<compile_context>
chip_gen: v6e
topology: v6e:2x2x1
jax: 0.10.0
libtpu: 0.0.40
codegen_flags: <defaults>
</compile_context>

<pallas_src>
import jax
import jax.numpy as jnp
import numpy as np
from jax.experimental import pallas as pl
from jax.experimental.pallas import tpu as pltpu


def _round_up(x, m):
    return ((x + m - 1) // m) * m


def _cdiv(a, b):
    return -(-a // b)


# ----------------------------------------------------------------------------- kernel

def _mynetwork_kernel(x_ref, w1_ref, b1_ref, w2_ref, b2_ref,
                      fw1_ref, fb1_ref, fw2_ref, fb2_ref, out_ref):
    B = x_ref.shape[0]
    cdt = w1_ref.dtype                       # MXU operand dtype (bf16 in production, f32 for checks)
    x = x_ref[...].astype(jnp.float32)       # (B, 28, 28)

    # ---- conv1 (1 -> 10, k=5, valid): ONE K-packed width-Toeplitz matmul --------------
    # LHS rows = (b, i) -> B*24 ; K = (di, w) -> 5*28 = 140 ; RHS cols = (j, oc) -> 240.
    win = jnp.concatenate([x[:, d:d + 24, :] for d in range(5)], axis=2)      # (B, 24, 140)
    a1 = jnp.dot(win.reshape(B * 24, 140).astype(cdt), w1_ref[...],
                 preferred_element_type=jnp.float32) + b1_ref[...]            # (B*24, 240) f32

    # ---- maxpool 2x2 + relu ------------------------------------------------------------
    # rows: pool adjacent row pairs
    r1 = a1.reshape(B * 12, 2, 240)
    rp1 = jnp.maximum(r1[:, 0, :], r1[:, 1, :])                               # (B*12, 240)
    # cols: pair-max with a 10-lane (one channel-group) rotate; keep the 240-lane layout.
    # Odd-column groups become don't-care lanes (zeroed rows in the conv2 weights).
    rot1 = jnp.concatenate([rp1[:, 10:], rp1[:, :10]], axis=1)
    h1 = jnp.maximum(jnp.maximum(rp1, rot1), 0.0)                             # (B*12, 240)

    # ---- conv2 (10 -> 20, k=5, valid): 5 accumulating width-Toeplitz matmuls ----------
    # K = 240 per slab (column-pool selection folded into the zero-expanded weights).
    h1b = h1.reshape(B, 12, 240)
    a2 = jnp.dot(h1b[:, 0:8, :].reshape(B * 8, 240).astype(cdt), w2_ref[0],
                 preferred_element_type=jnp.float32)
    for d in range(1, 5):
        a2 = a2 + jnp.dot(h1b[:, d:d + 8, :].reshape(B * 8, 240).astype(cdt), w2_ref[d],
                          preferred_element_type=jnp.float32)
    a2 = a2 + b2_ref[...]                                                     # (B*8, 160) f32

    # dropout(0.3): identity (eval-mode semantics)

    # ---- maxpool 2x2 + relu ------------------------------------------------------------
    r2 = a2.reshape(B * 4, 2, 160)
    rp2 = jnp.maximum(r2[:, 0, :], r2[:, 1, :])                               # (B*4, 160)
    rot2 = jnp.concatenate([rp2[:, 20:], rp2[:, :20]], axis=1)
    h2 = jnp.maximum(jnp.maximum(rp2, rot2), 0.0)                             # (B*4, 160)

    # ---- fc1 (320 -> 50): 4 accumulating dots over the spatial-row pieces -------------
    # (weights are split by spatial row and zero-expanded to the un-compacted 160 lanes)
    h2b = h2.reshape(B, 4, 160)
    z1 = jnp.dot(h2b[:, 0, :].astype(cdt), fw1_ref[0],
                 preferred_element_type=jnp.float32)
    for p in range(1, 4):
        z1 = z1 + jnp.dot(h2b[:, p, :].astype(cdt), fw1_ref[p],
                          preferred_element_type=jnp.float32)
    z1 = jnp.maximum(z1 + fb1_ref[...], 0.0)                                  # (B, 50)

    # ---- fc2 (50 -> 10, lane-padded to 128) + log_softmax (kept in f32) ----------------
    z2 = jnp.dot(z1.astype(cdt), fw2_ref[...],
                 preferred_element_type=jnp.float32) + fb2_ref[...]           # (B, 128)
    m = jnp.max(z2, axis=-1, keepdims=True)
    s = z2 - m
    lse = jnp.log(jnp.sum(jnp.exp(s), axis=-1, keepdims=True))
    out_ref[...] = (s - lse).astype(out_ref.dtype)


# ------------------------------------------------------------------ one-time weight prep

def _width_toeplitz(wk, out_w):
    """wk: (5, 5, ic, oc) conv weight indexed [di, dj, ic, oc].

    Returns (5, in_w*ic, out_w*oc) with
      W[di, w*ic + c_in, j*oc + c_out] = wk[di, w - j, c_in, c_out]  for 0 <= w-j < 5,
    built with gather + 0/1 mask only (bit-exact).
    """
    kk, _, icn, ocn = wk.shape
    in_w = out_w + kk - 1
    dj = np.arange(in_w)[:, None] - np.arange(out_w)[None, :]                 # (in_w, out_w)
    valid = ((dj >= 0) & (dj < kk)).astype(np.float32)
    djc = np.clip(dj, 0, kk - 1)
    g = wk[:, djc, :, :]                                                      # (5, in_w, out_w, ic, oc)
    g = g * jnp.asarray(valid)[None, :, :, None, None]
    g = jnp.transpose(g, (0, 1, 3, 2, 4))                                     # (5, in_w, ic, out_w, oc)
    return g.reshape(kk, in_w * icn, out_w * ocn)


def prepare_params(params, compute_dtype=jnp.bfloat16):
    """One-time conversion of the PyTorch-layout weights into kernel operands.

    Call once and reuse the result across forward calls: the Toeplitz build, transposes,
    pooling folds and lane padding are hoisted out of the per-call path.
    """
    cdt = jnp.dtype(compute_dtype)
    f32 = jnp.float32

    # conv1 -> K-packed (140, 240) width-Toeplitz operand (K = 5 row offsets x 28 cols).
    wk1 = jnp.transpose(jnp.asarray(params["conv1_w"], f32), (2, 3, 1, 0))    # (5,5,1,10)
    w1 = _width_toeplitz(wk1, 24).reshape(140, 240).astype(cdt)
    b1 = jnp.tile(jnp.asarray(params["conv1_b"], f32), 24).reshape(1, 240)

    # conv2 -> (5, 240, 160): rows zero-expanded 120 -> 240 so the kernel keeps h1 in the
    # un-compacted 240-lane layout after the folded column pool (odd columns hit zeros).
    wk2 = jnp.transpose(jnp.asarray(params["conv2_w"], f32), (2, 3, 1, 0))    # (5,5,10,20)
    w2t = _width_toeplitz(wk2, 8).reshape(5, 12, 1, 10, 160)
    w2 = jnp.concatenate([w2t, jnp.zeros_like(w2t)], axis=2).reshape(5, 240, 160).astype(cdt)
    b2 = jnp.tile(jnp.asarray(params["conv2_b"], f32), 8).reshape(1, 160)

    # fc1 -> (4, 160, 50): PyTorch (c,h,w) flatten order permuted to (h,w,c), split by the
    # spatial row h, and zero-expanded along w (4 -> 8) to match h2's 160-lane layout.
    f1 = jnp.asarray(params["fc1_w"], f32).reshape(50, 20, 4, 4)              # [n, c, h, w]
    f1 = jnp.transpose(f1, (2, 3, 1, 0))[:, :, None, :, :]                    # [h, w, 1, c, n]
    fw1 = jnp.concatenate([f1, jnp.zeros_like(f1)],
                          axis=2).reshape(4, 160, 50).astype(cdt)
    fb1 = jnp.asarray(params["fc1_b"], f32).reshape(1, 50)

    # fc2 -> (50, 128): logits lane-padded to 128; padded lanes pinned to -1e9 via the f32
    # bias so exp() underflows to 0 and log_softmax stays exact.
    fw2 = jnp.zeros((50, 128), cdt).at[:, :10].set(
        jnp.asarray(params["fc2_w"], f32).T.astype(cdt))
    fb2 = jnp.full((1, 128), -1e9, f32).at[0, :10].set(jnp.asarray(params["fc2_b"], f32))

    return (w1, b1, w2, b2, fw1, fb1, fw2, fb2)


# ----------------------------------------------------------------------------- wrapper

def my_network_apply(x_nchw, prep, *, batch_tile=256):
    """MyNetwork forward with prepared operands. x_nchw: (N,1,28,28) -> (N,10) log-probs."""
    w1, b1, w2, b2, fw1, fb1, fw2, fb2 = prep
    N = x_nchw.shape[0]
    assert x_nchw.shape[1:] == (1, 28, 28), x_nchw.shape
    cdt = w1.dtype

    # Batch tile: multiple of 8, and at least 2 grid steps whenever the batch allows it so
    # the single "parallel" grid axis can be sharded across both v7x TensorCores.  The
    # default (256) keeps peak in-kernel VMEM well under v7x's 64 MiB; on v5e/v6e
    # (128 MiB physical) batch_tile up to ~512 is a further small win.
    if N <= 8:
        bt = 8
    else:
        steps = max(2, _cdiv(N, batch_tile))
        bt = min(_round_up(_cdiv(N, steps), 8), _round_up(batch_tile, 8))
    grid_b = _cdiv(N, bt)
    n_pad = grid_b * bt

    # Drop the channel dim (free reshape) and ship the pixels in the MXU operand dtype
    # (bf16 halves the dominant HBM read).  The tail padding fuses with this cast under
    # jit, so it does not add an extra HBM pass.
    x = jnp.asarray(x_nchw).reshape(N, 28, 28).astype(cdt)
    if n_pad != N:
        x = jnp.pad(x, ((0, n_pad - N), (0, 0), (0, 0)))

    vmem_limit = int(min(96 << 20, max(48 << 20, bt * (224 << 10))))

    out = pl.pallas_call(
        _mynetwork_kernel,
        out_shape=jax.ShapeDtypeStruct((n_pad, 128), jnp.float32),
        grid=(grid_b,),
        in_specs=[
            pl.BlockSpec((bt, 28, 28), lambda i: (i, 0, 0)),     # x (batch tile)
            pl.BlockSpec((140, 240), lambda i: (0, 0)),          # conv1 Toeplitz (K-packed)
            pl.BlockSpec((1, 240), lambda i: (0, 0)),            # conv1 bias (tiled over cols)
            pl.BlockSpec((5, 240, 160), lambda i: (0, 0, 0)),    # conv2 Toeplitz (pool folded)
            pl.BlockSpec((1, 160), lambda i: (0, 0)),            # conv2 bias
            pl.BlockSpec((4, 160, 50), lambda i: (0, 0, 0)),     # fc1 (split + pool folded)
            pl.BlockSpec((1, 50), lambda i: (0, 0)),             # fc1 bias
            pl.BlockSpec((50, 128), lambda i: (0, 0)),           # fc2 (lane-padded)
            pl.BlockSpec((1, 128), lambda i: (0, 0)),            # fc2 bias (-1e9 pad pinning)
        ],
        out_specs=pl.BlockSpec((bt, 128), lambda i: (i, 0)),
        compiler_params=pltpu.CompilerParams(
            dimension_semantics=("parallel",),
            vmem_limit_bytes=vmem_limit),
    )(x, w1, b1, w2, b2, fw1, fb1, fw2, fb2)

    return out[:N, :10]


def my_network_forward(x_nchw, params, *, compute_dtype=jnp.bfloat16, batch_tile=256):
    """Convenience wrapper (re-runs the one-time prep; prefer prepare_params + apply)."""
    return my_network_apply(x_nchw, prepare_params(params, compute_dtype),
                            batch_tile=batch_tile)


# ------------------------------------------------------------------------ test utilities

def _init_params(key):
    """Deterministic init mimicking PyTorch's default U(-1/sqrt(fan_in), 1/sqrt(fan_in))."""
    ks = jax.random.split(key, 8)

    def u(k, shape, fan_in):
        bound = 1.0 / np.sqrt(fan_in)
        return jax.random.uniform(k, shape, jnp.float32, -bound, bound)

    return {
        "conv1_w": u(ks[0], (10, 1, 5, 5), 1 * 5 * 5),
        "conv1_b": u(ks[1], (10,), 1 * 5 * 5),
        "conv2_w": u(ks[2], (20, 10, 5, 5), 10 * 5 * 5),
        "conv2_b": u(ks[3], (20,), 10 * 5 * 5),
        "fc1_w": u(ks[4], (50, 320), 320),
        "fc1_b": u(ks[5], (50,), 320),
        "fc2_w": u(ks[6], (10, 50), 50),
        "fc2_b": u(ks[7], (10,), 50),
    }


def _reference_forward(x_nchw, params):
    """Pure-JAX reference mirroring the PyTorch module (eval mode)."""
    hp = jax.lax.Precision.HIGHEST
    y = jax.lax.conv_general_dilated(x_nchw, params["conv1_w"], (1, 1), "VALID",
                                     dimension_numbers=("NCHW", "OIHW", "NCHW"),
                                     precision=hp)
    y = y + params["conv1_b"][None, :, None, None]
    y = jax.lax.reduce_window(y, -jnp.inf, jax.lax.max, (1, 1, 2, 2), (1, 1, 2, 2), "VALID")
    y = jnp.maximum(y, 0.0)
    y = jax.lax.conv_general_dilated(y, params["conv2_w"], (1, 1), "VALID",
                                     dimension_numbers=("NCHW", "OIHW", "NCHW"),
                                     precision=hp)
    y = y + params["conv2_b"][None, :, None, None]
    y = jax.lax.reduce_window(y, -jnp.inf, jax.lax.max, (1, 1, 2, 2), (1, 1, 2, 2), "VALID")
    y = jnp.maximum(y, 0.0)
    y = y.reshape(y.shape[0], -1)
    y = jnp.maximum(jnp.dot(y, params["fc1_w"].T, precision=hp) + params["fc1_b"], 0.0)
    y = jnp.dot(y, params["fc2_w"].T, precision=hp) + params["fc2_b"]
    return jax.nn.log_softmax(y, axis=1)


if __name__ == "__main__":
    key = jax.random.PRNGKey(0)
    pkey, xkey = jax.random.split(key)
    params = _init_params(pkey)

    # 28x28 input is what the 320-feature flatten implies:
    # 28 -conv5-> 24 -pool-> 12 -conv5-> 8 -pool-> 4  (20 ch * 4 * 4 = 320).
    # N=13 exercises two grid steps plus the tail padding path.
    x = jax.random.normal(xkey, (13, 1, 28, 28), jnp.float32)

    ref = jax.block_until_ready(_reference_forward(x, params))

    # Production path: bf16 MXU operands, f32 accumulation / log_softmax.
    prep = prepare_params(params, compute_dtype=jnp.bfloat16)     # hoisted, one-time
    fwd = jax.jit(my_network_apply)
    logprobs = jax.block_until_ready(fwd(x, prep))

    assert logprobs.shape == (13, 10)
    assert bool(jnp.all(jnp.isfinite(logprobs)))
    assert bool(jnp.allclose(jnp.sum(jnp.exp(logprobs), axis=1), 1.0, atol=1e-3))
    err_bf16 = float(jnp.max(jnp.abs(logprobs - ref)))
    assert err_bf16 < 2.5e-2, f"bf16-operand path max abs err {err_bf16}"

    # Strict numerical parity check with f32 MXU operands (same kernel, f32 prep).
    prep32 = prepare_params(params, compute_dtype=jnp.float32)
    out32 = jax.block_until_ready(jax.jit(my_network_apply)(x, prep32))
    err_f32 = float(jnp.max(jnp.abs(out32 - ref)))
    assert err_f32 < 5e-3, f"f32-operand path max abs err {err_f32}"

    print("KERNEL_OK")
</pallas_src>

<mosaic_0001>
module attributes {stable_mosaic.version = 11 : i64} {
  func.func @_mynetwork_kernel(%arg0: i32, %arg1: memref<8x28x28xbf16, #tpu.memory_space<vmem>>, %arg2: memref<140x240xbf16, #tpu.memory_space<vmem>>, %arg3: memref<1x240xf32, #tpu.memory_space<vmem>>, %arg4: memref<5x240x160xbf16, #tpu.memory_space<vmem>>, %arg5: memref<1x160xf32, #tpu.memory_space<vmem>>, %arg6: memref<4x160x50xbf16, #tpu.memory_space<vmem>>, %arg7: memref<1x50xf32, #tpu.memory_space<vmem>>, %arg8: memref<50x128xbf16, #tpu.memory_space<vmem>>, %arg9: memref<1x128xf32, #tpu.memory_space<vmem>>, %arg10: memref<8x128xf32, #tpu.memory_space<vmem>>) attributes {dimension_semantics = [#tpu.dimension_semantics<parallel>], iteration_bounds = array<i64: 2>, scalar_prefetch = 0 : i64, scratch_operands = 0 : i64, tpu.core_type = #tpu.core_type<tc>, window_params = [{transform_indices = @transform_0, window_bounds = array<i64: 8, 28, 28>}, {pipeline_mode = #tpu.pipeline_mode<synchronous>, transform_indices = @transform_1, window_bounds = array<i64: 140, 240>}, {pipeline_mode = #tpu.pipeline_mode<synchronous>, transform_indices = @transform_2, window_bounds = array<i64: 1, 240>}, {pipeline_mode = #tpu.pipeline_mode<synchronous>, transform_indices = @transform_3, window_bounds = array<i64: 5, 240, 160>}, {pipeline_mode = #tpu.pipeline_mode<synchronous>, transform_indices = @transform_4, window_bounds = array<i64: 1, 160>}, {pipeline_mode = #tpu.pipeline_mode<synchronous>, transform_indices = @transform_5, window_bounds = array<i64: 4, 160, 50>}, {pipeline_mode = #tpu.pipeline_mode<synchronous>, transform_indices = @transform_6, window_bounds = array<i64: 1, 50>}, {pipeline_mode = #tpu.pipeline_mode<synchronous>, transform_indices = @transform_7, window_bounds = array<i64: 50, 128>}, {pipeline_mode = #tpu.pipeline_mode<synchronous>, transform_indices = @transform_8, window_bounds = array<i64: 1, 128>}, {transform_indices = @transform_9, window_bounds = array<i64: 8, 128>}]} {
    %c0 = arith.constant 0 : index
    %c0_0 = arith.constant 0 : index
    %c0_1 = arith.constant 0 : index
    %0 = vector.load %arg1[%c0, %c0_0, %c0_1] : memref<8x28x28xbf16, #tpu.memory_space<vmem>>, vector<8x28x28xbf16>
    %1 = arith.extf %0 : vector<8x28x28xbf16> to vector<8x28x28xf32>
    %2 = vector.extract_strided_slice %1 {offsets = [0, 0, 0], sizes = [8, 24, 28], strides = [1, 1, 1]} : vector<8x28x28xf32> to vector<8x24x28xf32>
    %3 = vector.extract_strided_slice %1 {offsets = [0, 1, 0], sizes = [8, 24, 28], strides = [1, 1, 1]} : vector<8x28x28xf32> to vector<8x24x28xf32>
    %4 = vector.extract_strided_slice %1 {offsets = [0, 2, 0], sizes = [8, 24, 28], strides = [1, 1, 1]} : vector<8x28x28xf32> to vector<8x24x28xf32>
    %5 = vector.extract_strided_slice %1 {offsets = [0, 3, 0], sizes = [8, 24, 28], strides = [1, 1, 1]} : vector<8x28x28xf32> to vector<8x24x28xf32>
    %6 = vector.extract_strided_slice %1 {offsets = [0, 4, 0], sizes = [8, 24, 28], strides = [1, 1, 1]} : vector<8x28x28xf32> to vector<8x24x28xf32>
    %7 = tpu.concatenate %2, %3, %4, %5, %6 in 2 : vector<8x24x28xf32>, vector<8x24x28xf32>, vector<8x24x28xf32>, vector<8x24x28xf32>, vector<8x24x28xf32> -> vector<8x24x140xf32>
    %8 = vector.shape_cast %7 : vector<8x24x140xf32> to vector<192x140xf32>
    %9 = arith.truncf %8 : vector<192x140xf32> to vector<192x140xbf16>
    %c0_2 = arith.constant 0 : index
    %c0_3 = arith.constant 0 : index
    %10 = vector.load %arg2[%c0_2, %c0_3] : memref<140x240xbf16, #tpu.memory_space<vmem>>, vector<140x240xbf16>
    %cst = arith.constant dense<0.000000e+00> : vector<192x240xf32>
    %11 = tpu.matmul %9, %10, %cst {dimension_numbers = #tpu.dot_dimension_numbers<[1], [0], [0], [1], [0, 0, 1, 1], [], []>} : vector<192x140xbf16>, vector<140x240xbf16>, vector<192x240xf32> -> vector<192x240xf32>
    %c0_4 = arith.constant 0 : index
    %c0_5 = arith.constant 0 : index
    %12 = vector.load %arg3[%c0_4, %c0_5] : memref<1x240xf32, #tpu.memory_space<vmem>>, vector<1x240xf32>
    %13 = vector.broadcast %12 : vector<1x240xf32> to vector<192x240xf32>
    %14 = arith.addf %11, %13 : vector<192x240xf32>
    %15 = vector.shape_cast %14 : vector<192x240xf32> to vector<96x2x240xf32>
    %16 = vector.extract_strided_slice %15 {offsets = [0, 0, 0], sizes = [96, 1, 240], strides = [1, 1, 1]} : vector<96x2x240xf32> to vector<96x1x240xf32>
    %17 = vector.shape_cast %16 : vector<96x1x240xf32> to vector<96x240xf32>
    %18 = vector.extract_strided_slice %15 {offsets = [0, 1, 0], sizes = [96, 1, 240], strides = [1, 1, 1]} : vector<96x2x240xf32> to vector<96x1x240xf32>
    %19 = vector.shape_cast %18 : vector<96x1x240xf32> to vector<96x240xf32>
    %20 = arith.maximumf %17, %19 : vector<96x240xf32>
    %21 = vector.extract_strided_slice %20 {offsets = [0, 10], sizes = [96, 230], strides = [1, 1]} : vector<96x240xf32> to vector<96x230xf32>
    %22 = vector.extract_strided_slice %20 {offsets = [0, 0], sizes = [96, 10], strides = [1, 1]} : vector<96x240xf32> to vector<96x10xf32>
    %23 = tpu.concatenate %21, %22 in 1 : vector<96x230xf32>, vector<96x10xf32> -> vector<96x240xf32>
    %24 = arith.maximumf %20, %23 : vector<96x240xf32>
    %cst_6 = arith.constant 0.000000e+00 : f32
    %25 = vector.broadcast %cst_6 : f32 to vector<96x240xf32>
    %26 = arith.maximumf %24, %25 : vector<96x240xf32>
    %27 = vector.shape_cast %26 : vector<96x240xf32> to vector<8x12x240xf32>
    %28 = vector.extract_strided_slice %27 {offsets = [0, 0, 0], sizes = [8, 8, 240], strides = [1, 1, 1]} : vector<8x12x240xf32> to vector<8x8x240xf32>
    %29 = vector.shape_cast %28 : vector<8x8x240xf32> to vector<64x240xf32>
    %30 = arith.truncf %29 : vector<64x240xf32> to vector<64x240xbf16>
    %c0_7 = arith.constant 0 : index
    %c0_8 = arith.constant 0 : index
    %c0_9 = arith.constant 0 : index
    %31 = vector.load %arg4[%c0_7, %c0_8, %c0_9] : memref<5x240x160xbf16, #tpu.memory_space<vmem>>, vector<1x240x160xbf16>
    %32 = vector.shape_cast %31 : vector<1x240x160xbf16> to vector<240x160xbf16>
    %cst_10 = arith.constant dense<0.000000e+00> : vector<64x160xf32>
    %33 = tpu.matmul %30, %32, %cst_10 {dimension_numbers = #tpu.dot_dimension_numbers<[1], [0], [0], [1], [0, 0, 1, 1], [], []>} : vector<64x240xbf16>, vector<240x160xbf16>, vector<64x160xf32> -> vector<64x160xf32>
    %34 = vector.extract_strided_slice %27 {offsets = [0, 1, 0], sizes = [8, 8, 240], strides = [1, 1, 1]} : vector<8x12x240xf32> to vector<8x8x240xf32>
    %35 = vector.shape_cast %34 : vector<8x8x240xf32> to vector<64x240xf32>
    %36 = arith.truncf %35 : vector<64x240xf32> to vector<64x240xbf16>
    %c1 = arith.constant 1 : index
    %c0_11 = arith.constant 0 : index
    %c0_12 = arith.constant 0 : index
    %37 = vector.load %arg4[%c1, %c0_11, %c0_12] : memref<5x240x160xbf16, #tpu.memory_space<vmem>>, vector<1x240x160xbf16>
    %38 = vector.shape_cast %37 : vector<1x240x160xbf16> to vector<240x160xbf16>
    %cst_13 = arith.constant dense<0.000000e+00> : vector<64x160xf32>
    %39 = tpu.matmul %36, %38, %cst_13 {dimension_numbers = #tpu.dot_dimension_numbers<[1], [0], [0], [1], [0, 0, 1, 1], [], []>} : vector<64x240xbf16>, vector<240x160xbf16>, vector<64x160xf32> -> vector<64x160xf32>
    %40 = arith.addf %33, %39 : vector<64x160xf32>
    %41 = vector.extract_strided_slice %27 {offsets = [0, 2, 0], sizes = [8, 8, 240], strides = [1, 1, 1]} : vector<8x12x240xf32> to vector<8x8x240xf32>
    %42 = vector.shape_cast %41 : vector<8x8x240xf32> to vector<64x240xf32>
    %43 = arith.truncf %42 : vector<64x240xf32> to vector<64x240xbf16>
    %c2 = arith.constant 2 : index
    %c0_14 = arith.constant 0 : index
    %c0_15 = arith.constant 0 : index
    %44 = vector.load %arg4[%c2, %c0_14, %c0_15] : memref<5x240x160xbf16, #tpu.memory_space<vmem>>, vector<1x240x160xbf16>
    %45 = vector.shape_cast %44 : vector<1x240x160xbf16> to vector<240x160xbf16>
    %cst_16 = arith.constant dense<0.000000e+00> : vector<64x160xf32>
    %46 = tpu.matmul %43, %45, %cst_16 {dimension_numbers = #tpu.dot_dimension_numbers<[1], [0], [0], [1], [0, 0, 1, 1], [], []>} : vector<64x240xbf16>, vector<240x160xbf16>, vector<64x160xf32> -> vector<64x160xf32>
    %47 = arith.addf %40, %46 : vector<64x160xf32>
    %48 = vector.extract_strided_slice %27 {offsets = [0, 3, 0], sizes = [8, 8, 240], strides = [1, 1, 1]} : vector<8x12x240xf32> to vector<8x8x240xf32>
    %49 = vector.shape_cast %48 : vector<8x8x240xf32> to vector<64x240xf32>
    %50 = arith.truncf %49 : vector<64x240xf32> to vector<64x240xbf16>
    %c3 = arith.constant 3 : index
    %c0_17 = arith.constant 0 : index
    %c0_18 = arith.constant 0 : index
    %51 = vector.load %arg4[%c3, %c0_17, %c0_18] : memref<5x240x160xbf16, #tpu.memory_space<vmem>>, vector<1x240x160xbf16>
    %52 = vector.shape_cast %51 : vector<1x240x160xbf16> to vector<240x160xbf16>
    %cst_19 = arith.constant dense<0.000000e+00> : vector<64x160xf32>
    %53 = tpu.matmul %50, %52, %cst_19 {dimension_numbers = #tpu.dot_dimension_numbers<[1], [0], [0], [1], [0, 0, 1, 1], [], []>} : vector<64x240xbf16>, vector<240x160xbf16>, vector<64x160xf32> -> vector<64x160xf32>
    %54 = arith.addf %47, %53 : vector<64x160xf32>
    %55 = vector.extract_strided_slice %27 {offsets = [0, 4, 0], sizes = [8, 8, 240], strides = [1, 1, 1]} : vector<8x12x240xf32> to vector<8x8x240xf32>
    %56 = vector.shape_cast %55 : vector<8x8x240xf32> to vector<64x240xf32>
    %57 = arith.truncf %56 : vector<64x240xf32> to vector<64x240xbf16>
    %c4 = arith.constant 4 : index
    %c0_20 = arith.constant 0 : index
    %c0_21 = arith.constant 0 : index
    %58 = vector.load %arg4[%c4, %c0_20, %c0_21] : memref<5x240x160xbf16, #tpu.memory_space<vmem>>, vector<1x240x160xbf16>
    %59 = vector.shape_cast %58 : vector<1x240x160xbf16> to vector<240x160xbf16>
    %cst_22 = arith.constant dense<0.000000e+00> : vector<64x160xf32>
    %60 = tpu.matmul %57, %59, %cst_22 {dimension_numbers = #tpu.dot_dimension_numbers<[1], [0], [0], [1], [0, 0, 1, 1], [], []>} : vector<64x240xbf16>, vector<240x160xbf16>, vector<64x160xf32> -> vector<64x160xf32>
    %61 = arith.addf %54, %60 : vector<64x160xf32>
    %c0_23 = arith.constant 0 : index
    %c0_24 = arith.constant 0 : index
    %62 = vector.load %arg5[%c0_23, %c0_24] : memref<1x160xf32, #tpu.memory_space<vmem>>, vector<1x160xf32>
    %63 = vector.broadcast %62 : vector<1x160xf32> to vector<64x160xf32>
    %64 = arith.addf %61, %63 : vector<64x160xf32>
    %65 = vector.shape_cast %64 : vector<64x160xf32> to vector<32x2x160xf32>
    %66 = vector.extract_strided_slice %65 {offsets = [0, 0, 0], sizes = [32, 1, 160], strides = [1, 1, 1]} : vector<32x2x160xf32> to vector<32x1x160xf32>
    %67 = vector.shape_cast %66 : vector<32x1x160xf32> to vector<32x160xf32>
    %68 = vector.extract_strided_slice %65 {offsets = [0, 1, 0], sizes = [32, 1, 160], strides = [1, 1, 1]} : vector<32x2x160xf32> to vector<32x1x160xf32>
    %69 = vector.shape_cast %68 : vector<32x1x160xf32> to vector<32x160xf32>
    %70 = arith.maximumf %67, %69 : vector<32x160xf32>
    %71 = vector.extract_strided_slice %70 {offsets = [0, 20], sizes = [32, 140], strides = [1, 1]} : vector<32x160xf32> to vector<32x140xf32>
    %72 = vector.extract_strided_slice %70 {offsets = [0, 0], sizes = [32, 20], strides = [1, 1]} : vector<32x160xf32> to vector<32x20xf32>
    %73 = tpu.concatenate %71, %72 in 1 : vector<32x140xf32>, vector<32x20xf32> -> vector<32x160xf32>
    %74 = arith.maximumf %70, %73 : vector<32x160xf32>
    %cst_25 = arith.constant 0.000000e+00 : f32
    %75 = vector.broadcast %cst_25 : f32 to vector<32x160xf32>
    %76 = arith.maximumf %74, %75 : vector<32x160xf32>
    %77 = vector.shape_cast %76 : vector<32x160xf32> to vector<8x4x160xf32>
    %78 = vector.extract_strided_slice %77 {offsets = [0, 0, 0], sizes = [8, 1, 160], strides = [1, 1, 1]} : vector<8x4x160xf32> to vector<8x1x160xf32>
    %79 = vector.shape_cast %78 : vector<8x1x160xf32> to vector<8x160xf32>
    %80 = arith.truncf %79 : vector<8x160xf32> to vector<8x160xbf16>
    %c0_26 = arith.constant 0 : index
    %c0_27 = arith.constant 0 : index
    %c0_28 = arith.constant 0 : index
    %81 = vector.load %arg6[%c0_26, %c0_27, %c0_28] : memref<4x160x50xbf16, #tpu.memory_space<vmem>>, vector<1x160x50xbf16>
    %82 = vector.shape_cast %81 : vector<1x160x50xbf16> to vector<160x50xbf16>
    %cst_29 = arith.constant dense<0.000000e+00> : vector<8x50xf32>
    %83 = tpu.matmul %80, %82, %cst_29 {dimension_numbers = #tpu.dot_dimension_numbers<[1], [0], [0], [1], [0, 0, 1, 1], [], []>} : vector<8x160xbf16>, vector<160x50xbf16>, vector<8x50xf32> -> vector<8x50xf32>
    %84 = vector.extract_strided_slice %77 {offsets = [0, 1, 0], sizes = [8, 1, 160], strides = [1, 1, 1]} : vector<8x4x160xf32> to vector<8x1x160xf32>
    %85 = vector.shape_cast %84 : vector<8x1x160xf32> to vector<8x160xf32>
    %86 = arith.truncf %85 : vector<8x160xf32> to vector<8x160xbf16>
    %c1_30 = arith.constant 1 : index
    %c0_31 = arith.constant 0 : index
    %c0_32 = arith.constant 0 : index
    %87 = vector.load %arg6[%c1_30, %c0_31, %c0_32] : memref<4x160x50xbf16, #tpu.memory_space<vmem>>, vector<1x160x50xbf16>
    %88 = vector.shape_cast %87 : vector<1x160x50xbf16> to vector<160x50xbf16>
    %cst_33 = arith.constant dense<0.000000e+00> : vector<8x50xf32>
    %89 = tpu.matmul %86, %88, %cst_33 {dimension_numbers = #tpu.dot_dimension_numbers<[1], [0], [0], [1], [0, 0, 1, 1], [], []>} : vector<8x160xbf16>, vector<160x50xbf16>, vector<8x50xf32> -> vector<8x50xf32>
    %90 = arith.addf %83, %89 : vector<8x50xf32>
    %91 = vector.extract_strided_slice %77 {offsets = [0, 2, 0], sizes = [8, 1, 160], strides = [1, 1, 1]} : vector<8x4x160xf32> to vector<8x1x160xf32>
    %92 = vector.shape_cast %91 : vector<8x1x160xf32> to vector<8x160xf32>
    %93 = arith.truncf %92 : vector<8x160xf32> to vector<8x160xbf16>
    %c2_34 = arith.constant 2 : index
    %c0_35 = arith.constant 0 : index
    %c0_36 = arith.constant 0 : index
    %94 = vector.load %arg6[%c2_34, %c0_35, %c0_36] : memref<4x160x50xbf16, #tpu.memory_space<vmem>>, vector<1x160x50xbf16>
    %95 = vector.shape_cast %94 : vector<1x160x50xbf16> to vector<160x50xbf16>
    %cst_37 = arith.constant dense<0.000000e+00> : vector<8x50xf32>
    %96 = tpu.matmul %93, %95, %cst_37 {dimension_numbers = #tpu.dot_dimension_numbers<[1], [0], [0], [1], [0, 0, 1, 1], [], []>} : vector<8x160xbf16>, vector<160x50xbf16>, vector<8x50xf32> -> vector<8x50xf32>
    %97 = arith.addf %90, %96 : vector<8x50xf32>
    %98 = vector.extract_strided_slice %77 {offsets = [0, 3, 0], sizes = [8, 1, 160], strides = [1, 1, 1]} : vector<8x4x160xf32> to vector<8x1x160xf32>
    %99 = vector.shape_cast %98 : vector<8x1x160xf32> to vector<8x160xf32>
    %100 = arith.truncf %99 : vector<8x160xf32> to vector<8x160xbf16>
    %c3_38 = arith.constant 3 : index
    %c0_39 = arith.constant 0 : index
    %c0_40 = arith.constant 0 : index
    %101 = vector.load %arg6[%c3_38, %c0_39, %c0_40] : memref<4x160x50xbf16, #tpu.memory_space<vmem>>, vector<1x160x50xbf16>
    %102 = vector.shape_cast %101 : vector<1x160x50xbf16> to vector<160x50xbf16>
    %cst_41 = arith.constant dense<0.000000e+00> : vector<8x50xf32>
    %103 = tpu.matmul %100, %102, %cst_41 {dimension_numbers = #tpu.dot_dimension_numbers<[1], [0], [0], [1], [0, 0, 1, 1], [], []>} : vector<8x160xbf16>, vector<160x50xbf16>, vector<8x50xf32> -> vector<8x50xf32>
    %104 = arith.addf %97, %103 : vector<8x50xf32>
    %c0_42 = arith.constant 0 : index
    %c0_43 = arith.constant 0 : index
    %105 = vector.load %arg7[%c0_42, %c0_43] : memref<1x50xf32, #tpu.memory_space<vmem>>, vector<1x50xf32>
    %106 = vector.broadcast %105 : vector<1x50xf32> to vector<8x50xf32>
    %107 = arith.addf %104, %106 : vector<8x50xf32>
    %cst_44 = arith.constant 0.000000e+00 : f32
    %108 = vector.broadcast %cst_44 : f32 to vector<8x50xf32>
    %109 = arith.maximumf %107, %108 : vector<8x50xf32>
    %110 = arith.truncf %109 : vector<8x50xf32> to vector<8x50xbf16>
    %c0_45 = arith.constant 0 : index
    %c0_46 = arith.constant 0 : index
    %111 = vector.load %arg8[%c0_45, %c0_46] : memref<50x128xbf16, #tpu.memory_space<vmem>>, vector<50x128xbf16>
    %cst_47 = arith.constant dense<0.000000e+00> : vector<8x128xf32>
    %112 = tpu.matmul %110, %111, %cst_47 {dimension_numbers = #tpu.dot_dimension_numbers<[1], [0], [0], [1], [0, 0, 1, 1], [], []>} : vector<8x50xbf16>, vector<50x128xbf16>, vector<8x128xf32> -> vector<8x128xf32>
    %c0_48 = arith.constant 0 : index
    %c0_49 = arith.constant 0 : index
    %113 = vector.load %arg9[%c0_48, %c0_49] : memref<1x128xf32, #tpu.memory_space<vmem>>, vector<1x128xf32>
    %114 = vector.broadcast %113 : vector<1x128xf32> to vector<8x128xf32>
    %115 = arith.addf %112, %114 : vector<8x128xf32>
    %cst_50 = arith.constant dense<0xFF800000> : vector<8xf32>
    %116 = vector.multi_reduction <maximumf>, %115, %cst_50 [1] : vector<8x128xf32> to vector<8xf32>
    %117 = vector.shape_cast %116 : vector<8xf32> to vector<8x1xf32>
    %118 = vector.broadcast %117 : vector<8x1xf32> to vector<8x128xf32>
    %119 = arith.subf %115, %118 : vector<8x128xf32>
    %120 = math.exp %119 : vector<8x128xf32>
    %cst_51 = arith.constant dense<0.000000e+00> : vector<8xf32>
    %121 = vector.multi_reduction <add>, %120, %cst_51 [1] : vector<8x128xf32> to vector<8xf32>
    %122 = vector.shape_cast %121 : vector<8xf32> to vector<8x1xf32>
    %123 = math.log %122 : vector<8x1xf32>
    %124 = vector.broadcast %123 : vector<8x1xf32> to vector<8x128xf32>
    %125 = arith.subf %119, %124 : vector<8x128xf32>
    %c0_52 = arith.constant 0 : index
    %c0_53 = arith.constant 0 : index
    %126 = vector.load %arg10[%c0_52, %c0_53] : memref<8x128xf32, #tpu.memory_space<vmem>>, vector<8x128xf32>
    tpu.vector_store %arg10[%c0_52, %c0_53], %125 {strides = array<i32>} : memref<8x128xf32, #tpu.memory_space<vmem>>, vector<8x128xf32>,
    return
  }
  func.func @transform_0(%arg0: i32) -> (i32, i32, i32) {
    %c0_i32 = arith.constant 0 : i32
    %c0_i32_0 = arith.constant 0 : i32
    %c0_i32_1 = arith.constant 0 : i32
    return %arg0, %c0_i32, %c0_i32_0 : i32, i32, i32
  }
  func.func @transform_1(%arg0: i32) -> (i32, i32) {
    %c0_i32 = arith.constant 0 : i32
    %c0_i32_0 = arith.constant 0 : i32
    %c0_i32_1 = arith.constant 0 : i32
    return %c0_i32, %c0_i32_0 : i32, i32
  }
  func.func @transform_2(%arg0: i32) -> (i32, i32) {
    %c0_i32 = arith.constant 0 : i32
    %c0_i32_0 = arith.constant 0 : i32
    %c0_i32_1 = arith.constant 0 : i32
    return %c0_i32, %c0_i32_0 : i32, i32
  }
  func.func @transform_3(%arg0: i32) -> (i32, i32, i32) {
    %c0_i32 = arith.constant 0 : i32
    %c0_i32_0 = arith.constant 0 : i32
    %c0_i32_1 = arith.constant 0 : i32
    %c0_i32_2 = arith.constant 0 : i32
    return %c0_i32, %c0_i32_0, %c0_i32_1 : i32, i32, i32
  }
  func.func @transform_4(%arg0: i32) -> (i32, i32) {
    %c0_i32 = arith.constant 0 : i32
    %c0_i32_0 = arith.constant 0 : i32
    %c0_i32_1 = arith.constant 0 : i32
    return %c0_i32, %c0_i32_0 : i32, i32
  }
  func.func @transform_5(%arg0: i32) -> (i32, i32, i32) {
    %c0_i32 = arith.constant 0 : i32
    %c0_i32_0 = arith.constant 0 : i32
    %c0_i32_1 = arith.constant 0 : i32
    %c0_i32_2 = arith.constant 0 : i32
    return %c0_i32, %c0_i32_0, %c0_i32_1 : i32, i32, i32
  }
  func.func @transform_6(%arg0: i32) -> (i32, i32) {
    %c0_i32 = arith.constant 0 : i32
    %c0_i32_0 = arith.constant 0 : i32
    %c0_i32_1 = arith.constant 0 : i32
    return %c0_i32, %c0_i32_0 : i32, i32
  }
  func.func @transform_7(%arg0: i32) -> (i32, i32) {
    %c0_i32 = arith.constant 0 : i32
    %c0_i32_0 = arith.constant 0 : i32
    %c0_i32_1 = arith.constant 0 : i32
    return %c0_i32, %c0_i32_0 : i32, i32
  }
  func.func @transform_8(%arg0: i32) -> (i32, i32) {
    %c0_i32 = arith.constant 0 : i32
    %c0_i32_0 = arith.constant 0 : i32
    %c0_i32_1 = arith.constant 0 : i32
    return %c0_i32, %c0_i32_0 : i32, i32
  }
  func.func @transform_9(%arg0: i32) -> (i32, i32) {
    %c0_i32 = arith.constant 0 : i32
    %c0_i32_0 = arith.constant 0 : i32
    return %arg0, %c0_i32 : i32, i32
  }
}

</mosaic_0001>

<bundles_post_ra>
// kernel: my_network_apply.1
= control target key start
LH: loop header
LB: loop body
LE: loop exit
PB: predicated region body
PF: predicated region fallthrough
CT: control target
= control target key end

     0   :  { %14 = vsyncpa [#allocation3], 0  ;;  %s17459_s0 = inlined_call_operand.vmem [shape: bf16[16,28,28], index: 0, kind: input, shape index: {}]   ;;  %s17460_s1 = inlined_call_operand.vmem [shape: bf16[140,240], index: 1, kind: input, shape index: {}]   ;;  %s17461_s2 = inlined_call_operand.vmem [shape: f32[1,240], index: 2, kind: input, shape index: {}]   ;;  %s17462_s3 = inlined_call_operand.vmem [shape: bf16[5,240,160], index: 3, kind: input, shape index: {}]   ;;  %s17463_s4 = inlined_call_operand.vmem [shape: f32[1,160], index: 4, kind: input, shape index: {}]   ;;  %s17464_s5 = inlined_call_operand.vmem [shape: bf16[4,160,50], index: 5, kind: input, shape index: {}]   ;;  %s17465_s6 = inlined_call_operand.vmem [shape: f32[1,50], index: 6, kind: input, shape index: {}]   ;;  %s17466_s7 = inlined_call_operand.vmem [shape: bf16[50,128], index: 7, kind: input, shape index: {}]   ;;  %s17467_s8 = inlined_call_operand.vmem [shape: f32[1,128], index: 8, kind: input, shape index: {}]   ;;  %s17468_s9 = inlined_call_operand.hbm [shape: f32[16,128], index: 9, kind: output, shape index: {}]  }
   0x1   :  { %16 = vsyncpa [#allocation3 + $0x1], 0  ;;  %s11870_s30 = smov 0   ;;  %s11872_s10 = smov 0  }
   0x2   :  { %s11874_s11 = smov 0   ;;  %s11876_s12 = smov 0  }
   0x3 LB: > { %s11891_s13 = sadd.s32 4294967295, %s11805_s12   ;;  %s10525_s14 = sadd.s32 4294967294, %s11805_s12   ;;  %s11805_s12 = sphi %s11876_s12, %s18681_s12   ;;  %s11801_s11 = sphi %s11874_s11, %s18680_s11   ;;  %s11797_s10 = sphi %s11872_s10, %s18679_s10   ;;  %s11793_s30 = sphi %s11870_s30, %s18678_s30  }
   0x4   : > { %s11895_s15 = sadd.s32 1, %s11805_s12   ;;  %s223_s16 = sadd.s32 1, %s11801_s11 }
   0x5   : > { %s220_s17 = ssub.s32 %s11805_s12, %s11895_s15  ;;  %p233_p0 = scmp.ne.s32.totalorder %s11801_s11, %s11797_s10 }
   0x6   : > { %p221_p1 = scmp.eq.s32.totalorder %s220_s17, 0  ;;  %p234_p2 = scmp.eq.s32.totalorder %s11891_s13, 1 }
   0x7   : > { %p239_p3 = scmp.ne.s32.totalorder %s11797_s10, %s11793_s30  ;;  %p240_p4 = scmp.eq.s32.totalorder %s10525_s14, 1 }
   0x8   : > { %s11906_s18 = scalar_select %p221_p1, %s11801_s11, %s223_s16  }
   0x9   : > { %p11908_p5 = por %p234_p2, %p233_p0  ;;  %p11912_p6 = por %p240_p4, %p239_p3 }
   0xa   : > { %p10528_p7 = scmp.ge.s32.totalorder %s11805_s12, 1  ;;  %p292_p8 = scmp.lt.s32.totalorder %s11805_s12, 3 }
   0xc   : > { %p293_p9 = pnand %p10528_p7, %p292_p8 }
   0xe   : > { %296 = sbr.rel (%p293_p9) target bundleno = 2256 (0x8d0), region = 56 }
  0x13   : > { %s10530_s21 = sshll.u32 %s11891_s13, 3  ;;  %v11445_v0 = vld [vmem:[%s17460_s1 + $0x74] ss:$8 sps:$4 sm:$0xff]   ;;  %v11447_v1 = vld [vmem:[%s17460_s1 + $0x70] ss:$8 sps:$4 sm:$0xff]   ;;  %vm433_vm0 = vcmask 1046528  }
  0x14   : > { %p330_p10 = scmp.lt.s32.totalorder %s10530_s21, 15  ;;  %1234 = vmatprep.subr.bf16.mxu0 %v11445_v0  ;;  %v11448_v2 = vld [vmem:[%s17460_s1 + $0x64] ss:$8 sps:$4 sm:$0xff]   ;;  %v11450_v3 = vld [vmem:[%s17460_s1 + $0x60] ss:$8 sps:$4 sm:$0xff]   ;;  %vm691_vm1 = vcmask 1044480  }
  0x15   : > { %1235 = vmatpush1.bf16.msra.mxu0 %v11447_v1  ;;  %v11451_v4 = vld [vmem:[%s17460_s1 + $0x54] ss:$8 sps:$4 sm:$0xff]   ;;  %vm562_vm2 = vcmask 1045504   ;;  %vm820_vm3 = vcmask 1043456   ;;  %v11453_v14 = vld [vmem:[%s17460_s1 + $0x50] ss:$8 sps:$4 sm:$0xff]  }
  0x16   : > { %s18683_s21 = smov (!%p330_p10, %s10530_s21), 15  ;;  %1236 = vmatprep.subr.bf16.mxu0 %v11448_v2  ;;  %v11454_v19 = vld [vmem:[%s17460_s1 + $0x44] ss:$8 sps:$4 sm:$0xff]   ;;  %v11456_v32 = vld [vmem:[%s17460_s1 + $0x40] ss:$8 sps:$4 sm:$0xff]   ;;  %s11808_s16 = smov 84  }
  0x17   : > { %s11097_s14 = sshll.u32 %s18683_s21, 4  ;;  %v11457_v49 = vld [vmem:[%s17460_s1 + $0x34] ss:$8 sps:$4 sm:$0xff]   ;;  %v11459_v50 = vld [vmem:[%s17460_s1 + $0x30] ss:$8 sps:$4 sm:$0xff]   ;;  %s11809_s27 = smov 56  }
  0x18   : > { %s11937_s24 = scalar_lea.vmem %s17459_s0, %s11097_s14  ;;  %s11807_s14 = smov 28   ;;  %v11460_v55 = vld [vmem:[%s17460_s1 + $0x24] ss:$8 sps:$4 sm:$0xff]   ;;  %vm949_vm4 = vcmask 228352   ;;  %vm974_vm5 = vcmask 457728   ;;  %vm999_vm6 = vcmask 687104  }
  0x19   : > { %v11099_v5 = vld [vmem:[%s11937_s24] sm:$0xff]   ;;  %v339_v6 = vld [vmem:[%s11937_s24 + $0x8] ss:$16 sps:$4 sm:$0xff]   ;;  %v340_v7 = vld [vmem:[%s11937_s24 + $0xc] sm:$0x3]  ;;  %1237 = vmatpush1.bf16.msra.mxu0 %v11450_v3  ;;  %s11810_s28 = smov 112  }
  0x1a   : > { %v11942_v8 = vunpack.c.l.bf16 %v11099_v5  ;;  %v11944_v9 = vunpack.c.h.bf16 %v11099_v5  ;;  %v11946_v10 = vunpack.c.l.bf16 %v339_v6  ;;  %v11130_v11 = vld [vmem:[%s11937_s24 + $0x10] sm:$0xff]   ;;  %v11949_v12 = vunpack.c.l.bf16 %v340_v7  ;;  %v344_v13 = vld [vmem:[%s11937_s24 + $0x1c] sm:$0x3]  ;;  %1238 = vmatprep.subr.bf16.mxu0 %v11451_v4  ;;  %v11131_v4 = vld [vmem:[%s11937_s24 + $0x20] sm:$0xff]   ;;  %s11815_s29 = smov 12  }
  0x1b   : > { %v11955_v15 = vunpack.c.l.bf16 %v11130_v11  ;;  %v11957_v16 = vunpack.c.h.bf16 %v11130_v11  ;;  %v11959_v17 = vunpack.c.h.bf16 %v339_v6  ;;  %v11961_v18 = vunpack.c.l.bf16 %v344_v13  ;;  %v11462_v5 = vld [vmem:[%s17460_s1 + $0x20] ss:$8 sps:$4 sm:$0xff]   ;;  %v11463_v6 = vld [vmem:[%s17460_s1 + $0x14] ss:$8 sps:$4 sm:$0xff]  }
  0x1c   : > { %v434_v20 = vrot.slane %v11942_v8, 1  ;;  %v435_v21 = vrot.slane %v11944_v9, 1  ;;  %v437_v22 = vrot.slane %v11946_v10, 1  ;;  %v692_v23 = vrot.slane %v11942_v8, 3 }
  0x1d   : > { %v693_v24 = vrot.slane %v11944_v9, 3  ;;  %v695_v25 = vrot.slane %v11946_v10, 3  ;;  %v563_v26 = vrot.slane %v11942_v8, 2  ;;  %v564_v27 = vrot.slane %v11944_v9, 2  ;;  %1239 = vmatpush1.bf16.msra.mxu0 %v11453_v14  ;;  %v12032_v14 = vld [vmem:[%s11937_s24 + $0x28] ss:$16 sps:$4 sm:$0xff]  }
  0x1e   : > { %v436_v28 = vsel %vm433_vm0, %v434_v20, %v435_v21  ;;  %v438_v29 = vsel %vm433_vm0, %v435_v21, %v437_v22  ;;  %v566_v30 = vrot.slane %v11946_v10, 2  ;;  %v821_v31 = vrot.slane %v11942_v8, 4  ;;  %1240 = vmatprep.subr.bf16.mxu0 %v11454_v19  ;;  %v11465_v21 = vld [vmem:[%s17460_s1 + $0x10] ss:$8 sps:$4 sm:$0xff]  }
  0x1f   : > { %v11205_v33 = vpack.i.bf16 %v438_v29, %v436_v28  ;;  %v694_v34 = vsel %vm691_vm1, %v692_v23, %v693_v24  ;;  %v696_v35 = vsel %vm691_vm1, %v693_v24, %v695_v25  ;;  %v565_v36 = vsel %vm562_vm2, %v563_v26, %v564_v27  ;;  %v11466_v26 = vld [vmem:[%s17460_s1 + $0x4] ss:$8 sps:$4 sm:$0xff]  }
  0x20   : > { %v11215_v37 = vpack.i.bf16 %v696_v35, %v694_v34  ;;  %v567_v38 = vsel %vm562_vm2, %v564_v27, %v566_v30  ;;  %v822_v39 = vrot.slane %v11944_v9, 4  ;;  %v824_v40 = vrot.slane %v11946_v10, 4 }
  0x21   : > { %11206 = vrot.lane.b32.xlu0 %v11205_v33, %s11807_s14  ;;  %v11210_v41 = vpack.i.bf16 %v567_v38, %v565_v36  ;;  %v439_v42 = vrot.slane %v11949_v12, 1  ;;  %v441_v43 = vrot.slane %v11955_v15, 1  ;;  %v442_v44 = vrot.slane %v11957_v16, 1  ;;  %1241 = vmatpush1.bf16.msra.mxu0 %v11456_v32 }
  0x22   : > { %11216 = vrot.lane.b32.xlu1 %v11215_v37, %s11808_s16  ;;  %v823_v45 = vsel %vm820_vm3, %v821_v31, %v822_v39  ;;  %v825_v46 = vsel %vm820_vm3, %v822_v39, %v824_v40  ;;  %v568_v47 = vrot.slane %v11949_v12, 2  ;;  %v570_v48 = vrot.slane %v11955_v15, 2  ;;  %1242 = vmatprep.subr.bf16.mxu0 %v11457_v49  ;;  %v11468_v37 = vld [vmem:[%s17460_s1] ss:$8 sps:$4 sm:$0xff]  }
  0x23   : > { %v11220_v51 = vpack.i.bf16 %v825_v46, %v823_v45  ;;  %v440_v52 = vsel %vm433_vm0, %v437_v22, %v439_v42  ;;  %v443_v53 = vsel %vm433_vm0, %v441_v43, %v442_v44  ;;  %v571_v54 = vrot.slane %v11957_v16, 2  ;;  %v348_v46 = vld [vmem:[%s11937_s24 + $0x2c] sm:$0x3] }
  0x24   : > { %v11225_v56 = vpack.i.bf16 %v443_v53, %v440_v52  ;;  %v569_v57 = vsel %vm562_vm2, %v566_v30, %v568_v47  ;;  %v697_v58 = vrot.slane %v11949_v12, 3  ;;  %v699_v59 = vrot.slane %v11955_v15, 3 }
  0x25   : > { %11211 = vrot.lane.b32.xlu0 %v11210_v41, %s11809_s27  ;;  %v572_v60 = vsel %vm562_vm2, %v570_v48, %v571_v54  ;;  %v700_v61 = vrot.slane %v11957_v16, 3  ;;  %v826_v62 = vrot.slane %v11949_v12, 4  ;;  %v828_v63 = vrot.slane %v11955_v15, 4  ;;  %1243 = vmatpush1.bf16.msra.mxu0 %v11459_v50  ;;  %v11469_v41 = vld [vmem:[%s17460_s1 + $0x84] ss:$8 sps:$4 sm:$0x3f]  }
  0x26   : > { %11221 = vrot.lane.b32.xlu1 %v11220_v51, %s11810_s28  ;;  %v11230_v0 = vpack.i.bf16 %v572_v60, %v569_v57  ;;  %v698_v1 = vsel %vm691_vm1, %v695_v25, %v697_v58  ;;  %v829_v2 = vrot.slane %v11957_v16, 4  ;;  %v444_v3 = vrot.slane %v11959_v17, 1  ;;  %1244 = vmatprep.subr.bf16.mxu0 %v11460_v55  ;;  %v11132_v51 = vld [vmem:[%s11937_s24 + $0x30] sm:$0xff]  }
  0x27   : > { %v701_v7 = vsel %vm691_vm1, %v699_v59, %v700_v61  ;;  %v827_v11 = vsel %vm820_vm3, %v824_v40, %v826_v62  ;;  %v446_v12 = vrot.slane %v11961_v18, 1  ;;  %v573_v13 = vrot.slane %v11959_v17, 2 }
  0x28   : > { %v830_v19 = vsel %vm820_vm3, %v828_v63, %v829_v2  ;;  %v575_v20 = vrot.slane %v11961_v18, 2  ;;  %v11235_v22 = vpack.i.bf16 %v701_v7, %v698_v1  ;;  %v445_v23 = vsel %vm433_vm0, %v442_v44, %v444_v3 }
  0x29   : > { %11226 = vrot.lane.b32.xlu0 %v11225_v56, %s11807_s14  ;;  %v447_v24 = vsel %vm433_vm0, %v444_v3, %v446_v12  ;;  %v702_v25 = vrot.slane %v11959_v17, 3  ;;  %v11240_v27 = vpack.i.bf16 %v830_v19, %v827_v11  ;;  %v574_v28 = vsel %vm562_vm2, %v571_v54, %v573_v13  ;;  %1245 = vmatpush1.bf16.msra.mxu0 %v11462_v5 }
  0x2a   : > { %11231 = vrot.lane.b32.xlu1 %v11230_v0, %s11809_s27  ;;  %v576_v29 = vsel %vm562_vm2, %v573_v13, %v575_v20  ;;  %v704_v30 = vrot.slane %v11961_v18, 3  ;;  %v831_v31 = vrot.slane %v11959_v17, 4  ;;  %v833_v32 = vrot.slane %v11961_v18, 4  ;;  %1246 = vmatprep.subr.bf16.mxu0 %v11463_v6 }
  0x2b   : > { %v12052_v33 = vunpack.c.l.bf16 %v11131_v4  ;;  %v11245_v34 = vpack.i.bf16 %v447_v24, %v445_v23  ;;  %v12054_v35 = vunpack.c.h.bf16 %v11131_v4  ;;  %v12057_v36 = vunpack.c.l.bf16 %v12032_v14 }
  0x2c   : > { %v11250_v38 = vpack.i.bf16 %v576_v29, %v574_v28  ;;  %v703_v18 = vsel %vm691_vm1, %v700_v61, %v702_v25  ;;  %v705_v42 = vsel %vm691_vm1, %v702_v25, %v704_v30  ;;  %v832_v47 = vsel %vm820_vm3, %v829_v2, %v831_v31  ;;  %v352_v2 = vld [vmem:[%s11937_s24 + $0x3c] sm:$0x3] }
  0x2d   : > { %11236 = vrot.lane.b32.xlu0 %v11235_v22, %s11808_s16  ;;  %v448_v39 = vrot.slane %v12052_v33, 1  ;;  %v577_v40 = vrot.slane %v12052_v33, 2  ;;  %v449_v43 = vrot.slane %v12054_v35, 1  ;;  %v451_v44 = vrot.slane %v12057_v36, 1  ;;  %1247 = vmatpush1.bf16.msra.mxu0 %v11465_v21 }
  0x2e   : > { %11241 = vrot.lane.b32.xlu1 %v11240_v27, %s11810_s28  ;;  %v578_v45 = vrot.slane %v12054_v35, 2  ;;  %v834_v48 = vsel %vm820_vm3, %v831_v31, %v833_v32  ;;  %v580_v49 = vrot.slane %v12057_v36, 2  ;;  %v706_v50 = vrot.slane %v12052_v33, 3  ;;  %1248 = vmatprep.subr.bf16.mxu0 %v11466_v26 }
  0x2f   : > { %v707_v52 = vrot.slane %v12054_v35, 3  ;;  %v709_v53 = vrot.slane %v12057_v36, 3  ;;  %v835_v54 = vrot.slane %v12052_v33, 4  ;;  %v11255_v55 = vpack.i.bf16 %v705_v42, %v703_v18  ;;  %v11133_v18 = vld [vmem:[%s11937_s24 + $0x40] sm:$0xff]  }
  0x30   : > { %v450_v56 = vsel %vm433_vm0, %v448_v39, %v449_v43  ;;  %v452_v57 = vsel %vm433_vm0, %v449_v43, %v451_v44  ;;  %v11260_v58 = vpack.i.bf16 %v834_v48, %v832_v47  ;;  %v579_v59 = vsel %vm562_vm2, %v577_v40, %v578_v45  ;;  %v12122_v39 = vld [vmem:[%s11937_s24 + $0x48] ss:$16 sps:$4 sm:$0xff]  }
  0x31   : > { %11246 = vrot.lane.b32.xlu0 %v11245_v34, %s11807_s14  ;;  %v836_v60 = vrot.slane %v12054_v35, 4  ;;  %v838_v61 = vrot.slane %v12057_v36, 4  ;;  %1249 = vmatpush1.bf16.msra.mxu0 %v11468_v37  ;;  %v581_v62 = vsel %vm562_vm2, %v578_v45, %v580_v49  ;;  %v12091_v63 = vunpack.c.l.bf16 %v11132_v51 }
  0x32   : > { %11251 = vrot.lane.b32.xlu1 %v11250_v38, %s11809_s27  ;;  %v12093_v0 = vunpack.c.h.bf16 %v11132_v51  ;;  %v380_v1 = vunpack.c.l.bf16 %v348_v46  ;;  %10551 = vmatprep.subr.msk.bf16.mxu0 %vm562_vm2, %v11469_v41  ;;  %v11265_v3 = vpack.i.bf16 %v452_v57, %v450_v56  ;;  %v708_v4 = vsel %vm691_vm1, %v706_v50, %v707_v52 }
  0x33   : > { %v710_v5 = vsel %vm691_vm1, %v707_v52, %v709_v53  ;;  %v837_v6 = vsel %vm820_vm3, %v835_v54, %v836_v60  ;;  %v839_v7 = vsel %vm820_vm3, %v836_v60, %v838_v61  ;;  %v455_v12 = vrot.slane %v12091_v63, 1 }
  0x34   : > { %v453_v11 = vrot.slane %v380_v1, 1  ;;  %v456_v13 = vrot.slane %v12093_v0, 1  ;;  %v11270_v19 = vpack.i.bf16 %v581_v62, %v579_v59  ;;  %v582_v20 = vrot.slane %v380_v1, 2 }
  0x35   : > { %11256 = vrot.lane.b32.xlu0 %v11255_v55, %s11808_s16  ;;  %v584_v21 = vrot.slane %v12091_v63, 2  ;;  %v585_v22 = vrot.slane %v12093_v0, 2  ;;  %v11275_v23 = vpack.i.bf16 %v710_v5, %v708_v4  ;;  %v12108_v24 = vunpack.c.h.bf16 %v12032_v14  ;;  %v356_v4 = vld [vmem:[%s11937_s24 + $0x4c] sm:$0x3]  ;;  %v11134_v5 = vld [vmem:[%s11937_s24 + $0x50] sm:$0xff]  }
  0x36   : > { %11261 = vrot.lane.b32.xlu1 %v11260_v58, %s11810_s28  ;;  %v11280_v25 = vpack.i.bf16 %v839_v7, %v837_v6  ;;  %v454_v26 = vsel %vm433_vm0, %v451_v44, %v453_v11  ;;  %v711_v27 = vrot.slane %v380_v1, 3  ;;  %v384_v28 = vunpack.c.l.bf16 %v352_v2 }
  0x37   : > { %v457_v29 = vsel %vm433_vm0, %v455_v12, %v456_v13  ;;  %v583_v30 = vsel %vm562_vm2, %v580_v49, %v582_v20  ;;  %v713_v31 = vrot.slane %v12091_v63, 3  ;;  %v714_v32 = vrot.slane %v12093_v0, 3 }
  0x38   : > { %v586_v14 = vsel %vm562_vm2, %v584_v21, %v585_v22  ;;  %v840_v34 = vrot.slane %v380_v1, 4  ;;  %v842_v37 = vrot.slane %v12091_v63, 4  ;;  %v843_v38 = vrot.slane %v12093_v0, 4 }
  0x39   : > { %11266 = vrot.lane.b32.xlu0 %v11265_v3, %s11807_s14  ;;  %v11285_v40 = vpack.i.bf16 %v457_v29, %v454_v26  ;;  %v712_v41 = vsel %vm691_vm1, %v709_v53, %v711_v27  ;;  %v11290_v42 = vpack.i.bf16 %v586_v14, %v583_v30  ;;  %v715_v43 = vsel %vm691_vm1, %v713_v31, %v714_v32 }
  0x3a   : > { %11271 = vrot.lane.b32.xlu1 %v11270_v19, %s11809_s27  ;;  %v458_v44 = vrot.slane %v12108_v24, 1  ;;  %v460_v45 = vrot.slane %v384_v28, 1  ;;  %v841_v46 = vsel %vm820_vm3, %v838_v61, %v840_v34  ;;  %v844_v47 = vsel %vm820_vm3, %v842_v37, %v843_v38 }
  0x3b   : > { %v587_v48 = vrot.slane %v12108_v24, 2  ;;  %v589_v49 = vrot.slane %v384_v28, 2  ;;  %v12132_v50 = vunpack.c.l.bf16 %v11133_v18  ;;  %v12134_v51 = vunpack.c.h.bf16 %v11133_v18  ;;  %v360_v18 = vld [vmem:[%s11937_s24 + $0x5c] sm:$0x3] }
  0x3c   : > { %v12137_v52 = vunpack.c.l.bf16 %v12122_v39  ;;  %v11295_v53 = vpack.i.bf16 %v715_v43, %v712_v41  ;;  %v716_v54 = vrot.slane %v12108_v24, 3  ;;  %v11300_v55 = vpack.i.bf16 %v844_v47, %v841_v46 }
  0x3d   : > { %11276 = vrot.lane.b32.xlu0 %v11275_v23, %s11808_s16  ;;  %v459_v56 = vsel %vm433_vm0, %v456_v13, %v458_v44  ;;  %v461_v57 = vsel %vm433_vm0, %v458_v44, %v460_v45  ;;  %v718_v58 = vrot.slane %v384_v28, 3  ;;  %v588_v59 = vsel %vm562_vm2, %v585_v22, %v587_v48 }
  0x3e   : > { %11281 = vrot.lane.b32.xlu1 %v11280_v25, %s11810_s28  ;;  %v590_v60 = vsel %vm562_vm2, %v587_v48, %v589_v49  ;;  %v845_v61 = vrot.slane %v12108_v24, 4  ;;  %v847_v62 = vrot.slane %v384_v28, 4  ;;  %v462_v1 = vrot.slane %v12132_v50, 1 }
  0x3f   : > { %v463_v2 = vrot.slane %v12134_v51, 1  ;;  %v465_v3 = vrot.slane %v12137_v52, 1  ;;  %v591_v6 = vrot.slane %v12132_v50, 2  ;;  %v592_v7 = vrot.slane %v12134_v51, 2 }
  0x40   : > { %v594_v11 = vrot.slane %v12137_v52, 2  ;;  %v11305_v12 = vpack.i.bf16 %v461_v57, %v459_v56  ;;  %v11310_v13 = vpack.i.bf16 %v590_v60, %v588_v59  ;;  %v717_v19 = vsel %vm691_vm1, %v714_v32, %v716_v54 }
  0x41   : > { %11286 = vrot.lane.b32.xlu0 %v11285_v40, %s11807_s14  ;;  %v719_v20 = vsel %vm691_vm1, %v716_v54, %v718_v58  ;;  %v846_v21 = vsel %vm820_vm3, %v843_v38, %v845_v61  ;;  %v848_v22 = vsel %vm820_vm3, %v845_v61, %v847_v62  ;;  %v720_v23 = vrot.slane %v12132_v50, 3 }
  0x42   : > { %11291 = vrot.lane.b32.xlu1 %v11290_v42, %s11809_s27  ;;  %v464_v25 = vsel %vm433_vm0, %v462_v1, %v463_v2  ;;  %v466_v26 = vsel %vm433_vm0, %v463_v2, %v465_v3  ;;  %v721_v27 = vrot.slane %v12134_v51, 3  ;;  %v723_v28 = vrot.slane %v12137_v52, 3 }
  0x43   : > { %v593_v29 = vsel %vm562_vm2, %v591_v6, %v592_v7  ;;  %v595_v30 = vsel %vm562_vm2, %v592_v7, %v594_v11  ;;  %v12170_v31 = vunpack.c.l.bf16 %v11134_v5  ;;  %v388_v32 = vunpack.c.l.bf16 %v356_v4 }
  0x44   : > { %v11315_v14 = vpack.i.bf16 %v719_v20, %v717_v19  ;;  %v849_v34 = vrot.slane %v12132_v50, 4  ;;  %v850_v37 = vrot.slane %v12134_v51, 4  ;;  %v12175_v38 = vunpack.c.h.bf16 %v11134_v5  ;;  %v11135_v5 = vld [vmem:[%s11937_s24 + $0x60] sm:$0xff]  }
  0x45   : > { %11296 = vrot.lane.b32.xlu0 %v11295_v53, %s11808_s16  ;;  %v11320_v40 = vpack.i.bf16 %v848_v22, %v846_v21  ;;  %v852_v41 = vrot.slane %v12137_v52, 4  ;;  %v11325_v42 = vpack.i.bf16 %v466_v26, %v464_v25  ;;  %v11330_v43 = vpack.i.bf16 %v595_v30, %v593_v29 }
  0x46   : > { %11301 = vrot.lane.b32.xlu1 %v11300_v55, %s11810_s28  ;;  %v722_v44 = vsel %vm691_vm1, %v720_v23, %v721_v27  ;;  %v724_v45 = vsel %vm691_vm1, %v721_v27, %v723_v28  ;;  %v467_v46 = vrot.slane %v388_v32, 1  ;;  %v469_v47 = vrot.slane %v12170_v31, 1 }
  0x47   : > { %v12184_v48 = vunpack.c.h.bf16 %v12122_v39  ;;  %v12186_v49 = vunpack.c.l.bf16 %v360_v18  ;;  %v851_v53 = vsel %vm820_vm3, %v849_v34, %v850_v37  ;;  %v470_v54 = vrot.slane %v12175_v38, 1 }
  0x48   : > { %v596_v55 = vrot.slane %v388_v32, 2  ;;  %v598_v56 = vrot.slane %v12170_v31, 2  ;;  %v853_v57 = vsel %vm820_vm3, %v850_v37, %v852_v41  ;;  %v599_v39 = vrot.slane %v12175_v38, 2 }
  0x49   : > { %11306 = vrot.lane.b32.xlu0 %v11305_v12, %s11807_s14  ;;  %v725_v58 = vrot.slane %v388_v32, 3  ;;  %v727_v59 = vrot.slane %v12170_v31, 3  ;;  %v728_v60 = vrot.slane %v12175_v38, 3  ;;  %v854_v61 = vrot.slane %v388_v32, 4  ;;  %v12204_v12 = vld [vmem:[%s11937_s24 + $0x68] ss:$16 sps:$4 sm:$0xff]  }
  0x4a   : > { %11311 = vrot.lane.b32.xlu1 %v11310_v13, %s11809_s27  ;;  %v856_v62 = vrot.slane %v12170_v31, 4  ;;  %v857_v1 = vrot.slane %v12175_v38, 4  ;;  %v472_v2 = vrot.slane %v12184_v48, 1  ;;  %v474_v4 = vrot.slane %v12186_v49, 1 }
  0x4b   : > { %v11335_v6 = vpack.i.bf16 %v724_v45, %v722_v44  ;;  %v11340_v7 = vpack.i.bf16 %v853_v57, %v851_v53  ;;  %v468_v13 = vsel %vm433_vm0, %v465_v3, %v467_v46  ;;  %v471_v19 = vsel %vm433_vm0, %v469_v47, %v470_v54 }
  0x4c   : > { %v597_v20 = vsel %vm562_vm2, %v594_v11, %v596_v55  ;;  %v600_v21 = vsel %vm562_vm2, %v598_v56, %v599_v39  ;;  %v726_v22 = vsel %vm691_vm1, %v723_v28, %v725_v58  ;;  %v729_v23 = vsel %vm691_vm1, %v727_v59, %v728_v60  ;;  %v11471_v28 = vld [vmem:[%s17460_s1 + $0x80] ss:$8 sps:$4 sm:$0x3f]  }
  0x4d   : > { %11316 = vrot.lane.b32.xlu0 %v11315_v14, %s11808_s16  ;;  %v855_v25 = vsel %vm820_vm3, %v852_v41, %v854_v61  ;;  %v601_v26 = vrot.slane %v12184_v48, 2  ;;  %v858_v3 = vsel %vm820_vm3, %v856_v62, %v857_v1  ;;  %v473_v27 = vsel %vm433_vm0, %v470_v54, %v472_v2  ;;  %v364_v41 = vld [vmem:[%s11937_s24 + $0x6c] sm:$0x3]  ;;  %v368_v62 = vld [vmem:[%s11937_s24 + $0x7c] sm:$0x3] }
  0x4e   : > { %11321 = vrot.lane.b32.xlu1 %v11320_v40, %s11810_s28  ;;  %v475_v11 = vsel %vm433_vm0, %v472_v2, %v474_v4  ;;  %v603_v29 = vrot.slane %v12186_v49, 2  ;;  %v11345_v30 = vpack.i.bf16 %v471_v19, %v468_v13  ;;  %v730_v32 = vrot.slane %v12184_v48, 3 }
  0x4f   : > { %v12228_v14 = vunpack.c.l.bf16 %v11135_v5  ;;  %v11350_v34 = vpack.i.bf16 %v600_v21, %v597_v20  ;;  %v732_v37 = vrot.slane %v12186_v49, 3  ;;  %v12232_v18 = vunpack.c.h.bf16 %v11135_v5 }
  0x50   : > { %v12235_v40 = vunpack.c.l.bf16 %v12204_v12  ;;  %v11360_v44 = vpack.i.bf16 %v858_v3, %v855_v25  ;;  %v11365_v45 = vpack.i.bf16 %v475_v11, %v473_v27  ;;  %v602_v46 = vsel %vm562_vm2, %v599_v39, %v601_v26 }
  0x51   : > { %11326 = vrot.lane.b32.xlu0 %v11325_v42, %s11807_s14  ;;  %v11136_v42 = vld [vmem:[%s11937_s24 + $0x70] sm:$0xff]   ;;  %v604_v47 = vsel %vm562_vm2, %v601_v26, %v603_v29  ;;  %v859_v53 = vrot.slane %v12184_v48, 4  ;;  %v861_v54 = vrot.slane %v12186_v49, 4  ;;  %v731_v55 = vsel %vm691_vm1, %v728_v60, %v730_v32  ;;  %s11819_s24 = smov [#allocation2]  }
  0x52   : > { %11331 = vrot.lane.b32.xlu1 %v11330_v43, %s11809_s27  ;;  %v11355_v43 = vpack.i.bf16 %v729_v23, %v726_v22  ;;  %v476_v56 = vrot.slane %v12228_v14, 1  ;;  %v605_v57 = vrot.slane %v12228_v14, 2  ;;  %v734_v58 = vrot.slane %v12228_v14, 3 }
  0x53   : > { %v733_v39 = vsel %vm691_vm1, %v730_v32, %v732_v37  ;;  %v477_v59 = vrot.slane %v12232_v18, 1  ;;  %v479_v61 = vrot.slane %v12235_v40, 1  ;;  %v1229_v49 = vsel %vm562_vm2, %v11471_v28, 0 }
  0x54   : > { %v606_v2 = vrot.slane %v12232_v18, 2  ;;  %v608_v60 = vrot.slane %v12235_v40, 2  ;;  %v12256_v4 = vunpack.c.l.bf16 %v11136_v42  ;;  %v12258_v5 = vunpack.c.l.bf16 %v364_v41  ;;  %1265 = vmatpush2.bf16.msra.mxu0 %v1229_v49 }
  0x55   : > { %11336 = vrot.lane.b32.xlu0 %v11335_v6, %s11808_s16  ;;  %v735_v6 = vrot.slane %v12232_v18, 3  ;;  %v863_v13 = vrot.slane %v12228_v14, 4  ;;  %v12263_v19 = vunpack.c.h.bf16 %v11136_v42  ;;  %v11370_v20 = vpack.i.bf16 %v604_v47, %v602_v46 }
  0x56   : > { %11341 = vrot.lane.b32.xlu1 %v11340_v7, %s11810_s28  ;;  %v737_v7 = vrot.slane %v12235_v40, 3  ;;  %v11375_v21 = vpack.i.bf16 %v733_v39, %v731_v55  ;;  %v864_v22 = vrot.slane %v12232_v18, 4  ;;  %v866_v23 = vrot.slane %v12235_v40, 4 }
  0x57   : > { %v860_v25 = vsel %vm820_vm3, %v857_v1, %v859_v53  ;;  %v862_v26 = vsel %vm820_vm3, %v859_v53, %v861_v54  ;;  %v478_v3 = vsel %vm433_vm0, %v476_v56, %v477_v59  ;;  %v480_v27 = vsel %vm433_vm0, %v477_v59, %v479_v61 }
  0x58   : > { %v481_v11 = vrot.slane %v12258_v5, 1  ;;  %v483_v29 = vrot.slane %v12256_v4, 1  ;;  %v12278_v28 = vunpack.c.h.bf16 %v12204_v12  ;;  %v484_v32 = vrot.slane %v12263_v19, 1 }
  0x59   : > { %11346 = vrot.lane.b32.xlu0 %v11345_v30, %s11807_s14  ;;  %v12280_v30 = vunpack.c.l.bf16 %v368_v62  ;;  %v612_v1 = vrot.slane %v12256_v4, 2  ;;  %v613_v37 = vrot.slane %v12263_v19, 2  ;;  %v739_v41 = vrot.slane %v12258_v5, 3 }
  0x5a   : > { %11351 = vrot.lane.b32.xlu1 %v11350_v34, %s11809_s27  ;;  %v610_v34 = vrot.slane %v12258_v5, 2  ;;  %v741_v42 = vrot.slane %v12256_v4, 3  ;;  %v868_v12 = vrot.slane %v12258_v5, 4  ;;  %v870_v46 = vrot.slane %v12256_v4, 4 }
  0x5b   : > { %v871_v47 = vrot.slane %v12263_v19, 4  ;;  %v607_v53 = vsel %vm562_vm2, %v605_v57, %v606_v2  ;;  %v609_v54 = vsel %vm562_vm2, %v606_v2, %v608_v60  ;;  %v736_v55 = vsel %vm691_vm1, %v734_v58, %v735_v6 }
  0x5c   : > { %v486_v56 = vrot.slane %v12278_v28, 1  ;;  %v488_v39 = vrot.slane %v12280_v30, 1  ;;  %v615_v59 = vrot.slane %v12278_v28, 2  ;;  %v617_v62 = vrot.slane %v12280_v30, 2 }
  0x5d   : > { %11356 = vrot.lane.b32.xlu0 %v11355_v43, %s11808_s16  ;;  %v742_v43 = vrot.slane %v12263_v19, 3  ;;  %v744_v49 = vrot.slane %v12278_v28, 3  ;;  %v746_v5 = vrot.slane %v12280_v30, 3  ;;  %v11390_v57 = vpack.i.bf16 %v609_v54, %v607_v53 }
  0x5e   : > { %11361 = vrot.lane.b32.xlu1 %v11360_v44, %s11810_s28  ;;  %v11380_v44 = vpack.i.bf16 %v862_v26, %v860_v25  ;;  %v738_v2 = vsel %vm691_vm1, %v735_v6, %v737_v7  ;;  %v873_v58 = vrot.slane %v12278_v28, 4  ;;  %v865_v25 = vsel %vm820_vm3, %v863_v13, %v864_v22 }
  0x5f   : > { %v11395_v26 = vpack.i.bf16 %v738_v2, %v736_v55  ;;  %v611_v6 = vsel %vm562_vm2, %v608_v60, %v610_v34  ;;  %v614_v53 = vsel %vm562_vm2, %v612_v1, %v613_v37  ;;  %v743_v54 = vsel %vm691_vm1, %v741_v42, %v742_v43 }
  0x60   : > { %v11410_v13 = vpack.i.bf16 %v614_v53, %v611_v6  ;;  %v489_v34 = vsel %vm433_vm0, %v486_v56, %v488_v39  ;;  %v616_v1 = vsel %vm562_vm2, %v613_v37, %v615_v59  ;;  %v745_v42 = vsel %vm691_vm1, %v742_v43, %v744_v49 }
  0x61   : > { %11366 = vrot.lane.b32.xlu0 %v11365_v45, %s11807_s14  ;;  %v11385_v45 = vpack.i.bf16 %v480_v27, %v478_v3  ;;  %v482_v27 = vsel %vm433_vm0, %v479_v61, %v481_v11  ;;  %v872_v61 = vsel %vm820_vm3, %v870_v46, %v871_v47  ;;  %v874_v46 = vsel %vm820_vm3, %v871_v47, %v873_v58 }
  0x62   : > { %11371 = vrot.lane.b32.xlu1 %v11370_v20, %s11809_s27  ;;  %v875_v20 = vrot.slane %v12280_v30, 4  ;;  %vm1024_vm7 = vcmask 916480   ;;  %vm1191_vm8 = vcmask 97280   ;;  %vm3211_vm9 = vcmask 1041409  }
  0x63   : > { %vm3213_vm10 = vcmask 1042434   ;;  %vm3215_vm11 = vcmask 1043459   ;;  %vm3217_vm12 = vcmask 1044484   ;;  %vm3219_vm13 = vcmask 1045509  }
  0x64   : > { %vm3221_vm14 = vcmask 1046534   ;;  %vm3223_vm15 = vcmask 1047559  }
  0x65   : > { %11376 = vrot.lane.b32.xlu0 %v11375_v21, %s11808_s16  ;;  %v867_v21 = vsel %vm820_vm3, %v864_v22, %v866_v23  ;;  %v740_v22 = vsel %vm691_vm1, %v737_v7, %v739_v41  ;;  %v618_v7 = vsel %vm562_vm2, %v615_v59, %v617_v62  ;;  %vm8969_vm2 = vcmask 883712  }
  0x66   : > { %11381 = vrot.lane.b32.xlu1 %v11380_v44, %s11810_s28  ;;  %v11400_v3 = vpack.i.bf16 %v867_v21, %v865_v25  ;;  %v485_v44 = vsel %vm433_vm0, %v483_v29, %v484_v32  ;;  %v11415_v11 = vpack.i.bf16 %v743_v54, %v740_v22  ;;  %v487_v29 = vsel %vm433_vm0, %v484_v32, %v486_v56 }
  0x67   : > { %v11405_v30 = vpack.i.bf16 %v485_v44, %v482_v27  ;;  %v11425_v41 = vpack.i.bf16 %v489_v34, %v487_v29  ;;  %v876_v32 = vsel %vm820_vm3, %v873_v58, %v875_v20  ;;  %vm3434_vm0 = vcmask 965632  }
  0x68   : > { %v11440_v37 = vpack.i.bf16 %v876_v32, %v874_v46 }
  0x69   : > { %11386 = vrot.lane.b32.xlu0 %v11385_v45, %s11807_s14  ;;  %v869_v45 = vsel %vm820_vm3, %v866_v23, %v868_v12  ;;  %v11430_v23 = vpack.i.bf16 %v618_v7, %v616_v1  ;;  %v747_v12 = vsel %vm691_vm1, %v744_v49, %v746_v5  ;;  %vm3495_vm1 = vcmask 834560  }
  0x6a   : > { %11391 = vrot.lane.b32.xlu1 %v11390_v57, %s11809_s27  ;;  %v11420_v60 = vpack.i.bf16 %v872_v61, %v869_v45  ;;  %v11435_v55 = vpack.i.bf16 %v747_v12, %v745_v42  ;;  %vm9554_vm3 = vcmask 261120  }
  0x6d   : > { %11396 = vrot.lane.b32.xlu0 %v11395_v26, %s11808_s16 }
  0x6e   : > { %11401 = vrot.lane.b32.xlu1 %v11400_v3, %s11810_s28 }
  0x71   : > { %11406 = vrot.lane.b32.xlu0 %v11405_v30, %s11807_s14 }
  0x72   : > { %11411 = vrot.lane.b32.xlu1 %v11410_v13, %s11809_s27 }
  0x75   : > { %11416 = vrot.lane.b32.xlu0 %v11415_v11, %s11808_s16 }
  0x76   : > { %11421 = vrot.lane.b32.xlu1 %v11420_v60, %s11810_s28 }
  0x79   : > { %11426 = vrot.lane.b32.xlu0 %v11425_v41, %s11807_s14  ;;  %s11749_s14 = sshll.u32 %s11819_s24, 4  ;;  %s11750_s14 = int_to_ptr.vmem [resolvable:$false] %s11749_s14 }
  0x7a   : > { %11431 = vrot.lane.b32.xlu1 %v11430_v23, %s11809_s27  ;;  %s11813_s27 = smov 102  }
  0x7d   : > { %11436 = vrot.lane.b32.xlu0 %v11435_v55, %s11808_s16  ;;  %s11812_s16 = smov 118  }
  0x7e   : > { %11441 = vrot.lane.b32.xlu1 %v11440_v37, %s11810_s28  ;;  %s11814_s28 = smov 108  }
  0x93   : > { %v11207_v56 = vpop.permute.xlu0 %11206 }
  0x94   : > { %v11217_v39 = vpop.permute.xlu1 %11216  ;;  %v11209_v59 = vunpack.i.h.bf16 %v11207_v56  ;;  %v11208_v43 = vunpack.i.l.bf16 %v11207_v56 }
  0x95   : > { %v11219_v47 = vunpack.i.h.bf16 %v11217_v39  ;;  %v11218_v49 = vunpack.i.l.bf16 %v11217_v39 }
  0x96   : > { %v951_v58 = vsel %vm949_vm4, %v11944_v9, %v11209_v59  ;;  %v950_v20 = vsel %vm949_vm4, %v11942_v8, %v11208_v43 }
  0x97   : > { %v11212_v62 = vpop.permute.xlu0 %11211 }
  0x98   : > { %v11214_v5 = vunpack.i.h.bf16 %v11212_v62  ;;  %v11213_v57 = vunpack.i.l.bf16 %v11212_v62  ;;  %v11222_v2 = vpop.permute.xlu1 %11221 }
  0x99   : > { %v11224_v25 = vunpack.i.h.bf16 %v11222_v2  ;;  %v11223_v21 = vunpack.i.l.bf16 %v11222_v2 }
  0x9a   : > { %v975_v26 = vsel %vm974_vm5, %v950_v20, %v11213_v57  ;;  %v976_v3 = vsel %vm974_vm5, %v951_v58, %v11214_v5 }
  0x9b   : > { %v11227_v27 = vpop.permute.xlu0 %11226  ;;  %v1050_v44 = vpack.c.bf16 %v11224_v25, %v11223_v21  ;;  %v1000_v6 = vsel %vm999_vm6, %v975_v26, %v11218_v49  ;;  %v1001_v53 = vsel %vm999_vm6, %v976_v3, %v11219_v47 }
  0x9c   : > { %v11229_v30 = vunpack.i.h.bf16 %v11227_v27  ;;  %v11228_v13 = vunpack.i.l.bf16 %v11227_v27  ;;  %v11232_v22 = vpop.permute.xlu1 %11231  ;;  %v1025_v9 = vsel %vm1024_vm7, %v1000_v6, %v11223_v21  ;;  %v1026_v8 = vsel %vm1024_vm7, %v1001_v53, %v11224_v25 }
  0x9d   : > { %v11234_v54 = vunpack.i.h.bf16 %v11232_v22  ;;  %v11233_v45 = vunpack.i.l.bf16 %v11232_v22  ;;  %10552 = vmatprep.mubr.msk.bf16.mxu0 %vm1191_vm8, %v1050_v44  ;;  %v1049_v61 = vpack.c.bf16 %v1026_v8, %v1025_v9 }
  0x9e   : > { %v953_v11 = vsel %vm949_vm4, %v11955_v15, %v11229_v30  ;;  %v952_v60 = vsel %vm949_vm4, %v11946_v10, %v11228_v13 }
  0x9f   : > { %v977_v29 = vsel %vm974_vm5, %v952_v60, %v11233_v45  ;;  %v978_v34 = vsel %vm974_vm5, %v953_v11, %v11234_v54  ;;  %v11237_v1 = vpop.permute.xlu0 %11236  ;;  %1267 = vmatmul.mubr.bf16.vlgmr.msra.gmra.mxu0 %v1049_v61 }
  0xa0   : > { %v11239_v7 = vunpack.i.h.bf16 %v11237_v1  ;;  %v11238_v41 = vunpack.i.l.bf16 %v11237_v1  ;;  %v11242_v23 = vpop.permute.xlu1 %11241 }
  0xa1   : > { %v11244_v42 = vunpack.i.h.bf16 %v11242_v23  ;;  %v11243_v12 = vunpack.i.l.bf16 %v11242_v23 }
  0xa2   : > { %v1002_v46 = vsel %vm999_vm6, %v977_v29, %v11238_v41  ;;  %v1003_v32 = vsel %vm999_vm6, %v978_v34, %v11239_v7 }
  0xa3   : > { %v1052_v55 = vpack.c.bf16 %v11244_v42, %v11243_v12  ;;  %v11247_v15 = vpop.permute.xlu0 %11246  ;;  %v1027_v37 = vsel %vm1024_vm7, %v1002_v46, %v11243_v12  ;;  %v1028_v10 = vsel %vm1024_vm7, %v1003_v32, %v11244_v42 }
  0xa4   : > { %v11249_v56 = vunpack.i.h.bf16 %v11247_v15  ;;  %v11248_v39 = vunpack.i.l.bf16 %v11247_v15  ;;  %v11252_v59 = vpop.permute.xlu1 %11251  ;;  %v1051_v43 = vpack.c.bf16 %v1028_v10, %v1027_v37 }
  0xa5   : > { %v11254_v62 = vunpack.i.h.bf16 %v11252_v59  ;;  %v11253_v47 = vunpack.i.l.bf16 %v11252_v59  ;;  %10553 = vmatprep.mubr.msk.bf16.mxu0 %vm1191_vm8, %v1052_v55 }
  0xa6   : > { %v955_v49 = vsel %vm949_vm4, %v11959_v17, %v11249_v56  ;;  %v954_v5 = vsel %vm949_vm4, %v11957_v16, %v11248_v39 }
  0xa7   : > { %v979_v57 = vsel %vm974_vm5, %v954_v5, %v11253_v47  ;;  %v980_v2 = vsel %vm974_vm5, %v955_v49, %v11254_v62  ;;  %v11257_v58 = vpop.permute.xlu0 %11256  ;;  %1277 = vmatmul.mubr.bf16.gmra.mxu0 %v1051_v43 }
  0xa8   : > { %v11259_v20 = vunpack.i.h.bf16 %v11257_v58  ;;  %v11258_v25 = vunpack.i.l.bf16 %v11257_v58  ;;  %v11262_v21 = vpop.permute.xlu1 %11261 }
  0xa9   : > { %v11264_v26 = vunpack.i.h.bf16 %v11262_v21  ;;  %v11263_v3 = vunpack.i.l.bf16 %v11262_v21 }
  0xaa   : > { %v1004_v27 = vsel %vm999_vm6, %v979_v57, %v11258_v25  ;;  %v1005_v44 = vsel %vm999_vm6, %v980_v2, %v11259_v20 }
  0xab   : > { %v1054_v6 = vpack.c.bf16 %v11264_v26, %v11263_v3  ;;  %v11267_v17 = vpop.permute.xlu0 %11266  ;;  %v1029_v53 = vsel %vm1024_vm7, %v1004_v27, %v11263_v3  ;;  %v1030_v16 = vsel %vm1024_vm7, %v1005_v44, %v11264_v26 }
  0xac   : > { %v11269_v30 = vunpack.i.h.bf16 %v11267_v17  ;;  %v11268_v13 = vunpack.i.l.bf16 %v11267_v17  ;;  %v11272_v22 = vpop.permute.xlu1 %11271  ;;  %v1053_v9 = vpack.c.bf16 %v1030_v16, %v1029_v53 }
  0xad   : > { %v11274_v8 = vunpack.i.h.bf16 %v11272_v22  ;;  %v11273_v54 = vunpack.i.l.bf16 %v11272_v22  ;;  %10554 = vmatprep.mubr.msk.bf16.mxu0 %vm1191_vm8, %v1054_v6 }
  0xae   : > { %v957_v45 = vsel %vm949_vm4, %v12054_v35, %v11269_v30  ;;  %v956_v61 = vsel %vm949_vm4, %v12052_v33, %v11268_v13 }
  0xaf   : > { %v981_v11 = vsel %vm974_vm5, %v956_v61, %v11273_v54  ;;  %v982_v60 = vsel %vm974_vm5, %v957_v45, %v11274_v8  ;;  %v11277_v29 = vpop.permute.xlu0 %11276  ;;  %1287 = vmatmul.mubr.bf16.gmra.mxu0 %v1053_v9 }
  0xb0   : > { %v11279_v34 = vunpack.i.h.bf16 %v11277_v29  ;;  %v11278_v1 = vunpack.i.l.bf16 %v11277_v29  ;;  %v11282_v7 = vpop.permute.xlu1 %11281 }
  0xb1   : > { %v11284_v41 = vunpack.i.h.bf16 %v11282_v7  ;;  %v11283_v23 = vunpack.i.l.bf16 %v11282_v7 }
  0xb2   : > { %v1006_v42 = vsel %vm999_vm6, %v981_v11, %v11278_v1  ;;  %v1007_v12 = vsel %vm999_vm6, %v982_v60, %v11279_v34 }
  0xb3   : > { %v1056_v46 = vpack.c.bf16 %v11284_v41, %v11283_v23  ;;  %v11287_v35 = vpop.permute.xlu0 %11286  ;;  %v1031_v32 = vsel %vm1024_vm7, %v1006_v42, %v11283_v23  ;;  %v1032_v33 = vsel %vm1024_vm7, %v1007_v12, %v11284_v41 }
  0xb4   : > { %v11289_v55 = vunpack.i.h.bf16 %v11287_v35  ;;  %v11288_v15 = vunpack.i.l.bf16 %v11287_v35  ;;  %v11292_v37 = vpop.permute.xlu1 %11291  ;;  %v1055_v10 = vpack.c.bf16 %v1032_v33, %v1031_v32 }
  0xb5   : > { %v11294_v56 = vunpack.i.h.bf16 %v11292_v37  ;;  %v11293_v39 = vunpack.i.l.bf16 %v11292_v37  ;;  %10555 = vmatprep.mubr.msk.bf16.mxu0 %vm1191_vm8, %v1056_v46 }
  0xb6   : > { %v959_v59 = vsel %vm949_vm4, %v12091_v63, %v11289_v55  ;;  %v958_v43 = vsel %vm949_vm4, %v12057_v36, %v11288_v15 }
  0xb7   : > { %v983_v62 = vsel %vm974_vm5, %v958_v43, %v11293_v39  ;;  %v984_v47 = vsel %vm974_vm5, %v959_v59, %v11294_v56  ;;  %v11297_v49 = vpop.permute.xlu0 %11296  ;;  %1297 = vmatmul.mubr.bf16.gmra.mxu0 %v1055_v10 }
  0xb8   : > { %v11299_v5 = vunpack.i.h.bf16 %v11297_v49  ;;  %v11298_v57 = vunpack.i.l.bf16 %v11297_v49  ;;  %v11302_v2 = vpop.permute.xlu1 %11301 }
  0xb9   : > { %v11304_v58 = vunpack.i.h.bf16 %v11302_v2  ;;  %v11303_v20 = vunpack.i.l.bf16 %v11302_v2 }
  0xba   : > { %v1008_v25 = vsel %vm999_vm6, %v983_v62, %v11298_v57  ;;  %v1009_v21 = vsel %vm999_vm6, %v984_v47, %v11299_v5 }
  0xbb   : > { %v1058_v26 = vpack.c.bf16 %v11304_v58, %v11303_v20  ;;  %v11307_v63 = vpop.permute.xlu0 %11306  ;;  %v1033_v3 = vsel %vm1024_vm7, %v1008_v25, %v11303_v20  ;;  %v1034_v36 = vsel %vm1024_vm7, %v1009_v21, %v11304_v58 }
  0xbc   : > { %v11309_v27 = vunpack.i.h.bf16 %v11307_v63  ;;  %v11308_v44 = vunpack.i.l.bf16 %v11307_v63  ;;  %v11312_v6 = vpop.permute.xlu1 %11311  ;;  %v1057_v17 = vpack.c.bf16 %v1034_v36, %v1033_v3 }
  0xbd   : > { %v11314_v53 = vunpack.i.h.bf16 %v11312_v6  ;;  %v11313_v16 = vunpack.i.l.bf16 %v11312_v6  ;;  %10556 = vmatprep.mubr.msk.bf16.mxu0 %vm1191_vm8, %v1058_v26 }
  0xbe   : > { %v961_v30 = vsel %vm949_vm4, %v12108_v24, %v11309_v27  ;;  %v960_v13 = vsel %vm949_vm4, %v12093_v0, %v11308_v44 }
  0xbf   : > { %v985_v22 = vsel %vm974_vm5, %v960_v13, %v11313_v16  ;;  %v986_v9 = vsel %vm974_vm5, %v961_v30, %v11314_v53  ;;  %v11317_v8 = vpop.permute.xlu0 %11316  ;;  %1307 = vmatmul.mubr.bf16.gmra.mxu0 %v1057_v17 }
  0xc0   : > { %v11319_v54 = vunpack.i.h.bf16 %v11317_v8  ;;  %v11318_v45 = vunpack.i.l.bf16 %v11317_v8  ;;  %v11322_v61 = vpop.permute.xlu1 %11321 }
  0xc1   : > { %v11324_v11 = vunpack.i.h.bf16 %v11322_v61  ;;  %v11323_v60 = vunpack.i.l.bf16 %v11322_v61 }
  0xc2   : > { %v1010_v29 = vsel %vm999_vm6, %v985_v22, %v11318_v45  ;;  %v1011_v34 = vsel %vm999_vm6, %v986_v9, %v11319_v54 }
  0xc3   : > { %v1060_v1 = vpack.c.bf16 %v11324_v11, %v11323_v60  ;;  %v11327_v24 = vpop.permute.xlu0 %11326  ;;  %v1035_v7 = vsel %vm1024_vm7, %v1010_v29, %v11323_v60  ;;  %v1036_v0 = vsel %vm1024_vm7, %v1011_v34, %v11324_v11 }
  0xc4   : > { %v11329_v41 = vunpack.i.h.bf16 %v11327_v24  ;;  %v11328_v23 = vunpack.i.l.bf16 %v11327_v24  ;;  %v11332_v42 = vpop.permute.xlu1 %11331  ;;  %v1059_v12 = vpack.c.bf16 %v1036_v0, %v1035_v7 }
  0xc5   : > { %v11334_v46 = vunpack.i.h.bf16 %v11332_v42  ;;  %v11333_v35 = vunpack.i.l.bf16 %v11332_v42  ;;  %10557 = vmatprep.mubr.msk.bf16.mxu0 %vm1191_vm8, %v1060_v1 }
  0xc6   : > { %v963_v32 = vsel %vm949_vm4, %v12134_v51, %v11329_v41  ;;  %v962_v33 = vsel %vm949_vm4, %v12132_v50, %v11328_v23 }
  0xc7   : > { %v987_v55 = vsel %vm974_vm5, %v962_v33, %v11333_v35  ;;  %v988_v15 = vsel %vm974_vm5, %v963_v32, %v11334_v46  ;;  %v11337_v37 = vpop.permute.xlu0 %11336  ;;  %1317 = vmatmul.mubr.bf16.gmra.mxu0 %v1059_v12 }
  0xc8   : > { %v11339_v10 = vunpack.i.h.bf16 %v11337_v37  ;;  %v11338_v56 = vunpack.i.l.bf16 %v11337_v37  ;;  %v11342_v39 = vpop.permute.xlu1 %11341 }
  0xc9   : > { %v11344_v59 = vunpack.i.h.bf16 %v11342_v39  ;;  %v11343_v43 = vunpack.i.l.bf16 %v11342_v39 }
  0xca   : > { %v1012_v62 = vsel %vm999_vm6, %v987_v55, %v11338_v56  ;;  %v1013_v47 = vsel %vm999_vm6, %v988_v15, %v11339_v10 }
  0xcb   : > { %v1062_v49 = vpack.c.bf16 %v11344_v59, %v11343_v43  ;;  %v11347_v51 = vpop.permute.xlu0 %11346  ;;  %v1037_v5 = vsel %vm1024_vm7, %v1012_v62, %v11343_v43  ;;  %v1038_v50 = vsel %vm1024_vm7, %v1013_v47, %v11344_v59 }
  0xcc   : > { %v11349_v57 = vunpack.i.h.bf16 %v11347_v51  ;;  %v11348_v2 = vunpack.i.l.bf16 %v11347_v51  ;;  %v11352_v58 = vpop.permute.xlu1 %11351  ;;  %v1061_v20 = vpack.c.bf16 %v1038_v50, %v1037_v5 }
  0xcd   : > { %v11354_v25 = vunpack.i.h.bf16 %v11352_v58  ;;  %v11353_v21 = vunpack.i.l.bf16 %v11352_v58  ;;  %10558 = vmatprep.mubr.msk.bf16.mxu0 %vm1191_vm8, %v1062_v49 }
  0xce   : > { %v965_v26 = vsel %vm949_vm4, %v12170_v31, %v11349_v57  ;;  %v964_v63 = vsel %vm949_vm4, %v12137_v52, %v11348_v2 }
  0xcf   : > { %v989_v3 = vsel %vm974_vm5, %v964_v63, %v11353_v21  ;;  %v990_v36 = vsel %vm974_vm5, %v965_v26, %v11354_v25  ;;  %v11357_v27 = vpop.permute.xlu0 %11356  ;;  %1327 = vmatmul.mubr.bf16.gmra.mxu0 %v1061_v20 }
  0xd0   : > { %v11359_v44 = vunpack.i.h.bf16 %v11357_v27  ;;  %v11358_v6 = vunpack.i.l.bf16 %v11357_v27  ;;  %v11362_v17 = vpop.permute.xlu1 %11361 }
  0xd1   : > { %v11364_v53 = vunpack.i.h.bf16 %v11362_v17  ;;  %v11363_v16 = vunpack.i.l.bf16 %v11362_v17 }
  0xd2   : > { %v1014_v30 = vsel %vm999_vm6, %v989_v3, %v11358_v6  ;;  %v1015_v13 = vsel %vm999_vm6, %v990_v36, %v11359_v44 }
  0xd3   : > { %v1064_v22 = vpack.c.bf16 %v11364_v53, %v11363_v16  ;;  %v11367_v31 = vpop.permute.xlu0 %11366  ;;  %v1039_v9 = vsel %vm1024_vm7, %v1014_v30, %v11363_v16  ;;  %v1040_v52 = vsel %vm1024_vm7, %v1015_v13, %v11364_v53 }
  0xd4   : > { %v11369_v8 = vunpack.i.h.bf16 %v11367_v31  ;;  %v11368_v54 = vunpack.i.l.bf16 %v11367_v31  ;;  %v11372_v45 = vpop.permute.xlu1 %11371  ;;  %v1063_v61 = vpack.c.bf16 %v1040_v52, %v1039_v9 }
  0xd5   : > { %v11374_v11 = vunpack.i.h.bf16 %v11372_v45  ;;  %v11373_v60 = vunpack.i.l.bf16 %v11372_v45  ;;  %10559 = vmatprep.mubr.msk.bf16.mxu0 %vm1191_vm8, %v1064_v22 }
  0xd6   : > { %v967_v29 = vsel %vm949_vm4, %v12184_v48, %v11369_v8  ;;  %v966_v34 = vsel %vm949_vm4, %v12175_v38, %v11368_v54 }
  0xd7   : > { %v991_v1 = vsel %vm974_vm5, %v966_v34, %v11373_v60  ;;  %v992_v24 = vsel %vm974_vm5, %v967_v29, %v11374_v11  ;;  %v11377_v7 = vpop.permute.xlu0 %11376  ;;  %1337 = vmatmul.mubr.bf16.gmra.mxu0 %v1063_v61 }
  0xd8   : > { %v11379_v0 = vunpack.i.h.bf16 %v11377_v7  ;;  %v11378_v41 = vunpack.i.l.bf16 %v11377_v7  ;;  %v11382_v23 = vpop.permute.xlu1 %11381 }
  0xd9   : > { %v11384_v42 = vunpack.i.h.bf16 %v11382_v23  ;;  %v11383_v12 = vunpack.i.l.bf16 %v11382_v23 }
  0xda   : > { %v1016_v46 = vsel %vm999_vm6, %v991_v1, %v11378_v41  ;;  %v1017_v35 = vsel %vm999_vm6, %v992_v24, %v11379_v0 }
  0xdb   : > { %v1066_v32 = vpack.c.bf16 %v11384_v42, %v11383_v12  ;;  %v11387_v48 = vpop.permute.xlu0 %11386  ;;  %v1041_v33 = vsel %vm1024_vm7, %v1016_v46, %v11383_v12  ;;  %v1042_v38 = vsel %vm1024_vm7, %v1017_v35, %v11384_v42 }
  0xdc   : > { %v11389_v55 = vunpack.i.h.bf16 %v11387_v48  ;;  %v11388_v15 = vunpack.i.l.bf16 %v11387_v48  ;;  %v11392_v37 = vpop.permute.xlu1 %11391  ;;  %v1065_v10 = vpack.c.bf16 %v1042_v38, %v1041_v33 }
  0xdd   : > { %v11394_v56 = vunpack.i.h.bf16 %v11392_v37  ;;  %v11393_v39 = vunpack.i.l.bf16 %v11392_v37  ;;  %10560 = vmatprep.mubr.msk.bf16.mxu0 %vm1191_vm8, %v1066_v32  ;;  %v1093_v37 = vlaneseq }
  0xde   : > { %v969_v59 = vsel %vm949_vm4, %v12232_v18, %v11389_v55  ;;  %v968_v43 = vsel %vm949_vm4, %v12228_v14, %v11388_v15 }
  0xdf   : > { %v993_v62 = vsel %vm974_vm5, %v968_v43, %v11393_v39  ;;  %v994_v47 = vsel %vm974_vm5, %v969_v59, %v11394_v56  ;;  %v11397_v49 = vpop.permute.xlu0 %11396  ;;  %1347 = vmatmul.mubr.bf16.gmra.mxu0 %v1065_v10  ;;  %v12470_v10 = vshrl.u32 %v1093_v37, 7  ;;  %v11811_v59 = vmov 1983009808  }
  0xe0   : > { %v11399_v51 = vunpack.i.h.bf16 %v11397_v49  ;;  %v11398_v5 = vunpack.i.l.bf16 %v11397_v49  ;;  %v11402_v50 = vpop.permute.xlu1 %11401  ;;  %v1438_v43 = vunpack.c.l.s4 %v11811_v59 }
  0xe1   : > { %v11404_v57 = vunpack.i.h.bf16 %v11402_v50  ;;  %v11403_v2 = vunpack.i.l.bf16 %v11402_v50  ;;  %17858 = vst [vmem:[#allocation5_spill] sm:$0xff] %v12470_v10  ;;  %v12473_v56 = vsub.s32 0, %v12470_v10  ;;  %v17469_v39 = vsub.s32 1, %v12470_v10 }
  0xe2   : > { %v1018_v58 = vsel %vm999_vm6, %v993_v62, %v11398_v5  ;;  %v1019_v20 = vsel %vm999_vm6, %v994_v47, %v11399_v51  ;;  %v1091_v62 = vld [vmem:[%s17461_s2] sm:$0x3]  ;;  %v1439_v51 = vunpack.c.0.s8 %v1438_v43 }
  0xe3   : > { %v1068_v25 = vpack.c.bf16 %v11404_v57, %v11403_v2  ;;  %v11407_v18 = vpop.permute.xlu0 %11406  ;;  %v1043_v21 = vsel %vm1024_vm7, %v1018_v58, %v11403_v2  ;;  %v1044_v14 = vsel %vm1024_vm7, %v1019_v20, %v11404_v57  ;;  %17859 = vst [vmem:[#allocation6_spill] sm:$0xff] %v12473_v56  ;;  %v12480_v47 = vrot.slane %v1091_v62, %v12473_v56 }
  0xe4   : > { %v11409_v26 = vunpack.i.h.bf16 %v11407_v18  ;;  %v11408_v63 = vunpack.i.l.bf16 %v11407_v18  ;;  %v11412_v3 = vpop.permute.xlu1 %11411  ;;  %v1067_v36 = vpack.c.bf16 %v1044_v14, %v1043_v21  ;;  %v12484_v49 = vrot.slane %v1091_v62, %v17469_v39 }
  0xe5   : > { %v11414_v27 = vunpack.i.h.bf16 %v11412_v3  ;;  %v11413_v44 = vunpack.i.l.bf16 %v11412_v3  ;;  %10561 = vmatprep.mubr.msk.bf16.mxu0 %vm1191_vm8, %v1068_v25  ;;  %v12489_v58 = vsub.s32 %v1439_v51, %v12470_v10  ;;  %v12495_v3 = vsub.s32 2, %v12470_v10 }
  0xe6   : > { %v971_v6 = vsel %vm949_vm4, %v12256_v4, %v11409_v26  ;;  %v970_v17 = vsel %vm949_vm4, %v12235_v40, %v11408_v63 }
  0xe7   : > { %v995_v53 = vsel %vm974_vm5, %v970_v17, %v11413_v44  ;;  %v996_v16 = vsel %vm974_vm5, %v971_v6, %v11414_v27  ;;  %v11417_v30 = vpop.permute.xlu0 %11416  ;;  %1357 = vmatmul.mubr.bf16.gmra.mxu0 %v1067_v36  ;;  %17860 = vst [vmem:[#allocation7_spill] sm:$0xff] %v12489_v58  ;;  %17861 = vst [vmem:[#allocation8_spill] sm:$0xff] %v12495_v3 }
  0xe8   : > { %v11419_v13 = vunpack.i.h.bf16 %v11417_v30  ;;  %v11418_v22 = vunpack.i.l.bf16 %v11417_v30  ;;  %v11422_v31 = vpop.permute.xlu1 %11421 }
  0xe9   : > { %v11424_v9 = vunpack.i.h.bf16 %v11422_v31  ;;  %v11423_v52 = vunpack.i.l.bf16 %v11422_v31 }
  0xea   : > { %v1020_v8 = vsel %vm999_vm6, %v995_v53, %v11418_v22  ;;  %v1021_v54 = vsel %vm999_vm6, %v996_v16, %v11419_v13 }
  0xeb   : > { %v1070_v45 = vpack.c.bf16 %v11424_v9, %v11423_v52  ;;  %v11427_v4 = vpop.permute.xlu0 %11426  ;;  %v1045_v61 = vsel %vm1024_vm7, %v1020_v8, %v11423_v52  ;;  %v1046_v40 = vsel %vm1024_vm7, %v1021_v54, %v11424_v9 }
  0xec   : > { %v11429_v11 = vunpack.i.h.bf16 %v11427_v4  ;;  %v11428_v60 = vunpack.i.l.bf16 %v11427_v4  ;;  %v11432_v29 = vpop.permute.xlu1 %11431  ;;  %v1069_v34 = vpack.c.bf16 %v1046_v40, %v1045_v61 }
  0xed   : > { %v11434_v1 = vunpack.i.h.bf16 %v11432_v29  ;;  %v11433_v24 = vunpack.i.l.bf16 %v11432_v29  ;;  %10562 = vmatprep.mubr.msk.bf16.mxu0 %vm1191_vm8, %v1070_v45 }
  0xee   : > { %v973_v7 = vsel %vm949_vm4, %v12278_v28, %v11429_v11  ;;  %v972_v0 = vsel %vm949_vm4, %v12263_v19, %v11428_v60  ;;  %vm10397_vm4 = vcmask 1040384  }
  0xef   : > { %v997_v41 = vsel %vm974_vm5, %v972_v0, %v11433_v24  ;;  %v998_v23 = vsel %vm974_vm5, %v973_v7, %v11434_v1  ;;  %v11437_v42 = vpop.permute.xlu0 %11436  ;;  %1367 = vmatmul.mubr.bf16.gmra.mxu0 %v1069_v34  ;;  %vm11818_vm5 = vmmov 0  }
  0xf0   : > { %v11439_v12 = vunpack.i.h.bf16 %v11437_v42  ;;  %v11438_v46 = vunpack.i.l.bf16 %v11437_v42  ;;  %v11442_v35 = vpop.permute.xlu1 %11441 }
  0xf1   : > { %v11444_v32 = vunpack.i.h.bf16 %v11442_v35  ;;  %v11443_v48 = vunpack.i.l.bf16 %v11442_v35 }
  0xf2   : > { %v1022_v33 = vsel %vm999_vm6, %v997_v41, %v11438_v46  ;;  %v1023_v38 = vsel %vm999_vm6, %v998_v23, %v11439_v12  ;;  %vm10393_vm6 = vcmask 408576  }
  0xf3   : > { %v1072_v55 = vpack.c.bf16 %v11444_v32, %v11443_v48  ;;  %v1047_v28 = vsel %vm1024_vm7, %v1022_v33, %v11443_v48  ;;  %v1048_v19 = vsel %vm1024_vm7, %v1023_v38, %v11444_v32 }
  0xf4   : > { %v1071_v15 = vpack.c.bf16 %v1048_v19, %v1047_v28 }
  0xf5   : > { %10563 = vmatprep.mubr.msk.bf16.mxu0 %vm1191_vm8, %v1072_v55 }
  0xf7   : > { %1377 = vmatmul.mubr.bf16.gmra.mxu0 %v1071_v15 }
 0x15f   : > { %v1268_v5 = vpop.f32.mrf.mxu0 }
 0x160   : > { %v1269_v57 = vadd.f32 %v1268_v5, %v12480_v47 }
 0x161   : > { %v1270_v50 = vpop.f32.mrf.mxu0 }
 0x162   : > { %v1271_v2 = vadd.f32 %v1270_v50, %v12484_v49 }
 0x163   : > { %v1272_v20 = vpop.f32.mrf.mxu0 }
 0x164   : > { %v1435_v25 = vcombine.low %v1269_v57, %v1271_v2  ;;  %v1436_v18 = vcombine.high %v1269_v57, %v1271_v2  ;;  %v1273_v36 = vadd.f32 %v1272_v20, %v12480_v47 }
 0x165   : > { %v1274_v21 = vpop.f32.mrf.mxu0 }
 0x166   : > { %v1443_v14 = vrot.slane %v1435_v25, %v12489_v58  ;;  %v1450_v26 = vrot.slane %v1436_v18, %v12489_v58  ;;  %v1275_v63 = vadd.f32 %v1274_v21, %v12484_v49 }
 0x167   : > { %v1278_v27 = vpop.f32.mrf.mxu0 }
 0x168   : > { %v1451_v44 = vcombine.high %v1443_v14, %v1443_v14  ;;  %v1452_v6 = vcombine.high %v1450_v26, %v1450_v26  ;;  %v10564_v17 = vrot.slane %v1443_v14, 9  ;;  %v10566_v53 = vrot.slane %v1450_v26, 9 }
 0x169   : > { %v1453_v16 = vcombine.low %v1273_v36, %v1275_v63  ;;  %v1454_v30 = vcombine.high %v1273_v36, %v1275_v63  ;;  %v1280_v13 = vpop.f32.mrf.mxu0  ;;  %v1279_v45 = vadd.f32 %v1278_v27, %v12480_v47 }
 0x16a   : > { %v10565_v22 = vrot.slane %v1451_v44, 9  ;;  %v10567_v31 = vrot.slane %v1452_v6, 9  ;;  %v12498_v9 = vmax.f32 %v1443_v14, %v10564_v17  ;;  %v12500_v52 = vmax.f32 %v1450_v26, %v10566_v53 }
 0x16b   : > { %v1461_v8 = vrot.slane %v1453_v16, %v12489_v58  ;;  %v1468_v54 = vrot.slane %v1454_v30, %v12489_v58  ;;  %v1281_v4 = vadd.f32 %v1280_v13, %v12484_v49  ;;  %v1282_v61 = vpop.f32.mrf.mxu0 }
 0x16c   : > { %v12506_v40 = vmax.f32 %v1451_v44, %v10565_v22  ;;  %v12508_v11 = vmax.f32 %v1452_v6, %v10567_v31  ;;  %v2446_v60 = vrot.slane %v12498_v9, %v12473_v56  ;;  %v2450_v29 = vrot.slane %v12498_v9, %v12495_v3 }
 0x16d   : > { %v2462_v34 = vrot.slane %v12500_v52, %v12473_v56  ;;  %v2466_v1 = vrot.slane %v12500_v52, %v12495_v3  ;;  %v1469_v24 = vcombine.high %v1461_v8, %v1461_v8  ;;  %v1470_v7 = vcombine.high %v1468_v54, %v1468_v54  ;;  %v1284_v0 = vpop.f32.mrf.mxu0 }
 0x16e   : > { %v2454_v41 = vrot.slane %v12506_v40, %v12473_v56  ;;  %v2458_v23 = vrot.slane %v12506_v40, %v12495_v3  ;;  %v10568_v42 = vrot.slane %v1461_v8, 9  ;;  %v10570_v12 = vrot.slane %v1468_v54, 9 }
 0x16f   : > { %v10569_v46 = vrot.slane %v1469_v24, 9  ;;  %v10571_v35 = vrot.slane %v1470_v7, 9  ;;  %v1471_v32 = vcombine.low %v1279_v45, %v1281_v4  ;;  %v1472_v48 = vcombine.high %v1279_v45, %v1281_v4  ;;  %v1288_v33 = vpop.f32.mrf.mxu0 }
 0x170   : > { %v12522_v38 = vmax.f32 %v1461_v8, %v10568_v42  ;;  %v12524_v55 = vmax.f32 %v1468_v54, %v10570_v12  ;;  %v1283_v28 = vadd.f32 %v1282_v61, %v12480_v47  ;;  %v1285_v19 = vadd.f32 %v1284_v0, %v12484_v49 }
 0x171   : > { %v12528_v15 = vmax.f32 %v1469_v24, %v10569_v46  ;;  %v1479_v37 = vrot.slane %v1471_v32, %v12489_v58  ;;  %v1486_v59 = vrot.slane %v1472_v48, %v12489_v58  ;;  %v1289_v43 = vadd.f32 %v1288_v33, %v12480_v47  ;;  %v1290_v62 = vpop.f32.mrf.mxu0 }
 0x172   : > { %v1489_v51 = vcombine.low %v1283_v28, %v1285_v19  ;;  %v1490_v5 = vcombine.high %v1283_v28, %v1285_v19  ;;  %v1291_v50 = vadd.f32 %v1290_v62, %v12484_v49  ;;  %v12534_v57 = vmax.f32 %v1470_v7, %v10571_v35 }
 0x173   : > { %v1487_v2 = vcombine.high %v1479_v37, %v1479_v37  ;;  %v1488_v20 = vcombine.high %v1486_v59, %v1486_v59  ;;  %v10572_v25 = vrot.slane %v1479_v37, 9  ;;  %v10574_v18 = vrot.slane %v1486_v59, 9  ;;  %v1292_v21 = vpop.f32.mrf.mxu0 }
 0x174   : > { %v1497_v14 = vrot.slane %v1489_v51, %v12489_v58  ;;  %v1504_v26 = vrot.slane %v1490_v5, %v12489_v58  ;;  %v1507_v63 = vcombine.low %v1289_v43, %v1291_v50  ;;  %v1508_v36 = vcombine.high %v1289_v43, %v1291_v50 }
 0x175   : > { %v10573_v27 = vrot.slane %v1487_v2, 9  ;;  %v10575_v44 = vrot.slane %v1488_v20, 9  ;;  %v12538_v6 = vmax.f32 %v1479_v37, %v10572_v25  ;;  %v12540_v17 = vmax.f32 %v1486_v59, %v10574_v18  ;;  %v1294_v53 = vpop.f32.mrf.mxu0 }
 0x176   : > { %v1505_v16 = vcombine.high %v1497_v14, %v1497_v14  ;;  %v12542_v30 = vcombine.high %v1504_v26, %v1504_v26  ;;  %v10576_v13 = vrot.slane %v1497_v14, 9  ;;  %v10578_v22 = vrot.slane %v1504_v26, 9 }
 0x177   : > { %v12544_v31 = vmax.f32 %v1487_v2, %v10573_v27  ;;  %v12546_v8 = vmax.f32 %v1488_v20, %v10575_v44  ;;  %v2510_v54 = vrot.slane %v12538_v6, %v12473_v56  ;;  %v2514_v45 = vrot.slane %v12538_v6, %v12495_v3  ;;  %v1298_v4 = vpop.f32.mrf.mxu0 }
 0x178   : > { %v2530_v24 = vrot.slane %v12540_v17, %v12495_v3  ;;  %v10577_v7 = vrot.slane %v1505_v16, 9  ;;  %v10579_v0 = vrot.slane %v12542_v30, 9  ;;  %v12561_v46 = vmax.f32 %v1497_v14, %v10576_v13 }
 0x179   : > { %17862 = vst [vmem:[#allocation9_spill] sm:$0xff] %v12546_v8  ;;  %v2518_v42 = vrot.slane %v12544_v31, %v12473_v56  ;;  %v2522_v12 = vrot.slane %v12544_v31, %v12495_v3  ;;  %v12563_v35 = vmax.f32 %v1504_v26, %v10578_v22  ;;  %v1300_v32 = vpop.f32.mrf.mxu0  ;;  %v1515_v33 = vrot.slane %v1507_v63, %v12489_v58 }
 0x17a   : > { %v12565_v48 = vmax.f32 %v1505_v16, %v10577_v7  ;;  %v1522_v28 = vrot.slane %v1508_v36, %v12489_v58  ;;  %v1293_v19 = vadd.f32 %v1292_v21, %v12480_v47  ;;  %v1295_v37 = vadd.f32 %v1294_v53, %v12484_v49 }
 0x17b   : > { %17863 = vst [vmem:[#allocation10_spill] sm:$0xff] %v12563_v35  ;;  %v12572_v59 = vadd.f32 %v1298_v4, %v12480_v47  ;;  %v2474_v43 = vrot.slane %v12508_v11, %v12495_v3  ;;  %v2482_v62 = vrot.slane %v12522_v38, %v12495_v3  ;;  %v1302_v51 = vpop.f32.mrf.mxu0  ;;  %v1523_v5 = vcombine.high %v1515_v33, %v1515_v33 }
 0x17c   : > { %17864 = vst [vmem:[#allocation11_spill] sm:$0xff] %v12565_v48  ;;  %v1524_v50 = vcombine.high %v1522_v28, %v1522_v28  ;;  %v10580_v2 = vrot.slane %v1515_v33, 9  ;;  %v10582_v20 = vrot.slane %v1522_v28, 9  ;;  %v1525_v25 = vcombine.low %v1293_v19, %v1295_v37 }
 0x17d   : > { %v1526_v18 = vcombine.high %v1293_v19, %v1295_v37  ;;  %v2490_v21 = vrot.slane %v12528_v15, %v12495_v3  ;;  %v2498_v14 = vrot.slane %v12524_v55, %v12495_v3  ;;  %v1304_v26 = vpop.f32.mrf.mxu0  ;;  %v10581_v63 = vrot.slane %v1523_v5, 9 }
 0x17e   : > { %v10583_v36 = vrot.slane %v1524_v50, 9  ;;  %v12582_v27 = vmax.f32 %v1515_v33, %v10580_v2  ;;  %v12584_v44 = vmax.f32 %v1522_v28, %v10582_v20  ;;  %v1533_v53 = vrot.slane %v1525_v25, %v12489_v58 }
 0x17f   : > { %v1540_v16 = vrot.slane %v1526_v18, %v12489_v58  ;;  %v2506_v13 = vrot.slane %v12534_v57, %v12495_v3  ;;  %v3225_v22 = vsel %vm3211_vm9, %v2458_v23, %v2450_v29  ;;  %v12597_v4 = vmax.f32 %v1523_v5, %v10581_v63  ;;  %v1308_v29 = vpop.f32.mrf.mxu0 }
 0x180   : > { %17865 = vst [vmem:[#allocation12_spill] sm:$0xff] %v12582_v27  ;;  %17866 = vst [vmem:[#allocation13_spill] sm:$0xff] %v12584_v44  ;;  %v12599_v7 = vmax.f32 %v1524_v50, %v10583_v36  ;;  %v1541_v2 = vcombine.high %v1533_v53, %v1533_v53  ;;  %v10584_v50 = vrot.slane %v1533_v53, 9  ;;  %v3226_v36 = vsel %vm3213_vm10, %v2466_v1, %v3225_v22 }
 0x181   : > { %17867 = vst [vmem:[#allocation14_spill] sm:$0xff] %v12597_v4  ;;  %v12609_v20 = vcombine.high %v1540_v16, %v1540_v16  ;;  %v10586_v25 = vrot.slane %v1540_v16, 9  ;;  %v2470_v39 = vrot.slane %v12508_v11, %v12473_v56  ;;  %v3227_v23 = vsel %vm3215_vm11, %v2474_v43, %v3226_v36  ;;  %v12636_v22 = vpop.f32.mrf.mxu0 }
 0x182   : > { %17868 = vst [vmem:[#allocation15_spill] sm:$0xff] %v12599_v7  ;;  %v10585_v18 = vrot.slane %v1541_v2, 9  ;;  %v12622_v19 = vmax.f32 %v1533_v53, %v10584_v50  ;;  %v2478_v37 = vrot.slane %v12522_v38, %v12473_v56  ;;  %v3228_v28 = vsel %vm3217_vm12, %v2482_v62, %v3227_v23 }
 0x183   : > { %v12624_v33 = vmax.f32 %v1540_v16, %v10586_v25  ;;  %v2486_v63 = vrot.slane %v12528_v15, %v12473_v56  ;;  %v2494_v1 = vrot.slane %v12524_v55, %v12473_v56  ;;  %v3229_v53 = vsel %vm3219_vm13, %v2490_v21, %v3228_v28 }
 0x184   : > { %17869 = vst [vmem:[#allocation16_spill] sm:$0xff] %v12622_v19  ;;  %v12629_v5 = vmax.f32 %v1541_v2, %v10585_v18  ;;  %v2502_v43 = vrot.slane %v12534_v57, %v12473_v56  ;;  %v3212_v62 = vsel %vm3211_vm9, %v2454_v41, %v2446_v60  ;;  %v1301_v16 = vadd.f32 %v1300_v32, %v12484_v49 }
 0x185   : > { %17870 = vst [vmem:[#allocation17_spill] sm:$0xff] %v12624_v33  ;;  %v3230_v2 = vsel %vm3221_vm14, %v2498_v14, %v3229_v53  ;;  %v3214_v21 = vsel %vm3213_vm10, %v2462_v34, %v3212_v62  ;;  %v1303_v28 = vadd.f32 %v1302_v51, %v12480_v47  ;;  %v1305_v23 = vadd.f32 %v1304_v26, %v12484_v49  ;;  %v1312_v51 = vpop.f32.mrf.mxu0 }
 0x186   : > { %17871 = vst [vmem:[#allocation18_spill] sm:$0xff] %v12629_v5  ;;  %v3231_v50 = vsel %vm3223_vm15, %v2506_v13, %v3230_v2  ;;  %v3216_v25 = vsel %vm3215_vm11, %v2470_v39, %v3214_v21  ;;  %v1543_v18 = vcombine.low %v12572_v59, %v1301_v16  ;;  %v1544_v60 = vcombine.high %v12572_v59, %v1301_v16 }
 0x187   : > { %3388 = vrot.lane.b32.xlu1 %v3231_v50, %s11812_s16  ;;  %v3218_v41 = vsel %vm3217_vm12, %v2478_v37, %v3216_v25  ;;  %v1561_v32 = vcombine.low %v1303_v28, %v1305_v23  ;;  %v1562_v14 = vcombine.high %v1303_v28, %v1305_v23  ;;  %v12663_v34 = vadd.f32 %v1308_v29, %v12480_v47 }
 0x188   : > { %v3220_v26 = vsel %vm3219_vm13, %v2486_v63, %v3218_v41  ;;  %v1551_v13 = vrot.slane %v1543_v18, %v12489_v58  ;;  %v1558_v39 = vrot.slane %v1544_v60, %v12489_v58  ;;  %v12671_v59 = vmax.f32 %v12542_v30, %v10579_v0 }
 0x189   : > { %v3222_v36 = vsel %vm3221_vm14, %v2494_v1, %v3220_v26  ;;  %v1569_v37 = vrot.slane %v1561_v32, %v12489_v58  ;;  %v1576_v53 = vrot.slane %v1562_v14, %v12489_v58  ;;  %v2538_v29 = vrot.slane %v12546_v8, %v12495_v3  ;;  %v1314_v1 = vpop.f32.mrf.mxu0 }
 0x18a   : > { %17872 = vst [vmem:[#allocation19_spill] sm:$0xff] %v12671_v59  ;;  %v3224_v63 = vsel %vm3223_vm15, %v2502_v43, %v3222_v36  ;;  %v1559_v62 = vcombine.high %v1551_v13, %v1551_v13  ;;  %v1560_v16 = vcombine.high %v1558_v39, %v1558_v39  ;;  %v10588_v2 = vrot.slane %v1551_v13, 9 }
 0x18b   : > { %3386 = vrot.lane.b32.xlu0 %v3224_v63, %s11812_s16  ;;  %v10590_v21 = vrot.slane %v1558_v39, 9  ;;  %v1577_v28 = vcombine.high %v1569_v37, %v1569_v37  ;;  %v12680_v30 = vcombine.high %v1576_v53, %v1576_v53  ;;  %v10592_v0 = vrot.slane %v1569_v37, 9 }
 0x18c   : > { %v10589_v23 = vrot.slane %v1559_v62, 9  ;;  %v10591_v50 = vrot.slane %v1560_v16, 9  ;;  %v12682_v25 = vmax.f32 %v1551_v13, %v10588_v2  ;;  %v10594_v18 = vrot.slane %v1576_v53, 9 }
 0x18d   : > { %v12684_v60 = vmax.f32 %v1558_v39, %v10590_v21  ;;  %v10593_v41 = vrot.slane %v1577_v28, 9  ;;  %v12687_v32 = vmax.f32 %v1569_v37, %v10592_v0  ;;  %v2546_v0 = vrot.slane %v12561_v46, %v12495_v3 }
 0x18e   : > { %17873 = vst [vmem:[#allocation20_spill] sm:$0xff] %v12682_v25  ;;  %v12689_v14 = vmax.f32 %v1559_v62, %v10589_v23  ;;  %v12691_v26 = vmax.f32 %v1560_v16, %v10591_v50  ;;  %v12704_v62 = vmax.f32 %v1576_v53, %v10594_v18  ;;  %v1318_v16 = vpop.f32.mrf.mxu0  ;;  %v2554_v23 = vrot.slane %v12565_v48, %v12495_v3 }
 0x18f   : > { %17874 = vst [vmem:[#allocation21_spill] sm:$0xff] %v12684_v60  ;;  %17875 = vst [vmem:[#allocation22_spill] sm:$0xff] %v12687_v32  ;;  %3459 = vrot.lane.b32.xlu0 %v3224_v63, %s11813_s27  ;;  %v12702_v37 = vmax.f32 %v1577_v28, %v10593_v41  ;;  %v2562_v63 = vrot.slane %v12563_v35, %v12495_v3  ;;  %v2570_v53 = vrot.slane %v12671_v59, %v12495_v3 }
 0x190   : > { %17876 = vst [vmem:[#allocation23_spill] sm:$0xff] %v12689_v14  ;;  %17877 = vst [vmem:[#allocation24_spill] sm:$0xff] %v12691_v26  ;;  %v3239_v28 = vsel %vm3211_vm9, %v2522_v12, %v2514_v45  ;;  %v2534_v50 = vrot.slane %v12546_v8, %v12473_v56  ;;  %v2542_v41 = vrot.slane %v12561_v46, %v12473_v56 }
 0x191   : > { %17878 = vst [vmem:[#allocation25_spill] sm:$0xff] %v12702_v37  ;;  %17879 = vst [vmem:[#allocation26_spill] sm:$0xff] %v12704_v62  ;;  %v3240_v18 = vsel %vm3213_vm10, %v2530_v24, %v3239_v28  ;;  %v2550_v39 = vrot.slane %v12565_v48, %v12473_v56  ;;  %v2558_v21 = vrot.slane %v12563_v35, %v12473_v56  ;;  %v12749_v28 = vpop.f32.mrf.mxu0 }
 0x192   : > { %v3241_v61 = vsel %vm3215_vm11, %v2538_v29, %v3240_v18  ;;  %v2566_v45 = vrot.slane %v12671_v59, %v12473_v56  ;;  %v3232_v24 = vsel %vm3211_vm9, %v2518_v42, %v2510_v54  ;;  %v1311_v12 = vadd.f32 %v12636_v22, %v12484_v49 }
 0x193   : > { %v3242_v13 = vsel %vm3217_vm12, %v2546_v0, %v3241_v61  ;;  %v17880_v29 = vrot.slane %v12540_v17, %v12473_v56  ;;  %v1313_v2 = vadd.f32 %v1312_v51, %v12480_v47  ;;  %v1315_v36 = vadd.f32 %v1314_v1, %v12484_v49 }
 0x194   : > { %v3243_v43 = vsel %vm3219_vm13, %v2554_v23, %v3242_v13  ;;  %v1579_v42 = vcombine.low %v12663_v34, %v1311_v12  ;;  %v1580_v22 = vcombine.high %v12663_v34, %v1311_v12  ;;  %v1322_v23 = vpop.f32.mrf.mxu0  ;;  %v2674_v48 = vrot.slane %v12687_v32, %v12495_v3 }
 0x195   : > { %v3233_v18 = vsel %vm3213_vm10, %v17880_v29, %v3232_v24  ;;  %v3244_v10 = vsel %vm3221_vm14, %v2562_v63, %v3243_v43  ;;  %v1597_v0 = vcombine.low %v1313_v2, %v1315_v36  ;;  %v1598_v59 = vcombine.high %v1313_v2, %v1315_v36 }
 0x196   : > { %v3234_v54 = vsel %vm3215_vm11, %v2534_v50, %v3233_v18  ;;  %v3245_v24 = vsel %vm3223_vm15, %v2570_v53, %v3244_v10  ;;  %v1587_v1 = vrot.slane %v1579_v42, %v12489_v58  ;;  %v1594_v13 = vrot.slane %v1580_v22, %v12489_v58  ;;  %v1324_v42 = vpop.f32.mrf.mxu0 }
 0x197   : > { %v3235_v61 = vsel %vm3217_vm12, %v2542_v41, %v3234_v54  ;;  %3392 = vrot.lane.b32.xlu1 %v3245_v24, %s11812_s16  ;;  %v1605_v34 = vrot.slane %v1597_v0, %v12489_v58  ;;  %v1612_v43 = vrot.slane %v1598_v59, %v12489_v58  ;;  %v12773_v63 = vadd.f32 %v1318_v16, %v12480_v47 }
 0x198   : > { %v3236_v51 = vsel %vm3219_vm13, %v2550_v39, %v3235_v61  ;;  %v1595_v36 = vcombine.high %v1587_v1, %v1587_v1  ;;  %v1596_v39 = vcombine.high %v1594_v13, %v1594_v13  ;;  %v10596_v2 = vrot.slane %v1587_v1, 9 }
 0x199   : > { %v3237_v50 = vsel %vm3221_vm14, %v2558_v21, %v3236_v51  ;;  %v10598_v53 = vrot.slane %v1594_v13, 9  ;;  %v1613_v41 = vcombine.high %v1605_v34, %v1605_v34  ;;  %v12777_v12 = vcombine.high %v1612_v43, %v1612_v43 }
 0x19a   : > { %v3238_v10 = vsel %vm3223_vm15, %v2566_v45, %v3237_v50  ;;  %v10600_v29 = vrot.slane %v1605_v34, 9  ;;  %v10597_v21 = vrot.slane %v1595_v36, 9  ;;  %v10599_v18 = vrot.slane %v1596_v39, 9 }
 0x19b   : > { %3390 = vrot.lane.b32.xlu0 %v3238_v10, %s11812_s16  ;;  %v12779_v54 = vmax.f32 %v1587_v1, %v10596_v2  ;;  %v10602_v59 = vrot.slane %v1612_v43, 9  ;;  %v12781_v16 = vmax.f32 %v1594_v13, %v10598_v53  ;;  %3461 = vrot.lane.b32.xlu1 %v3238_v10, %s11813_s27  ;;  %v10601_v45 = vrot.slane %v1613_v41, 9 }
 0x19c   : > { %v12785_v61 = vmax.f32 %v1605_v34, %v10600_v29  ;;  %v12787_v0 = vmax.f32 %v1595_v36, %v10597_v21  ;;  %v12789_v24 = vmax.f32 %v1596_v39, %v10599_v18  ;;  %v17887_v2 = vrot.slane %v12609_v20, 9  ;;  %v1328_v21 = vpop.f32.mrf.mxu0 }
 0x19d   : > { %17881 = vst [vmem:[#allocation27_spill] sm:$0xff] %v12781_v16  ;;  %v12799_v10 = vmax.f32 %v1613_v41, %v10601_v45  ;;  %v12801_v34 = vmax.f32 %v1612_v43, %v10602_v59  ;;  %v2602_v29 = vrot.slane %v12599_v7, %v12495_v3  ;;  %v2610_v41 = vrot.slane %v12622_v19, %v12495_v3 }
 0x19e   : > { %17882 = vst [vmem:[#allocation28_spill] sm:$0xff] %v12785_v61  ;;  %17883 = vst [vmem:[#allocation29_spill] sm:$0xff] %v12787_v0  ;;  %v12810_v53 = vmax.f32 %v12609_v20, %v17887_v2  ;;  %v2618_v43 = vrot.slane %v12629_v5, %v12495_v3  ;;  %v2626_v18 = vrot.slane %v12624_v33, %v12495_v3 }
 0x19f   : > { %17884 = vst [vmem:[#allocation30_spill] sm:$0xff] %v12789_v24  ;;  %17885 = vst [vmem:[#allocation31_spill] sm:$0xff] %v12799_v10  ;;  %v17889_v59 = vrot.slane %v12582_v27, %v12495_v3  ;;  %v17890_v20 = vrot.slane %v12597_v4, %v12495_v3  ;;  %v17891_v50 = vrot.slane %v12584_v44, %v12495_v3 }
 0x1a0   : > { %17886 = vst [vmem:[#allocation32_spill] sm:$0xff] %v12801_v34  ;;  %17888 = vst [vmem:[#allocation33_spill] sm:$0xff] %v12810_v53  ;;  %v2634_v2 = vrot.slane %v12810_v53, %v12495_v3  ;;  %v2598_v1 = vrot.slane %v12599_v7, %v12473_v56  ;;  %v2606_v13 = vrot.slane %v12622_v19, %v12473_v56 }
 0x1a1   : > { %v3253_v45 = vsel %vm3211_vm9, %v17890_v20, %v17889_v59  ;;  %v2614_v51 = vrot.slane %v12629_v5, %v12473_v56  ;;  %v2622_v59 = vrot.slane %v12624_v33, %v12473_v56  ;;  %v2630_v20 = vrot.slane %v12810_v53, %v12473_v56  ;;  %v12855_v5 = vpop.f32.mrf.mxu0 }
 0x1a2   : > { %v3254_v39 = vsel %vm3213_vm10, %v17891_v50, %v3253_v45  ;;  %v17892_v50 = vrot.slane %v12582_v27, %v12473_v56  ;;  %v17893_v45 = vrot.slane %v12597_v4, %v12473_v56  ;;  %v1325_v53 = vadd.f32 %v1324_v42, %v12484_v49  ;;  %v11477_v42 = vld [vmem:[%s17462_s3 + $0x254] ss:$8 sps:$4 sm:$0xff]  }
 0x1a3   : > { %v3255_v36 = vsel %vm3215_vm11, %v2602_v29, %v3254_v39  ;;  %v1321_v39 = vadd.f32 %v12749_v28, %v12484_v49  ;;  %v1323_v29 = vadd.f32 %v1322_v23, %v12480_v47  ;;  %v12864_v4 = vadd.f32 %v1328_v21, %v12480_v47  ;;  %v11472_v28 = vld [vmem:[%s17462_s3 + $0x164] ss:$8 sps:$4 sm:$0xff]   ;;  %v11474_v23 = vld [vmem:[%s17462_s3 + $0x160] ss:$8 sps:$4 sm:$0xff]   ;;  %v11478_v21 = vld [vmem:[%s17462_s3 + $0x154] ss:$8 sps:$4 sm:$0xff]   ;;  %6864 = vmatprep.subr.bf16.mxu0 %v11477_v42 }
 0x1a4   : > { %v3256_v22 = vsel %vm3217_vm12, %v2610_v41, %v3255_v36  ;;  %v3246_v7 = vsel %vm3211_vm9, %v17893_v45, %v17892_v50  ;;  %v17894_v36 = vrot.slane %v12584_v44, %v12473_v56  ;;  %5723 = vmatprep.subr.bf16.mxu1 %v11472_v28  ;;  %v11481_v42 = vld [vmem:[%s17462_s3 + $0x240] ss:$8 sps:$4 sm:$0xff]   ;;  %v2682_v8 = vrot.slane %v12702_v37, %v12495_v3 }
 0x1a5   : > { %v3257_v33 = vsel %vm3219_vm13, %v2618_v43, %v3256_v22  ;;  %v1615_v50 = vcombine.low %v12773_v63, %v1321_v39  ;;  %v1633_v44 = vcombine.low %v1323_v29, %v1325_v53  ;;  %5724 = vmatpush1.bf16.msra.mxu1 %v11474_v23 }
 0x1a6   : > { %v3247_v41 = vsel %vm3213_vm10, %v17894_v36, %v3246_v7  ;;  %v3258_v22 = vsel %vm3221_vm14, %v2626_v18, %v3257_v33  ;;  %v1616_v7 = vcombine.high %v12773_v63, %v1321_v39  ;;  %v1634_v33 = vcombine.high %v1323_v29, %v1325_v53  ;;  %v11483_v53 = vld [vmem:[%s17462_s3 + $0x244] ss:$8 sps:$4 sm:$0xff]   ;;  %5725 = vmatprep.subr.bf16.mxu1 %v11478_v21 }
 0x1a7   : > { %v3248_v43 = vsel %vm3215_vm11, %v2598_v1, %v3247_v41  ;;  %v3259_v45 = vsel %vm3223_vm15, %v2634_v2, %v3258_v22  ;;  %v11475_v1 = vld [vmem:[%s17462_s3 + $0x250] ss:$8 sps:$4 sm:$0xff]   ;;  %v1623_v18 = vrot.slane %v1615_v50, %v12489_v58  ;;  %v17895_v41 = vrot.slane %v12680_v30, 9 }
 0x1a8   : > { %v3249_v36 = vsel %vm3217_vm12, %v2606_v13, %v3248_v43  ;;  %3396 = vrot.lane.b32.xlu1 %v3259_v45, %s11812_s16  ;;  %v1630_v39 = vrot.slane %v1616_v7, %v12489_v58  ;;  %v12896_v13 = vpop.f32.mrf.mxu0  ;;  %v1641_v28 = vrot.slane %v1633_v44, %v12489_v58  ;;  %v2662_v22 = vrot.slane %v12691_v26, %v12473_v56  ;;  %v11484_v44 = vld [vmem:[%s17462_s3 + $0x144] ss:$8 sps:$4 sm:$0xff]  }
 0x1a9   : > { %v3250_v63 = vsel %vm3219_vm13, %v2614_v51, %v3249_v36  ;;  %v12894_v2 = vmax.f32 %v12680_v30, %v17895_v41  ;;  %v1648_v51 = vrot.slane %v1634_v33, %v12489_v58  ;;  %v11480_v30 = vld [vmem:[%s17462_s3 + $0x150] ss:$8 sps:$4 sm:$0xff]   ;;  %v1631_v50 = vcombine.high %v1623_v18, %v1623_v18  ;;  %6865 = vmatpush1.bf16.msra.mxu0 %v11475_v1  ;;  %v11486_v1 = vld [vmem:[%s17462_s3 + $0x140] ss:$8 sps:$4 sm:$0xff]  }
 0x1aa   : > { %v3251_v29 = vsel %vm3221_vm14, %v2622_v59, %v3250_v63  ;;  %v1632_v7 = vcombine.high %v1630_v39, %v1630_v39  ;;  %v10604_v45 = vrot.slane %v1623_v18, 9  ;;  %v10606_v59 = vrot.slane %v1630_v39, 9  ;;  %v1334_v19 = vpop.f32.mrf.mxu0  ;;  %6866 = vmatprep.subr.bf16.mxu0 %v11483_v53  ;;  %5726 = vmatpush1.bf16.msra.mxu1 %v11480_v30  ;;  %v11489_v53 = vld [vmem:[%s17462_s3 + $0x234] ss:$8 sps:$4 sm:$0xff]  }
 0x1ab   : > { %17896 = vst [vmem:[#allocation34_spill] sm:$0xff] %v12894_v2  ;;  %v3252_v43 = vsel %vm3223_vm15, %v2630_v20, %v3251_v29  ;;  %v1649_v36 = vcombine.high %v1641_v28, %v1641_v28  ;;  %v12914_v23 = vcombine.high %v1648_v51, %v1648_v51  ;;  %v10608_v33 = vrot.slane %v1641_v28, 9  ;;  %5727 = vmatprep.subr.bf16.mxu1 %v11484_v44  ;;  %v11490_v44 = vld [vmem:[%s17462_s3 + $0x134] ss:$8 sps:$4 sm:$0xff]  }
 0x1ac   : > { %3394 = vrot.lane.b32.xlu0 %v3252_v43, %s11812_s16  ;;  %v10605_v63 = vrot.slane %v1631_v50, 9  ;;  %v10607_v41 = vrot.slane %v1632_v7, 9  ;;  %v12916_v20 = vmax.f32 %v1623_v18, %v10604_v45  ;;  %v10610_v29 = vrot.slane %v1648_v51, 9 }
 0x1ad   : > { %v12921_v21 = vmax.f32 %v1630_v39, %v10606_v59  ;;  %v10609_v27 = vrot.slane %v1649_v36, 9  ;;  %v12924_v35 = vmax.f32 %v1641_v28, %v10608_v33  ;;  %6867 = vmatpush1.bf16.msra.mxu0 %v11481_v42  ;;  %v17904_v30 = vrot.slane %v12689_v14, %v12473_v56  ;;  %v11492_v39 = vld [vmem:[%s17462_s3 + $0x130] ss:$8 sps:$4 sm:$0xff]  }
 0x1ae   : > { %v12929_v18 = vmax.f32 %v1631_v50, %v10605_v63  ;;  %v12931_v45 = vmax.f32 %v1632_v7, %v10607_v41  ;;  %v12947_v7 = vmax.f32 %v1648_v51, %v10610_v29  ;;  %v2670_v63 = vrot.slane %v12687_v32, %v12473_v56  ;;  %v11487_v51 = vld [vmem:[%s17462_s3 + $0x230] ss:$8 sps:$4 sm:$0xff]   ;;  %5728 = vmatpush1.bf16.msra.mxu1 %v11486_v1  ;;  %v11495_v1 = vld [vmem:[%s17462_s3 + $0x224] ss:$8 sps:$4 sm:$0xff]  }
 0x1af   : > { %17897 = vst [vmem:[#allocation35_spill] sm:$0xff] %v12921_v21  ;;  %17898 = vst [vmem:[#allocation36_spill] sm:$0xff] %v12924_v35  ;;  %v12945_v50 = vmax.f32 %v1649_v36, %v10609_v27  ;;  %v1338_v27 = vpop.f32.mrf.mxu0  ;;  %v2686_v36 = vrot.slane %v12704_v62, %v12473_v56  ;;  %v2694_v41 = vrot.slane %v12894_v2, %v12473_v56  ;;  %6868 = vmatprep.subr.bf16.mxu0 %v11489_v53 }
 0x1b0   : > { %17899 = vst [vmem:[#allocation37_spill] sm:$0xff] %v12929_v18  ;;  %17900 = vst [vmem:[#allocation38_spill] sm:$0xff] %v12931_v45  ;;  %3463 = vrot.lane.b32.xlu0 %v3252_v43, %s11813_s27  ;;  %v2678_v43 = vrot.slane %v12702_v37, %v12473_v56  ;;  %v17903_v29 = vrot.slane %v12682_v25, %v12473_v56  ;;  %v2666_v42 = vrot.slane %v12691_v26, %v12495_v3 }
 0x1b1   : > { %17901 = vst [vmem:[#allocation39_spill] sm:$0xff] %v12945_v50  ;;  %17902 = vst [vmem:[#allocation40_spill] sm:$0xff] %v12947_v7  ;;  %v17905_v28 = vrot.slane %v12684_v60, %v12473_v56  ;;  %v2698_v26 = vrot.slane %v12894_v2, %v12495_v3  ;;  %v1331_v53 = vadd.f32 %v12855_v5, %v12484_v49  ;;  %5729 = vmatprep.subr.bf16.mxu1 %v11490_v44 }
 0x1b2   : > { %v3260_v33 = vsel %vm3211_vm9, %v17904_v30, %v17903_v29  ;;  %v2690_v30 = vrot.slane %v12704_v62, %v12495_v3  ;;  %v11496_v62 = vld [vmem:[%s17462_s3 + $0x124] ss:$8 sps:$4 sm:$0xff]   ;;  %v1333_v32 = vadd.f32 %v12896_v13, %v12480_v47  ;;  %6869 = vmatpush1.bf16.msra.mxu0 %v11487_v51  ;;  %5730 = vmatpush1.bf16.msra.mxu1 %v11492_v39 }
 0x1b3   : > { %v3261_v59 = vsel %vm3213_vm10, %v17905_v28, %v3260_v33  ;;  %v17906_v28 = vrot.slane %v12682_v25, %v12495_v3  ;;  %v17907_v33 = vrot.slane %v12689_v14, %v12495_v3  ;;  %v1651_v14 = vcombine.low %v12864_v4, %v1331_v53  ;;  %6870 = vmatprep.subr.bf16.mxu0 %v11495_v1 }
 0x1b4   : > { %v3262_v29 = vsel %vm3215_vm11, %v2662_v22, %v3261_v59  ;;  %v17908_v59 = vrot.slane %v12684_v60, %v12495_v3  ;;  %5731 = vmatprep.subr.bf16.mxu1 %v11496_v62  ;;  %v13041_v1 = vadd.f32 %v1338_v27, %v12480_v47  ;;  %v11499_v62 = vld [vmem:[%s17462_s3 + $0x210] ss:$8 sps:$4 sm:$0xff]   ;;  %v2746_v60 = vrot.slane %v12799_v10, %v12495_v3 }
 0x1b5   : > { %v3267_v37 = vsel %vm3211_vm9, %v17907_v33, %v17906_v28  ;;  %v3263_v22 = vsel %vm3217_vm12, %v2670_v63, %v3262_v29  ;;  %v1335_v28 = vadd.f32 %v1334_v19, %v12484_v49  ;;  %v13015_v33 = vpop.f32.mrf.mxu0  ;;  %v1652_v63 = vcombine.high %v12864_v4, %v1331_v53  ;;  %v11498_v19 = vld [vmem:[%s17462_s3 + $0x120] ss:$8 sps:$4 sm:$0xff]   ;;  %v11501_v4 = vld [vmem:[%s17462_s3 + $0x214] ss:$8 sps:$4 sm:$0xff]  }
 0x1b6   : > { %v3268_v2 = vsel %vm3213_vm10, %v17908_v59, %v3267_v37  ;;  %v3264_v5 = vsel %vm3219_vm13, %v2678_v43, %v3263_v22  ;;  %v11493_v37 = vld [vmem:[%s17462_s3 + $0x220] ss:$8 sps:$4 sm:$0xff]   ;;  %5732 = vmatpush1.bf16.msra.mxu1 %v11498_v19  ;;  %v2730_v19 = vrot.slane %v12789_v24, %v12495_v3  ;;  %v2754_v25 = vrot.slane %v12801_v34, %v12495_v3 }
 0x1b7   : > { %v3269_v44 = vsel %vm3215_vm11, %v2666_v42, %v3268_v2  ;;  %v3265_v13 = vsel %vm3221_vm14, %v2686_v36, %v3264_v5  ;;  %v1669_v43 = vcombine.low %v1333_v32, %v1335_v28  ;;  %v1670_v29 = vcombine.high %v1333_v32, %v1335_v28  ;;  %v13043_v22 = vpop.f32.mrf.mxu0  ;;  %6871 = vmatpush1.bf16.msra.mxu0 %v11493_v37 }
 0x1b8   : > { %v3270_v51 = vsel %vm3217_vm12, %v2674_v48, %v3269_v44  ;;  %v3266_v2 = vsel %vm3223_vm15, %v2694_v41, %v3265_v13  ;;  %v1659_v42 = vrot.slane %v1651_v14, %v12489_v58  ;;  %v1666_v53 = vrot.slane %v1652_v63, %v12489_v58  ;;  %6872 = vmatprep.subr.bf16.mxu0 %v11501_v4  ;;  %v11504_v4 = vld [vmem:[%s17462_s3 + $0x110] ss:$8 sps:$4 sm:$0xff]  }
 0x1b9   : > { %v3271_v39 = vsel %vm3219_vm13, %v2682_v8, %v3270_v51  ;;  %3398 = vrot.lane.b32.xlu1 %v3266_v2, %s11812_s16  ;;  %v1677_v32 = vrot.slane %v1669_v43, %v12489_v58  ;;  %v1684_v36 = vrot.slane %v1670_v29, %v12489_v58  ;;  %v1344_v29 = vpop.f32.mrf.mxu0 }
 0x1ba   : > { %v3272_v48 = vsel %vm3221_vm14, %v2690_v30, %v3271_v39  ;;  %v1667_v41 = vcombine.high %v1659_v42, %v1659_v42  ;;  %v1668_v14 = vcombine.high %v1666_v53, %v1666_v53  ;;  %v10612_v59 = vrot.slane %v1659_v42, 9  ;;  %v11502_v39 = vld [vmem:[%s17462_s3 + $0x114] ss:$8 sps:$4 sm:$0xff]  }
 0x1bb   : > { %v3273_v8 = vsel %vm3223_vm15, %v2698_v26, %v3272_v48  ;;  %v10614_v30 = vrot.slane %v1666_v53, 9  ;;  %v1685_v28 = vcombine.high %v1677_v32, %v1677_v32  ;;  %v13050_v5 = vcombine.high %v1684_v36, %v1684_v36  ;;  %6873 = vmatpush1.bf16.msra.mxu0 %v11499_v62  ;;  %5733 = vmatprep.subr.bf16.mxu1 %v11502_v39  ;;  %v11508_v62 = vld [vmem:[%s17462_s3 + $0x104] ss:$8 sps:$4 sm:$0xff]  }
 0x1bc   : > { %3400 = vrot.lane.b32.xlu0 %v3273_v8, %s11812_s16  ;;  %v10616_v27 = vrot.slane %v1677_v32, 9  ;;  %v10613_v44 = vrot.slane %v1667_v41, 9  ;;  %v10615_v63 = vrot.slane %v1668_v14, 9  ;;  %v13052_v26 = vmax.f32 %v1659_v42, %v10612_v59  ;;  %v11507_v8 = vld [vmem:[%s17462_s3 + $0x204] ss:$8 sps:$4 sm:$0xff]   ;;  %5734 = vmatpush1.bf16.msra.mxu1 %v11504_v4 }
 0x1bd   : > { %v10618_v13 = vrot.slane %v1684_v36, 9  ;;  %v13054_v51 = vmax.f32 %v1666_v53, %v10614_v30  ;;  %3465 = vrot.lane.b32.xlu1 %v3266_v2, %s11813_s27  ;;  %v10617_v37 = vrot.slane %v1685_v28, 9  ;;  %v2750_v39 = vrot.slane %v12801_v34, %v12473_v56  ;;  %6874 = vmatprep.subr.bf16.mxu0 %v11507_v8  ;;  %v11513_v2 = vld [vmem:[%s17462_s3 + $0x1f4] ss:$8 sps:$4 sm:$0xff]   ;;  %v11511_v8 = vld [vmem:[%s17462_s3 + $0x1f0] ss:$8 sps:$4 sm:$0xff]  }
 0x1be   : > { %17909 = vst [vmem:[#allocation41_spill] sm:$0xff] %v13052_v26  ;;  %v13058_v43 = vmax.f32 %v1677_v32, %v10616_v27  ;;  %v13066_v42 = vmax.f32 %v1667_v41, %v10613_v44  ;;  %v13068_v53 = vmax.f32 %v1668_v14, %v10615_v63  ;;  %v11505_v32 = vld [vmem:[%s17462_s3 + $0x200] ss:$8 sps:$4 sm:$0xff]   ;;  %v17916_v63 = vrot.slane %v12777_v12, 9  ;;  %v1348_v27 = vpop.f32.mrf.mxu0  ;;  %5735 = vmatprep.subr.bf16.mxu1 %v11508_v62 }
 0x1bf   : > { %17910 = vst [vmem:[#allocation42_spill] sm:$0xff] %v13054_v51  ;;  %v13084_v59 = vmax.f32 %v1685_v28, %v10617_v37  ;;  %v13086_v30 = vmax.f32 %v1684_v36, %v10618_v13  ;;  %v2726_v36 = vrot.slane %v12789_v24, %v12473_v56  ;;  %v11510_v28 = vld [vmem:[%s17462_s3 + $0x100] ss:$8 sps:$4 sm:$0xff]   ;;  %v2734_v13 = vrot.slane %v12785_v61, %v12473_v56 }
 0x1c0   : > { %17911 = vst [vmem:[#allocation43_spill] sm:$0xff] %v13058_v43  ;;  %17912 = vst [vmem:[#allocation44_spill] sm:$0xff] %v13066_v42  ;;  %v13098_v41 = vmax.f32 %v12777_v12, %v17916_v63  ;;  %v2742_v37 = vrot.slane %v12799_v10, %v12473_v56  ;;  %v17918_v12 = vrot.slane %v12779_v54, %v12473_v56  ;;  %6875 = vmatpush1.bf16.msra.mxu0 %v11505_v32 }
 0x1c1   : > { %17913 = vst [vmem:[#allocation45_spill] sm:$0xff] %v13068_v53  ;;  %17914 = vst [vmem:[#allocation46_spill] sm:$0xff] %v13084_v59  ;;  %v17919_v63 = vrot.slane %v12787_v0, %v12473_v56  ;;  %v17920_v44 = vrot.slane %v12781_v16, %v12473_v56  ;;  %v17921_v32 = vrot.slane %v12779_v54, %v12495_v3  ;;  %5736 = vmatpush1.bf16.msra.mxu1 %v11510_v28 }
 0x1c2   : > { %17915 = vst [vmem:[#allocation47_spill] sm:$0xff] %v13086_v30  ;;  %17917 = vst [vmem:[#allocation48_spill] sm:$0xff] %v13098_v41  ;;  %v2758_v14 = vrot.slane %v13098_v41, %v12473_v56  ;;  %v17922_v24 = vrot.slane %v12787_v0, %v12495_v3  ;;  %v1343_v34 = vadd.f32 %v13043_v22, %v12480_v47  ;;  %6876 = vmatprep.subr.bf16.mxu0 %v11513_v2 }
 0x1c3   : > { %v3274_v4 = vsel %vm3211_vm9, %v17919_v63, %v17918_v12  ;;  %v2738_v12 = vrot.slane %v12785_v61, %v12495_v3  ;;  %v17923_v62 = vrot.slane %v12781_v16, %v12495_v3  ;;  %v13160_v10 = vadd.f32 %v1348_v27, %v12480_v47 }
 0x1c4   : > { %v3275_v48 = vsel %vm3213_vm10, %v17920_v44, %v3274_v4  ;;  %v2762_v44 = vrot.slane %v13098_v41, %v12495_v3  ;;  %6877 = vmatpush1.bf16.msra.mxu0 %v11511_v8  ;;  %v2794_v61 = vrot.slane %v12931_v45, %v12495_v3  ;;  %v2802_v16 = vrot.slane %v12924_v35, %v12495_v3 }
 0x1c5   : > { %v3276_v63 = vsel %vm3215_vm11, %v2726_v36, %v3275_v48  ;;  %v3281_v48 = vsel %vm3211_vm9, %v17922_v24, %v17921_v32  ;;  %v1341_v36 = vadd.f32 %v13015_v33, %v12484_v49  ;;  %v13162_v24 = vpop.f32.mrf.mxu0  ;;  %v17936_v0 = vrot.slane %v12916_v20, %v12495_v3 }
 0x1c6   : > { %v3277_v4 = vsel %vm3217_vm12, %v2734_v13, %v3276_v63  ;;  %v3282_v13 = vsel %vm3213_vm10, %v17923_v62, %v3281_v48  ;;  %v1345_v63 = vadd.f32 %v1344_v29, %v12484_v49 }
 0x1c7   : > { %v3278_v41 = vsel %vm3219_vm13, %v2742_v37, %v3277_v4  ;;  %v3283_v22 = vsel %vm3215_vm11, %v2730_v19, %v3282_v13  ;;  %v1687_v28 = vcombine.low %v13041_v1, %v1341_v36  ;;  %v1688_v37 = vcombine.high %v13041_v1, %v1341_v36  ;;  %v1352_v8 = vpop.f32.mrf.mxu0 }
 0x1c8   : > { %v3279_v33 = vsel %vm3221_vm14, %v2750_v39, %v3278_v41  ;;  %v3284_v32 = vsel %vm3217_vm12, %v2738_v12, %v3283_v22  ;;  %v1705_v29 = vcombine.low %v1343_v34, %v1345_v63  ;;  %v1706_v48 = vcombine.high %v1343_v34, %v1345_v63 }
 0x1c9   : > { %v3280_v4 = vsel %vm3223_vm15, %v2758_v14, %v3279_v33  ;;  %v3285_v27 = vsel %vm3219_vm13, %v2746_v60, %v3284_v32  ;;  %v1695_v2 = vrot.slane %v1687_v28, %v12489_v58  ;;  %v1702_v41 = vrot.slane %v1688_v37, %v12489_v58 }
 0x1ca   : > { %3402 = vrot.lane.b32.xlu1 %v3280_v4, %s11812_s16  ;;  %v17924_v19 = vrot.slane %v12914_v23, 9  ;;  %v3286_v1 = vsel %vm3221_vm14, %v2754_v25, %v3285_v27  ;;  %v1713_v14 = vrot.slane %v1705_v29, %v12489_v58  ;;  %v1720_v12 = vrot.slane %v1706_v48, %v12489_v58 }
 0x1cb   : > { %v2790_v34 = vrot.slane %v12931_v45, %v12473_v56  ;;  %v3287_v60 = vsel %vm3223_vm15, %v2762_v44, %v3286_v1  ;;  %v1703_v36 = vcombine.high %v1695_v2, %v1695_v2  ;;  %v1704_v62 = vcombine.high %v1702_v41, %v1702_v41 }
 0x1cc   : > { %v13177_v39 = vmax.f32 %v12914_v23, %v17924_v19  ;;  %v10620_v13 = vrot.slane %v1695_v2, 9  ;;  %3404 = vrot.lane.b32.xlu0 %v3287_v60, %s11812_s16  ;;  %v10622_v63 = vrot.slane %v1702_v41, 9  ;;  %v1721_v23 = vcombine.high %v1713_v14, %v1713_v14  ;;  %v1354_v19 = vpop.f32.mrf.mxu0 }
 0x1cd   : > { %v13186_v33 = vcombine.high %v1720_v12, %v1720_v12  ;;  %v10624_v25 = vrot.slane %v1713_v14, 9  ;;  %v10621_v22 = vrot.slane %v1703_v36, 9  ;;  %v10623_v28 = vrot.slane %v1704_v62, 9 }
 0x1ce   : > { %17925 = vst [vmem:[#allocation49_spill] sm:$0xff] %v13177_v39  ;;  %v13188_v37 = vmax.f32 %v1695_v2, %v10620_v13  ;;  %v10626_v32 = vrot.slane %v1720_v12, 9  ;;  %v13190_v29 = vmax.f32 %v1702_v41, %v10622_v63  ;;  %v10625_v48 = vrot.slane %v1721_v23, 9  ;;  %v1358_v13 = vpop.f32.mrf.mxu0 }
 0x1cf   : > { %v13193_v27 = vmax.f32 %v1713_v14, %v10624_v25  ;;  %v13195_v1 = vmax.f32 %v1703_v36, %v10621_v22  ;;  %v13197_v60 = vmax.f32 %v1704_v62, %v10623_v28  ;;  %v11514_v62 = vld [vmem:[%s17462_s3 + $0xf4] ss:$8 sps:$4 sm:$0xff]   ;;  %v2798_v22 = vrot.slane %v12924_v35, %v12473_v56  ;;  %v11517_v25 = vld [vmem:[%s17462_s3 + $0x1e0] ss:$8 sps:$4 sm:$0xff]  }
 0x1d0   : > { %17926 = vst [vmem:[#allocation50_spill] sm:$0xff] %v13188_v37  ;;  %17927 = vst [vmem:[#allocation51_spill] sm:$0xff] %v13190_v29  ;;  %3467 = vrot.lane.b32.xlu0 %v3280_v4, %s11813_s27  ;;  %v13208_v14 = vmax.f32 %v1721_v23, %v10625_v48  ;;  %v13210_v36 = vmax.f32 %v1720_v12, %v10626_v32  ;;  %v2806_v4 = vrot.slane %v12945_v50, %v12473_v56  ;;  %v11516_v12 = vld [vmem:[%s17462_s3 + $0xf0] ss:$8 sps:$4 sm:$0xff]   ;;  %v11519_v23 = vld [vmem:[%s17462_s3 + $0x1e4] ss:$8 sps:$4 sm:$0xff]  }
 0x1d1   : > { %17928 = vst [vmem:[#allocation52_spill] sm:$0xff] %v13193_v27  ;;  %17929 = vst [vmem:[#allocation53_spill] sm:$0xff] %v13195_v1  ;;  %v2814_v28 = vrot.slane %v12947_v7, %v12473_v56  ;;  %v2822_v32 = vrot.slane %v13177_v39, %v12473_v56  ;;  %v17933_v48 = vrot.slane %v12916_v20, %v12473_v56  ;;  %5737 = vmatprep.subr.bf16.mxu1 %v11514_v62 }
 0x1d2   : > { %17930 = vst [vmem:[#allocation54_spill] sm:$0xff] %v13197_v60  ;;  %17931 = vst [vmem:[#allocation55_spill] sm:$0xff] %v13208_v14  ;;  %v17934_v41 = vrot.slane %v12929_v18, %v12473_v56  ;;  %v17935_v2 = vrot.slane %v12921_v21, %v12473_v56  ;;  %5738 = vmatpush1.bf16.msra.mxu1 %v11516_v12  ;;  %v2826_v45 = vrot.slane %v13177_v39, %v12495_v3  ;;  %v11520_v12 = vld [vmem:[%s17462_s3 + $0x1d4] ss:$8 sps:$4 sm:$0xff]  }
 0x1d3   : > { %17932 = vst [vmem:[#allocation56_spill] sm:$0xff] %v13210_v36  ;;  %6878 = vmatprep.subr.bf16.mxu0 %v11519_v23  ;;  %5741 = vmatprep.subr.bf16.mxu1 %v11520_v12 }
 0x1d4   : > { %v3288_v63 = vsel %vm3211_vm9, %v17934_v41, %v17933_v48  ;;  %v2810_v41 = vrot.slane %v12945_v50, %v12495_v3  ;;  %v2818_v48 = vrot.slane %v12947_v7, %v12495_v3  ;;  %v1351_v50 = vadd.f32 %v13162_v24, %v12484_v49  ;;  %6879 = vmatpush1.bf16.msra.mxu0 %v11517_v25  ;;  %v11525_v24 = vld [vmem:[%s17462_s3 + $0x2c4] ss:$8 sps:$4 sm:$0xff]  }
 0x1d5   : > { %v3289_v44 = vsel %vm3213_vm10, %v17935_v2, %v3288_v63  ;;  %v17937_v2 = vrot.slane %v12929_v18, %v12495_v3  ;;  %v1353_v7 = vadd.f32 %v1352_v8, %v12480_v47  ;;  %v1355_v18 = vadd.f32 %v1354_v19, %v12484_v49  ;;  %v13287_v8 = vpop.f32.mrf.mxu0  ;;  %v11523_v19 = vld [vmem:[%s17462_s3 + $0x2c0] ss:$8 sps:$4 sm:$0xff]   ;;  %6882 = vmatprep.subr.bf16.mxu0 %v11525_v24 }
 0x1d6   : > { %v3290_v62 = vsel %vm3215_vm11, %v2790_v34, %v3289_v44  ;;  %v17938_v44 = vrot.slane %v12921_v21, %v12495_v3 }
 0x1d7   : > { %v3295_v63 = vsel %vm3211_vm9, %v17937_v2, %v17936_v0  ;;  %v3291_v34 = vsel %vm3217_vm12, %v2798_v22, %v3290_v62  ;;  %v11522_v0 = vld [vmem:[%s17462_s3 + $0x1d0] ss:$8 sps:$4 sm:$0xff]   ;;  %v1723_v62 = vcombine.low %v13160_v10, %v1351_v50  ;;  %v1724_v2 = vcombine.high %v13160_v10, %v1351_v50 }
 0x1d8   : > { %v3296_v39 = vsel %vm3213_vm10, %v17938_v44, %v3295_v63  ;;  %v3292_v22 = vsel %vm3219_vm13, %v2806_v4, %v3291_v34  ;;  %v1741_v44 = vcombine.low %v1353_v7, %v1355_v18  ;;  %v1742_v21 = vcombine.high %v1353_v7, %v1355_v18  ;;  %5742 = vmatpush2.bf16.msra.mxu1 %v11522_v0  ;;  %v11526_v7 = vld [vmem:[%s17462_s3 + $0x1c4] ss:$8 sps:$4 sm:$0xff]   ;;  %v1362_v0 = vpop.f32.mrf.mxu0 }
 0x1d9   : > { %v3297_v23 = vsel %vm3215_vm11, %v2794_v61, %v3296_v39  ;;  %v3293_v25 = vsel %vm3221_vm14, %v2814_v28, %v3292_v22  ;;  %v1731_v10 = vrot.slane %v1723_v62, %v12489_v58  ;;  %v1738_v50 = vrot.slane %v1724_v2, %v12489_v58  ;;  %6883 = vmatpush2.bf16.msra.mxu0 %v11523_v19 }
 0x1da   : > { %v3298_v63 = vsel %vm3217_vm12, %v2802_v16, %v3297_v23  ;;  %v3294_v61 = vsel %vm3223_vm15, %v2822_v32, %v3293_v25  ;;  %v1749_v28 = vrot.slane %v1741_v44, %v12489_v58  ;;  %v1756_v16 = vrot.slane %v1742_v21, %v12489_v58  ;;  %v11531_v21 = vld [vmem:[%s17462_s3 + $0x2b4] ss:$8 sps:$4 sm:$0xff]   ;;  %5743 = vmatprep.subr.bf16.mxu1 %v11526_v7  ;;  %v11529_v23 = vld [vmem:[%s17462_s3 + $0x2b0] ss:$8 sps:$4 sm:$0xff]  }
 0x1db   : > { %v3299_v39 = vsel %vm3219_vm13, %v2810_v41, %v3298_v63  ;;  %3406 = vrot.lane.b32.xlu1 %v3294_v61, %s11812_s16  ;;  %v13303_v18 = vadd.f32 %v1358_v13, %v12480_v47  ;;  %v1739_v41 = vcombine.high %v1731_v10, %v1731_v10  ;;  %v1740_v12 = vcombine.high %v1738_v50, %v1738_v50  ;;  %v11532_v7 = vld [vmem:[%s17462_s3 + $0x1b4] ss:$8 sps:$4 sm:$0xff]  }
 0x1dc   : > { %v3300_v4 = vsel %vm3221_vm14, %v2818_v48, %v3299_v39  ;;  %v10628_v34 = vrot.slane %v1731_v10, 9  ;;  %v11528_v48 = vld [vmem:[%s17462_s3 + $0x1c0] ss:$8 sps:$4 sm:$0xff]   ;;  %v10630_v13 = vrot.slane %v1738_v50, 9  ;;  %v1757_v24 = vcombine.high %v1749_v28, %v1749_v28  ;;  %6884 = vmatprep.subr.bf16.mxu0 %v11531_v21 }
 0x1dd   : > { %v3301_v32 = vsel %vm3223_vm15, %v2826_v45, %v3300_v4  ;;  %v13316_v22 = vcombine.high %v1756_v16, %v1756_v16  ;;  %v10632_v45 = vrot.slane %v1749_v28, 9  ;;  %v10629_v62 = vrot.slane %v1739_v41, 9  ;;  %5744 = vmatpush2.bf16.msra.mxu1 %v11528_v48  ;;  %6885 = vmatpush2.bf16.msra.mxu0 %v11529_v23  ;;  %v11537_v48 = vld [vmem:[%s17462_s3 + $0x2a4] ss:$8 sps:$4 sm:$0xff]  }
 0x1de   : > { %3408 = vrot.lane.b32.xlu0 %v3301_v32, %s11812_s16  ;;  %v10631_v2 = vrot.slane %v1740_v12, 9  ;;  %v13321_v19 = vmax.f32 %v1731_v10, %v10628_v34  ;;  %v10634_v25 = vrot.slane %v1756_v16, 9  ;;  %v13323_v63 = vmax.f32 %v1738_v50, %v10630_v13  ;;  %5745 = vmatprep.subr.bf16.mxu1 %v11532_v7 }
 0x1df   : > { %3469 = vrot.lane.b32.xlu1 %v3294_v61, %s11813_s27  ;;  %v10633_v44 = vrot.slane %v1757_v24, 9  ;;  %v13327_v4 = vmax.f32 %v1749_v28, %v10632_v45  ;;  %v13332_v32 = vmax.f32 %v1739_v41, %v10629_v62  ;;  %v1364_v61 = vpop.f32.mrf.mxu0  ;;  %v11534_v28 = vld [vmem:[%s17462_s3 + $0x1b0] ss:$8 sps:$4 sm:$0xff]   ;;  %v11535_v45 = vld [vmem:[%s17462_s3 + $0x2a0] ss:$8 sps:$4 sm:$0xff]   ;;  %v17948_v7 = vrot.slane %v13052_v26, %v12495_v3  ;;  %6886 = vmatprep.subr.bf16.mxu0 %v11537_v48 }
 0x1e0   : > { %17939 = vst [vmem:[#allocation57_spill] sm:$0xff] %v13321_v19  ;;  %17940 = vst [vmem:[#allocation58_spill] sm:$0xff] %v13323_v63  ;;  %v13334_v10 = vmax.f32 %v1740_v12, %v10631_v2  ;;  %v13352_v13 = vmax.f32 %v1756_v16, %v10634_v25  ;;  %v17946_v2 = vrot.slane %v13050_v5, 9  ;;  %v2858_v16 = vrot.slane %v13068_v53, %v12495_v3 }
 0x1e1   : > { %17941 = vst [vmem:[#allocation59_spill] sm:$0xff] %v13327_v4  ;;  %17942 = vst [vmem:[#allocation60_spill] sm:$0xff] %v13332_v32  ;;  %v13350_v21 = vmax.f32 %v1757_v24, %v10633_v44  ;;  %5746 = vmatpush2.bf16.msra.mxu1 %v11534_v28  ;;  %v2866_v24 = vrot.slane %v13058_v43, %v12495_v3  ;;  %v2874_v25 = vrot.slane %v13084_v59, %v12495_v3  ;;  %v1368_v50 = vpop.f32.mrf.mxu0 }
 0x1e2   : > { %17943 = vst [vmem:[#allocation61_spill] sm:$0xff] %v13334_v10  ;;  %17945 = vst [vmem:[#allocation63_spill] sm:$0xff] %v13352_v13  ;;  %v13364_v41 = vmax.f32 %v13050_v5, %v17946_v2  ;;  %v2882_v44 = vrot.slane %v13086_v30, %v12495_v3  ;;  %v17949_v5 = vrot.slane %v13066_v42, %v12495_v3  ;;  %6887 = vmatpush2.bf16.msra.mxu0 %v11535_v45 }
 0x1e3   : > { %17944 = vst [vmem:[#allocation62_spill] sm:$0xff] %v13350_v21  ;;  %v17950_v23 = vrot.slane %v13054_v51, %v12495_v3  ;;  %v2854_v12 = vrot.slane %v13068_v53, %v12473_v56  ;;  %v2862_v62 = vrot.slane %v13058_v43, %v12473_v56  ;;  %v2870_v48 = vrot.slane %v13084_v59, %v12473_v56 }
 0x1e4   : > { %17947 = vst [vmem:[#allocation64_spill] sm:$0xff] %v13364_v41  ;;  %v3309_v2 = vsel %vm3211_vm9, %v17949_v5, %v17948_v7  ;;  %v2890_v28 = vrot.slane %v13364_v41, %v12495_v3  ;;  %v2878_v7 = vrot.slane %v13086_v30, %v12473_v56  ;;  %v2886_v5 = vrot.slane %v13364_v41, %v12473_v56 }
 0x1e5   : > { %v3310_v34 = vsel %vm3213_vm10, %v17950_v23, %v3309_v2  ;;  %v17951_v2 = vrot.slane %v13052_v26, %v12473_v56  ;;  %v17952_v53 = vrot.slane %v13066_v42, %v12473_v56  ;;  %v17953_v41 = vrot.slane %v13054_v51, %v12473_v56  ;;  %v11541_v26 = vld [vmem:[%s17462_s3 + $0x290] ss:$8 sps:$4 sm:$0xff]  }
 0x1e6   : > { %v3311_v39 = vsel %vm3215_vm11, %v2858_v16, %v3310_v34  ;;  %v1361_v34 = vadd.f32 %v13287_v8, %v12484_v49  ;;  %v1363_v16 = vadd.f32 %v1362_v0, %v12480_v47  ;;  %v13416_v59 = vadd.f32 %v1368_v50, %v12480_v47 }
 0x1e7   : > { %v3312_v23 = vsel %vm3217_vm12, %v2866_v24, %v3311_v39  ;;  %v3302_v45 = vsel %vm3211_vm9, %v17952_v53, %v17951_v2  ;;  %v1365_v24 = vadd.f32 %v1364_v61, %v12484_v49  ;;  %v2934_v43 = vrot.slane %v13208_v14, %v12473_v56 }
 0x1e8   : > { %v3313_v30 = vsel %vm3219_vm13, %v2874_v25, %v3312_v23  ;;  %v3303_v39 = vsel %vm3213_vm10, %v17953_v41, %v3302_v45  ;;  %v1759_v8 = vcombine.low %v13303_v18, %v1361_v34  ;;  %v1760_v0 = vcombine.high %v13303_v18, %v1361_v34 }
 0x1e9   : > { %v3314_v42 = vsel %vm3221_vm14, %v2882_v44, %v3313_v30  ;;  %v3304_v53 = vsel %vm3215_vm11, %v2854_v12, %v3303_v39  ;;  %v1777_v2 = vcombine.low %v1363_v16, %v1365_v24  ;;  %v1778_v51 = vcombine.high %v1363_v16, %v1365_v24 }
 0x1ea   : > { %v3315_v25 = vsel %vm3223_vm15, %v2890_v28, %v3314_v42  ;;  %v3305_v23 = vsel %vm3217_vm12, %v2862_v62, %v3304_v53  ;;  %v1767_v50 = vrot.slane %v1759_v8, %v12489_v58  ;;  %v1774_v30 = vrot.slane %v1760_v0, %v12489_v58  ;;  %v1370_v28 = vpop.f32.mrf.mxu0 }
 0x1eb   : > { %3412 = vrot.lane.b32.xlu1 %v3315_v25, %s11812_s16  ;;  %v3306_v61 = vsel %vm3219_vm13, %v2870_v48, %v3305_v23  ;;  %v17954_v41 = vrot.slane %v13186_v33, 9  ;;  %v1785_v42 = vrot.slane %v1777_v2, %v12489_v58  ;;  %v1792_v62 = vrot.slane %v1778_v51, %v12489_v58 }
 0x1ec   : > { %v3307_v18 = vsel %vm3221_vm14, %v2878_v7, %v3306_v61  ;;  %v2922_v44 = vrot.slane %v13197_v60, %v12495_v3  ;;  %v1775_v45 = vcombine.high %v1767_v50, %v1767_v50  ;;  %v1776_v34 = vcombine.high %v1774_v30, %v1774_v30  ;;  %v1372_v61 = vpop.f32.mrf.mxu0 }
 0x1ed   : > { %v13431_v12 = vmax.f32 %v13186_v33, %v17954_v41  ;;  %v3308_v48 = vsel %vm3223_vm15, %v2886_v5, %v3307_v18  ;;  %v10636_v16 = vrot.slane %v1767_v50, 9  ;;  %v10638_v39 = vrot.slane %v1774_v30, 9  ;;  %v11543_v5 = vld [vmem:[%s17462_s3 + $0x294] ss:$8 sps:$4 sm:$0xff]  }
 0x1ee   : > { %3410 = vrot.lane.b32.xlu0 %v3308_v48, %s11812_s16  ;;  %v1793_v33 = vcombine.high %v1785_v42, %v1785_v42  ;;  %v13440_v24 = vcombine.high %v1792_v62, %v1792_v62  ;;  %v10640_v7 = vrot.slane %v1785_v42, 9  ;;  %v10637_v53 = vrot.slane %v1775_v45, 9  ;;  %6888 = vmatprep.subr.bf16.mxu0 %v11543_v5 }
 0x1ef   : > { %17955 = vst [vmem:[#allocation65_spill] sm:$0xff] %v13431_v12  ;;  %v10639_v8 = vrot.slane %v1776_v34, 9  ;;  %v13442_v0 = vmax.f32 %v1767_v50, %v10636_v16  ;;  %v10642_v51 = vrot.slane %v1792_v62, 9  ;;  %v13444_v25 = vmax.f32 %v1774_v30, %v10638_v39  ;;  %v1374_v16 = vpop.f32.mrf.mxu0  ;;  %v11538_v39 = vld [vmem:[%s17462_s3 + $0x1a4] ss:$8 sps:$4 sm:$0xff]   ;;  %6889 = vmatpush2.bf16.msra.mxu0 %v11541_v26 }
 0x1f0   : > { %v10641_v23 = vrot.slane %v1793_v33, 9  ;;  %v13447_v2 = vmax.f32 %v1785_v42, %v10640_v7  ;;  %v13449_v41 = vmax.f32 %v1775_v45, %v10637_v53  ;;  %v2930_v7 = vrot.slane %v13193_v27, %v12495_v3  ;;  %5747 = vmatprep.subr.bf16.mxu1 %v11538_v39  ;;  %v11547_v26 = vld [vmem:[%s17462_s3 + $0x280] ss:$8 sps:$4 sm:$0xff]  }
 0x1f1   : > { %17956 = vst [vmem:[#allocation66_spill] sm:$0xff] %v13442_v0  ;;  %17957 = vst [vmem:[#allocation67_spill] sm:$0xff] %v13444_v25  ;;  %v13451_v18 = vmax.f32 %v1776_v34, %v10639_v8  ;;  %v13464_v45 = vmax.f32 %v1792_v62, %v10642_v51  ;;  %v2938_v53 = vrot.slane %v13208_v14, %v12495_v3  ;;  %v1378_v35 = vpop.f32.mrf.mxu0 }
 0x1f2   : > { %17958 = vst [vmem:[#allocation68_spill] sm:$0xff] %v13447_v2  ;;  %17959 = vst [vmem:[#allocation69_spill] sm:$0xff] %v13449_v41  ;;  %3471 = vrot.lane.b32.xlu0 %v3308_v48, %s11813_s27  ;;  %v13462_v42 = vmax.f32 %v1793_v33, %v10641_v23  ;;  %v2946_v8 = vrot.slane %v13210_v36, %v12495_v3  ;;  %v2954_v48 = vrot.slane %v13431_v12, %v12495_v3 }
 0x1f3   : > { %17960 = vst [vmem:[#allocation70_spill] sm:$0xff] %v13451_v18  ;;  %17962 = vst [vmem:[#allocation72_spill] sm:$0xff] %v13464_v45  ;;  %v17963_v62 = vrot.slane %v13188_v37, %v12495_v3  ;;  %v17964_v33 = vrot.slane %v13195_v1, %v12495_v3  ;;  %v2918_v23 = vrot.slane %v13197_v60, %v12473_v56 }
 0x1f4   : > { %17961 = vst [vmem:[#allocation71_spill] sm:$0xff] %v13462_v42  ;;  %v17965_v50 = vrot.slane %v13190_v29, %v12495_v3  ;;  %v2926_v34 = vrot.slane %v13193_v27, %v12473_v56  ;;  %v17967_v14 = vrot.slane %v13195_v1, %v12473_v56  ;;  %v1371_v27 = vadd.f32 %v1370_v28, %v12484_v49 }
 0x1f5   : > { %v3323_v51 = vsel %vm3211_vm9, %v17964_v33, %v17963_v62  ;;  %v2942_v62 = vrot.slane %v13210_v36, %v12473_v56  ;;  %v11540_v33 = vld [vmem:[%s17462_s3 + $0x1a0] ss:$8 sps:$4 sm:$0xff]   ;;  %v1375_v1 = vadd.f32 %v1374_v16, %v12484_v49 }
 0x1f6   : > { %v3324_v30 = vsel %vm3213_vm10, %v17965_v50, %v3323_v51  ;;  %v2950_v50 = vrot.slane %v13431_v12, %v12473_v56  ;;  %v17966_v51 = vrot.slane %v13188_v37, %v12473_v56  ;;  %v1373_v37 = vadd.f32 %v1372_v61, %v12480_v47  ;;  %5748 = vmatpush2.bf16.msra.mxu1 %v11540_v33 }
 0x1f7   : > { %v3325_v60 = vsel %vm3215_vm11, %v2922_v44, %v3324_v30  ;;  %v17968_v30 = vrot.slane %v13190_v29, %v12473_v56  ;;  %v1795_v39 = vcombine.low %v13416_v59, %v1371_v27 }
 0x1f8   : > { %v3316_v36 = vsel %vm3211_vm9, %v17967_v14, %v17966_v51  ;;  %v3326_v44 = vsel %vm3217_vm12, %v2930_v7, %v3325_v60  ;;  %v1796_v51 = vcombine.high %v13416_v59, %v1371_v27  ;;  %v11544_v60 = vld [vmem:[%s17462_s3 + $0x194] ss:$8 sps:$4 sm:$0xff]   ;;  %v1813_v16 = vcombine.low %v1373_v37, %v1375_v1  ;;  %v11549_v59 = vld [vmem:[%s17462_s3 + $0x284] ss:$8 sps:$4 sm:$0xff]  }
 0x1f9   : > { %v3317_v12 = vsel %vm3213_vm10, %v17968_v30, %v3316_v36  ;;  %v3327_v14 = vsel %vm3219_vm13, %v2938_v53, %v3326_v44  ;;  %v1814_v7 = vcombine.high %v1373_v37, %v1375_v1  ;;  %v1803_v53 = vrot.slane %v1795_v39, %v12489_v58  ;;  %5749 = vmatprep.subr.bf16.mxu1 %v11544_v60  ;;  %v1380_v30 = vpop.f32.mrf.mxu0 }
 0x1fa   : > { %v3318_v28 = vsel %vm3215_vm11, %v2918_v23, %v3317_v12  ;;  %v3328_v36 = vsel %vm3221_vm14, %v2946_v8, %v3327_v14  ;;  %v11546_v12 = vld [vmem:[%s17462_s3 + $0x190] ss:$8 sps:$4 sm:$0xff]   ;;  %v1810_v8 = vrot.slane %v1796_v51, %v12489_v58  ;;  %v1821_v1 = vrot.slane %v1813_v16, %v12489_v58  ;;  %6890 = vmatprep.subr.bf16.mxu0 %v11549_v59 }
 0x1fb   : > { %v3319_v61 = vsel %vm3217_vm12, %v2926_v34, %v3318_v28  ;;  %v3329_v27 = vsel %vm3223_vm15, %v2954_v48, %v3328_v36  ;;  %v1828_v34 = vrot.slane %v1814_v7, %v12489_v58  ;;  %v13554_v48 = vadd.f32 %v1378_v35, %v12480_v47  ;;  %5750 = vmatpush2.bf16.msra.mxu1 %v11546_v12 }
 0x1fc   : > { %v3320_v5 = vsel %vm3219_vm13, %v2934_v43, %v3319_v61  ;;  %3416 = vrot.lane.b32.xlu1 %v3329_v27, %s11812_s16  ;;  %v1811_v23 = vcombine.high %v1803_v53, %v1803_v53  ;;  %v1812_v33 = vcombine.high %v1810_v8, %v1810_v8  ;;  %v10644_v44 = vrot.slane %v1803_v53, 9  ;;  %6891 = vmatpush2.bf16.msra.mxu0 %v11547_v26 }
 0x1fd   : > { %v3321_v37 = vsel %vm3221_vm14, %v2942_v62, %v3320_v5  ;;  %v10646_v14 = vrot.slane %v1810_v8, 9  ;;  %v1829_v28 = vcombine.high %v1821_v1, %v1821_v1  ;;  %v13558_v62 = vcombine.high %v1828_v34, %v1828_v34 }
 0x1fe   : > { %v3322_v43 = vsel %vm3223_vm15, %v2950_v50, %v3321_v37  ;;  %v10648_v39 = vrot.slane %v1821_v1, 9  ;;  %v10645_v51 = vrot.slane %v1811_v23, 9  ;;  %v10647_v60 = vrot.slane %v1812_v33, 9 }
 0x1ff   : > { %3414 = vrot.lane.b32.xlu0 %v3322_v43, %s11812_s16  ;;  %v13560_v35 = vmax.f32 %v1803_v53, %v10644_v44  ;;  %v10650_v36 = vrot.slane %v1828_v34, 9  ;;  %v13562_v50 = vmax.f32 %v1810_v8, %v10646_v14  ;;  %v10649_v61 = vrot.slane %v1829_v28, 9  ;;  %v1382_v53 = vpop.f32.mrf.mxu0 }
 0x200   : > { %3473 = vrot.lane.b32.xlu1 %v3322_v43, %s11813_s27  ;;  %v13566_v7 = vmax.f32 %v1821_v1, %v10648_v39  ;;  %v13568_v12 = vmax.f32 %v1811_v23, %v10645_v51  ;;  %v13570_v59 = vmax.f32 %v1812_v33, %v10647_v60  ;;  %v17976_v33 = vrot.slane %v13316_v22, 9 }
 0x201   : > { %17969 = vst [vmem:[#allocation73_spill] sm:$0xff] %v13560_v35  ;;  %17970 = vst [vmem:[#allocation74_spill] sm:$0xff] %v13562_v50  ;;  %v13580_v37 = vmax.f32 %v1829_v28, %v10649_v61  ;;  %v13582_v1 = vmax.f32 %v1828_v34, %v10650_v36  ;;  %v2986_v14 = vrot.slane %v13334_v10, %v12495_v3  ;;  %v1384_v5 = vpop.f32.mrf.mxu0 }
 0x202   : > { %17971 = vst [vmem:[#allocation75_spill] sm:$0xff] %v13566_v7  ;;  %17972 = vst [vmem:[#allocation76_spill] sm:$0xff] %v13568_v12  ;;  %v13591_v44 = vmax.f32 %v13316_v22, %v17976_v33  ;;  %v2994_v28 = vrot.slane %v13327_v4, %v12495_v3  ;;  %v3002_v34 = vrot.slane %v13350_v21, %v12495_v3 }
 0x203   : > { %17973 = vst [vmem:[#allocation77_spill] sm:$0xff] %v13570_v59  ;;  %17974 = vst [vmem:[#allocation78_spill] sm:$0xff] %v13580_v37  ;;  %v3010_v39 = vrot.slane %v13352_v13, %v12495_v3  ;;  %v17978_v51 = vrot.slane %v13321_v19, %v12495_v3  ;;  %v17979_v60 = vrot.slane %v13332_v32, %v12495_v3 }
 0x204   : > { %17975 = vst [vmem:[#allocation79_spill] sm:$0xff] %v13582_v1  ;;  %17977 = vst [vmem:[#allocation80_spill] sm:$0xff] %v13591_v44  ;;  %v3018_v36 = vrot.slane %v13591_v44, %v12495_v3  ;;  %v17980_v61 = vrot.slane %v13323_v63, %v12495_v3  ;;  %v2982_v26 = vrot.slane %v13334_v10, %v12473_v56 }
 0x205   : > { %v3337_v22 = vsel %vm3211_vm9, %v17979_v60, %v17978_v51  ;;  %v2990_v23 = vrot.slane %v13327_v4, %v12473_v56  ;;  %v2998_v51 = vrot.slane %v13350_v21, %v12473_v56  ;;  %v3006_v60 = vrot.slane %v13352_v13, %v12473_v56 }
 0x206   : > { %v3338_v33 = vsel %vm3213_vm10, %v17980_v61, %v3337_v22  ;;  %v3014_v43 = vrot.slane %v13591_v44, %v12473_v56  ;;  %v17981_v61 = vrot.slane %v13321_v19, %v12473_v56  ;;  %v17982_v27 = vrot.slane %v13332_v32, %v12473_v56  ;;  %v18058_v32 = vld [vmem:[#allocation33_spill] sm:$0xff] }
 0x207   : > { %v3339_v8 = vsel %vm3215_vm11, %v2986_v14, %v3338_v33  ;;  %v1381_v14 = vadd.f32 %v1380_v30, %v12484_v49  ;;  %v1383_v33 = vadd.f32 %v1382_v53, %v12480_v47  ;;  %v17983_v13 = vrot.slane %v13323_v63, %v12473_v56 }
 0x208   : > { %v3340_v22 = vsel %vm3217_vm12, %v2994_v28, %v3339_v8  ;;  %v3330_v16 = vsel %vm3211_vm9, %v17982_v27, %v17981_v61  ;;  %v1385_v8 = vadd.f32 %v1384_v5, %v12484_v49  ;;  %v17984_v28 = vrot.slane %v13440_v24, 9 }
 0x209   : > { %v3341_v10 = vsel %vm3219_vm13, %v3002_v34, %v3340_v22  ;;  %v3331_v44 = vsel %vm3213_vm10, %v17983_v13, %v3330_v16  ;;  %v1831_v47 = vcombine.low %v13554_v48, %v1381_v14  ;;  %v1832_v53 = vcombine.high %v13554_v48, %v1381_v14  ;;  %v11550_v48 = vld [vmem:[%s17462_s3 + $0x184] ss:$8 sps:$4 sm:$0xff]  }
 0x20a   : > { %v13644_v21 = vmax.f32 %v13440_v24, %v17984_v28  ;;  %v3342_v27 = vsel %vm3221_vm14, %v3010_v39, %v3341_v10  ;;  %v3332_v30 = vsel %vm3215_vm11, %v2982_v26, %v3331_v44  ;;  %v1849_v13 = vcombine.low %v1383_v33, %v1385_v8  ;;  %5751 = vmatprep.subr.bf16.mxu1 %v11550_v48 }
 0x20b   : > { %v3343_v34 = vsel %vm3223_vm15, %v3018_v36, %v3342_v27  ;;  %v3333_v22 = vsel %vm3217_vm12, %v2990_v23, %v3332_v30  ;;  %v1850_v16 = vcombine.high %v1383_v33, %v1385_v8  ;;  %v1839_v24 = vrot.slane %v1831_v47, %v12489_v58  ;;  %v11552_v36 = vld [vmem:[%s17462_s3 + $0x180] ss:$8 sps:$4 sm:$0xff]   ;;  %v11553_v8 = vld [vmem:[%s17462_s3 + $0x270] ss:$8 sps:$4 sm:$0xff]  }
 0x20c   : > { %17985 = vst [vmem:[#allocation81_spill] sm:$0xff] %v13644_v21  ;;  %3420 = vrot.lane.b32.xlu1 %v3343_v34, %s11812_s16  ;;  %v3334_v49 = vsel %vm3219_vm13, %v2998_v51, %v3333_v22  ;;  %v1846_v10 = vrot.slane %v1832_v53, %v12489_v58  ;;  %v3046_v5 = vrot.slane %v13451_v18, %v12473_v56  ;;  %v11555_v51 = vld [vmem:[%s17462_s3 + $0x274] ss:$8 sps:$4 sm:$0xff]  }
 0x20d   : > { %v3335_v26 = vsel %vm3221_vm14, %v3006_v60, %v3334_v49  ;;  %v1857_v23 = vrot.slane %v1849_v13, %v12489_v58  ;;  %v1864_v44 = vrot.slane %v1850_v16, %v12489_v58  ;;  %v3054_v39 = vrot.slane %v13447_v2, %v12473_v56  ;;  %5752 = vmatpush2.bf16.msra.mxu1 %v11552_v36  ;;  %v11556_v13 = vld [vmem:[%s17462_s3 + $0x174] ss:$8 sps:$4 sm:$0xff]   ;;  %v11558_v36 = vld [vmem:[%s17462_s3 + $0x170] ss:$8 sps:$4 sm:$0xff]  }
 0x20e   : > { %v3336_v61 = vsel %vm3223_vm15, %v3014_v43, %v3335_v26  ;;  %v1847_v14 = vcombine.high %v1839_v24, %v1839_v24  ;;  %v1848_v33 = vcombine.high %v1846_v10, %v1846_v10  ;;  %v10652_v60 = vrot.slane %v1839_v24, 9  ;;  %6892 = vmatprep.subr.bf16.mxu0 %v11555_v51  ;;  %5753 = vmatprep.subr.bf16.mxu1 %v11556_v13 }
 0x20f   : > { %3418 = vrot.lane.b32.xlu0 %v3336_v61, %s11812_s16  ;;  %v10654_v28 = vrot.slane %v1846_v10, 9  ;;  %v1865_v27 = vcombine.high %v1857_v23, %v1857_v23  ;;  %v13677_v30 = vcombine.high %v1864_v44, %v1864_v44  ;;  %v10656_v47 = vrot.slane %v1857_v23, 9  ;;  %6893 = vmatpush2.bf16.msra.mxu0 %v11553_v8  ;;  %v11559_v8 = vld [vmem:[%s17462_s3 + $0x260] ss:$8 sps:$4 sm:$0xff]  }
 0x210   : > { %v10653_v53 = vrot.slane %v1847_v14, 9  ;;  %v10655_v34 = vrot.slane %v1848_v33, 9  ;;  %v13679_v22 = vmax.f32 %v1839_v24, %v10652_v60  ;;  %v10658_v43 = vrot.slane %v1864_v44, 9  ;;  %v11561_v24 = vld [vmem:[%s17462_s3 + $0x264] ss:$8 sps:$4 sm:$0xff]  }
 0x211   : > { %v13684_v16 = vmax.f32 %v1846_v10, %v10654_v28  ;;  %v10657_v49 = vrot.slane %v1865_v27, 9  ;;  %v13687_v26 = vmax.f32 %v1857_v23, %v10656_v47  ;;  %v3062_v13 = vrot.slane %v13462_v42, %v12473_v56  ;;  %5754 = vmatpush2.bf16.msra.mxu1 %v11558_v36  ;;  %6894 = vmatprep.subr.bf16.mxu0 %v11561_v24  ;;  %v13748_v10 = vpop.permute.xlu0 %3386 }
 0x212   : > { %17986 = vst [vmem:[#allocation82_spill] sm:$0xff] %v13679_v22  ;;  %v13695_v51 = vmax.f32 %v1847_v14, %v10653_v53  ;;  %v13697_v60 = vmax.f32 %v1848_v33, %v10655_v34  ;;  %v13713_v47 = vmax.f32 %v1864_v44, %v10658_v43  ;;  %v3070_v23 = vrot.slane %v13464_v45, %v12473_v56 }
 0x213   : > { %17987 = vst [vmem:[#allocation83_spill] sm:$0xff] %v13684_v16  ;;  %17988 = vst [vmem:[#allocation84_spill] sm:$0xff] %v13687_v26  ;;  %3475 = vrot.lane.b32.xlu0 %v3336_v61, %s11813_s27  ;;  %v13711_v33 = vmax.f32 %v1865_v27, %v10657_v49  ;;  %v3078_v61 = vrot.slane %v13644_v21, %v12473_v56  ;;  %v17993_v44 = vrot.slane %v13442_v0, %v12473_v56 }
 0x214   : > { %17989 = vst [vmem:[#allocation85_spill] sm:$0xff] %v13695_v51  ;;  %17990 = vst [vmem:[#allocation86_spill] sm:$0xff] %v13697_v60  ;;  %v17994_v27 = vrot.slane %v13449_v41, %v12473_v56  ;;  %v3050_v49 = vrot.slane %v13451_v18, %v12495_v3  ;;  %v3058_v14 = vrot.slane %v13447_v2, %v12495_v3  ;;  %6895 = vmatpush2.bf16.msra.mxu0 %v11559_v8 }
 0x215   : > { %17991 = vst [vmem:[#allocation87_spill] sm:$0xff] %v13711_v33  ;;  %17992 = vst [vmem:[#allocation88_spill] sm:$0xff] %v13713_v47  ;;  %v17995_v36 = vrot.slane %v13444_v25, %v12473_v56  ;;  %v3066_v28 = vrot.slane %v13462_v42, %v12495_v3  ;;  %v3074_v53 = vrot.slane %v13464_v45, %v12495_v3  ;;  %v17998_v18 = vrot.slane %v13558_v62, 9 }
 0x216   : > { %v3344_v43 = vsel %vm3211_vm9, %v17994_v27, %v17993_v44  ;;  %v3082_v44 = vrot.slane %v13644_v21, %v12495_v3  ;;  %v13746_v27 = vpop.permute.xlu1 %3388  ;;  %v17996_v48 = vrot.slane %v13442_v0, %v12495_v3  ;;  %v3110_v21 = vrot.slane %v13570_v59, %v12473_v56 }
 0x217   : > { %v3345_v34 = vsel %vm3213_vm10, %v17995_v36, %v3344_v43  ;;  %v17997_v43 = vrot.slane %v13449_v41, %v12495_v3  ;;  %v13761_v45 = vmax.f32 %v13558_v62, %v17998_v18  ;;  %v3118_v42 = vrot.slane %v13566_v7, %v12473_v56 }
 0x218   : > { %v3346_v24 = vsel %vm3215_vm11, %v3046_v5, %v3345_v34  ;;  %v18000_v5 = vrot.slane %v13444_v25, %v12495_v3  ;;  %v3134_v62 = vrot.slane %v13582_v1, %v12473_v56  ;;  %v18002_v25 = vrot.slane %v13568_v12, %v12473_v56 }
 0x219   : > { %v3351_v36 = vsel %vm3211_vm9, %v17997_v43, %v17996_v48  ;;  %17999 = vst [vmem:[#allocation89_spill] sm:$0xff] %v13761_v45  ;;  %v3347_v8 = vsel %vm3217_vm12, %v3054_v39, %v3346_v24  ;;  %v3126_v48 = vrot.slane %v13580_v37, %v12473_v56  ;;  %v3142_v39 = vrot.slane %v13761_v45, %v12473_v56 }
 0x21a   : > { %v3352_v34 = vsel %vm3213_vm10, %v18000_v5, %v3351_v36  ;;  %v3348_v43 = vsel %vm3219_vm13, %v3062_v13, %v3347_v8  ;;  %v18001_v5 = vrot.slane %v13560_v35, %v12473_v56  ;;  %v13791_v8 = vpop.permute.xlu1 %3392 }
 0x21b   : > { %v3353_v18 = vsel %vm3215_vm11, %v3050_v49, %v3352_v34  ;;  %v3349_v24 = vsel %vm3221_vm14, %v3070_v23, %v3348_v43  ;;  %v3114_v49 = vrot.slane %v13570_v59, %v12495_v3  ;;  %v18003_v23 = vrot.slane %v13562_v50, %v12473_v56 }
 0x21c   : > { %v3354_v36 = vsel %vm3217_vm12, %v3058_v14, %v3353_v18  ;;  %v3358_v13 = vsel %vm3211_vm9, %v18002_v25, %v18001_v5  ;;  %v3350_v34 = vsel %vm3223_vm15, %v3078_v61, %v3349_v24  ;;  %v3122_v43 = vrot.slane %v13566_v7, %v12495_v3  ;;  %v3460_v61 = vpop.permute.xlu0 %3459 }
 0x21d   : > { %v3355_v41 = vsel %vm3219_vm13, %v3066_v28, %v3354_v36  ;;  %v3359_v14 = vsel %vm3213_vm10, %v18003_v23, %v3358_v13  ;;  %3422 = vrot.lane.b32.xlu1 %v3350_v34, %s11812_s16  ;;  %v3130_v5 = vrot.slane %v13580_v37, %v12495_v3  ;;  %v3138_v28 = vrot.slane %v13582_v1, %v12495_v3 }
 0x21e   : > { %v3356_v25 = vsel %vm3221_vm14, %v3074_v53, %v3355_v41  ;;  %v3360_v18 = vsel %vm3215_vm11, %v3110_v21, %v3359_v14  ;;  %v3146_v13 = vrot.slane %v13761_v45, %v12495_v3  ;;  %v18004_v23 = vrot.slane %v13560_v35, %v12495_v3  ;;  %v18056_v35 = vld [vmem:[#allocation17_spill] sm:$0xff] }
 0x21f   : > { %v3357_v24 = vsel %vm3223_vm15, %v3082_v44, %v3356_v25  ;;  %v3361_v36 = vsel %vm3217_vm12, %v3118_v42, %v3360_v18  ;;  %v18005_v21 = vrot.slane %v13568_v12, %v12495_v3  ;;  %v18006_v44 = vrot.slane %v13562_v50, %v12495_v3  ;;  %v18055_v12 = vld [vmem:[#allocation18_spill] sm:$0xff] }
 0x220   : > { %3424 = vrot.lane.b32.xlu0 %v3357_v24, %s11812_s16  ;;  %v3362_v53 = vsel %vm3219_vm13, %v3126_v48, %v3361_v36  ;;  %v18007_v14 = vrot.slane %v13677_v30, 9  ;;  %v3174_v18 = vrot.slane %v13697_v60, %v12473_v56  ;;  %v3182_v48 = vrot.slane %v13687_v26, %v12473_v56 }
 0x221   : > { %v3365_v41 = vsel %vm3211_vm9, %v18005_v21, %v18004_v23  ;;  %v3363_v45 = vsel %vm3221_vm14, %v3134_v62, %v3362_v53  ;;  %v3190_v24 = vrot.slane %v13711_v33, %v12473_v56  ;;  %3477 = vrot.lane.b32.xlu1 %v3350_v34, %s11813_s27  ;;  %v3198_v21 = vrot.slane %v13713_v47, %v12473_v56 }
 0x222   : > { %v3366_v42 = vsel %vm3213_vm10, %v18006_v44, %v3365_v41  ;;  %v13828_v25 = vmax.f32 %v13677_v30, %v18007_v14  ;;  %v3364_v36 = vsel %vm3223_vm15, %v3142_v39, %v3363_v45  ;;  %v3462_v41 = vpop.permute.xlu1 %3461  ;;  %v18009_v53 = vrot.slane %v13679_v22, %v12473_v56 }
 0x223   : > { %v3367_v23 = vsel %vm3215_vm11, %v3114_v49, %v3366_v42  ;;  %v18010_v44 = vrot.slane %v13695_v51, %v12473_v56  ;;  %v3178_v45 = vrot.slane %v13697_v60, %v12495_v3  ;;  %v3186_v39 = vrot.slane %v13687_v26, %v12495_v3 }
 0x224   : > { %18008 = vst [vmem:[#allocation90_spill] sm:$0xff] %v13828_v25  ;;  %v3368_v30 = vsel %vm3217_vm12, %v3122_v43, %v3367_v23  ;;  %v3206_v62 = vrot.slane %v13828_v25, %v12473_v56  ;;  %v18011_v42 = vrot.slane %v13684_v16, %v12473_v56  ;;  %v3194_v14 = vrot.slane %v13711_v33, %v12495_v3 }
 0x225   : > { %v3369_v49 = vsel %vm3219_vm13, %v3130_v5, %v3368_v30  ;;  %v3372_v34 = vsel %vm3211_vm9, %v18010_v44, %v18009_v53  ;;  %v3202_v23 = vrot.slane %v13713_v47, %v12495_v3  ;;  %v3391_v30 = vpop.permute.xlu0 %3390  ;;  %v3210_v60 = vrot.slane %v13828_v25, %v12495_v3  ;;  %3426 = vrot.lane.b32.xlu1 %v3364_v36, %s11812_s16 }
 0x226   : > { %v3370_v43 = vsel %vm3221_vm14, %v3138_v28, %v3369_v49  ;;  %v3373_v5 = vsel %vm3213_vm10, %v18011_v42, %v3372_v34  ;;  %v18012_v28 = vrot.slane %v13679_v22, %v12495_v3  ;;  %v18013_v49 = vrot.slane %v13695_v51, %v12495_v3 }
 0x227   : > { %v3371_v53 = vsel %vm3223_vm15, %v3146_v13, %v3370_v43  ;;  %v3374_v44 = vsel %vm3215_vm11, %v3174_v18, %v3373_v5  ;;  %v18014_v13 = vrot.slane %v13684_v16, %v12495_v3 }
 0x228   : > { %v3379_v34 = vsel %vm3211_vm9, %v18013_v49, %v18012_v28  ;;  %3428 = vrot.lane.b32.xlu0 %v3371_v53, %s11812_s16  ;;  %v3375_v42 = vsel %vm3217_vm12, %v3182_v48, %v3374_v44  ;;  %v3435_v28 = vsel %vm3434_vm0, %v13748_v10, %v13746_v27  ;;  %v3496_v53 = vsel %vm3495_vm1, %v13746_v27, %v3460_v61 }
 0x229   : > { %v3380_v18 = vsel %vm3213_vm10, %v18014_v13, %v3379_v34  ;;  %v3376_v43 = vsel %vm3219_vm13, %v3190_v24, %v3375_v42  ;;  %v3520_v49 = vcombine.low %v3435_v28, %v3496_v53  ;;  %v3521_v25 = vcombine.high %v3435_v28, %v3496_v53  ;;  %v13893_v34 = vpop.permute.xlu1 %3396  ;;  %v3395_v13 = vpop.permute.xlu0 %3394 }
 0x22a   : > { %v3381_v5 = vsel %vm3215_vm11, %v3178_v45, %v3380_v18  ;;  %v3377_v48 = vsel %vm3221_vm14, %v3198_v21, %v3376_v43  ;;  %v3436_v42 = vsel %vm3434_vm0, %v3391_v30, %v13791_v8  ;;  %v3497_v10 = vsel %vm3495_vm1, %v13791_v8, %v3462_v41 }
 0x22b   : > { %v3382_v44 = vsel %vm3217_vm12, %v3186_v39, %v3381_v5  ;;  %v3378_v24 = vsel %vm3223_vm15, %v3206_v62, %v3377_v48  ;;  %v3528_v61 = vrot.slane %v3520_v49, %v12489_v58  ;;  %v3535_v21 = vrot.slane %v3521_v25, %v12489_v58 }
 0x22c   : > { %v3383_v45 = vsel %vm3219_vm13, %v3194_v14, %v3382_v44  ;;  %3479 = vrot.lane.b32.xlu0 %v3364_v36, %s11813_s27  ;;  %3430 = vrot.lane.b32.xlu1 %v3378_v24, %s11812_s16  ;;  %v3538_v39 = vcombine.low %v3436_v42, %v3497_v10  ;;  %v3539_v14 = vcombine.high %v3436_v42, %v3497_v10 }
 0x22d   : > { %v3384_v27 = vsel %vm3221_vm14, %v3202_v23, %v3383_v45  ;;  %v13909_v30 = vsel %vm3434_vm0, %v3395_v13, %v13893_v34  ;;  %v3536_v18 = vcombine.high %v3528_v61, %v3528_v61  ;;  %v3537_v8 = vcombine.high %v3535_v21, %v3535_v21 }
 0x22e   : > { %v3385_v62 = vsel %vm3223_vm15, %v3210_v60, %v3384_v27  ;;  %v3736_v41 = vrot.slane %v3528_v61, 1  ;;  %v3738_v36 = vrot.slane %v3535_v21, 1  ;;  %v3880_v43 = vmax.f32 %v12498_v9, %v3528_v61 }
 0x22f   : > { %v3884_v23 = vmax.f32 %v12522_v38, %v3535_v21  ;;  %v13914_v5 = vrot.slane %v3538_v39, %v12489_v58  ;;  %v13917_v25 = vrot.slane %v3539_v14, %v12489_v58  ;;  %v3737_v60 = vrot.slane %v3536_v18, 1 }
 0x230   : > { %3432 = vrot.lane.b32.xlu0 %v3385_v62, %s11812_s16  ;;  %3481 = vrot.lane.b32.xlu1 %v3378_v24, %s11813_s27  ;;  %v3739_v28 = vrot.slane %v3537_v8, 1  ;;  %v3881_v53 = vmax.f32 %v12506_v40, %v3736_v41  ;;  %v3882_v48 = vmax.f32 %v12500_v52, %v3536_v18  ;;  %v3885_v9 = vmax.f32 %v12528_v15, %v3738_v36  ;;  %s326_s16 = sand.u32 1, %s11797_s10  }
 0x231   : > { %v3886_v38 = vmax.f32 %v12524_v55, %v3537_v8  ;;  %v3976_v44 = vmax.f32 %v3880_v43, 0.0  ;;  %v3980_v49 = vmax.f32 %v3884_v23, 0.0  ;;  %v3883_v13 = vmax.f32 %v12508_v11, %v3737_v60  ;;  %s10529_s27 = sshll.u32 %s326_s16, 3  ;;  %s10453_s25 = scalar_lea.sflag [#allocation3], %s326_s16 }
 0x232   : > { %v3887_v45 = vmax.f32 %v12534_v57, %v3739_v28  ;;  %v3977_v42 = vmax.f32 %v3881_v53, 0.0  ;;  %v3978_v10 = vmax.f32 %v3882_v48, 0.0  ;;  %v3981_v27 = vmax.f32 %v3885_v9, 0.0 }
 0x233   : > { %v3982_v24 = vmax.f32 %v3886_v38, 0.0  ;;  %v4139_v61 = vrot.slane %v3976_v44, %v12473_v56  ;;  %v4143_v40 = vrot.slane %v3976_v44, %v12495_v3  ;;  %v3979_v21 = vmax.f32 %v3883_v13, 0.0 }
 0x234   : > { %v3983_v52 = vmax.f32 %v3887_v45, 0.0  ;;  %v4147_v15 = vrot.slane %v3977_v42, %v12473_v56  ;;  %v4151_v55 = vrot.slane %v3977_v42, %v12495_v3  ;;  %v4155_v62 = vrot.slane %v3978_v10, %v12473_v56 }
 0x235   : > { %v4159_v11 = vrot.slane %v3978_v10, %v12495_v3  ;;  %v4171_v57 = vrot.slane %v3980_v49, %v12473_v56  ;;  %v4175_v39 = vrot.slane %v3980_v49, %v12495_v3  ;;  %v4163_v14 = vrot.slane %v3979_v21, %v12473_v56 }
 0x236   : > { %v4167_v18 = vrot.slane %v3979_v21, %v12495_v3  ;;  %v4179_v8 = vrot.slane %v3981_v27, %v12473_v56  ;;  %v4183_v41 = vrot.slane %v3981_v27, %v12495_v3  ;;  %v4187_v36 = vrot.slane %v3982_v24, %v12473_v56 }
 0x237   : > { %v4191_v43 = vrot.slane %v3982_v24, %v12495_v3  ;;  %v4195_v23 = vrot.slane %v3983_v52, %v12473_v56  ;;  %v4199_v60 = vrot.slane %v3983_v52, %v12495_v3  ;;  %v4776_v28 = vpack.c.bf16 %v4139_v61, %v4139_v61 }
 0x238   : > { %v4777_v53 = vpack.c.bf16 %v4143_v40, %v4143_v40  ;;  %v4778_v48 = vpack.c.bf16 %v4147_v15, %v4147_v15  ;;  %v4779_v9 = vpack.c.bf16 %v4151_v55, %v4151_v55  ;;  %v4780_v38 = vpack.c.bf16 %v4155_v62, %v4155_v62 }
 0x239   : > { %v4781_v44 = vpack.c.bf16 %v4159_v11, %v4159_v11  ;;  %v4782_v49 = vpack.c.bf16 %v4163_v14, %v4163_v14  ;;  %v4783_v13 = vpack.c.bf16 %v4167_v18, %v4167_v18  ;;  %v4784_v45 = vpack.c.bf16 %v4171_v57, %v4171_v57 }
 0x23a   : > { %v4785_v42 = vpack.c.bf16 %v4175_v39, %v4175_v39  ;;  %v4786_v10 = vpack.c.bf16 %v4179_v8, %v4179_v8  ;;  %v4787_v27 = vpack.c.bf16 %v4183_v41, %v4183_v41  ;;  %v4788_v21 = vpack.c.bf16 %v4187_v36, %v4187_v36  ;;  %v18030_v41 = vld [vmem:[#allocation11_spill] sm:$0xff] }
 0x23b   : > { %v4789_v47 = vpack.c.bf16 %v4191_v43, %v4191_v43  ;;  %v4790_v33 = vpack.c.bf16 %v4195_v23, %v4195_v23  ;;  %v4791_v24 = vpack.c.bf16 %v4199_v60, %v4199_v60  ;;  %v13943_v26 = vunpack.c.l.b16 %v4778_v48 }
 0x23c   : > { %v13945_v16 = vunpack.c.l.b16 %v4779_v9  ;;  %v13947_v61 = vunpack.c.l.b16 %v4780_v38  ;;  %v13949_v40 = vunpack.c.l.b16 %v4781_v44  ;;  %v13951_v52 = vunpack.c.l.b16 %v4782_v49 }
 0x23d   : > { %v13953_v15 = vunpack.c.l.b16 %v4783_v13  ;;  %v13955_v55 = vunpack.c.l.b16 %v4784_v45  ;;  %v13957_v62 = vunpack.c.l.b16 %v4785_v42  ;;  %v13959_v11 = vunpack.c.l.b16 %v4786_v10 }
 0x23e   : > { %v13961_v57 = vunpack.c.l.b16 %v4787_v27  ;;  %v13963_v39 = vunpack.c.l.b16 %v4788_v21  ;;  %v13965_v14 = vunpack.c.l.b16 %v4789_v47  ;;  %v13967_v18 = vunpack.c.l.b16 %v4790_v33 }
 0x23f   : > { %18015 = vst [vmem:[#allocation91_spill] sm:$0xff] %v13953_v15  ;;  %18016 = vst [vmem:[#allocation92_spill] sm:$0xff] %v13955_v55  ;;  %v13969_v8 = vunpack.c.l.b16 %v4791_v24  ;;  %v5812_v43 = vunpack.c.l.b16 %v4776_v28  ;;  %v5813_v23 = vunpack.c.l.b16 %v4777_v53  ;;  %v5828_v60 = vrot.slane %v13943_v26, 7 }
 0x240   : > { %18017 = vst [vmem:[#allocation93_spill] sm:$0xff] %v13957_v62  ;;  %18018 = vst [vmem:[#allocation94_spill] sm:$0xff] %v13959_v11  ;;  %v5830_v48 = vrot.slane %v13947_v61, 6  ;;  %v5832_v9 = vrot.slane %v13951_v52, 5  ;;  %v5842_v38 = vrot.slane %v13945_v16, 7  ;;  %v5844_v47 = vrot.slane %v13949_v40, 6 }
 0x241   : > { %18019 = vst [vmem:[#allocation95_spill] sm:$0xff] %v13961_v57  ;;  %18020 = vst [vmem:[#allocation96_spill] sm:$0xff] %v13963_v39  ;;  %v6466_v33 = vrot.slane %v13951_v52, 7  ;;  %v5829_v44 = vsel %vm3211_vm9, %v5828_v60, %v5812_v43  ;;  %v6468_v49 = vrot.slane %v13955_v55, 6  ;;  %v6480_v13 = vrot.slane %v13953_v15, 7  ;;  %v3464_v60 = vpop.permute.xlu0 %3463 }
 0x242   : > { %18021 = vst [vmem:[#allocation97_spill] sm:$0xff] %v13965_v14  ;;  %18022 = vst [vmem:[#allocation98_spill] sm:$0xff] %v13967_v18  ;;  %v7120_v28 = vrot.slane %v13955_v55, 7  ;;  %v5831_v53 = vsel %vm3213_vm10, %v5830_v48, %v5829_v44  ;;  %v5843_v45 = vsel %vm3211_vm9, %v5842_v38, %v5813_v23  ;;  %v3740_v44 = vrot.slane %v13914_v5, 1 }
 0x243   : > { %18023 = vst [vmem:[#allocation99_spill] sm:$0xff] %v13969_v8  ;;  %v6467_v42 = vsel %vm3211_vm9, %v6466_v33, %v13947_v61  ;;  %v13989_v27 = vsel %vm3215_vm11, %v5832_v9, %v5831_v53  ;;  %v13992_v21 = vsel %vm3213_vm10, %v5844_v47, %v5843_v45  ;;  %v13999_v43 = vsel %vm3211_vm9, %v6480_v13, %v13949_v40 }
 0x244   : > { %18024 = vst [vmem:[#allocation100_spill] sm:$0xff] %v13989_v27  ;;  %18025 = vst [vmem:[#allocation101_spill] sm:$0xff] %v13992_v21  ;;  %v13995_v24 = vsel %vm3213_vm10, %v6468_v49, %v6467_v42  ;;  %v14003_v23 = vsel %vm3211_vm9, %v7120_v28, %v13951_v52  ;;  %v7774_v9 = vrot.slane %v13959_v11, 7  ;;  %v3554_v47 = vcombine.high %v13914_v5, %v13914_v5 }
 0x245   : > { %18026 = vst [vmem:[#allocation102_spill] sm:$0xff] %v13995_v24  ;;  %18027 = vst [vmem:[#allocation103_spill] sm:$0xff] %v13999_v43  ;;  %v3555_v33 = vcombine.high %v13917_v25, %v13917_v25  ;;  %v3742_v49 = vrot.slane %v13917_v25, 1  ;;  %v3888_v28 = vmax.f32 %v12538_v6, %v13914_v5  ;;  %v3892_v53 = vmax.f32 %v12561_v46, %v13917_v25  ;;  %v18032_v6 = vld [vmem:[#allocation9_spill] sm:$0xff]  ;;  %v18034_v46 = vld [vmem:[#allocation19_spill] sm:$0xff] }
 0x246   : > { %18028 = vst [vmem:[#allocation104_spill] sm:$0xff] %v14003_v23  ;;  %v14016_v13 = vsel %vm3211_vm9, %v7774_v9, %v13955_v55  ;;  %v14024_v45 = vsel %vm3495_vm1, %v13893_v34, %v3464_v60  ;;  %v3741_v42 = vrot.slane %v3554_v47, 1  ;;  %v3889_v48 = vmax.f32 %v12544_v31, %v3740_v44  ;;  %v18031_v9 = vld [vmem:[#allocation10_spill] sm:$0xff] }
 0x247   : > { %18029 = vst [vmem:[#allocation105_spill] sm:$0xff] %v14016_v13  ;;  %v3743_v10 = vrot.slane %v3555_v33, 1  ;;  %v3890_v38 = vmax.f32 %v12540_v17, %v3554_v47  ;;  %v3893_v36 = vmax.f32 %v18030_v41, %v3742_v49  ;;  %v3894_v23 = vmax.f32 %v18031_v9, %v3555_v33 }
 0x248   : > { %v3984_v13 = vmax.f32 %v3888_v28, 0.0  ;;  %v3988_v27 = vmax.f32 %v3892_v53, 0.0  ;;  %v14031_v5 = vmax.f32 %v18032_v6, %v3741_v42  ;;  %v3985_v21 = vmax.f32 %v3889_v48, 0.0 }
 0x249   : > { %v3895_v25 = vmax.f32 %v18034_v46, %v3743_v10  ;;  %v3986_v34 = vmax.f32 %v3890_v38, 0.0  ;;  %v3989_v60 = vmax.f32 %v3893_v36, 0.0  ;;  %v3990_v51 = vmax.f32 %v3894_v23, 0.0 }
 0x24a   : > { %18033 = vst [vmem:[#allocation11_spill] sm:$0xff] %v14031_v5  ;;  %v4203_v22 = vrot.slane %v3988_v27, %v12473_v56  ;;  %v4207_v31 = vrot.slane %v3988_v27, %v12495_v3  ;;  %v4945_v47 = vrot.slane %v3984_v13, %v12473_v56  ;;  %v4949_v33 = vrot.slane %v3984_v13, %v12495_v3 }
 0x24b   : > { %v3991_v41 = vmax.f32 %v3895_v25, 0.0  ;;  %v4211_v44 = vrot.slane %v3989_v60, %v12473_v56  ;;  %v4215_v49 = vrot.slane %v3989_v60, %v12495_v3  ;;  %v4219_v10 = vrot.slane %v3990_v51, %v12473_v56 }
 0x24c   : > { %v4223_v36 = vrot.slane %v3990_v51, %v12495_v3  ;;  %v4792_v27 = vpack.c.bf16 %v4203_v22, %v4203_v22  ;;  %v4793_v38 = vpack.c.bf16 %v4207_v31, %v4207_v31  ;;  %v5022_v46 = vpack.c.bf16 %v4945_v47, %v4945_v47 }
 0x24d   : > { %v4227_v23 = vrot.slane %v3991_v41, %v12473_v56  ;;  %v4231_v48 = vrot.slane %v3991_v41, %v12495_v3  ;;  %v4794_v28 = vpack.c.bf16 %v4211_v44, %v4211_v44  ;;  %v4795_v53 = vpack.c.bf16 %v4215_v49, %v4215_v49 }
 0x24e   : > { %v4796_v42 = vpack.c.bf16 %v4219_v10, %v4219_v10  ;;  %v4797_v9 = vpack.c.bf16 %v4223_v36, %v4223_v36  ;;  %v5023_v25 = vpack.c.bf16 %v4949_v33, %v4949_v33  ;;  %v14053_v1 = vunpack.c.l.b16 %v5022_v46 }
 0x24f   : > { %v4798_v6 = vpack.c.bf16 %v4227_v23, %v4227_v23  ;;  %v4799_v13 = vpack.c.bf16 %v4231_v48, %v4231_v48  ;;  %v14045_v17 = vunpack.c.l.b16 %v4794_v28  ;;  %v14047_v60 = vunpack.c.l.b16 %v4795_v53  ;;  %v3399_v28 = vpop.permute.xlu1 %3398 }
 0x250   : > { %v14049_v59 = vunpack.c.l.b16 %v4796_v42  ;;  %v14051_v51 = vunpack.c.l.b16 %v4797_v9  ;;  %18037 = vst [vmem:[#allocation19_spill] sm:$0xff] %v14053_v1  ;;  %v14055_v22 = vunpack.c.l.b16 %v5023_v25  ;;  %v5814_v33 = vunpack.c.l.b16 %v4792_v27 }
 0x251   : > { %18035 = vst [vmem:[#allocation10_spill] sm:$0xff] %v14045_v17  ;;  %v14057_v31 = vunpack.c.l.b16 %v4798_v6  ;;  %v14059_v41 = vunpack.c.l.b16 %v4799_v13  ;;  %v5815_v49 = vunpack.c.l.b16 %v4793_v38  ;;  %v5856_v10 = vrot.slane %v14045_v17, 7 }
 0x252   : > { %18036 = vst [vmem:[#allocation9_spill] sm:$0xff] %v14049_v59  ;;  %18038 = vst [vmem:[#allocation106_spill] sm:$0xff] %v14055_v22  ;;  %v5858_v36 = vrot.slane %v14049_v59, 6  ;;  %v5870_v48 = vrot.slane %v14047_v60, 7  ;;  %v5872_v53 = vrot.slane %v14051_v51, 6  ;;  %v6310_v42 = vrot.slane %v3985_v21, %v12473_v56 }
 0x253   : > { %18039 = vst [vmem:[#allocation107_spill] sm:$0xff] %v14057_v31  ;;  %18040 = vst [vmem:[#allocation108_spill] sm:$0xff] %v14059_v41  ;;  %v5860_v23 = vrot.slane %v14057_v31, 5  ;;  %v6314_v9 = vrot.slane %v3985_v21, %v12495_v3  ;;  %v6494_v6 = vrot.slane %v14057_v31, 7  ;;  %v5857_v27 = vsel %vm3211_vm9, %v5856_v10, %v5814_v33 }
 0x254   : > { %v5871_v38 = vsel %vm3211_vm9, %v5870_v48, %v5815_v49  ;;  %v6508_v13 = vrot.slane %v14059_v41, 7  ;;  %v6964_v46 = vrot.slane %v3986_v34, %v12473_v56  ;;  %v5859_v25 = vsel %vm3213_vm10, %v5858_v36, %v5857_v27 }
 0x255   : > { %v14077_v44 = vsel %vm3213_vm10, %v5872_v53, %v5871_v38  ;;  %v6387_v47 = vpack.c.bf16 %v6310_v42, %v6310_v42  ;;  %v6388_v37 = vpack.c.bf16 %v6314_v9, %v6314_v9  ;;  %v14080_v50 = vsel %vm3215_vm11, %v5860_v23, %v5859_v25  ;;  %v3401_v42 = vpop.permute.xlu0 %3400 }
 0x256   : > { %18041 = vst [vmem:[#allocation109_spill] sm:$0xff] %v14077_v44  ;;  %18042 = vst [vmem:[#allocation110_spill] sm:$0xff] %v14080_v50  ;;  %v14084_v21 = vsel %vm3211_vm9, %v6494_v6, %v14049_v59  ;;  %v14088_v33 = vsel %vm3211_vm9, %v6508_v13, %v14051_v51  ;;  %v6968_v49 = vrot.slane %v3986_v34, %v12495_v3  ;;  %v18047_v9 = vmax.f32 %v14031_v5, 0.0  ;;  %v3466_v13 = vpop.permute.xlu1 %3465  ;;  %v18052_v5 = vld [vmem:[#allocation16_spill] sm:$0xff] }
 0x257   : > { %18043 = vst [vmem:[#allocation111_spill] sm:$0xff] %v14084_v21  ;;  %18044 = vst [vmem:[#allocation112_spill] sm:$0xff] %v14088_v33  ;;  %v14091_v10 = vunpack.c.l.b16 %v6387_v47  ;;  %v14093_v36 = vunpack.c.l.b16 %v6388_v37  ;;  %v7041_v48 = vpack.c.bf16 %v6964_v46, %v6964_v46  ;;  %v3556_v38 = vcombine.low %v13909_v30, %v14024_v45  ;;  %v18082_v33 = vld [vmem:[#allocation24_spill] sm:$0xff] }
 0x258   : > { %v7042_v23 = vpack.c.bf16 %v6968_v49, %v6968_v49  ;;  %v7618_v6 = vrot.slane %v18047_v9, %v12473_v56  ;;  %v3557_v46 = vcombine.high %v13909_v30, %v14024_v45  ;;  %v14112_v53 = vsel %vm3434_vm0, %v3399_v28, %v3401_v42 }
 0x259   : > { %18045 = vst [vmem:[#allocation113_spill] sm:$0xff] %v14091_v10  ;;  %18046 = vst [vmem:[#allocation114_spill] sm:$0xff] %v14093_v36  ;;  %v14102_v34 = vunpack.c.l.b16 %v7041_v48  ;;  %v3564_v9 = vrot.slane %v3556_v38, %v12489_v58  ;;  %v14118_v37 = vsel %vm3495_vm1, %v3401_v42, %v3466_v13  ;;  %v18054_v42 = vld [vmem:[#allocation13_spill] sm:$0xff] }
 0x25a   : > { %v14108_v25 = vunpack.c.l.b16 %v7042_v23  ;;  %v7695_v49 = vpack.c.bf16 %v7618_v6, %v7618_v6  ;;  %v3571_v50 = vrot.slane %v3557_v46, %v12489_v58  ;;  %v18051_v23 = vld [vmem:[#allocation12_spill] sm:$0xff]  ;;  %v18053_v46 = vld [vmem:[#allocation14_spill] sm:$0xff]  ;;  %v3403_v4 = vpop.permute.xlu1 %3402 }
 0x25b   : > { %18048 = vst [vmem:[#allocation115_spill] sm:$0xff] %v14102_v34  ;;  %v3572_v30 = vcombine.high %v3564_v9, %v3564_v9  ;;  %v3744_v45 = vrot.slane %v3564_v9, 1  ;;  %v3896_v6 = vmax.f32 %v18051_v23, %v3564_v9  ;;  %v18057_v23 = vld [vmem:[#allocation15_spill] sm:$0xff] }
 0x25c   : > { %18049 = vst [vmem:[#allocation116_spill] sm:$0xff] %v14108_v25  ;;  %v14120_v47 = vunpack.c.l.b16 %v7695_v49  ;;  %v3573_v25 = vcombine.high %v3571_v50, %v3571_v50  ;;  %v3746_v38 = vrot.slane %v3571_v50, 1  ;;  %v3900_v28 = vmax.f32 %v18052_v5, %v3571_v50 }
 0x25d   : > { %v3745_v34 = vrot.slane %v3572_v30, 1  ;;  %v3897_v44 = vmax.f32 %v18053_v46, %v3744_v45  ;;  %v3898_v13 = vmax.f32 %v18054_v42, %v3572_v30  ;;  %v3992_v9 = vmax.f32 %v3896_v6, 0.0 }
 0x25e   : > { %18050 = vst [vmem:[#allocation117_spill] sm:$0xff] %v14120_v47  ;;  %v3747_v49 = vrot.slane %v3573_v25, 1  ;;  %v3901_v7 = vmax.f32 %v18055_v12, %v3746_v38  ;;  %v3902_v2 = vmax.f32 %v18056_v35, %v3573_v25  ;;  %v3996_v5 = vmax.f32 %v3900_v28, 0.0  ;;  %v14139_v25 = vpop.permute.xlu0 %3404 }
 0x25f   : > { %v3899_v0 = vmax.f32 %v18057_v23, %v3745_v34  ;;  %v3993_v63 = vmax.f32 %v3897_v44, 0.0  ;;  %v3994_v50 = vmax.f32 %v3898_v13, 0.0  ;;  %v4235_v45 = vrot.slane %v3992_v9, %v12473_v56 }
 0x260   : > { %v14133_v27 = vmax.f32 %v18058_v32, %v3747_v49  ;;  %v3997_v48 = vmax.f32 %v3901_v7, 0.0  ;;  %v3998_v47 = vmax.f32 %v3902_v2, 0.0  ;;  %v4239_v30 = vrot.slane %v3992_v9, %v12495_v3 }
 0x261   : > { %v3995_v46 = vmax.f32 %v3899_v0, 0.0  ;;  %v4243_v12 = vrot.slane %v3993_v63, %v12473_v56  ;;  %v4247_v35 = vrot.slane %v3993_v63, %v12495_v3  ;;  %v4251_v34 = vrot.slane %v3994_v50, %v12473_v56 }
 0x262   : > { %18059 = vst [vmem:[#allocation12_spill] sm:$0xff] %v14133_v27  ;;  %v4255_v32 = vrot.slane %v3994_v50, %v12495_v3  ;;  %v4800_v6 = vpack.c.bf16 %v4235_v45, %v4235_v45  ;;  %v4801_v0 = vpack.c.bf16 %v4239_v30, %v4239_v30  ;;  %v4953_v63 = vrot.slane %v3996_v5, %v12473_v56  ;;  %v11564_v30 = vld [vmem:[%s17462_s3 + $0x74] ss:$8 sps:$4 sm:$0xff]  }
 0x263   : > { %v4259_v2 = vrot.slane %v3995_v46, %v12473_v56  ;;  %v4263_v7 = vrot.slane %v3995_v46, %v12495_v3  ;;  %v4802_v38 = vpack.c.bf16 %v4243_v12, %v4243_v12  ;;  %v4803_v28 = vpack.c.bf16 %v4247_v35, %v4247_v35  ;;  %6226 = vmatprep.subr.bf16.mxu1 %v11564_v30 }
 0x264   : > { %v4804_v42 = vpack.c.bf16 %v4251_v34, %v4251_v34  ;;  %v4805_v13 = vpack.c.bf16 %v4255_v32, %v4255_v32  ;;  %v4957_v23 = vrot.slane %v3996_v5, %v12495_v3  ;;  %v14148_v44 = vunpack.c.l.b16 %v4800_v6  ;;  %v3468_v32 = vpop.permute.xlu0 %3467 }
 0x265   : > { %v4806_v49 = vpack.c.bf16 %v4259_v2, %v4259_v2  ;;  %v4807_v9 = vpack.c.bf16 %v4263_v7, %v4263_v7  ;;  %v5024_v50 = vpack.c.bf16 %v4953_v63, %v4953_v63  ;;  %v14150_v45 = vunpack.c.l.b16 %v4801_v0 }
 0x266   : > { %18060 = vst [vmem:[#allocation16_spill] sm:$0xff] %v14148_v44  ;;  %v14152_v19 = vunpack.c.l.b16 %v4802_v38  ;;  %v14154_v46 = vunpack.c.l.b16 %v4803_v28  ;;  %v5025_v12 = vpack.c.bf16 %v4957_v23, %v4957_v23  ;;  %v14159_v35 = vunpack.c.l.b16 %v4804_v42  ;;  %v11567_v38 = vld [vmem:[%s17462_s3 + $0x434] ss:$8 sps:$4 sm:$0xff]  }
 0x267   : > { %18061 = vst [vmem:[#allocation14_spill] sm:$0xff] %v14150_v45  ;;  %v14161_v34 = vunpack.c.l.b16 %v4805_v13  ;;  %v14163_v5 = vunpack.c.l.b16 %v4806_v49  ;;  %v14165_v6 = vunpack.c.l.b16 %v4807_v9  ;;  %v14167_v2 = vunpack.c.l.b16 %v5024_v50  ;;  %v3407_v49 = vpop.permute.xlu1 %3406  ;;  %8172 = vmatprep.subr.bf16.mxu0 %v11567_v38 }
 0x268   : > { %18062 = vst [vmem:[#allocation13_spill] sm:$0xff] %v14152_v19  ;;  %18063 = vst [vmem:[#allocation18_spill] sm:$0xff] %v14154_v46  ;;  %v6318_v7 = vrot.slane %v3997_v48, %v12473_v56  ;;  %v6322_v0 = vrot.slane %v3997_v48, %v12495_v3  ;;  %v14174_v28 = vunpack.c.l.b16 %v5025_v12  ;;  %v6972_v13 = vrot.slane %v3998_v47, %v12473_v56 }
 0x269   : > { %18064 = vst [vmem:[#allocation17_spill] sm:$0xff] %v14159_v35  ;;  %18065 = vst [vmem:[#allocation15_spill] sm:$0xff] %v14161_v34  ;;  %v6976_v63 = vrot.slane %v3998_v47, %v12495_v3  ;;  %v18072_v47 = vmax.f32 %v14133_v27, 0.0  ;;  %v14219_v12 = vsel %vm3495_vm1, %v14139_v25, %v3468_v32  ;;  %v18079_v27 = vld [vmem:[#allocation23_spill] sm:$0xff] }
 0x26a   : > { %18066 = vst [vmem:[#allocation33_spill] sm:$0xff] %v14163_v5  ;;  %18067 = vst [vmem:[#allocation118_spill] sm:$0xff] %v14165_v6  ;;  %v6389_v9 = vpack.c.bf16 %v6318_v7, %v6318_v7  ;;  %v6390_v23 = vpack.c.bf16 %v6322_v0, %v6322_v0  ;;  %v7043_v30 = vpack.c.bf16 %v6972_v13, %v6972_v13  ;;  %v7802_v0 = vrot.slane %v14152_v19, 7 }
 0x26b   : > { %18068 = vst [vmem:[#allocation119_spill] sm:$0xff] %v14167_v2  ;;  %18069 = vst [vmem:[#allocation120_spill] sm:$0xff] %v14174_v28  ;;  %v7044_v29 = vpack.c.bf16 %v6976_v63, %v6976_v63  ;;  %v7626_v7 = vrot.slane %v18072_v47, %v12473_v56  ;;  %v3409_v63 = vpop.permute.xlu0 %3408  ;;  %v18076_v13 = vcombine.low %v14112_v53, %v14118_v37 }
 0x26c   : > { %v14183_v10 = vunpack.c.l.b16 %v6389_v9  ;;  %v14185_v42 = vunpack.c.l.b16 %v6390_v23  ;;  %v14191_v50 = vunpack.c.l.b16 %v7043_v30  ;;  %v14200_v23 = vsel %vm3211_vm9, %v7802_v0, %v14148_v44  ;;  %v3470_v9 = vpop.permute.xlu1 %3469 }
 0x26d   : > { %v14193_v48 = vunpack.c.l.b16 %v7044_v29  ;;  %v7697_v21 = vpack.c.bf16 %v7626_v7, %v7626_v7  ;;  %18075 = vst [vmem:[#allocation125_spill] sm:$0xff] %v14200_v23  ;;  %v3575_v29 = vcombine.high %v14112_v53, %v14118_v37  ;;  %v3582_v38 = vrot.slane %v18076_v13, %v12489_v58  ;;  %v18078_v53 = vld [vmem:[#allocation20_spill] sm:$0xff] }
 0x26e   : > { %18070 = vst [vmem:[#allocation121_spill] sm:$0xff] %v14183_v10  ;;  %18071 = vst [vmem:[#allocation122_spill] sm:$0xff] %v14185_v42  ;;  %v14215_v0 = vsel %vm3434_vm0, %v3403_v4, %v14139_v25  ;;  %v14222_v30 = vsel %vm3434_vm0, %v3407_v49, %v3409_v63  ;;  %v14232_v25 = vsel %vm3495_vm1, %v3409_v63, %v3470_v9  ;;  %v18080_v10 = vld [vmem:[#allocation21_spill] sm:$0xff]  ;;  %v18081_v42 = vld [vmem:[#allocation22_spill] sm:$0xff] }
 0x26f   : > { %18073 = vst [vmem:[#allocation123_spill] sm:$0xff] %v14191_v50  ;;  %18074 = vst [vmem:[#allocation124_spill] sm:$0xff] %v14193_v48  ;;  %v14211_v7 = vunpack.c.l.b16 %v7697_v21  ;;  %v3589_v47 = vrot.slane %v3575_v29, %v12489_v58  ;;  %v3590_v50 = vcombine.high %v3582_v38, %v3582_v38  ;;  %v3748_v23 = vrot.slane %v3582_v38, 1  ;;  %v18083_v4 = vld [vmem:[#allocation25_spill] sm:$0xff]  ;;  %v18084_v63 = vld [vmem:[#allocation26_spill] sm:$0xff] }
 0x270   : > { %v3904_v37 = vmax.f32 %v18078_v53, %v3582_v38  ;;  %v3592_v13 = vcombine.low %v14215_v0, %v14219_v12 }
 0x271   : > { %18077 = vst [vmem:[#allocation126_spill] sm:$0xff] %v14211_v7  ;;  %v3591_v32 = vcombine.high %v3589_v47, %v3589_v47  ;;  %v3749_v49 = vrot.slane %v3590_v50, 1  ;;  %v3750_v48 = vrot.slane %v3589_v47, 1  ;;  %v3905_v29 = vmax.f32 %v18079_v27, %v3748_v23  ;;  %v18085_v23 = vld [vmem:[#allocation34_spill] sm:$0xff] }
 0x272   : > { %v3906_v24 = vmax.f32 %v18080_v10, %v3590_v50  ;;  %v3908_v38 = vmax.f32 %v18081_v42, %v3589_v47  ;;  %v4000_v53 = vmax.f32 %v3904_v37, 0.0  ;;  %v14238_v21 = vrot.slane %v3592_v13, %v12489_v58 }
 0x273   : > { %v3751_v7 = vrot.slane %v3591_v32, 1  ;;  %v3907_v36 = vmax.f32 %v18082_v33, %v3749_v49  ;;  %v3909_v43 = vmax.f32 %v18083_v4, %v3750_v48  ;;  %v3910_v9 = vmax.f32 %v18084_v63, %v3591_v32 }
 0x274   : > { %v4001_v2 = vmax.f32 %v3905_v29, 0.0  ;;  %v4002_v5 = vmax.f32 %v3906_v24, 0.0  ;;  %v4004_v35 = vmax.f32 %v3908_v38, 0.0  ;;  %v4267_v27 = vrot.slane %v4000_v53, %v12473_v56 }
 0x275   : > { %v3911_v10 = vmax.f32 %v18085_v23, %v3751_v7  ;;  %v4003_v50 = vmax.f32 %v3907_v36, 0.0  ;;  %v4005_v42 = vmax.f32 %v3909_v43, 0.0  ;;  %v4006_v47 = vmax.f32 %v3910_v9, 0.0 }
 0x276   : > { %v4271_v37 = vrot.slane %v4000_v53, %v12495_v3  ;;  %v4275_v13 = vrot.slane %v4001_v2, %v12473_v56  ;;  %v4279_v33 = vrot.slane %v4001_v2, %v12495_v3  ;;  %v4283_v48 = vrot.slane %v4002_v5, %v12473_v56 }
 0x277   : > { %v4007_v4 = vmax.f32 %v3911_v10, 0.0  ;;  %v4287_v32 = vrot.slane %v4002_v5, %v12495_v3  ;;  %v4291_v24 = vrot.slane %v4003_v50, %v12473_v56  ;;  %v4295_v49 = vrot.slane %v4003_v50, %v12495_v3 }
 0x278   : > { %v4299_v7 = vrot.slane %v4004_v35, %v12473_v56  ;;  %v4303_v43 = vrot.slane %v4004_v35, %v12495_v3  ;;  %v4307_v36 = vrot.slane %v4005_v42, %v12473_v56  ;;  %v4311_v29 = vrot.slane %v4005_v42, %v12495_v3 }
 0x279   : > { %v4315_v38 = vrot.slane %v4006_v47, %v12473_v56  ;;  %v4319_v2 = vrot.slane %v4006_v47, %v12495_v3  ;;  %v4323_v53 = vrot.slane %v4007_v4, %v12473_v56  ;;  %v4327_v5 = vrot.slane %v4007_v4, %v12495_v3 }
 0x27a   : > { %v4808_v63 = vpack.c.bf16 %v4267_v27, %v4267_v27  ;;  %v4809_v9 = vpack.c.bf16 %v4271_v37, %v4271_v37  ;;  %v4810_v23 = vpack.c.bf16 %v4275_v13, %v4275_v13  ;;  %v4811_v10 = vpack.c.bf16 %v4279_v33, %v4279_v33 }
 0x27b   : > { %v4812_v50 = vpack.c.bf16 %v4283_v48, %v4283_v48  ;;  %v4813_v19 = vpack.c.bf16 %v4287_v32, %v4287_v32  ;;  %v4814_v44 = vpack.c.bf16 %v4291_v24, %v4291_v24  ;;  %v4815_v35 = vpack.c.bf16 %v4295_v49, %v4295_v49 }
 0x27c   : > { %v4816_v31 = vpack.c.bf16 %v4299_v7, %v4299_v7  ;;  %v4817_v59 = vpack.c.bf16 %v4303_v43, %v4303_v43  ;;  %v4818_v17 = vpack.c.bf16 %v4307_v36, %v4307_v36  ;;  %v4819_v42 = vpack.c.bf16 %v4311_v29, %v4311_v29 }
 0x27d   : > { %v4820_v1 = vpack.c.bf16 %v4315_v38, %v4315_v38  ;;  %v4821_v18 = vpack.c.bf16 %v4319_v2, %v4319_v2  ;;  %v4822_v39 = vpack.c.bf16 %v4323_v53, %v4323_v53  ;;  %v4823_v47 = vpack.c.bf16 %v4327_v5, %v4327_v5 }
 0x27e   : > { %v14260_v11 = vunpack.c.l.b16 %v4810_v23  ;;  %v5230_v55 = vunpack.c.l.b16 %v4811_v10  ;;  %v14262_v4 = vunpack.c.l.b16 %v4812_v50  ;;  %v5232_v27 = vunpack.c.l.b16 %v4813_v19 }
 0x27f   : > { %v14264_v37 = vunpack.c.l.b16 %v4814_v44  ;;  %v14266_v13 = vunpack.c.l.b16 %v4815_v35  ;;  %v14268_v33 = vunpack.c.l.b16 %v4816_v31  ;;  %v14270_v48 = vunpack.c.l.b16 %v4817_v59 }
 0x280   : > { %18086 = vst [vmem:[#allocation20_spill] sm:$0xff] %v14262_v4  ;;  %v14272_v32 = vunpack.c.l.b16 %v4818_v17  ;;  %v14274_v24 = vunpack.c.l.b16 %v4819_v42  ;;  %v14276_v49 = vunpack.c.l.b16 %v4820_v1  ;;  %v14278_v7 = vunpack.c.l.b16 %v4821_v18  ;;  %v18106_v17 = vld [vmem:[#allocation31_spill] sm:$0xff] }
 0x281   : > { %18087 = vst [vmem:[#allocation23_spill] sm:$0xff] %v14264_v37  ;;  %18088 = vst [vmem:[#allocation21_spill] sm:$0xff] %v14266_v13  ;;  %v14280_v43 = vunpack.c.l.b16 %v4822_v39  ;;  %v14282_v36 = vunpack.c.l.b16 %v4823_v47  ;;  %v5395_v44 = vrot.slane %v5232_v27, 7  ;;  %v5816_v29 = vunpack.c.l.b16 %v4808_v63 }
 0x282   : > { %18089 = vst [vmem:[#allocation22_spill] sm:$0xff] %v14268_v33  ;;  %18090 = vst [vmem:[#allocation24_spill] sm:$0xff] %v14270_v48  ;;  %v5817_v31 = vunpack.c.l.b16 %v4809_v9  ;;  %v5884_v59 = vrot.slane %v14260_v11, 7  ;;  %v5898_v1 = vrot.slane %v5230_v55, 7  ;;  %v5900_v2 = vrot.slane %v5232_v27, 6 }
 0x283   : > { %18091 = vst [vmem:[#allocation25_spill] sm:$0xff] %v14272_v32  ;;  %18092 = vst [vmem:[#allocation26_spill] sm:$0xff] %v14274_v24  ;;  %v14288_v38 = vsel %vm3211_vm9, %v5395_v44, %v5230_v55  ;;  %v6536_v18 = vrot.slane %v14266_v13, 7  ;;  %v18098_v5 = vcombine.high %v14215_v0, %v14219_v12  ;;  %v3608_v9 = vcombine.high %v14238_v21, %v14238_v21  ;;  %v18101_v0 = vld [vmem:[#allocation29_spill] sm:$0xff] }
 0x284   : > { %18093 = vst [vmem:[#allocation34_spill] sm:$0xff] %v14276_v49  ;;  %18094 = vst [vmem:[#allocation127_spill] sm:$0xff] %v14278_v7  ;;  %v14292_v39 = vsel %vm3211_vm9, %v5884_v59, %v5816_v29  ;;  %v5899_v23 = vsel %vm3211_vm9, %v5898_v1, %v5817_v31  ;;  %v3752_v10 = vrot.slane %v14238_v21, 1  ;;  %v3912_v50 = vmax.f32 %v12779_v54, %v14238_v21  ;;  %v18102_v29 = vld [vmem:[#allocation27_spill] sm:$0xff]  ;;  %v18107_v54 = vld [vmem:[#allocation32_spill] sm:$0xff] }
 0x285   : > { %18095 = vst [vmem:[#allocation128_spill] sm:$0xff] %v14280_v43  ;;  %18096 = vst [vmem:[#allocation129_spill] sm:$0xff] %v14282_v36  ;;  %v3607_v63 = vrot.slane %v18098_v5, %v12489_v58  ;;  %v14303_v55 = vsel %vm3211_vm9, %v6536_v18, %v5232_v27  ;;  %v14309_v35 = vsel %vm3213_vm10, %v5900_v2, %v5899_v23  ;;  %v3753_v47 = vrot.slane %v3608_v9, 1  ;;  %v18103_v5 = vld [vmem:[#allocation28_spill] sm:$0xff]  ;;  %v18104_v18 = vld [vmem:[#allocation30_spill] sm:$0xff] }
 0x286   : > { %18097 = vst [vmem:[#allocation130_spill] sm:$0xff] %v14292_v39  ;;  %18099 = vst [vmem:[#allocation131_spill] sm:$0xff] %v14303_v55  ;;  %v3913_v44 = vmax.f32 %v18101_v0, %v3752_v10  ;;  %v3914_v59 = vmax.f32 %v18102_v29, %v3608_v9  ;;  %v4008_v1 = vmax.f32 %v3912_v50, 0.0  ;;  %v18108_v55 = vld [vmem:[#allocation48_spill] sm:$0xff] }
 0x287   : > { %18100 = vst [vmem:[#allocation132_spill] sm:$0xff] %v14309_v35  ;;  %v3609_v42 = vcombine.high %v3607_v63, %v3607_v63  ;;  %v3754_v12 = vrot.slane %v3607_v63, 1  ;;  %v3916_v31 = vmax.f32 %v18103_v5, %v3607_v63  ;;  %v14315_v53 = vmax.f32 %v18104_v18, %v3753_v47 }
 0x288   : > { %v4009_v2 = vmax.f32 %v3913_v44, 0.0  ;;  %v4010_v23 = vmax.f32 %v3914_v59, 0.0  ;;  %v4961_v35 = vrot.slane %v4008_v1, %v12473_v56  ;;  %v4965_v29 = vrot.slane %v4008_v1, %v12495_v3 }
 0x289   : > { %v3755_v27 = vrot.slane %v3609_v42, 1  ;;  %18105 = vst [vmem:[#allocation29_spill] sm:$0xff] %v14315_v53  ;;  %v3917_v19 = vmax.f32 %v18106_v17, %v3754_v12  ;;  %v3918_v21 = vmax.f32 %v18107_v54, %v3609_v42  ;;  %v4012_v39 = vmax.f32 %v3916_v31, 0.0 }
 0x28a   : > { %v5026_v17 = vpack.c.bf16 %v4961_v35, %v4961_v35 }
 0x28b   : > { %v3919_v10 = vmax.f32 %v18108_v55, %v3755_v27  ;;  %v4013_v0 = vmax.f32 %v3917_v19, 0.0  ;;  %v4014_v63 = vmax.f32 %v3918_v21, 0.0  ;;  %v4331_v50 = vrot.slane %v4012_v39, %v12473_v56 }
 0x28c   : > { %v4335_v47 = vrot.slane %v4012_v39, %v12495_v3  ;;  %v5027_v19 = vpack.c.bf16 %v4965_v29, %v4965_v29  ;;  %v14331_v21 = vunpack.c.l.b16 %v5026_v17 }
 0x28d   : > { %v4015_v12 = vmax.f32 %v3919_v10, 0.0  ;;  %v4339_v42 = vrot.slane %v4013_v0, %v12473_v56  ;;  %v4343_v44 = vrot.slane %v4013_v0, %v12495_v3  ;;  %v4347_v59 = vrot.slane %v4014_v63, %v12473_v56 }
 0x28e   : > { %v4351_v55 = vrot.slane %v4014_v63, %v12495_v3  ;;  %v4824_v5 = vpack.c.bf16 %v4331_v50, %v4331_v50  ;;  %v4825_v31 = vpack.c.bf16 %v4335_v47, %v4335_v47  ;;  %18109 = vst [vmem:[#allocation27_spill] sm:$0xff] %v14331_v21  ;;  %v14333_v10 = vunpack.c.l.b16 %v5027_v19 }
 0x28f   : > { %v4355_v27 = vrot.slane %v4015_v12, %v12473_v56  ;;  %v4359_v18 = vrot.slane %v4015_v12, %v12495_v3  ;;  %v4826_v39 = vpack.c.bf16 %v4339_v42, %v4339_v42  ;;  %v4827_v54 = vpack.c.bf16 %v4343_v44, %v4343_v44 }
 0x290   : > { %v4828_v1 = vpack.c.bf16 %v4347_v59, %v4347_v59  ;;  %v4829_v35 = vpack.c.bf16 %v4351_v55, %v4351_v55  ;;  %18110 = vst [vmem:[#allocation28_spill] sm:$0xff] %v14333_v10  ;;  %v5818_v29 = vunpack.c.l.b16 %v4824_v5  ;;  %v5819_v43 = vunpack.c.l.b16 %v4825_v31 }
 0x291   : > { %v4830_v0 = vpack.c.bf16 %v4355_v27, %v4355_v27  ;;  %v4831_v9 = vpack.c.bf16 %v4359_v18, %v4359_v18  ;;  %v14335_v53 = vunpack.c.l.b16 %v4826_v39  ;;  %v5246_v63 = vunpack.c.l.b16 %v4827_v54 }
 0x292   : > { %v14337_v50 = vunpack.c.l.b16 %v4828_v1  ;;  %v5248_v47 = vunpack.c.l.b16 %v4829_v35  ;;  %v14351_v5 = vrot.slane %v4009_v2, %v12473_v56  ;;  %v14362_v1 = vrot.slane %v4010_v23, %v12473_v56  ;;  %v18123_v35 = vld [vmem:[#allocation36_spill] sm:$0xff] }
 0x293   : > { %18111 = vst [vmem:[#allocation30_spill] sm:$0xff] %v14335_v53  ;;  %v14339_v49 = vunpack.c.l.b16 %v4830_v0  ;;  %v14341_v12 = vunpack.c.l.b16 %v4831_v9  ;;  %v5912_v42 = vrot.slane %v14335_v53, 7  ;;  %v5926_v17 = vrot.slane %v5246_v63, 7  ;;  %v18158_v53 = vld [vmem:[#allocation13_spill] sm:$0xff] }
 0x294   : > { %18112 = vst [vmem:[#allocation31_spill] sm:$0xff] %v14337_v50  ;;  %v5423_v59 = vrot.slane %v5248_v47, 7  ;;  %v5928_v19 = vrot.slane %v5248_v47, 6  ;;  %18116 = vst [vmem:[#allocation134_spill] sm:$0xff] %v14351_v5  ;;  %v6330_v9 = vrot.slane %v4009_v2, %v12495_v3  ;;  %v6984_v0 = vrot.slane %v4010_v23, %v12495_v3 }
 0x295   : > { %18113 = vst [vmem:[#allocation32_spill] sm:$0xff] %v14339_v49  ;;  %18114 = vst [vmem:[#allocation48_spill] sm:$0xff] %v14341_v12  ;;  %v14347_v27 = vsel %vm3211_vm9, %v5912_v42, %v5818_v29  ;;  %v5927_v18 = vsel %vm3211_vm9, %v5926_v17, %v5819_v43  ;;  %v6564_v54 = vrot.slane %v14341_v12, 7  ;;  %v3610_v2 = vcombine.low %v14222_v30, %v14232_v25 }
 0x296   : > { %18115 = vst [vmem:[#allocation133_spill] sm:$0xff] %v14347_v27  ;;  %v14355_v31 = vsel %vm3211_vm9, %v5423_v59, %v5246_v63  ;;  %v14358_v39 = vsel %vm3213_vm10, %v5928_v19, %v5927_v18  ;;  %18118 = vst [vmem:[#allocation136_spill] sm:$0xff] %v14362_v1  ;;  %v6392_v43 = vpack.c.bf16 %v6330_v9, %v6330_v9  ;;  %v18120_v42 = vrot.slane %v13949_v40, 7 }
 0x297   : > { %18117 = vst [vmem:[#allocation135_spill] sm:$0xff] %v14358_v39  ;;  %v14370_v63 = vsel %vm3211_vm9, %v6564_v54, %v5248_v47  ;;  %v3611_v29 = vcombine.high %v14222_v30, %v14232_v25  ;;  %v5341_v59 = vrot.slane %v13953_v15, 6  ;;  %v7046_v18 = vpack.c.bf16 %v6984_v0, %v6984_v0  ;;  %v18126_v25 = vld [vmem:[#allocation39_spill] sm:$0xff] }
 0x298   : > { %18119 = vst [vmem:[#allocation137_spill] sm:$0xff] %v14370_v63  ;;  %v5340_v17 = vsel %vm3211_vm9, %v18120_v42, %v13945_v16  ;;  %v14379_v19 = vunpack.c.l.b16 %v6392_v43  ;;  %v3618_v23 = vrot.slane %v3610_v2, %v12489_v58  ;;  %v5343_v9 = vrot.slane %v13957_v62, 5 }
 0x299   : > { %v3625_v47 = vrot.slane %v3611_v29, %v12489_v58  ;;  %v5342_v54 = vsel %vm3213_vm10, %v5341_v59, %v5340_v17  ;;  %v5345_v30 = vrot.slane %v13961_v57, 4  ;;  %v14387_v40 = vunpack.c.l.b16 %v7046_v18  ;;  %v18124_v29 = vld [vmem:[#allocation37_spill] sm:$0xff]  ;;  %v18125_v17 = vld [vmem:[#allocation35_spill] sm:$0xff] }
 0x29a   : > { %18121 = vst [vmem:[#allocation138_spill] sm:$0xff] %v14379_v19  ;;  %v3626_v16 = vcombine.high %v3618_v23, %v3618_v23  ;;  %v3756_v42 = vrot.slane %v3618_v23, 1  ;;  %v3920_v43 = vmax.f32 %v12916_v20, %v3618_v23  ;;  %v5344_v44 = vsel %vm3215_vm11, %v5343_v9, %v5342_v54  ;;  %v18128_v19 = vld [vmem:[#allocation38_spill] sm:$0xff] }
 0x29b   : > { %18122 = vst [vmem:[#allocation139_spill] sm:$0xff] %v14387_v40  ;;  %v3627_v55 = vcombine.high %v3625_v47, %v3625_v47  ;;  %v3758_v0 = vrot.slane %v3625_v47, 1  ;;  %v3924_v2 = vmax.f32 %v18123_v35, %v3625_v47  ;;  %v18127_v40 = vld [vmem:[#allocation40_spill] sm:$0xff]  ;;  %v18129_v47 = vld [vmem:[#allocation49_spill] sm:$0xff]  ;;  %v5359_v21 = vrot.slane %v18158_v53, 4 }
 0x29c   : > { %v3757_v1 = vrot.slane %v3626_v16, 1  ;;  %v3921_v27 = vmax.f32 %v18124_v29, %v3756_v42  ;;  %v3922_v59 = vmax.f32 %v18125_v17, %v3626_v16  ;;  %v4016_v39 = vmax.f32 %v3920_v43, 0.0 }
 0x29d   : > { %v3759_v15 = vrot.slane %v3627_v55, 1  ;;  %v3925_v18 = vmax.f32 %v18126_v25, %v3758_v0  ;;  %v3926_v5 = vmax.f32 %v18127_v40, %v3627_v55  ;;  %v4020_v63 = vmax.f32 %v3924_v2, 0.0 }
 0x29e   : > { %v3923_v20 = vmax.f32 %v18128_v19, %v3757_v1  ;;  %v4017_v23 = vmax.f32 %v3921_v27, 0.0  ;;  %v4018_v49 = vmax.f32 %v3922_v59, 0.0  ;;  %v4363_v35 = vrot.slane %v4016_v39, %v12473_v56 }
 0x29f   : > { %v14399_v9 = vmax.f32 %v18129_v47, %v3759_v15  ;;  %v4021_v54 = vmax.f32 %v3925_v18, 0.0  ;;  %v4022_v42 = vmax.f32 %v3926_v5, 0.0  ;;  %v4367_v16 = vrot.slane %v4016_v39, %v12495_v3 }
 0x2a0   : > { %v4019_v43 = vmax.f32 %v3923_v20, 0.0  ;;  %v4371_v29 = vrot.slane %v4017_v23, %v12473_v56  ;;  %v4375_v25 = vrot.slane %v4017_v23, %v12495_v3  ;;  %v4379_v55 = vrot.slane %v4018_v49, %v12473_v56 }
 0x2a1   : > { %18130 = vst [vmem:[#allocation36_spill] sm:$0xff] %v14399_v9  ;;  %v4383_v27 = vrot.slane %v4018_v49, %v12495_v3  ;;  %v4832_v19 = vpack.c.bf16 %v4363_v35, %v4363_v35  ;;  %v4833_v40 = vpack.c.bf16 %v4367_v16, %v4367_v16  ;;  %v4969_v59 = vrot.slane %v4020_v63, %v12473_v56 }
 0x2a2   : > { %v4387_v15 = vrot.slane %v4019_v43, %v12473_v56  ;;  %v4391_v0 = vrot.slane %v4019_v43, %v12495_v3  ;;  %v4834_v5 = vpack.c.bf16 %v4371_v29, %v4371_v29  ;;  %v4835_v2 = vpack.c.bf16 %v4375_v25, %v4375_v25 }
 0x2a3   : > { %v4836_v39 = vpack.c.bf16 %v4379_v55, %v4379_v55  ;;  %v4837_v17 = vpack.c.bf16 %v4383_v27, %v4383_v27  ;;  %v4973_v18 = vrot.slane %v4020_v63, %v12495_v3  ;;  %v14411_v47 = vunpack.c.l.b16 %v4832_v19 }
 0x2a4   : > { %v4838_v20 = vpack.c.bf16 %v4387_v15, %v4387_v15  ;;  %v4839_v23 = vpack.c.bf16 %v4391_v0, %v4391_v0  ;;  %v14413_v1 = vunpack.c.l.b16 %v4833_v40  ;;  %v5028_v49 = vpack.c.bf16 %v4969_v59, %v4969_v59 }
 0x2a5   : > { %18131 = vst [vmem:[#allocation37_spill] sm:$0xff] %v14411_v47  ;;  %v5029_v35 = vpack.c.bf16 %v4973_v18, %v4973_v18  ;;  %v14415_v16 = vunpack.c.l.b16 %v4834_v5  ;;  %v14417_v9 = vunpack.c.l.b16 %v4835_v2  ;;  %v14419_v43 = vunpack.c.l.b16 %v4836_v39  ;;  %v18157_v47 = vld [vmem:[#allocation16_spill] sm:$0xff] }
 0x2a6   : > { %18132 = vst [vmem:[#allocation35_spill] sm:$0xff] %v14413_v1  ;;  %v14421_v29 = vunpack.c.l.b16 %v4837_v17  ;;  %v14423_v25 = vunpack.c.l.b16 %v4838_v20  ;;  %v14425_v55 = vunpack.c.l.b16 %v4839_v23  ;;  %v14427_v63 = vunpack.c.l.b16 %v5028_v49 }
 0x2a7   : > { %18133 = vst [vmem:[#allocation39_spill] sm:$0xff] %v14415_v16  ;;  %18134 = vst [vmem:[#allocation40_spill] sm:$0xff] %v14417_v9  ;;  %v14429_v27 = vunpack.c.l.b16 %v5029_v35  ;;  %v14432_v19 = vrot.slane %v4021_v54, %v12473_v56  ;;  %v6338_v40 = vrot.slane %v4021_v54, %v12495_v3  ;;  %v14436_v15 = vrot.slane %v4022_v42, %v12473_v56  ;;  %v14447_v54 = vpop.permute.xlu0 %3410 }
 0x2a8   : > { %18135 = vst [vmem:[#allocation38_spill] sm:$0xff] %v14419_v43  ;;  %18136 = vst [vmem:[#allocation49_spill] sm:$0xff] %v14421_v29  ;;  %v6992_v0 = vrot.slane %v4022_v42, %v12495_v3  ;;  %v5346_v2 = vsel %vm3217_vm12, %v5345_v30, %v5344_v44  ;;  %v18143_v59 = vrot.slane %v13965_v14, 3  ;;  %v5349_v20 = vrot.slane %v13969_v8, 2 }
 0x2a9   : > { %18137 = vst [vmem:[#allocation140_spill] sm:$0xff] %v14423_v25  ;;  %18138 = vst [vmem:[#allocation141_spill] sm:$0xff] %v14425_v55  ;;  %v6394_v17 = vpack.c.bf16 %v6338_v40, %v6338_v40  ;;  %v5351_v49 = vrot.slane %v14055_v22, 1  ;;  %v18144_v42 = vrot.slane %v14051_v51, 7  ;;  %v5369_v30 = vrot.slane %v14059_v41, 6  ;;  %v18151_v41 = vld [vmem:[#allocation98_spill] sm:$0xff]  ;;  %v14480_v25 = vpop.permute.xlu1 %3412 }
 0x2aa   : > { %18139 = vst [vmem:[#allocation142_spill] sm:$0xff] %v14427_v63  ;;  %18140 = vst [vmem:[#allocation143_spill] sm:$0xff] %v14429_v27  ;;  %v5348_v18 = vsel %vm3219_vm13, %v18143_v59, %v5346_v2  ;;  %v7048_v23 = vpack.c.bf16 %v6992_v0, %v6992_v0  ;;  %v5371_v2 = vrot.slane %v14150_v45, 5  ;;  %v5373_v59 = vrot.slane %v14154_v46, 4 }
 0x2ab   : > { %18141 = vst [vmem:[#allocation144_spill] sm:$0xff] %v14432_v19  ;;  %18142 = vst [vmem:[#allocation145_spill] sm:$0xff] %v14436_v15  ;;  %v5368_v44 = vsel %vm3211_vm9, %v18144_v42, %v14047_v60  ;;  %v14455_v35 = vunpack.c.l.b16 %v6394_v17  ;;  %v5350_v40 = vsel %vm3221_vm14, %v5349_v20, %v5348_v18  ;;  %v5375_v51 = vrot.slane %v14161_v34, 3 }
 0x2ac   : > { %v14460_v5 = vunpack.c.l.b16 %v7048_v23  ;;  %v5352_v0 = vsel %vm3223_vm15, %v5351_v49, %v5350_v40  ;;  %v5370_v39 = vsel %vm3213_vm10, %v5369_v30, %v5368_v44  ;;  %v5377_v42 = vrot.slane %v14165_v6, 2  ;;  %v18148_v49 = vld [vmem:[#allocation92_spill] sm:$0xff]  ;;  %v18149_v44 = vld [vmem:[#allocation94_spill] sm:$0xff] }
 0x2ad   : > { %18145 = vst [vmem:[#allocation146_spill] sm:$0xff] %v14455_v35  ;;  %v5372_v60 = vsel %vm3215_vm11, %v5371_v2, %v5370_v39  ;;  %v5379_v17 = vrot.slane %v14174_v28, 1  ;;  %v18147_v18 = vrot.slane %v13947_v61, 7  ;;  %v5327_v15 = vrot.slane %v13951_v52, 6  ;;  %v18150_v39 = vld [vmem:[#allocation96_spill] sm:$0xff]  ;;  %v18152_v35 = vld [vmem:[#allocation19_spill] sm:$0xff]  ;;  %v14482_v61 = vpop.permute.xlu0 %3471 }
 0x2ae   : > { %18146 = vst [vmem:[#allocation147_spill] sm:$0xff] %v14460_v5  ;;  %v5374_v23 = vsel %vm3217_vm12, %v5373_v59, %v5372_v60  ;;  %v5329_v40 = vrot.slane %v18148_v49, 5  ;;  %v5331_v30 = vrot.slane %v18149_v44, 4  ;;  %v5333_v2 = vrot.slane %v18150_v39, 3  ;;  %v18153_v59 = vld [vmem:[#allocation10_spill] sm:$0xff]  ;;  %v18154_v60 = vld [vmem:[#allocation9_spill] sm:$0xff] }
 0x2af   : > { %v5326_v20 = vsel %vm3211_vm9, %v18147_v18, %v13943_v26  ;;  %v5376_v5 = vsel %vm3219_vm13, %v5375_v51, %v5374_v23  ;;  %v5335_v19 = vrot.slane %v18151_v41, 2  ;;  %v5337_v63 = vrot.slane %v18152_v35, 1  ;;  %v18156_v51 = vld [vmem:[#allocation107_spill] sm:$0xff] }
 0x2b0   : > { %v5378_v26 = vsel %vm3221_vm14, %v5377_v42, %v5376_v5  ;;  %v5328_v52 = vsel %vm3213_vm10, %v5327_v15, %v5326_v20  ;;  %v18155_v18 = vrot.slane %v18154_v60, 7  ;;  %v5355_v23 = vrot.slane %v18156_v51, 6  ;;  %v18159_v42 = vld [vmem:[#allocation17_spill] sm:$0xff] }
 0x2b1   : > { %v5380_v43 = vsel %vm3223_vm15, %v5379_v17, %v5378_v26  ;;  %v5330_v16 = vsel %vm3215_vm11, %v5329_v40, %v5328_v52  ;;  %v5357_v50 = vrot.slane %v18157_v47, 5  ;;  %v5361_v20 = vrot.slane %v18159_v42, 3  ;;  %v18161_v17 = vld [vmem:[#allocation119_spill] sm:$0xff]  ;;  %v14502_v40 = vpop.permute.xlu1 %3416 }
 0x2b2   : > { %v5354_v49 = vsel %vm3211_vm9, %v18155_v18, %v18153_v59  ;;  %v5550_v32 = vpack.c.b16 %v5380_v43, %v5352_v0  ;;  %v5332_v5 = vsel %vm3217_vm12, %v5331_v30, %v5330_v16  ;;  %v18160_v18 = vld [vmem:[#allocation33_spill] sm:$0xff]  ;;  %v5365_v26 = vrot.slane %v18161_v17, 1 }
 0x2b3   : > { %v5356_v15 = vsel %vm3213_vm10, %v5355_v23, %v5354_v49  ;;  %v5334_v60 = vsel %vm3219_vm13, %v5333_v2, %v5332_v5  ;;  %v5363_v51 = vrot.slane %v18160_v18, 2  ;;  %v6482_v0 = vrot.slane %v13957_v62, 6  ;;  %v14513_v23 = vpop.permute.xlu0 %3414  ;;  %v18162_v5 = vld [vmem:[#allocation103_spill] sm:$0xff] }
 0x2b4   : > { %v5358_v59 = vsel %vm3215_vm11, %v5357_v50, %v5356_v15  ;;  %10720 = vmatprep.mubr.msk.bf16.mxu1 %vm1024_vm7, %v5550_v32  ;;  %v5336_v43 = vsel %vm3221_vm14, %v5335_v19, %v5334_v60  ;;  %v6484_v49 = vrot.slane %v13961_v57, 5  ;;  %v6486_v2 = vrot.slane %v13965_v14, 4  ;;  %v18163_v15 = vld [vmem:[#allocation114_spill] sm:$0xff] }
 0x2b5   : > { %v5360_v16 = vsel %vm3217_vm12, %v5359_v21, %v5358_v59  ;;  %v5338_v30 = vsel %vm3223_vm15, %v5337_v63, %v5336_v43  ;;  %v6488_v52 = vrot.slane %v13969_v8, 3  ;;  %v6483_v19 = vsel %vm3213_vm10, %v6482_v0, %v18162_v5  ;;  %v18200_v8 = vld [vmem:[#allocation56_spill] sm:$0xff] }
 0x2b6   : > { %v5362_v50 = vsel %vm3219_vm13, %v5361_v20, %v5360_v16  ;;  %v6490_v21 = vrot.slane %v14055_v22, 2  ;;  %v6492_v60 = vrot.slane %v18163_v15, 1  ;;  %v6485_v63 = vsel %vm3215_vm11, %v6484_v49, %v6483_v19  ;;  %v11562_v16 = vld [vmem:[%s17462_s3 + $0x70] ss:$8 sps:$4 sm:$0xff]  }
 0x2b7   : > { %v5364_v32 = vsel %vm3221_vm14, %v5363_v51, %v5362_v50  ;;  %v6510_v20 = vrot.slane %v14150_v45, 6  ;;  %v6512_v43 = vrot.slane %v14154_v46, 5  ;;  %v6487_v50 = vsel %vm3217_vm12, %v6486_v2, %v6485_v63  ;;  %v18165_v22 = vld [vmem:[#allocation122_spill] sm:$0xff]  ;;  %v18197_v45 = vld [vmem:[#allocation55_spill] sm:$0xff] }
 0x2b8   : > { %v5366_v59 = vsel %vm3223_vm15, %v5365_v26, %v5364_v32  ;;  %v6514_v0 = vrot.slane %v14161_v34, 4  ;;  %v6516_v5 = vrot.slane %v14165_v6, 3  ;;  %v11570_v26 = vld [vmem:[%s17462_s3 + $0x64] ss:$8 sps:$4 sm:$0xff]   ;;  %v6489_v49 = vsel %vm3219_vm13, %v6488_v52, %v6487_v50 }
 0x2b9   : > { %v5549_v51 = vpack.c.b16 %v5366_v59, %v5338_v30  ;;  %v18164_v32 = vld [vmem:[#allocation112_spill] sm:$0xff]  ;;  %v6518_v15 = vrot.slane %v14174_v28, 2  ;;  %v6520_v46 = vrot.slane %v18165_v22, 1  ;;  %v3474_v30 = vpop.permute.xlu1 %3473  ;;  %v3419_v59 = vpop.permute.xlu0 %3418  ;;  %v6491_v2 = vsel %vm3221_vm14, %v6490_v21, %v6489_v49 }
 0x2ba   : > { %v6511_v19 = vsel %vm3213_vm10, %v6510_v20, %v18164_v32  ;;  %v6470_v6 = vrot.slane %v18149_v44, 5  ;;  %v6472_v34 = vrot.slane %v18150_v39, 4  ;;  %v6493_v52 = vsel %vm3223_vm15, %v6492_v60, %v6491_v2  ;;  %v18168_v44 = vld [vmem:[#allocation111_spill] sm:$0xff] }
 0x2bb   : > { %5756 = vmatmul.mubr.bf16.vlgmr.msra.gmra.mxu1 %v5549_v51  ;;  %v6513_v63 = vsel %vm3215_vm11, %v6512_v43, %v6511_v19  ;;  %v6474_v20 = vrot.slane %v18151_v41, 3  ;;  %v6476_v32 = vrot.slane %v18152_v35, 2  ;;  %v11568_v51 = vld [vmem:[%s17462_s3 + $0x60] ss:$8 sps:$4 sm:$0xff]   ;;  %v18166_v43 = vld [vmem:[#allocation102_spill] sm:$0xff]  ;;  %v18167_v19 = vld [vmem:[#allocation113_spill] sm:$0xff] }
 0x2bc   : > { %v6515_v50 = vsel %vm3217_vm12, %v6514_v0, %v6513_v63  ;;  %6227 = vmatpush1.bf16.msra.mxu1 %v11562_v16  ;;  %v6471_v49 = vsel %vm3215_vm11, %v6470_v6, %v18166_v43  ;;  %v6478_v39 = vrot.slane %v18167_v19, 1  ;;  %v18169_v60 = vrot.slane %v18157_v47, 6  ;;  %v11576_v16 = vld [vmem:[%s17462_s3 + $0x54] ss:$8 sps:$4 sm:$0xff]  }
 0x2bd   : > { %v6517_v21 = vsel %vm3219_vm13, %v6516_v5, %v6515_v50  ;;  %6228 = vmatprep.subr.bf16.mxu1 %v11570_v26  ;;  %v6473_v63 = vsel %vm3217_vm12, %v6472_v34, %v6471_v49  ;;  %v6498_v5 = vrot.slane %v18158_v53, 5  ;;  %v6500_v6 = vrot.slane %v18159_v42, 4  ;;  %v3421_v34 = vpop.permute.xlu1 %3420  ;;  %v3476_v49 = vpop.permute.xlu0 %3475  ;;  %v11591_v53 = vld [vmem:[%s17462_s3 + $0x3f4] ss:$8 sps:$4 sm:$0xff]  }
 0x2be   : > { %v6497_v0 = vsel %vm3213_vm10, %v18169_v60, %v18168_v44  ;;  %v6519_v2 = vsel %vm3221_vm14, %v6518_v15, %v6517_v21  ;;  %v6475_v43 = vsel %vm3219_vm13, %v6474_v20, %v6473_v63  ;;  %v6502_v19 = vrot.slane %v18160_v18, 3  ;;  %v18170_v15 = vld [vmem:[#allocation121_spill] sm:$0xff] }
 0x2bf   : > { %v6521_v50 = vsel %vm3223_vm15, %v6520_v46, %v6519_v2  ;;  %v6504_v44 = vrot.slane %v18161_v17, 2  ;;  %v6477_v60 = vsel %vm3221_vm14, %v6476_v32, %v6475_v43  ;;  %v6499_v35 = vsel %vm3215_vm11, %v6498_v5, %v6497_v0  ;;  %v11574_v46 = vld [vmem:[%s17462_s3 + $0x50] ss:$8 sps:$4 sm:$0xff]  }
 0x2c0   : > { %v6691_v26 = vpack.c.b16 %v6521_v50, %v6493_v52  ;;  %v6506_v21 = vrot.slane %v18170_v15, 1  ;;  %6229 = vmatpush1.bf16.msra.mxu1 %v11568_v51  ;;  %v6479_v20 = vsel %vm3223_vm15, %v6478_v39, %v6477_v60  ;;  %v6501_v2 = vsel %vm3217_vm12, %v6500_v6, %v6499_v35  ;;  %v11582_v51 = vld [vmem:[%s17462_s3 + $0x44] ss:$8 sps:$4 sm:$0xff]   ;;  %v11588_v60 = vld [vmem:[%s17462_s3 + $0x34] ss:$8 sps:$4 sm:$0xff]  }
 0x2c1   : > { %v3441_v52 = vsel %vm3434_vm0, %v14447_v54, %v14480_v25  ;;  %v3502_v32 = vsel %vm3495_vm1, %v14480_v25, %v14482_v61  ;;  %6230 = vmatprep.subr.bf16.mxu1 %v11576_v16  ;;  %v6503_v0 = vsel %vm3219_vm13, %v6502_v19, %v6501_v2  ;;  %v3442_v35 = vsel %vm3434_vm0, %v14513_v23, %v14502_v40  ;;  %v11565_v23 = vld [vmem:[%s17462_s3 + $0x430] ss:$8 sps:$4 sm:$0xff]  }
 0x2c2   : > { %10818 = vmatprep.mubr.msk.bf16.mxu0 %vm1024_vm7, %v6691_v26  ;;  %v3628_v39 = vcombine.low %v3441_v52, %v3502_v32  ;;  %v3629_v63 = vcombine.high %v3441_v52, %v3502_v32  ;;  %v6505_v54 = vsel %vm3221_vm14, %v6504_v44, %v6503_v0  ;;  %v3503_v25 = vsel %vm3495_vm1, %v14502_v40, %v3474_v30  ;;  %v11580_v40 = vld [vmem:[%s17462_s3 + $0x40] ss:$8 sps:$4 sm:$0xff]   ;;  %v11573_v26 = vld [vmem:[%s17462_s3 + $0x424] ss:$8 sps:$4 sm:$0xff]  }
 0x2c3   : > { %v14594_v61 = vsel %vm3434_vm0, %v3419_v59, %v3421_v34  ;;  %v14597_v16 = vsel %vm3495_vm1, %v3421_v34, %v3476_v49  ;;  %v6507_v5 = vsel %vm3223_vm15, %v6506_v21, %v6505_v54  ;;  %v3646_v50 = vcombine.low %v3442_v35, %v3503_v25  ;;  %v18172_v52 = vld [vmem:[#allocation43_spill] sm:$0xff] }
 0x2c4   : > { %v3636_v19 = vrot.slane %v3628_v39, %v12489_v58  ;;  %v3643_v6 = vrot.slane %v3629_v63, %v12489_v58  ;;  %6231 = vmatpush1.bf16.msra.mxu1 %v11574_v46  ;;  %v6690_v30 = vpack.c.b16 %v6507_v5, %v6479_v20  ;;  %v3647_v59 = vcombine.high %v3442_v35, %v3503_v25  ;;  %v18171_v20 = vld [vmem:[#allocation41_spill] sm:$0xff]  ;;  %v18173_v35 = vld [vmem:[#allocation44_spill] sm:$0xff]  ;;  %v18174_v25 = vld [vmem:[#allocation42_spill] sm:$0xff] }
 0x2c5   : > { %6232 = vmatprep.subr.bf16.mxu1 %v11582_v51  ;;  %v14621_v0 = vrot.slane %v3646_v50, %v12489_v58 }
 0x2c6   : > { %v3644_v21 = vcombine.high %v3636_v19, %v3636_v19  ;;  %v3645_v34 = vcombine.high %v3643_v6, %v3643_v6  ;;  %v3760_v49 = vrot.slane %v3636_v19, 1  ;;  %v3762_v46 = vrot.slane %v3643_v6, 1  ;;  %6897 = vmatmul.mubr.bf16.vlgmr.msra.gmra.mxu0 %v6690_v30  ;;  %v11571_v30 = vld [vmem:[%s17462_s3 + $0x420] ss:$8 sps:$4 sm:$0xff]  }
 0x2c7   : > { %v3928_v2 = vmax.f32 %v18171_v20, %v3636_v19  ;;  %v3932_v32 = vmax.f32 %v18172_v52, %v3643_v6  ;;  %v14624_v39 = vrot.slane %v3647_v59, %v12489_v58  ;;  %8173 = vmatpush1.bf16.msra.mxu0 %v11565_v23  ;;  %v11586_v19 = vld [vmem:[%s17462_s3 + $0x30] ss:$8 sps:$4 sm:$0xff]   ;;  %v18176_v59 = vld [vmem:[#allocation47_spill] sm:$0xff]  ;;  %v11579_v23 = vld [vmem:[%s17462_s3 + $0x414] ss:$8 sps:$4 sm:$0xff]  }
 0x2c8   : > { %v3761_v51 = vrot.slane %v3644_v21, 1  ;;  %v3763_v63 = vrot.slane %v3645_v34, 1  ;;  %v3929_v54 = vmax.f32 %v18173_v35, %v3760_v49  ;;  %v3930_v5 = vmax.f32 %v18174_v25, %v3644_v21  ;;  %6233 = vmatpush1.bf16.msra.mxu1 %v11580_v40  ;;  %v18175_v6 = vld [vmem:[#allocation46_spill] sm:$0xff]  ;;  %8174 = vmatprep.subr.bf16.mxu0 %v11573_v26  ;;  %v18177_v21 = vld [vmem:[#allocation45_spill] sm:$0xff]  ;;  %v18178_v35 = vld [vmem:[#allocation64_spill] sm:$0xff] }
 0x2c9   : > { %v3933_v50 = vmax.f32 %v18175_v6, %v3762_v46  ;;  %v3934_v20 = vmax.f32 %v18176_v59, %v3645_v34  ;;  %v4024_v52 = vmax.f32 %v3928_v2, 0.0  ;;  %v4028_v44 = vmax.f32 %v3932_v32, 0.0  ;;  %6234 = vmatprep.subr.bf16.mxu1 %v11588_v60  ;;  %v11594_v46 = vld [vmem:[%s17462_s3 + $0x24] ss:$8 sps:$4 sm:$0xff]  }
 0x2ca   : > { %v3931_v49 = vmax.f32 %v18177_v21, %v3761_v51  ;;  %v3935_v40 = vmax.f32 %v18178_v35, %v3763_v63  ;;  %v4025_v25 = vmax.f32 %v3929_v54, 0.0  ;;  %v4026_v43 = vmax.f32 %v3930_v5, 0.0  ;;  %v11577_v54 = vld [vmem:[%s17462_s3 + $0x410] ss:$8 sps:$4 sm:$0xff]  }
 0x2cb   : > { %v4029_v6 = vmax.f32 %v3933_v50, 0.0  ;;  %v4030_v34 = vmax.f32 %v3934_v20, 0.0  ;;  %v14645_v2 = vrot.slane %v4024_v52, %v12473_v56  ;;  %v14648_v26 = vrot.slane %v4024_v52, %v12495_v3  ;;  %8175 = vmatpush1.bf16.msra.mxu0 %v11571_v30  ;;  %v11585_v52 = vld [vmem:[%s17462_s3 + $0x404] ss:$8 sps:$4 sm:$0xff]  }
 0x2cc   : > { %v4027_v32 = vmax.f32 %v3931_v49, 0.0  ;;  %v4031_v60 = vmax.f32 %v3935_v40, 0.0  ;;  %v4403_v51 = vrot.slane %v4025_v25, %v12473_v56  ;;  %v4407_v63 = vrot.slane %v4025_v25, %v12495_v3  ;;  %6235 = vmatpush1.bf16.msra.mxu1 %v11586_v19  ;;  %8176 = vmatprep.subr.bf16.mxu0 %v11579_v23  ;;  %v11600_v25 = vld [vmem:[%s17462_s3 + $0x14] ss:$8 sps:$4 sm:$0xff]  }
 0x2cd   : > { %v4411_v5 = vrot.slane %v4026_v43, %v12473_v56  ;;  %v4415_v50 = vrot.slane %v4026_v43, %v12495_v3  ;;  %v4427_v59 = vrot.slane %v4028_v44, %v12473_v56  ;;  %v4431_v20 = vrot.slane %v4028_v44, %v12495_v3  ;;  %v11592_v43 = vld [vmem:[%s17462_s3 + $0x20] ss:$8 sps:$4 sm:$0xff]   ;;  %6236 = vmatprep.subr.bf16.mxu1 %v11594_v46 }
 0x2ce   : > { %v4419_v30 = vrot.slane %v4027_v32, %v12473_v56  ;;  %v4423_v21 = vrot.slane %v4027_v32, %v12495_v3  ;;  %v4435_v49 = vrot.slane %v4029_v6, %v12473_v56  ;;  %v4439_v19 = vrot.slane %v4029_v6, %v12495_v3 }
 0x2cf   : > { %v4443_v44 = vrot.slane %v4030_v34, %v12473_v56  ;;  %v4447_v23 = vrot.slane %v4030_v34, %v12495_v3  ;;  %v4451_v35 = vrot.slane %v4031_v60, %v12473_v56  ;;  %v4455_v40 = vrot.slane %v4031_v60, %v12495_v3  ;;  %8177 = vmatpush1.bf16.msra.mxu0 %v11577_v54  ;;  %v11583_v34 = vld [vmem:[%s17462_s3 + $0x400] ss:$8 sps:$4 sm:$0xff]  }
 0x2d0   : > { %v4840_v6 = vpack.c.bf16 %v14645_v2, %v14645_v2  ;;  %v4841_v32 = vpack.c.bf16 %v14648_v26, %v14648_v26  ;;  %v4842_v15 = vpack.c.bf16 %v4403_v51, %v4403_v51  ;;  %v4843_v46 = vpack.c.bf16 %v4407_v63, %v4407_v63  ;;  %8178 = vmatprep.subr.bf16.mxu0 %v11585_v52  ;;  %v11598_v51 = vld [vmem:[%s17462_s3 + $0x10] ss:$8 sps:$4 sm:$0xff]  }
 0x2d1   : > { %v4844_v17 = vpack.c.bf16 %v4411_v5, %v4411_v5  ;;  %v4845_v18 = vpack.c.bf16 %v4415_v50, %v4415_v50  ;;  %v4846_v60 = vpack.c.bf16 %v4419_v30, %v4419_v30  ;;  %v4847_v42 = vpack.c.bf16 %v4423_v21, %v4423_v21  ;;  %6237 = vmatpush1.bf16.msra.mxu1 %v11592_v43 }
 0x2d2   : > { %v4848_v2 = vpack.c.bf16 %v4427_v59, %v4427_v59  ;;  %v4849_v47 = vpack.c.bf16 %v4431_v20, %v4431_v20  ;;  %v4850_v41 = vpack.c.bf16 %v4435_v49, %v4435_v49  ;;  %v4851_v26 = vpack.c.bf16 %v4439_v19, %v4439_v19  ;;  %6238 = vmatprep.subr.bf16.mxu1 %v11600_v25  ;;  %v11589_v59 = vld [vmem:[%s17462_s3 + $0x3f0] ss:$8 sps:$4 sm:$0xff]  }
 0x2d3   : > { %v4852_v63 = vpack.c.bf16 %v4443_v44, %v4443_v44  ;;  %v4853_v54 = vpack.c.bf16 %v4447_v23, %v4447_v23  ;;  %v4854_v5 = vpack.c.bf16 %v4451_v35, %v4451_v35  ;;  %v4855_v50 = vpack.c.bf16 %v4455_v40, %v4455_v40  ;;  %8179 = vmatpush1.bf16.msra.mxu0 %v11583_v34  ;;  %v11595_v34 = vld [vmem:[%s17462_s3 + $0x3e0] ss:$8 sps:$4 sm:$0xff]  }
 0x2d4   : > { %v14689_v30 = vunpack.c.l.b16 %v4842_v15  ;;  %v5262_v52 = vunpack.c.l.b16 %v4843_v46  ;;  %v14691_v21 = vunpack.c.l.b16 %v4844_v17  ;;  %v5264_v22 = vunpack.c.l.b16 %v4845_v18  ;;  %8180 = vmatprep.subr.bf16.mxu0 %v11591_v53  ;;  %v11597_v17 = vld [vmem:[%s17462_s3 + $0x3e4] ss:$8 sps:$4 sm:$0xff]  }
 0x2d5   : > { %v14696_v20 = vunpack.c.l.b16 %v4846_v60  ;;  %v14698_v49 = vunpack.c.l.b16 %v4847_v42  ;;  %v14700_v19 = vunpack.c.l.b16 %v4848_v2  ;;  %v14702_v43 = vunpack.c.l.b16 %v4849_v47  ;;  %6239 = vmatpush1.bf16.msra.mxu1 %v11598_v51 }
 0x2d6   : > { %18179 = vst [vmem:[#allocation10_spill] sm:$0xff] %v14689_v30  ;;  %18180 = vst [vmem:[#allocation9_spill] sm:$0xff] %v14691_v21  ;;  %v14707_v15 = vunpack.c.l.b16 %v4850_v41  ;;  %v14709_v18 = vunpack.c.l.b16 %v4851_v26  ;;  %v14711_v44 = vunpack.c.l.b16 %v4852_v63  ;;  %v14713_v23 = vunpack.c.l.b16 %v4853_v54  ;;  %v18193_v63 = vld [vmem:[#allocation50_spill] sm:$0xff] }
 0x2d7   : > { %18181 = vst [vmem:[#allocation103_spill] sm:$0xff] %v14696_v20  ;;  %18182 = vst [vmem:[#allocation112_spill] sm:$0xff] %v14698_v49  ;;  %v14715_v42 = vunpack.c.l.b16 %v4854_v5  ;;  %v14717_v35 = vunpack.c.l.b16 %v4855_v50  ;;  %v5451_v53 = vrot.slane %v5264_v22, 7  ;;  %v5820_v40 = vunpack.c.l.b16 %v4840_v6  ;;  %8181 = vmatpush1.bf16.msra.mxu0 %v11589_v59  ;;  %v11603_v6 = vld [vmem:[%s17462_s3 + $0x3d4] ss:$8 sps:$4 sm:$0xff]  }
 0x2d8   : > { %18183 = vst [vmem:[#allocation102_spill] sm:$0xff] %v14700_v19  ;;  %18184 = vst [vmem:[#allocation111_spill] sm:$0xff] %v14707_v15  ;;  %v5821_v25 = vunpack.c.l.b16 %v4841_v32  ;;  %v5940_v46 = vrot.slane %v14689_v30, 7  ;;  %v5954_v2 = vrot.slane %v5262_v52, 7  ;;  %v5956_v26 = vrot.slane %v5264_v22, 6  ;;  %8182 = vmatprep.subr.bf16.mxu0 %v11597_v17  ;;  %v18250_v19 = vld [vmem:[#allocation37_spill] sm:$0xff]  ;;  %v15009_v30 = vpop.permute.xlu0 %3424 }
 0x2d9   : > { %18185 = vst [vmem:[#allocation41_spill] sm:$0xff] %v14709_v18  ;;  %18186 = vst [vmem:[#allocation43_spill] sm:$0xff] %v14711_v44  ;;  %v14726_v60 = vsel %vm3211_vm9, %v5451_v53, %v5262_v52  ;;  %v6592_v51 = vrot.slane %v14698_v49, 7  ;;  %v3662_v54 = vcombine.high %v14621_v0, %v14621_v0  ;;  %v3663_v5 = vcombine.high %v14624_v39, %v14624_v39  ;;  %v18252_v20 = vld [vmem:[#allocation38_spill] sm:$0xff] }
 0x2da   : > { %18187 = vst [vmem:[#allocation44_spill] sm:$0xff] %v14713_v23  ;;  %18188 = vst [vmem:[#allocation42_spill] sm:$0xff] %v14715_v42  ;;  %v14733_v32 = vsel %vm3211_vm9, %v5940_v46, %v5820_v40  ;;  %v5955_v50 = vsel %vm3211_vm9, %v5954_v2, %v5821_v25  ;;  %v3764_v59 = vrot.slane %v14621_v0, 1  ;;  %v3766_v17 = vrot.slane %v14624_v39, 1  ;;  %v11601_v25 = vld [vmem:[%s17462_s3 + $0x3d0] ss:$8 sps:$4 sm:$0xff]  }
 0x2db   : > { %18189 = vst [vmem:[#allocation46_spill] sm:$0xff] %v14717_v35  ;;  %18190 = vst [vmem:[#allocation47_spill] sm:$0xff] %v14733_v32  ;;  %v14742_v52 = vsel %vm3211_vm9, %v6592_v51, %v5264_v22  ;;  %v14747_v53 = vsel %vm3213_vm10, %v5956_v26, %v5955_v50  ;;  %v3765_v40 = vrot.slane %v3662_v54, 1  ;;  %v3767_v46 = vrot.slane %v3663_v5, 1  ;;  %8183 = vmatpush1.bf16.msra.mxu0 %v11595_v34  ;;  %v18194_v2 = vld [vmem:[#allocation53_spill] sm:$0xff]  ;;  %v18195_v51 = vld [vmem:[#allocation51_spill] sm:$0xff] }
 0x2dc   : > { %18191 = vst [vmem:[#allocation45_spill] sm:$0xff] %v14742_v52  ;;  %18192 = vst [vmem:[#allocation64_spill] sm:$0xff] %v14747_v53  ;;  %v3936_v41 = vmax.f32 %v18193_v63, %v14621_v0  ;;  %v3937_v22 = vmax.f32 %v18194_v2, %v3764_v59  ;;  %v3938_v47 = vmax.f32 %v18195_v51, %v3662_v54  ;;  %v18196_v32 = vld [vmem:[#allocation52_spill] sm:$0xff]  ;;  %8184 = vmatprep.subr.bf16.mxu0 %v11603_v6  ;;  %v18198_v50 = vld [vmem:[#allocation54_spill] sm:$0xff] }
 0x2dd   : > { %v3940_v28 = vmax.f32 %v18196_v32, %v14624_v39  ;;  %v3941_v26 = vmax.f32 %v18197_v45, %v3766_v17  ;;  %v14760_v53 = vmax.f32 %v18198_v50, %v3765_v40  ;;  %v3942_v0 = vmax.f32 %v18200_v8, %v3663_v5  ;;  %v18201_v34 = vld [vmem:[#allocation65_spill] sm:$0xff]  ;;  %v11604_v54 = vld [vmem:[%s17462_s3] ss:$8 sps:$4 sm:$0xff]   ;;  %v11606_v8 = vld [vmem:[%s17462_s3 + $0x4] ss:$8 sps:$4 sm:$0xff]  }
 0x2de   : > { %v3943_v63 = vmax.f32 %v18201_v34, %v3767_v46  ;;  %v4032_v14 = vmax.f32 %v3936_v41, 0.0  ;;  %v4033_v57 = vmax.f32 %v3937_v22, 0.0  ;;  %v4034_v62 = vmax.f32 %v3938_v47, 0.0  ;;  %6240 = vmatprep.subr.bf16.mxu1 %v11606_v8 }
 0x2df   : > { %18199 = vst [vmem:[#allocation50_spill] sm:$0xff] %v14760_v53  ;;  %v4036_v52 = vmax.f32 %v3940_v28, 0.0  ;;  %v4037_v59 = vmax.f32 %v3941_v26, 0.0  ;;  %v4038_v45 = vmax.f32 %v3942_v0, 0.0  ;;  %8185 = vmatpush1.bf16.msra.mxu0 %v11601_v25  ;;  %6241 = vmatpush1.bf16.msra.mxu1 %v11604_v54  ;;  %v5417_v21 = vrot.slane %v18252_v20, 3 }
 0x2e0   : > { %v4039_v6 = vmax.f32 %v3943_v63, 0.0  ;;  %v4977_v32 = vrot.slane %v4032_v14, %v12473_v56  ;;  %v4981_v63 = vrot.slane %v4032_v14, %v12495_v3 }
 0x2e1   : > { %v4459_v41 = vrot.slane %v4036_v52, %v12473_v56  ;;  %v4463_v28 = vrot.slane %v4036_v52, %v12495_v3  ;;  %v4467_v47 = vrot.slane %v4037_v59, %v12473_v56  ;;  %v4471_v5 = vrot.slane %v4037_v59, %v12495_v3 }
 0x2e2   : > { %v4475_v17 = vrot.slane %v4038_v45, %v12473_v56  ;;  %v4479_v40 = vrot.slane %v4038_v45, %v12495_v3  ;;  %v4483_v46 = vrot.slane %v4039_v6, %v12473_v56  ;;  %v4487_v25 = vrot.slane %v4039_v6, %v12495_v3 }
 0x2e3   : > { %v4856_v2 = vpack.c.bf16 %v4459_v41, %v4459_v41  ;;  %v4857_v22 = vpack.c.bf16 %v4463_v28, %v4463_v28  ;;  %v4858_v51 = vpack.c.bf16 %v4467_v47, %v4467_v47  ;;  %v4859_v26 = vpack.c.bf16 %v4471_v5, %v4471_v5 }
 0x2e4   : > { %v4860_v50 = vpack.c.bf16 %v4475_v17, %v4475_v17  ;;  %v4861_v52 = vpack.c.bf16 %v4479_v40, %v4479_v40  ;;  %v4862_v0 = vpack.c.bf16 %v4483_v46, %v4483_v46  ;;  %v4863_v34 = vpack.c.bf16 %v4487_v25, %v4487_v25 }
 0x2e5   : > { %v5030_v59 = vpack.c.bf16 %v4977_v32, %v4977_v32  ;;  %v14781_v39 = vunpack.c.l.b16 %v4858_v51  ;;  %v5278_v45 = vunpack.c.l.b16 %v4859_v26  ;;  %v5031_v41 = vpack.c.bf16 %v4981_v63, %v4981_v63 }
 0x2e6   : > { %v14783_v53 = vunpack.c.l.b16 %v4860_v50  ;;  %v5280_v42 = vunpack.c.l.b16 %v4861_v52  ;;  %v14785_v6 = vunpack.c.l.b16 %v4862_v0  ;;  %v14787_v8 = vunpack.c.l.b16 %v4863_v34 }
 0x2e7   : > { %18202 = vst [vmem:[#allocation53_spill] sm:$0xff] %v14781_v39  ;;  %v14789_v28 = vunpack.c.l.b16 %v5030_v59  ;;  %v5822_v54 = vunpack.c.l.b16 %v4856_v2  ;;  %v5823_v47 = vunpack.c.l.b16 %v4857_v22  ;;  %v5968_v14 = vrot.slane %v14781_v39, 7  ;;  %v18246_v39 = vld [vmem:[#allocation30_spill] sm:$0xff] }
 0x2e8   : > { %18203 = vst [vmem:[#allocation51_spill] sm:$0xff] %v14783_v53  ;;  %18204 = vst [vmem:[#allocation52_spill] sm:$0xff] %v14785_v6  ;;  %v5479_v17 = vrot.slane %v5280_v42, 7  ;;  %v14794_v40 = vunpack.c.l.b16 %v5031_v41  ;;  %v5982_v46 = vrot.slane %v5278_v45, 7  ;;  %v5984_v25 = vrot.slane %v5280_v42, 6  ;;  %v18223_v6 = vld [vmem:[#allocation61_spill] sm:$0xff] }
 0x2e9   : > { %18205 = vst [vmem:[#allocation55_spill] sm:$0xff] %v14787_v8  ;;  %18206 = vst [vmem:[#allocation54_spill] sm:$0xff] %v14789_v28  ;;  %v14797_v51 = vrot.slane %v4033_v57, %v12473_v56  ;;  %v14803_v2 = vsel %vm3211_vm9, %v5968_v14, %v5822_v54  ;;  %v6346_v22 = vrot.slane %v4033_v57, %v12495_v3  ;;  %v6620_v50 = vrot.slane %v14787_v8, 7  ;;  %v18224_v53 = vld [vmem:[#allocation80_spill] sm:$0xff]  ;;  %v18247_v28 = vld [vmem:[#allocation31_spill] sm:$0xff] }
 0x2ea   : > { %18207 = vst [vmem:[#allocation56_spill] sm:$0xff] %v14794_v40  ;;  %v14800_v26 = vsel %vm3211_vm9, %v5479_v17, %v5278_v45  ;;  %18209 = vst [vmem:[#allocation148_spill] sm:$0xff] %v14803_v2  ;;  %v5983_v52 = vsel %vm3211_vm9, %v5982_v46, %v5823_v47  ;;  %v14811_v34 = vrot.slane %v4034_v62, %v12473_v56  ;;  %v18219_v2 = vld [vmem:[#allocation60_spill] sm:$0xff]  ;;  %v18221_v46 = vld [vmem:[#allocation62_spill] sm:$0xff]  ;;  %v18248_v44 = vrot.slane %v18247_v28, 7 }
 0x2eb   : > { %18208 = vst [vmem:[#allocation65_spill] sm:$0xff] %v14797_v51  ;;  %v7000_v63 = vrot.slane %v4034_v62, %v12495_v3  ;;  %v14815_v59 = vsel %vm3213_vm10, %v5984_v25, %v5983_v52  ;;  %v6396_v45 = vpack.c.bf16 %v6346_v22, %v6346_v22  ;;  %v14818_v41 = vsel %vm3211_vm9, %v6620_v50, %v5280_v42  ;;  %v18216_v50 = vld [vmem:[#allocation57_spill] sm:$0xff]  ;;  %v18222_v51 = vld [vmem:[#allocation63_spill] sm:$0xff] }
 0x2ec   : > { %18210 = vst [vmem:[#allocation149_spill] sm:$0xff] %v14811_v34  ;;  %18211 = vst [vmem:[#allocation150_spill] sm:$0xff] %v14815_v59  ;;  %v18213_v57 = vcombine.low %v14594_v61, %v14597_v16  ;;  %v18214_v17 = vcombine.high %v14594_v61, %v14597_v16  ;;  %v18220_v16 = vld [vmem:[#allocation58_spill] sm:$0xff] }
 0x2ed   : > { %18212 = vst [vmem:[#allocation151_spill] sm:$0xff] %v14818_v41  ;;  %v7050_v47 = vpack.c.bf16 %v7000_v63, %v7000_v63  ;;  %v14830_v25 = vunpack.c.l.b16 %v6396_v45  ;;  %v18218_v63 = vld [vmem:[#allocation59_spill] sm:$0xff] }
 0x2ee   : > { %v3672_v54 = vrot.slane %v18213_v57, %v12489_v58  ;;  %v3679_v14 = vrot.slane %v18214_v17, %v12489_v58 }
 0x2ef   : > { %18215 = vst [vmem:[#allocation152_spill] sm:$0xff] %v14830_v25  ;;  %v14833_v32 = vunpack.c.l.b16 %v7050_v47 }
 0x2f0   : > { %v3680_v22 = vcombine.high %v3672_v54, %v3672_v54  ;;  %v3768_v42 = vrot.slane %v3672_v54, 1  ;;  %v3944_v52 = vmax.f32 %v18216_v50, %v3672_v54  ;;  %v3681_v0 = vcombine.high %v3679_v14, %v3679_v14 }
 0x2f1   : > { %18217 = vst [vmem:[#allocation57_spill] sm:$0xff] %v14833_v32  ;;  %v3770_v57 = vrot.slane %v3679_v14, 1  ;;  %v3948_v5 = vmax.f32 %v18218_v63, %v3679_v14 }
 0x2f2   : > { %v3769_v34 = vrot.slane %v3680_v22, 1  ;;  %v3945_v61 = vmax.f32 %v18219_v2, %v3768_v42  ;;  %v3946_v17 = vmax.f32 %v18220_v16, %v3680_v22  ;;  %v4040_v62 = vmax.f32 %v3944_v52, 0.0 }
 0x2f3   : > { %v3771_v59 = vrot.slane %v3681_v0, 1  ;;  %v3949_v45 = vmax.f32 %v18221_v46, %v3770_v57  ;;  %v3950_v41 = vmax.f32 %v18222_v51, %v3681_v0  ;;  %v4044_v25 = vmax.f32 %v3948_v5, 0.0 }
 0x2f4   : > { %v3947_v54 = vmax.f32 %v18223_v6, %v3769_v34  ;;  %v4041_v47 = vmax.f32 %v3945_v61, 0.0  ;;  %v4042_v50 = vmax.f32 %v3946_v17, 0.0  ;;  %v4491_v32 = vrot.slane %v4040_v62, %v12473_v56  ;;  %v11607_v6 = vld [vmem:[%s17462_s3 + $0x3c0] ss:$8 sps:$4 sm:$0xff]  }
 0x2f5   : > { %v14843_v14 = vmax.f32 %v18224_v53, %v3771_v59  ;;  %v4045_v63 = vmax.f32 %v3949_v45, 0.0  ;;  %v4046_v2 = vmax.f32 %v3950_v41, 0.0  ;;  %v4495_v22 = vrot.slane %v4040_v62, %v12495_v3  ;;  %v11609_v53 = vld [vmem:[%s17462_s3 + $0x3c4] ss:$8 sps:$4 sm:$0xff]   ;;  %v11610_v41 = vld [vmem:[%s17462_s3 + $0xe0] ss:$8 sps:$4 sm:$0xff]  }
 0x2f6   : > { %v4043_v42 = vmax.f32 %v3947_v54, 0.0  ;;  %v4499_v52 = vrot.slane %v4041_v47, %v12473_v56  ;;  %v4503_v46 = vrot.slane %v4041_v47, %v12495_v3  ;;  %v4507_v5 = vrot.slane %v4042_v50, %v12473_v56  ;;  %v11612_v62 = vld [vmem:[%s17462_s3 + $0xe4] ss:$8 sps:$4 sm:$0xff]   ;;  %8186 = vmatprep.subr.bf16.mxu0 %v11609_v53 }
 0x2f7   : > { %18225 = vst [vmem:[#allocation59_spill] sm:$0xff] %v14843_v14  ;;  %v4511_v0 = vrot.slane %v4042_v50, %v12495_v3  ;;  %v4864_v34 = vpack.c.bf16 %v4491_v32, %v4491_v32  ;;  %v4865_v59 = vpack.c.bf16 %v4495_v22, %v4495_v22  ;;  %v11615_v32 = vld [vmem:[%s17462_s3 + $0x4a4] ss:$8 sps:$4 sm:$0xff]   ;;  %v4985_v47 = vrot.slane %v4044_v25, %v12473_v56  ;;  %v11613_v22 = vld [vmem:[%s17462_s3 + $0x4a0] ss:$8 sps:$4 sm:$0xff]  }
 0x2f8   : > { %v4515_v57 = vrot.slane %v4043_v42, %v12473_v56  ;;  %v4519_v61 = vrot.slane %v4043_v42, %v12495_v3  ;;  %v4866_v16 = vpack.c.bf16 %v4499_v52, %v4499_v52  ;;  %v4867_v17 = vpack.c.bf16 %v4503_v46, %v4503_v46  ;;  %8187 = vmatpush1.bf16.msra.mxu0 %v11607_v6  ;;  %v11618_v42 = vld [vmem:[%s17462_s3 + $0xd4] ss:$8 sps:$4 sm:$0xff]  }
 0x2f9   : > { %v4868_v45 = vpack.c.bf16 %v4507_v5, %v4507_v5  ;;  %v4869_v54 = vpack.c.bf16 %v4511_v0, %v4511_v0  ;;  %v4989_v50 = vrot.slane %v4044_v25, %v12495_v3  ;;  %v14876_v53 = vunpack.c.l.b16 %v4864_v34  ;;  %6244 = vmatprep.subr.bf16.mxu1 %v11612_v62  ;;  %8190 = vmatprep.subr.bf16.mxu0 %v11615_v32  ;;  %v11621_v25 = vld [vmem:[%s17462_s3 + $0x494] ss:$8 sps:$4 sm:$0xff]   ;;  %v11616_v34 = vld [vmem:[%s17462_s3 + $0xd0] ss:$8 sps:$4 sm:$0xff]  }
 0x2fa   : > { %v4870_v52 = vpack.c.bf16 %v4515_v57, %v4515_v57  ;;  %v4871_v46 = vpack.c.bf16 %v4519_v61, %v4519_v61  ;;  %v14878_v51 = vunpack.c.l.b16 %v4865_v59  ;;  %v5032_v5 = vpack.c.bf16 %v4985_v47, %v4985_v47  ;;  %6245 = vmatpush2.bf16.msra.mxu1 %v11610_v41 }
 0x2fb   : > { %18226 = vst [vmem:[#allocation60_spill] sm:$0xff] %v14876_v53  ;;  %v5033_v6 = vpack.c.bf16 %v4989_v50, %v4989_v50  ;;  %v14883_v0 = vunpack.c.l.b16 %v4866_v16  ;;  %v14885_v14 = vunpack.c.l.b16 %v4867_v17  ;;  %v14890_v57 = vunpack.c.l.b16 %v4868_v45  ;;  %6246 = vmatprep.subr.bf16.mxu1 %v11618_v42  ;;  %v11624_v16 = vld [vmem:[%s17462_s3 + $0xc4] ss:$8 sps:$4 sm:$0xff]  }
 0x2fc   : > { %v14892_v59 = vunpack.c.l.b16 %v4869_v54  ;;  %v14894_v62 = vunpack.c.l.b16 %v4870_v52  ;;  %v14896_v61 = vunpack.c.l.b16 %v4871_v46  ;;  %v14901_v17 = vunpack.c.l.b16 %v5032_v5  ;;  %8191 = vmatpush2.bf16.msra.mxu0 %v11613_v22  ;;  %v11619_v54 = vld [vmem:[%s17462_s3 + $0x490] ss:$8 sps:$4 sm:$0xff]  }
 0x2fd   : > { %18227 = vst [vmem:[#allocation58_spill] sm:$0xff] %v14883_v0  ;;  %18228 = vst [vmem:[#allocation62_spill] sm:$0xff] %v14885_v14  ;;  %v14903_v41 = vunpack.c.l.b16 %v5033_v6  ;;  %v14906_v32 = vrot.slane %v4045_v63, %v12473_v56  ;;  %v6354_v45 = vrot.slane %v4045_v63, %v12495_v3  ;;  %v14913_v47 = vrot.slane %v4046_v2, %v12473_v56  ;;  %v11627_v63 = vld [vmem:[%s17462_s3 + $0x484] ss:$8 sps:$4 sm:$0xff]  }
 0x2fe   : > { %18229 = vst [vmem:[#allocation63_spill] sm:$0xff] %v14890_v57  ;;  %18230 = vst [vmem:[#allocation61_spill] sm:$0xff] %v14892_v59  ;;  %v7008_v50 = vrot.slane %v4046_v2, %v12495_v3  ;;  %v18237_v52 = vrot.slane %v14266_v13, 6  ;;  %8192 = vmatprep.subr.bf16.mxu0 %v11621_v25  ;;  %v18238_v6 = vrot.slane %v14270_v48, 5  ;;  %v5401_v42 = vrot.slane %v14274_v24, 4  ;;  %6247 = vmatpush2.bf16.msra.mxu1 %v11616_v34  ;;  %v18245_v0 = vld [vmem:[#allocation27_spill] sm:$0xff] }
 0x2ff   : > { %18231 = vst [vmem:[#allocation80_spill] sm:$0xff] %v14894_v62  ;;  %18232 = vst [vmem:[#allocation153_spill] sm:$0xff] %v14896_v61  ;;  %v6398_v5 = vpack.c.bf16 %v6354_v45, %v6354_v45  ;;  %v5407_v13 = vrot.slane %v14333_v10, 1  ;;  %6248 = vmatprep.subr.bf16.mxu1 %v11624_v16  ;;  %v11630_v45 = vld [vmem:[%s17462_s3 + $0xb4] ss:$8 sps:$4 sm:$0xff]   ;;  %v5427_v22 = vrot.slane %v14413_v1, 5 }
 0x300   : > { %18233 = vst [vmem:[#allocation154_spill] sm:$0xff] %v14901_v17  ;;  %18234 = vst [vmem:[#allocation155_spill] sm:$0xff] %v14903_v41  ;;  %v5398_v46 = vsel %vm3213_vm10, %v18237_v52, %v14288_v38  ;;  %v11622_v38 = vld [vmem:[%s17462_s3 + $0xc0] ss:$8 sps:$4 sm:$0xff]   ;;  %v7052_v25 = vpack.c.bf16 %v7008_v50, %v7008_v50  ;;  %v5403_v52 = vrot.slane %v14278_v7, 3  ;;  %8193 = vmatpush2.bf16.msra.mxu0 %v11619_v54  ;;  %v5429_v17 = vrot.slane %v14417_v9, 4 }
 0x301   : > { %18235 = vst [vmem:[#allocation156_spill] sm:$0xff] %v14906_v32  ;;  %18236 = vst [vmem:[#allocation157_spill] sm:$0xff] %v14913_v47  ;;  %v5400_v2 = vsel %vm3215_vm11, %v18238_v6, %v5398_v46  ;;  %v5405_v47 = vrot.slane %v14282_v36, 2  ;;  %v14939_v46 = vunpack.c.l.b16 %v6398_v5  ;;  %v5425_v6 = vrot.slane %v14341_v12, 6  ;;  %v11625_v50 = vld [vmem:[%s17462_s3 + $0x480] ss:$8 sps:$4 sm:$0xff]   ;;  %8194 = vmatprep.subr.bf16.mxu0 %v11627_v63 }
 0x302   : > { %v5402_v34 = vsel %vm3217_vm12, %v5401_v42, %v5400_v2  ;;  %v14947_v32 = vunpack.c.l.b16 %v7052_v25  ;;  %v5431_v5 = vrot.slane %v14421_v29, 3  ;;  %v11633_v42 = vld [vmem:[%s17462_s3 + $0x474] ss:$8 sps:$4 sm:$0xff]   ;;  %v5433_v12 = vrot.slane %v14425_v55, 2  ;;  %6249 = vmatpush2.bf16.msra.mxu1 %v11622_v38  ;;  %v11628_v63 = vld [vmem:[%s17462_s3 + $0xb0] ss:$8 sps:$4 sm:$0xff]  }
 0x303   : > { %18239 = vst [vmem:[#allocation158_spill] sm:$0xff] %v14939_v46  ;;  %v5404_v16 = vsel %vm3219_vm13, %v5403_v52, %v5402_v34  ;;  %v5426_v54 = vsel %vm3213_vm10, %v5425_v6, %v14355_v31  ;;  %v5435_v25 = vrot.slane %v14429_v27, 1  ;;  %v5383_v6 = vrot.slane %v14264_v37, 6  ;;  %6250 = vmatprep.subr.bf16.mxu1 %v11630_v45  ;;  %v11636_v38 = vld [vmem:[%s17462_s3 + $0xa4] ss:$8 sps:$4 sm:$0xff]   ;;  %v18242_v62 = vld [vmem:[#allocation25_spill] sm:$0xff] }
 0x304   : > { %18240 = vst [vmem:[#allocation159_spill] sm:$0xff] %v14947_v32  ;;  %v5406_v2 = vsel %vm3221_vm14, %v5405_v47, %v5404_v16  ;;  %v14960_v32 = vpop.permute.xlu1 %3422  ;;  %v5428_v34 = vsel %vm3215_vm11, %v5427_v22, %v5426_v54  ;;  %v18241_v47 = vrot.slane %v14262_v4, 7  ;;  %v5385_v46 = vrot.slane %v14268_v33, 5  ;;  %8195 = vmatpush2.bf16.msra.mxu0 %v11625_v50 }
 0x305   : > { %v5408_v52 = vsel %vm3223_vm15, %v5407_v13, %v5406_v2  ;;  %v5430_v16 = vsel %vm3217_vm12, %v5429_v17, %v5428_v34  ;;  %v5387_v13 = vrot.slane %v18242_v62, 4  ;;  %v18243_v2 = vld [vmem:[#allocation34_spill] sm:$0xff]  ;;  %v5393_v53 = vrot.slane %v18245_v0, 1  ;;  %8196 = vmatprep.subr.bf16.mxu0 %v11633_v42  ;;  %v11639_v17 = vld [vmem:[%s17462_s3 + $0x464] ss:$8 sps:$4 sm:$0xff]  }
 0x306   : > { %v5382_v31 = vsel %vm3211_vm9, %v18241_v47, %v14260_v11  ;;  %v5389_v22 = vrot.slane %v18243_v2, 3  ;;  %v11631_v11 = vld [vmem:[%s17462_s3 + $0x470] ss:$8 sps:$4 sm:$0xff]   ;;  %v5432_v54 = vsel %vm3219_vm13, %v5431_v5, %v5430_v16  ;;  %v18244_v47 = vld [vmem:[#allocation128_spill] sm:$0xff]  ;;  %v5410_v5 = vsel %vm3211_vm9, %v18248_v44, %v18246_v39  ;;  %6251 = vmatpush2.bf16.msra.mxu1 %v11628_v63  ;;  %v11642_v44 = vld [vmem:[%s17462_s3 + $0x94] ss:$8 sps:$4 sm:$0xff]  }
 0x307   : > { %v5384_v45 = vsel %vm3213_vm10, %v5383_v6, %v5382_v31  ;;  %v5391_v57 = vrot.slane %v18244_v47, 2  ;;  %v5434_v34 = vsel %vm3221_vm14, %v5433_v12, %v5432_v54  ;;  %v18249_v16 = vld [vmem:[#allocation32_spill] sm:$0xff]  ;;  %v5413_v12 = vrot.slane %v18250_v19, 5  ;;  %v18251_v54 = vld [vmem:[#allocation39_spill] sm:$0xff]  ;;  %6252 = vmatprep.subr.bf16.mxu1 %v11636_v38 }
 0x308   : > { %v5386_v50 = vsel %vm3215_vm11, %v5385_v46, %v5384_v45  ;;  %v5411_v31 = vrot.slane %v18249_v16, 6  ;;  %v11634_v42 = vld [vmem:[%s17462_s3 + $0xa0] ss:$8 sps:$4 sm:$0xff]   ;;  %v5436_v6 = vsel %vm3223_vm15, %v5435_v25, %v5434_v34  ;;  %v5415_v46 = vrot.slane %v18251_v54, 4  ;;  %v15011_v25 = vpop.permute.xlu1 %3477  ;;  %8197 = vmatpush2.bf16.msra.mxu0 %v11631_v11 }
 0x309   : > { %v5388_v15 = vsel %vm3217_vm12, %v5387_v13, %v5386_v50  ;;  %v5552_v39 = vpack.c.b16 %v5436_v6, %v5408_v52  ;;  %v11637_v38 = vld [vmem:[%s17462_s3 + $0x460] ss:$8 sps:$4 sm:$0xff]   ;;  %8198 = vmatprep.subr.bf16.mxu0 %v11639_v17  ;;  %v6538_v11 = vrot.slane %v14270_v48, 6  ;;  %v6540_v6 = vrot.slane %v14274_v24, 5  ;;  %v15037_v24 = vpop.permute.xlu0 %3428 }
 0x30a   : > { %v5390_v63 = vsel %vm3219_vm13, %v5389_v22, %v5388_v15  ;;  %v5412_v45 = vsel %vm3213_vm10, %v5411_v31, %v5410_v5  ;;  %v18253_v52 = vld [vmem:[#allocation140_spill] sm:$0xff]  ;;  %v18254_v15 = vld [vmem:[#allocation142_spill] sm:$0xff]  ;;  %6253 = vmatpush2.bf16.msra.mxu1 %v11634_v42  ;;  %v6544_v17 = vrot.slane %v14282_v36, 3  ;;  %v6568_v36 = vrot.slane %v14417_v9, 5 }
 0x30b   : > { %v5392_v13 = vsel %vm3221_vm14, %v5391_v57, %v5390_v63  ;;  %v5414_v34 = vsel %vm3215_vm11, %v5413_v12, %v5412_v45  ;;  %v5419_v50 = vrot.slane %v18253_v52, 2  ;;  %v5421_v22 = vrot.slane %v18254_v15, 1  ;;  %10721 = vmatprep.mubr.msk.bf16.mxu1 %vm1024_vm7, %v5552_v39  ;;  %v11640_v57 = vld [vmem:[%s17462_s3 + $0x90] ss:$8 sps:$4 sm:$0xff]   ;;  %6254 = vmatprep.subr.bf16.mxu1 %v11642_v44 }
 0x30c   : > { %v5394_v5 = vsel %vm3223_vm15, %v5393_v53, %v5392_v13  ;;  %v5416_v31 = vsel %vm3217_vm12, %v5415_v46, %v5414_v34  ;;  %v6542_v63 = vrot.slane %v14278_v7, 4  ;;  %v6546_v39 = vrot.slane %v14333_v10, 2  ;;  %v18255_v46 = vld [vmem:[#allocation131_spill] sm:$0xff]  ;;  %v18256_v13 = vld [vmem:[#allocation138_spill] sm:$0xff]  ;;  %8199 = vmatpush2.bf16.msra.mxu0 %v11637_v38 }
 0x30d   : > { %v5418_v12 = vsel %vm3219_vm13, %v5417_v21, %v5416_v31  ;;  %v6539_v45 = vsel %vm3213_vm10, %v6538_v11, %v18255_v46  ;;  %v6548_v42 = vrot.slane %v18256_v13, 1  ;;  %v6566_v34 = vrot.slane %v14413_v1, 6  ;;  %v3427_v13 = vpop.permute.xlu1 %3426 }
 0x30e   : > { %v5420_v53 = vsel %vm3221_vm14, %v5419_v50, %v5418_v12  ;;  %v6541_v31 = vsel %vm3215_vm11, %v6540_v6, %v6539_v45  ;;  %v6570_v44 = vrot.slane %v14421_v29, 4  ;;  %v18257_v12 = vld [vmem:[#allocation137_spill] sm:$0xff]  ;;  %v6572_v46 = vrot.slane %v14425_v55, 3  ;;  %6255 = vmatpush2.bf16.msra.mxu1 %v11640_v57 }
 0x30f   : > { %v5422_v21 = vsel %vm3223_vm15, %v5421_v22, %v5420_v53  ;;  %v6543_v50 = vsel %vm3217_vm12, %v6542_v63, %v6541_v31  ;;  %v6567_v11 = vsel %vm3213_vm10, %v6566_v34, %v18257_v12  ;;  %v6574_v6 = vrot.slane %v14429_v27, 2  ;;  %v18258_v53 = vld [vmem:[#allocation146_spill] sm:$0xff]  ;;  %v18262_v12 = vld [vmem:[#allocation144_spill] sm:$0xff]  ;;  %v18291_v27 = vld [vmem:[#allocation77_spill] sm:$0xff] }
 0x310   : > { %v5551_v10 = vpack.c.b16 %v5422_v21, %v5394_v5  ;;  %v6545_v38 = vsel %vm3219_vm13, %v6544_v17, %v6543_v50  ;;  %v6569_v22 = vsel %vm3215_vm11, %v6568_v36, %v6567_v11  ;;  %v6576_v45 = vrot.slane %v18258_v53, 1  ;;  %v18259_v21 = vld [vmem:[#allocation134_spill] sm:$0xff] }
 0x311   : > { %v6547_v5 = vsel %vm3221_vm14, %v6546_v39, %v6545_v38  ;;  %v6571_v63 = vsel %vm3217_vm12, %v6570_v44, %v6569_v22  ;;  %v18260_v34 = vpack.c.bf16 %v18259_v21, %v18259_v21  ;;  %v18263_v57 = vpack.c.bf16 %v18262_v12, %v18262_v12  ;;  %v3480_v21 = vpop.permute.xlu0 %3479 }
 0x312   : > { %5766 = vmatmul.mubr.bf16.gmra.mxu1 %v5551_v10  ;;  %v6549_v36 = vsel %vm3223_vm15, %v6548_v42, %v6547_v5  ;;  %v6573_v50 = vsel %vm3219_vm13, %v6572_v46, %v6571_v63  ;;  %v6522_v10 = vrot.slane %v14264_v37, 7  ;;  %v6524_v39 = vrot.slane %v14268_v33, 6 }
 0x313   : > { %v15056_v31 = vunpack.c.l.b16 %v18260_v34  ;;  %v15061_v17 = vunpack.c.l.b16 %v18263_v57  ;;  %v6575_v44 = vsel %vm3221_vm14, %v6574_v6, %v6573_v50  ;;  %v6526_v11 = vrot.slane %v18242_v62, 5  ;;  %v3431_v34 = vpop.permute.xlu1 %3430 }
 0x314   : > { %v6528_v38 = vrot.slane %v18243_v2, 4  ;;  %v6530_v22 = vrot.slane %v18244_v47, 3  ;;  %v6577_v12 = vsel %vm3223_vm15, %v6576_v45, %v6575_v44  ;;  %v6523_v42 = vsel %vm3211_vm9, %v6522_v10, %v14262_v4  ;;  %v11643_v10 = vld [vmem:[%s17462_s3 + $0x450] ss:$8 sps:$4 sm:$0xff]  }
 0x315   : > { %18261 = vst [vmem:[#allocation30_spill] sm:$0xff] %v15056_v31  ;;  %18264 = vst [vmem:[#allocation131_spill] sm:$0xff] %v15061_v17  ;;  %v6532_v46 = vrot.slane %v18245_v0, 2  ;;  %v6534_v5 = vrot.slane %v15056_v31, 1  ;;  %v6693_v63 = vpack.c.b16 %v6577_v12, %v6549_v36  ;;  %v6525_v6 = vsel %vm3213_vm10, %v6524_v39, %v6523_v42  ;;  %v11645_v42 = vld [vmem:[%s17462_s3 + $0x454] ss:$8 sps:$4 sm:$0xff]   ;;  %v3433_v0 = vpop.permute.xlu0 %3432 }
 0x316   : > { %v6550_v57 = vrot.slane %v18249_v16, 7  ;;  %v6552_v50 = vrot.slane %v18250_v19, 6  ;;  %v6527_v47 = vsel %vm3215_vm11, %v6526_v11, %v6525_v6  ;;  %v6554_v2 = vrot.slane %v18251_v54, 5  ;;  %8200 = vmatprep.subr.bf16.mxu0 %v11645_v42 }
 0x317   : > { %v6556_v45 = vrot.slane %v18252_v20, 4  ;;  %v6558_v44 = vrot.slane %v18253_v52, 3  ;;  %10819 = vmatprep.mubr.msk.bf16.mxu0 %vm1024_vm7, %v6693_v63  ;;  %v6529_v36 = vsel %vm3217_vm12, %v6528_v38, %v6527_v47  ;;  %v6560_v12 = vrot.slane %v18254_v15, 2  ;;  %v3482_v52 = vpop.permute.xlu1 %3481  ;;  %8201 = vmatpush2.bf16.msra.mxu0 %v11643_v10 }
 0x318   : > { %v6551_v39 = vsel %vm3211_vm9, %v6550_v57, %v18247_v28  ;;  %v6562_v11 = vrot.slane %v15061_v17, 1  ;;  %v6531_v6 = vsel %vm3219_vm13, %v6530_v22, %v6529_v36  ;;  %v3444_v63 = vsel %vm3434_vm0, %v14960_v32, %v15009_v30 }
 0x319   : > { %v6553_v31 = vsel %vm3213_vm10, %v6552_v50, %v6551_v39  ;;  %v3505_v47 = vsel %vm3495_vm1, %v15009_v30, %v15011_v25  ;;  %v6533_v38 = vsel %vm3221_vm14, %v6532_v46, %v6531_v6  ;;  %v15109_v32 = vsel %vm3434_vm0, %v3427_v13, %v15037_v24  ;;  %v18265_v39 = vld [vmem:[#allocation66_spill] sm:$0xff]  ;;  %v18266_v6 = vld [vmem:[#allocation68_spill] sm:$0xff] }
 0x31a   : > { %v6555_v57 = vsel %vm3215_vm11, %v6554_v2, %v6553_v31  ;;  %v3682_v17 = vcombine.low %v3444_v63, %v3505_v47  ;;  %v3683_v15 = vcombine.high %v3444_v63, %v3505_v47  ;;  %v6535_v22 = vsel %vm3223_vm15, %v6534_v5, %v6533_v38  ;;  %v18267_v38 = vld [vmem:[#allocation69_spill] sm:$0xff] }
 0x31b   : > { %v6557_v50 = vsel %vm3217_vm12, %v6556_v45, %v6555_v57  ;;  %v15113_v30 = vsel %vm3495_vm1, %v15037_v24, %v3480_v21  ;;  %v15124_v45 = vsel %vm3434_vm0, %v3431_v34, %v3433_v0  ;;  %v15127_v24 = vsel %vm3495_vm1, %v3433_v0, %v3482_v52  ;;  %v18268_v34 = vld [vmem:[#allocation67_spill] sm:$0xff] }
 0x31c   : > { %v6559_v2 = vsel %vm3219_vm13, %v6558_v44, %v6557_v50  ;;  %v3690_v25 = vrot.slane %v3682_v17, %v12489_v58  ;;  %v3697_v31 = vrot.slane %v3683_v15, %v12489_v58  ;;  %v18269_v0 = vld [vmem:[#allocation71_spill] sm:$0xff] }
 0x31d   : > { %v6561_v5 = vsel %vm3221_vm14, %v6560_v12, %v6559_v2  ;;  %v18270_v2 = vld [vmem:[#allocation72_spill] sm:$0xff] }
 0x31e   : > { %v6563_v21 = vsel %vm3223_vm15, %v6562_v11, %v6561_v5  ;;  %v3698_v44 = vcombine.high %v3690_v25, %v3690_v25  ;;  %v3699_v17 = vcombine.high %v3697_v31, %v3697_v31  ;;  %v3772_v10 = vrot.slane %v3690_v25, 1 }
 0x31f   : > { %v6692_v15 = vpack.c.b16 %v6563_v21, %v6535_v22  ;;  %v3774_v36 = vrot.slane %v3697_v31, 1  ;;  %v3952_v42 = vmax.f32 %v18265_v39, %v3690_v25  ;;  %v3956_v12 = vmax.f32 %v18266_v6, %v3697_v31  ;;  %v11646_v22 = vld [vmem:[%s17462_s3 + $0x80] ss:$8 sps:$4 sm:$0xff]   ;;  %v11648_v25 = vld [vmem:[%s17462_s3 + $0x84] ss:$8 sps:$4 sm:$0xff]   ;;  %v18271_v31 = vld [vmem:[#allocation70_spill] sm:$0xff] }
 0x320   : > { %v3773_v63 = vrot.slane %v3698_v44, 1  ;;  %v3775_v47 = vrot.slane %v3699_v17, 1  ;;  %v3953_v57 = vmax.f32 %v18267_v38, %v3772_v10  ;;  %v3954_v50 = vmax.f32 %v18268_v34, %v3698_v44  ;;  %v18272_v10 = vld [vmem:[#allocation81_spill] sm:$0xff]  ;;  %6256 = vmatprep.subr.bf16.mxu1 %v11648_v25 }
 0x321   : > { %6907 = vmatmul.mubr.bf16.gmra.mxu0 %v6692_v15  ;;  %v3957_v52 = vmax.f32 %v18269_v0, %v3774_v36  ;;  %v3958_v11 = vmax.f32 %v18270_v2, %v3699_v17  ;;  %v4048_v5 = vmax.f32 %v3952_v42, 0.0  ;;  %v4052_v13 = vmax.f32 %v3956_v12, 0.0  ;;  %v11649_v17 = vld [vmem:[%s17462_s3 + $0x440] ss:$8 sps:$4 sm:$0xff]   ;;  %v11651_v36 = vld [vmem:[%s17462_s3 + $0x444] ss:$8 sps:$4 sm:$0xff]   ;;  %6257 = vmatpush2.bf16.msra.mxu1 %v11646_v22 }
 0x322   : > { %v3955_v21 = vmax.f32 %v18271_v31, %v3773_v63  ;;  %v3959_v39 = vmax.f32 %v18272_v10, %v3775_v47  ;;  %v4049_v44 = vmax.f32 %v3953_v57, 0.0  ;;  %v4050_v15 = vmax.f32 %v3954_v50, 0.0  ;;  %v11654_v63 = vld [vmem:[%s17462_s3 + $0x344] ss:$8 sps:$4 sm:$0xff]   ;;  %8202 = vmatprep.subr.bf16.mxu0 %v11651_v36 }
 0x323   : > { %v4053_v42 = vmax.f32 %v3957_v52, 0.0  ;;  %v4054_v6 = vmax.f32 %v3958_v11, 0.0  ;;  %v4523_v12 = vrot.slane %v4048_v5, %v12473_v56  ;;  %v4527_v38 = vrot.slane %v4048_v5, %v12495_v3  ;;  %8203 = vmatpush2.bf16.msra.mxu0 %v11649_v17  ;;  %7518 = vmatprep.subr.bf16.mxu1 %v11654_v63 }
 0x324   : > { %v4051_v47 = vmax.f32 %v3955_v21, 0.0  ;;  %v4055_v57 = vmax.f32 %v3959_v39, 0.0  ;;  %v4531_v34 = vrot.slane %v4049_v44, %v12473_v56  ;;  %v4535_v50 = vrot.slane %v4049_v44, %v12495_v3 }
 0x325   : > { %v4539_v0 = vrot.slane %v4050_v15, %v12473_v56  ;;  %v4543_v52 = vrot.slane %v4050_v15, %v12495_v3  ;;  %v4555_v2 = vrot.slane %v4052_v13, %v12473_v56  ;;  %v4559_v11 = vrot.slane %v4052_v13, %v12495_v3 }
 0x326   : > { %v4547_v5 = vrot.slane %v4051_v47, %v12473_v56  ;;  %v4551_v25 = vrot.slane %v4051_v47, %v12495_v3  ;;  %v4563_v31 = vrot.slane %v4053_v42, %v12473_v56  ;;  %v4567_v21 = vrot.slane %v4053_v42, %v12495_v3 }
 0x327   : > { %v4571_v22 = vrot.slane %v4054_v6, %v12473_v56  ;;  %v4575_v10 = vrot.slane %v4054_v6, %v12495_v3  ;;  %v4579_v39 = vrot.slane %v4055_v57, %v12473_v56  ;;  %v4583_v44 = vrot.slane %v4055_v57, %v12495_v3 }
 0x328   : > { %v4872_v15 = vpack.c.bf16 %v4523_v12, %v4523_v12  ;;  %v4873_v13 = vpack.c.bf16 %v4527_v38, %v4527_v38  ;;  %v4874_v17 = vpack.c.bf16 %v4531_v34, %v4531_v34  ;;  %v4875_v36 = vpack.c.bf16 %v4535_v50, %v4535_v50 }
 0x329   : > { %v4876_v46 = vpack.c.bf16 %v4539_v0, %v4539_v0  ;;  %v4877_v20 = vpack.c.bf16 %v4543_v52, %v4543_v52  ;;  %v4878_v47 = vpack.c.bf16 %v4547_v5, %v4547_v5  ;;  %v4879_v54 = vpack.c.bf16 %v4551_v25, %v4551_v25 }
 0x32a   : > { %v4880_v19 = vpack.c.bf16 %v4555_v2, %v4555_v2  ;;  %v4881_v16 = vpack.c.bf16 %v4559_v11, %v4559_v11  ;;  %v4882_v42 = vpack.c.bf16 %v4563_v31, %v4563_v31  ;;  %v4883_v63 = vpack.c.bf16 %v4567_v21, %v4567_v21  ;;  %v18288_v21 = vld [vmem:[#allocation74_spill] sm:$0xff] }
 0x32b   : > { %v4884_v28 = vpack.c.bf16 %v4571_v22, %v4571_v22  ;;  %v4885_v62 = vpack.c.bf16 %v4575_v10, %v4575_v10  ;;  %v4886_v33 = vpack.c.bf16 %v4579_v39, %v4579_v39  ;;  %v4887_v6 = vpack.c.bf16 %v4583_v44, %v4583_v44 }
 0x32c   : > { %v15169_v37 = vunpack.c.l.b16 %v4874_v17  ;;  %v5294_v4 = vunpack.c.l.b16 %v4875_v36  ;;  %v15171_v57 = vunpack.c.l.b16 %v4876_v46  ;;  %v5296_v12 = vunpack.c.l.b16 %v4877_v20 }
 0x32d   : > { %v15173_v38 = vunpack.c.l.b16 %v4878_v47  ;;  %v15175_v34 = vunpack.c.l.b16 %v4879_v54  ;;  %v15177_v50 = vunpack.c.l.b16 %v4880_v19  ;;  %v15179_v0 = vunpack.c.l.b16 %v4881_v16 }
 0x32e   : > { %v15181_v52 = vunpack.c.l.b16 %v4882_v42  ;;  %v15183_v2 = vunpack.c.l.b16 %v4883_v63  ;;  %v15185_v11 = vunpack.c.l.b16 %v4884_v28  ;;  %v15187_v5 = vunpack.c.l.b16 %v4885_v62  ;;  %v18289_v42 = vld [vmem:[#allocation78_spill] sm:$0xff] }
 0x32f   : > { %18273 = vst [vmem:[#allocation137_spill] sm:$0xff] %v15173_v38  ;;  %18274 = vst [vmem:[#allocation134_spill] sm:$0xff] %v15175_v34  ;;  %v15189_v25 = vunpack.c.l.b16 %v4886_v33  ;;  %v15191_v46 = vunpack.c.l.b16 %v4887_v6  ;;  %v5507_v54 = vrot.slane %v5296_v12, 7  ;;  %v5824_v31 = vunpack.c.l.b16 %v4872_v15 }
 0x330   : > { %18275 = vst [vmem:[#allocation144_spill] sm:$0xff] %v15179_v0  ;;  %18276 = vst [vmem:[#allocation66_spill] sm:$0xff] %v15183_v2  ;;  %v5825_v19 = vunpack.c.l.b16 %v4873_v13  ;;  %v5996_v16 = vrot.slane %v15169_v37, 7  ;;  %v6010_v28 = vrot.slane %v5294_v4, 7  ;;  %v6012_v10 = vrot.slane %v5296_v12, 6 }
 0x331   : > { %18277 = vst [vmem:[#allocation68_spill] sm:$0xff] %v15187_v5  ;;  %18278 = vst [vmem:[#allocation69_spill] sm:$0xff] %v15189_v25  ;;  %v15197_v22 = vsel %vm3211_vm9, %v5507_v54, %v5294_v4  ;;  %v6648_v62 = vrot.slane %v15175_v34, 7  ;;  %v18281_v44 = vcombine.low %v15109_v32, %v15113_v30  ;;  %v18282_v13 = vcombine.high %v15109_v32, %v15113_v30  ;;  %v18285_v32 = vld [vmem:[#allocation73_spill] sm:$0xff] }
 0x332   : > { %18279 = vst [vmem:[#allocation67_spill] sm:$0xff] %v15191_v46  ;;  %v15201_v33 = vsel %vm3211_vm9, %v5996_v16, %v5824_v31  ;;  %v6011_v4 = vsel %vm3211_vm9, %v6010_v28, %v5825_v19  ;;  %v3718_v47 = vcombine.low %v15124_v45, %v15127_v24 }
 0x333   : > { %18280 = vst [vmem:[#allocation71_spill] sm:$0xff] %v15201_v33  ;;  %v3708_v15 = vrot.slane %v18281_v44, %v12489_v58  ;;  %v3715_v17 = vrot.slane %v18282_v13, %v12489_v58  ;;  %v15214_v36 = vsel %vm3211_vm9, %v6648_v62, %v5296_v12  ;;  %v15221_v63 = vsel %vm3213_vm10, %v6012_v10, %v6011_v4  ;;  %v18286_v44 = vld [vmem:[#allocation75_spill] sm:$0xff]  ;;  %v18287_v13 = vld [vmem:[#allocation76_spill] sm:$0xff] }
 0x334   : > { %18283 = vst [vmem:[#allocation72_spill] sm:$0xff] %v15214_v36  ;;  %18284 = vst [vmem:[#allocation70_spill] sm:$0xff] %v15221_v63  ;;  %v15226_v12 = vrot.slane %v3718_v47, %v12489_v58  ;;  %v18290_v4 = vld [vmem:[#allocation79_spill] sm:$0xff] }
 0x335   : > { %v3716_v6 = vcombine.high %v3708_v15, %v3708_v15  ;;  %v3717_v54 = vcombine.high %v3715_v17, %v3715_v17  ;;  %v3776_v31 = vrot.slane %v3708_v15, 1  ;;  %v3778_v16 = vrot.slane %v3715_v17, 1 }
 0x336   : > { %v3960_v30 = vmax.f32 %v18285_v32, %v3708_v15  ;;  %v3964_v19 = vmax.f32 %v18286_v44, %v3715_v17  ;;  %v18293_v15 = vld [vmem:[#allocation89_spill] sm:$0xff] }
 0x337   : > { %v3777_v28 = vrot.slane %v3716_v6, 1  ;;  %v3779_v62 = vrot.slane %v3717_v54, 1  ;;  %v3961_v39 = vmax.f32 %v18287_v13, %v3776_v31  ;;  %v3962_v20 = vmax.f32 %v18288_v21, %v3716_v6 }
 0x338   : > { %v3965_v10 = vmax.f32 %v18289_v42, %v3778_v16  ;;  %v3966_v33 = vmax.f32 %v18290_v4, %v3717_v54  ;;  %v4056_v63 = vmax.f32 %v3960_v30, 0.0  ;;  %v4060_v53 = vmax.f32 %v3964_v19, 0.0 }
 0x339   : > { %v15233_v55 = vmax.f32 %v18291_v27, %v3777_v28  ;;  %v3967_v17 = vmax.f32 %v18293_v15, %v3779_v62  ;;  %v4057_v32 = vmax.f32 %v3961_v39, 0.0  ;;  %v4058_v47 = vmax.f32 %v3962_v20, 0.0 }
 0x33a   : > { %v4061_v44 = vmax.f32 %v3965_v10, 0.0  ;;  %v4062_v29 = vmax.f32 %v3966_v33, 0.0  ;;  %v4587_v9 = vrot.slane %v4060_v53, %v12473_v56  ;;  %v4591_v31 = vrot.slane %v4060_v53, %v12495_v3 }
 0x33b   : > { %18292 = vst [vmem:[#allocation81_spill] sm:$0xff] %v15233_v55  ;;  %v4063_v42 = vmax.f32 %v3967_v17, 0.0  ;;  %v4993_v6 = vrot.slane %v4056_v63, %v12473_v56  ;;  %v4997_v54 = vrot.slane %v4056_v63, %v12495_v3 }
 0x33c   : > { %v4595_v27 = vrot.slane %v4061_v44, %v12473_v56  ;;  %v4599_v16 = vrot.slane %v4061_v44, %v12495_v3  ;;  %v4603_v39 = vrot.slane %v4062_v29, %v12473_v56  ;;  %v4607_v20 = vrot.slane %v4062_v29, %v12495_v3 }
 0x33d   : > { %v4611_v33 = vrot.slane %v4063_v42, %v12473_v56  ;;  %v4615_v30 = vrot.slane %v4063_v42, %v12495_v3  ;;  %v4888_v53 = vpack.c.bf16 %v4587_v9, %v4587_v9  ;;  %v4889_v19 = vpack.c.bf16 %v4591_v31, %v4591_v31  ;;  %v18311_v42 = vld [vmem:[#allocation84_spill] sm:$0xff] }
 0x33e   : > { %v4890_v28 = vpack.c.bf16 %v4595_v27, %v4595_v27  ;;  %v4891_v62 = vpack.c.bf16 %v4599_v16, %v4599_v16  ;;  %v4892_v13 = vpack.c.bf16 %v4603_v39, %v4603_v39  ;;  %v4893_v10 = vpack.c.bf16 %v4607_v20, %v4607_v20  ;;  %v18310_v39 = vld [vmem:[#allocation83_spill] sm:$0xff] }
 0x33f   : > { %v4894_v4 = vpack.c.bf16 %v4611_v33, %v4611_v33  ;;  %v4895_v63 = vpack.c.bf16 %v4615_v30, %v4615_v30  ;;  %v5034_v15 = vpack.c.bf16 %v4993_v6, %v4993_v6  ;;  %v5035_v17 = vpack.c.bf16 %v4997_v54, %v4997_v54 }
 0x340   : > { %v15247_v21 = vunpack.c.l.b16 %v4890_v28  ;;  %v5310_v44 = vunpack.c.l.b16 %v4891_v62  ;;  %v15249_v55 = vunpack.c.l.b16 %v4892_v13  ;;  %v5312_v29 = vunpack.c.l.b16 %v4893_v10 }
 0x341   : > { %v15251_v1 = vunpack.c.l.b16 %v5034_v15  ;;  %v15253_v7 = vunpack.c.l.b16 %v5035_v17  ;;  %v15255_v9 = vunpack.c.l.b16 %v4894_v4  ;;  %v15257_v31 = vunpack.c.l.b16 %v4895_v63 }
 0x342   : > { %18294 = vst [vmem:[#allocation73_spill] sm:$0xff] %v15247_v21  ;;  %18295 = vst [vmem:[#allocation75_spill] sm:$0xff] %v15249_v55  ;;  %v5535_v27 = vrot.slane %v5312_v29, 7  ;;  %v5826_v16 = vunpack.c.l.b16 %v4888_v53  ;;  %v5827_v6 = vunpack.c.l.b16 %v4889_v19  ;;  %v6024_v54 = vrot.slane %v15247_v21, 7 }
 0x343   : > { %18296 = vst [vmem:[#allocation76_spill] sm:$0xff] %v15251_v1  ;;  %18297 = vst [vmem:[#allocation74_spill] sm:$0xff] %v15253_v7  ;;  %v6038_v20 = vrot.slane %v5310_v44, 7  ;;  %v6040_v33 = vrot.slane %v5312_v29, 6  ;;  %v15266_v28 = vrot.slane %v4057_v32, %v12473_v56  ;;  %v6362_v62 = vrot.slane %v4057_v32, %v12495_v3 }
 0x344   : > { %18298 = vst [vmem:[#allocation78_spill] sm:$0xff] %v15255_v9  ;;  %18299 = vst [vmem:[#allocation79_spill] sm:$0xff] %v15257_v31  ;;  %v15263_v30 = vsel %vm3211_vm9, %v5535_v27, %v5310_v44  ;;  %v6676_v13 = vrot.slane %v15257_v31, 7  ;;  %v15271_v10 = vsel %vm3211_vm9, %v6024_v54, %v5826_v16  ;;  %v15275_v19 = vrot.slane %v4058_v47, %v12473_v56 }
 0x345   : > { %18300 = vst [vmem:[#allocation77_spill] sm:$0xff] %v15266_v28  ;;  %18301 = vst [vmem:[#allocation89_spill] sm:$0xff] %v15271_v10  ;;  %v6039_v53 = vsel %vm3211_vm9, %v6038_v20, %v5827_v6  ;;  %v7016_v4 = vrot.slane %v4058_v47, %v12495_v3  ;;  %v6400_v17 = vpack.c.bf16 %v6362_v62, %v6362_v62  ;;  %v3780_v47 = vrot.slane %v15226_v12, 1  ;;  %v18307_v20 = vld [vmem:[#allocation82_spill] sm:$0xff] }
 0x346   : > { %18302 = vst [vmem:[#allocation160_spill] sm:$0xff] %v15275_v19  ;;  %v15279_v63 = vsel %vm3213_vm10, %v6040_v33, %v6039_v53  ;;  %v15284_v32 = vsel %vm3211_vm9, %v6676_v13, %v5312_v29  ;;  %v18305_v27 = vcombine.high %v15124_v45, %v15127_v24  ;;  %v3734_v6 = vcombine.high %v15226_v12, %v15226_v12  ;;  %v18309_v24 = vld [vmem:[#allocation85_spill] sm:$0xff]  ;;  %v18312_v10 = vld [vmem:[#allocation86_spill] sm:$0xff] }
 0x347   : > { %18303 = vst [vmem:[#allocation161_spill] sm:$0xff] %v15279_v63  ;;  %18304 = vst [vmem:[#allocation162_spill] sm:$0xff] %v15284_v32  ;;  %v7054_v44 = vpack.c.bf16 %v7016_v4, %v7016_v4  ;;  %v15293_v54 = vunpack.c.l.b16 %v6400_v17  ;;  %v3968_v33 = vmax.f32 %v18307_v20, %v15226_v12  ;;  %v5453_v62 = vrot.slane %v14698_v49, 6  ;;  %v18313_v12 = vld [vmem:[#allocation87_spill] sm:$0xff]  ;;  %v18314_v49 = vld [vmem:[#allocation88_spill] sm:$0xff] }
 0x348   : > { %v3733_v16 = vrot.slane %v18305_v27, %v12489_v58  ;;  %v5455_v29 = vrot.slane %v14702_v43, 5  ;;  %v3781_v4 = vrot.slane %v3734_v6, 1  ;;  %v3969_v27 = vmax.f32 %v18309_v24, %v3780_v47 }
 0x349   : > { %18306 = vst [vmem:[#allocation163_spill] sm:$0xff] %v15293_v54  ;;  %v15299_v13 = vunpack.c.l.b16 %v7054_v44  ;;  %v3970_v15 = vmax.f32 %v18310_v39, %v3734_v6  ;;  %v4064_v17 = vmax.f32 %v3968_v33, 0.0  ;;  %v18315_v54 = vld [vmem:[#allocation90_spill] sm:$0xff] }
 0x34a   : > { %v3735_v53 = vcombine.high %v3733_v16, %v3733_v16  ;;  %v3782_v45 = vrot.slane %v3733_v16, 1  ;;  %v3972_v58 = vmax.f32 %v18311_v42, %v3733_v16  ;;  %v3971_v63 = vmax.f32 %v18312_v10, %v3781_v4 }
 0x34b   : > { %18308 = vst [vmem:[#allocation82_spill] sm:$0xff] %v15299_v13  ;;  %v4065_v28 = vmax.f32 %v3969_v27, 0.0  ;;  %v4066_v44 = vmax.f32 %v3970_v15, 0.0  ;;  %v4619_v32 = vrot.slane %v4064_v17, %v12473_v56  ;;  %v4623_v42 = vrot.slane %v4064_v17, %v12495_v3 }
 0x34c   : > { %v3783_v19 = vrot.slane %v3735_v53, 1  ;;  %v3973_v20 = vmax.f32 %v18313_v12, %v3782_v45  ;;  %v3974_v48 = vmax.f32 %v18314_v49, %v3735_v53  ;;  %v4068_v13 = vmax.f32 %v3972_v58, 0.0 }
 0x34d   : > { %v4067_v47 = vmax.f32 %v3971_v63, 0.0  ;;  %v4627_v16 = vrot.slane %v4065_v28, %v12473_v56  ;;  %v4631_v10 = vrot.slane %v4065_v28, %v12495_v3  ;;  %v4635_v33 = vrot.slane %v4066_v44, %v12473_v56 }
 0x34e   : > { %v15309_v36 = vmax.f32 %v18315_v54, %v3783_v19  ;;  %v4069_v39 = vmax.f32 %v3973_v20, 0.0  ;;  %v4070_v6 = vmax.f32 %v3974_v48, 0.0  ;;  %v4639_v58 = vrot.slane %v4066_v44, %v12495_v3 }
 0x34f   : > { %v4643_v15 = vrot.slane %v4067_v47, %v12473_v56  ;;  %v4647_v19 = vrot.slane %v4067_v47, %v12495_v3  ;;  %v4896_v54 = vpack.c.bf16 %v4619_v32, %v4619_v32  ;;  %v4897_v63 = vpack.c.bf16 %v4623_v42, %v4623_v42 }
 0x350   : > { %18316 = vst [vmem:[#allocation85_spill] sm:$0xff] %v15309_v36  ;;  %v4898_v53 = vpack.c.bf16 %v4627_v16, %v4627_v16  ;;  %v4899_v48 = vpack.c.bf16 %v4631_v10, %v4631_v10  ;;  %v4900_v4 = vpack.c.bf16 %v4635_v33, %v4635_v33  ;;  %v4901_v45 = vpack.c.bf16 %v4639_v58, %v4639_v58 }
 0x351   : > { %v4902_v24 = vpack.c.bf16 %v4643_v15, %v4643_v15  ;;  %v4903_v27 = vpack.c.bf16 %v4647_v19, %v4647_v19  ;;  %v5001_v28 = vrot.slane %v4068_v13, %v12473_v56  ;;  %v5005_v17 = vrot.slane %v4068_v13, %v12495_v3 }
 0x352   : > { %v15321_v12 = vunpack.c.l.b16 %v4896_v54  ;;  %v15323_v20 = vunpack.c.l.b16 %v4897_v63  ;;  %v15325_v44 = vunpack.c.l.b16 %v4898_v53  ;;  %v15327_v49 = vunpack.c.l.b16 %v4899_v48 }
 0x353   : > { %v15329_v32 = vunpack.c.l.b16 %v4900_v4  ;;  %v15331_v47 = vunpack.c.l.b16 %v4901_v45  ;;  %v5036_v42 = vpack.c.bf16 %v5001_v28, %v5001_v28  ;;  %v5037_v16 = vpack.c.bf16 %v5005_v17, %v5005_v17  ;;  %v18331_v4 = vld [vmem:[#allocation10_spill] sm:$0xff] }
 0x354   : > { %18317 = vst [vmem:[#allocation83_spill] sm:$0xff] %v15321_v12  ;;  %18318 = vst [vmem:[#allocation84_spill] sm:$0xff] %v15323_v20  ;;  %v15333_v10 = vunpack.c.l.b16 %v4902_v24  ;;  %v15335_v33 = vunpack.c.l.b16 %v4903_v27  ;;  %v15338_v13 = vrot.slane %v4069_v39, %v12473_v56  ;;  %v6370_v58 = vrot.slane %v4069_v39, %v12495_v3 }
 0x355   : > { %18319 = vst [vmem:[#allocation86_spill] sm:$0xff] %v15325_v44  ;;  %18320 = vst [vmem:[#allocation87_spill] sm:$0xff] %v15327_v49  ;;  %v15342_v15 = vrot.slane %v4070_v6, %v12473_v56  ;;  %v7024_v19 = vrot.slane %v4070_v6, %v12495_v3  ;;  %v15345_v54 = vunpack.c.l.b16 %v5036_v42  ;;  %v15347_v63 = vunpack.c.l.b16 %v5037_v16  ;;  %v18334_v56 = vld [vmem:[#allocation103_spill] sm:$0xff]  ;;  %v18335_v3 = vld [vmem:[#allocation102_spill] sm:$0xff] }
 0x356   : > { %18321 = vst [vmem:[#allocation88_spill] sm:$0xff] %v15329_v32  ;;  %18322 = vst [vmem:[#allocation90_spill] sm:$0xff] %v15331_v47  ;;  %v5454_v48 = vsel %vm3213_vm10, %v5453_v62, %v14726_v60  ;;  %v6402_v45 = vpack.c.bf16 %v6370_v58, %v6370_v58  ;;  %v5457_v27 = vrot.slane %v14709_v18, 4  ;;  %v5459_v6 = vrot.slane %v14713_v23, 3  ;;  %v18340_v44 = vld [vmem:[#allocation53_spill] sm:$0xff] }
 0x357   : > { %18323 = vst [vmem:[#allocation164_spill] sm:$0xff] %v15333_v10  ;;  %18324 = vst [vmem:[#allocation165_spill] sm:$0xff] %v15335_v33  ;;  %v7056_v24 = vpack.c.bf16 %v7024_v19, %v7024_v19  ;;  %v5456_v39 = vsel %vm3215_vm11, %v5455_v29, %v5454_v48  ;;  %v5461_v28 = vrot.slane %v14717_v35, 2  ;;  %v5463_v17 = vrot.slane %v14794_v40, 1 }
 0x358   : > { %18325 = vst [vmem:[#allocation166_spill] sm:$0xff] %v15338_v13  ;;  %18326 = vst [vmem:[#allocation167_spill] sm:$0xff] %v15342_v15  ;;  %v15359_v42 = vunpack.c.l.b16 %v6402_v45  ;;  %v5481_v60 = vrot.slane %v14787_v8, 6  ;;  %v5483_v62 = vrot.slane %v14878_v51, 5  ;;  %v5458_v58 = vsel %vm3217_vm12, %v5457_v27, %v5456_v39  ;;  %v18332_v15 = vld [vmem:[#allocation9_spill] sm:$0xff] }
 0x359   : > { %18327 = vst [vmem:[#allocation168_spill] sm:$0xff] %v15345_v54  ;;  %18328 = vst [vmem:[#allocation169_spill] sm:$0xff] %v15347_v63  ;;  %v15361_v16 = vunpack.c.l.b16 %v7056_v24  ;;  %v5485_v29 = vrot.slane %v14885_v14, 4  ;;  %v5487_v19 = vrot.slane %v14892_v59, 3  ;;  %v5489_v48 = vrot.slane %v14896_v61, 2 }
 0x35a   : > { %18329 = vst [vmem:[#allocation170_spill] sm:$0xff] %v15359_v42  ;;  %v5460_v53 = vsel %vm3219_vm13, %v5459_v6, %v5458_v58  ;;  %v5482_v45 = vsel %vm3213_vm10, %v5481_v60, %v14800_v26  ;;  %v5491_v24 = vrot.slane %v14903_v41, 1  ;;  %v5439_v8 = vrot.slane %v18334_v56, 6  ;;  %v18336_v26 = vld [vmem:[#allocation111_spill] sm:$0xff] }
 0x35b   : > { %18330 = vst [vmem:[#allocation171_spill] sm:$0xff] %v15361_v16  ;;  %v18333_v16 = vrot.slane %v18332_v15, 7  ;;  %v5462_v39 = vsel %vm3221_vm14, %v5461_v28, %v5460_v53  ;;  %v5484_v27 = vsel %vm3215_vm11, %v5483_v62, %v5482_v45  ;;  %v5441_v13 = vrot.slane %v18335_v3, 5  ;;  %v18337_v42 = vld [vmem:[#allocation43_spill] sm:$0xff]  ;;  %v18339_v28 = vld [vmem:[#allocation54_spill] sm:$0xff] }
 0x35c   : > { %v5464_v6 = vsel %vm3223_vm15, %v5463_v17, %v5462_v39  ;;  %v5486_v58 = vsel %vm3217_vm12, %v5485_v29, %v5484_v27  ;;  %v5443_v60 = vrot.slane %v18336_v26, 4  ;;  %v5445_v54 = vrot.slane %v18337_v42, 3  ;;  %v18341_v17 = vld [vmem:[#allocation51_spill] sm:$0xff]  ;;  %v18343_v27 = vld [vmem:[#allocation52_spill] sm:$0xff] }
 0x35d   : > { %v5438_v36 = vsel %vm3211_vm9, %v18333_v16, %v18331_v4  ;;  %v5488_v10 = vsel %vm3219_vm13, %v5487_v19, %v5486_v58  ;;  %v18338_v16 = vld [vmem:[#allocation42_spill] sm:$0xff]  ;;  %v5449_v62 = vrot.slane %v18339_v28, 1  ;;  %v18342_v39 = vrot.slane %v18341_v17, 7 }
 0x35e   : > { %v5440_v4 = vsel %vm3213_vm10, %v5439_v8, %v5438_v36  ;;  %v5447_v53 = vrot.slane %v18338_v16, 2  ;;  %v5490_v45 = vsel %vm3221_vm14, %v5489_v48, %v5488_v10  ;;  %v5467_v12 = vrot.slane %v18343_v27, 6  ;;  %v18344_v8 = vld [vmem:[#allocation60_spill] sm:$0xff]  ;;  %v18345_v58 = vld [vmem:[#allocation58_spill] sm:$0xff]  ;;  %v18346_v48 = vld [vmem:[#allocation63_spill] sm:$0xff] }
 0x35f   : > { %v5442_v32 = vsel %vm3215_vm11, %v5441_v13, %v5440_v4  ;;  %v5466_v29 = vsel %vm3211_vm9, %v18342_v39, %v18340_v44  ;;  %v5492_v9 = vsel %vm3223_vm15, %v5491_v24, %v5490_v45  ;;  %v5469_v36 = vrot.slane %v18344_v8, 5  ;;  %v18347_v39 = vld [vmem:[#allocation80_spill] sm:$0xff]  ;;  %v18348_v24 = vld [vmem:[#allocation154_spill] sm:$0xff] }
 0x360   : > { %v5444_v19 = vsel %vm3217_vm12, %v5443_v60, %v5442_v32  ;;  %v5471_v55 = vrot.slane %v18345_v58, 4  ;;  %v5554_v21 = vpack.c.b16 %v5492_v9, %v5464_v6  ;;  %v5468_v13 = vsel %vm3213_vm10, %v5467_v12, %v5466_v29 }
 0x361   : > { %v5446_v10 = vsel %vm3219_vm13, %v5445_v54, %v5444_v19  ;;  %v5473_v4 = vrot.slane %v18346_v48, 3  ;;  %v5470_v44 = vsel %vm3215_vm11, %v5469_v36, %v5468_v13  ;;  %v5475_v25 = vrot.slane %v18347_v39, 2  ;;  %v18349_v36 = vld [vmem:[#allocation45_spill] sm:$0xff] }
 0x362   : > { %v5448_v1 = vsel %vm3221_vm14, %v5447_v53, %v5446_v10  ;;  %v5477_v45 = vrot.slane %v18348_v24, 1  ;;  %10722 = vmatprep.mubr.msk.bf16.mxu1 %vm1024_vm7, %v5554_v21  ;;  %v5472_v9 = vsel %vm3217_vm12, %v5471_v55, %v5470_v44  ;;  %v6594_v54 = vrot.slane %v14702_v43, 6 }
 0x363   : > { %v5450_v32 = vsel %vm3223_vm15, %v5449_v62, %v5448_v1  ;;  %v6596_v12 = vrot.slane %v14709_v18, 5  ;;  %v5474_v6 = vsel %vm3219_vm13, %v5473_v4, %v5472_v9  ;;  %v6598_v60 = vrot.slane %v14713_v23, 4  ;;  %v18350_v1 = vld [vmem:[#allocation152_spill] sm:$0xff] }
 0x364   : > { %v6600_v53 = vrot.slane %v14717_v35, 3  ;;  %v6602_v29 = vrot.slane %v14794_v40, 2  ;;  %v5476_v19 = vsel %vm3221_vm14, %v5475_v25, %v5474_v6  ;;  %v6595_v21 = vsel %vm3213_vm10, %v6594_v54, %v18349_v36  ;;  %v18351_v35 = vld [vmem:[#allocation151_spill] sm:$0xff] }
 0x365   : > { %v6604_v62 = vrot.slane %v18350_v1, 1  ;;  %v6622_v55 = vrot.slane %v14878_v51, 6  ;;  %v5478_v10 = vsel %vm3223_vm15, %v5477_v45, %v5476_v19  ;;  %v6597_v13 = vsel %vm3215_vm11, %v6596_v12, %v6595_v21  ;;  %v18352_v19 = vld [vmem:[#allocation158_spill] sm:$0xff] }
 0x366   : > { %v6624_v4 = vrot.slane %v14885_v14, 5  ;;  %v6626_v44 = vrot.slane %v14892_v59, 4  ;;  %v5553_v9 = vpack.c.b16 %v5478_v10, %v5450_v32  ;;  %v6599_v40 = vsel %vm3217_vm12, %v6598_v60, %v6597_v13  ;;  %v18353_v10 = vld [vmem:[#allocation65_spill] sm:$0xff] }
 0x367   : > { %v6623_v25 = vsel %vm3213_vm10, %v6622_v55, %v18351_v35  ;;  %v6628_v54 = vrot.slane %v14896_v61, 3  ;;  %v6601_v6 = vsel %vm3219_vm13, %v6600_v53, %v6599_v40  ;;  %v6630_v45 = vrot.slane %v14903_v41, 2  ;;  %v18356_v35 = vld [vmem:[#allocation156_spill] sm:$0xff] }
 0x368   : > { %v6625_v36 = vsel %vm3215_vm11, %v6624_v4, %v6623_v25  ;;  %v6632_v12 = vrot.slane %v18352_v19, 1  ;;  %5776 = vmatmul.mubr.bf16.gmra.mxu1 %v5553_v9  ;;  %v6603_v21 = vsel %vm3221_vm14, %v6602_v29, %v6601_v6  ;;  %v18354_v60 = vpack.c.bf16 %v18353_v10, %v18353_v10 }
 0x369   : > { %v6627_v32 = vsel %vm3217_vm12, %v6626_v44, %v6625_v36  ;;  %v18357_v55 = vpack.c.bf16 %v18356_v35, %v18356_v35  ;;  %v6605_v53 = vsel %vm3223_vm15, %v6604_v62, %v6603_v21  ;;  %v6578_v9 = vrot.slane %v18334_v56, 7 }
 0x36a   : > { %v15438_v13 = vunpack.c.l.b16 %v18354_v60  ;;  %v6629_v4 = vsel %vm3219_vm13, %v6628_v54, %v6627_v32  ;;  %v6580_v29 = vrot.slane %v18335_v3, 6  ;;  %v6582_v25 = vrot.slane %v18336_v26, 5 }
 0x36b   : > { %v15443_v40 = vunpack.c.l.b16 %v18357_v55  ;;  %v6631_v44 = vsel %vm3221_vm14, %v6630_v45, %v6629_v4  ;;  %v6584_v6 = vrot.slane %v18337_v42, 4  ;;  %v6586_v36 = vrot.slane %v18338_v16, 3 }
 0x36c   : > { %18355 = vst [vmem:[#allocation10_spill] sm:$0xff] %v15438_v13  ;;  %v6633_v10 = vsel %vm3223_vm15, %v6632_v12, %v6631_v44  ;;  %v6579_v60 = vsel %vm3211_vm9, %v6578_v9, %v18332_v15  ;;  %v6588_v62 = vrot.slane %v18339_v28, 2  ;;  %v6590_v54 = vrot.slane %v15438_v13, 1 }
 0x36d   : > { %18358 = vst [vmem:[#allocation9_spill] sm:$0xff] %v15443_v40  ;;  %v6695_v21 = vpack.c.b16 %v6633_v10, %v6605_v53  ;;  %v6581_v32 = vsel %vm3213_vm10, %v6580_v29, %v6579_v60  ;;  %v6606_v45 = vrot.slane %v18343_v27, 7  ;;  %v6608_v35 = vrot.slane %v18344_v8, 6 }
 0x36e   : > { %v6583_v55 = vsel %vm3215_vm11, %v6582_v25, %v6581_v32  ;;  %v6610_v4 = vrot.slane %v18345_v58, 5  ;;  %v6612_v12 = vrot.slane %v18346_v48, 4  ;;  %v6614_v44 = vrot.slane %v18347_v39, 3  ;;  %v18371_v48 = vld [vmem:[#allocation72_spill] sm:$0xff] }
 0x36f   : > { %10820 = vmatprep.mubr.msk.bf16.mxu0 %vm1024_vm7, %v6695_v21  ;;  %v6585_v9 = vsel %vm3217_vm12, %v6584_v6, %v6583_v55  ;;  %v6607_v53 = vsel %vm3211_vm9, %v6606_v45, %v18341_v17  ;;  %v6616_v29 = vrot.slane %v18348_v24, 2  ;;  %v6618_v10 = vrot.slane %v15443_v40, 1  ;;  %v18367_v24 = vld [vmem:[#allocation86_spill] sm:$0xff] }
 0x370   : > { %v6587_v60 = vsel %vm3219_vm13, %v6586_v36, %v6585_v9  ;;  %v6609_v25 = vsel %vm3213_vm10, %v6608_v35, %v6607_v53  ;;  %v5509_v32 = vrot.slane %v15175_v34, 6  ;;  %v5511_v13 = vrot.slane %v15179_v0, 5 }
 0x371   : > { %v6589_v28 = vsel %vm3221_vm14, %v6588_v62, %v6587_v60  ;;  %v6611_v21 = vsel %vm3215_vm11, %v6610_v4, %v6609_v25  ;;  %v5513_v6 = vrot.slane %v15183_v2, 4  ;;  %v5515_v45 = vrot.slane %v15187_v5, 3 }
 0x372   : > { %v6591_v55 = vsel %vm3223_vm15, %v6590_v54, %v6589_v28  ;;  %v6613_v40 = vsel %vm3217_vm12, %v6612_v12, %v6611_v21  ;;  %v5510_v36 = vsel %vm3213_vm10, %v5509_v32, %v15197_v22  ;;  %v5517_v35 = vrot.slane %v15191_v46, 2 }
 0x373   : > { %v6615_v9 = vsel %vm3219_vm13, %v6614_v44, %v6613_v40  ;;  %v5512_v53 = vsel %vm3215_vm11, %v5511_v13, %v5510_v36  ;;  %v5519_v62 = vrot.slane %v15253_v7, 1  ;;  %v5537_v4 = vrot.slane %v15257_v31, 6 }
 0x374   : > { %v6617_v60 = vsel %vm3221_vm14, %v6616_v29, %v6615_v9  ;;  %v5514_v25 = vsel %vm3217_vm12, %v5513_v6, %v5512_v53  ;;  %v5539_v28 = vrot.slane %v15323_v20, 5  ;;  %v5541_v54 = vrot.slane %v15327_v49, 4 }
 0x375   : > { %v6619_v22 = vsel %vm3223_vm15, %v6618_v10, %v6617_v60  ;;  %v5516_v12 = vsel %vm3219_vm13, %v5515_v45, %v5514_v25  ;;  %v5538_v40 = vsel %vm3213_vm10, %v5537_v4, %v15263_v30  ;;  %v5543_v13 = vrot.slane %v15331_v47, 3  ;;  %v18360_v60 = vld [vmem:[#allocation69_spill] sm:$0xff] }
 0x376   : > { %v6694_v44 = vpack.c.b16 %v6619_v22, %v6591_v55  ;;  %v5518_v32 = vsel %vm3221_vm14, %v5517_v35, %v5516_v12  ;;  %v5540_v29 = vsel %vm3215_vm11, %v5539_v28, %v5538_v40  ;;  %v5545_v21 = vrot.slane %v15335_v33, 2  ;;  %v18361_v28 = vld [vmem:[#allocation76_spill] sm:$0xff]  ;;  %v18362_v12 = vld [vmem:[#allocation73_spill] sm:$0xff]  ;;  %v18363_v40 = vld [vmem:[#allocation75_spill] sm:$0xff] }
 0x377   : > { %v5520_v6 = vsel %vm3223_vm15, %v5519_v62, %v5518_v32  ;;  %v5542_v36 = vsel %vm3217_vm12, %v5541_v54, %v5540_v29  ;;  %v5547_v10 = vrot.slane %v15347_v63, 1  ;;  %v18359_v45 = vrot.slane %v15171_v57, 7  ;;  %v18365_v32 = vld [vmem:[#allocation78_spill] sm:$0xff] }
 0x378   : > { %6917 = vmatmul.mubr.bf16.gmra.mxu0 %v6694_v44  ;;  %v5544_v55 = vsel %vm3219_vm13, %v5543_v13, %v5542_v36  ;;  %v5495_v35 = vrot.slane %v15173_v38, 6  ;;  %v5497_v9 = vrot.slane %v15177_v50, 5  ;;  %v5499_v53 = vrot.slane %v15181_v52, 4 }
 0x379   : > { %v5494_v30 = vsel %vm3211_vm9, %v18359_v45, %v15169_v37  ;;  %v5546_v62 = vsel %vm3221_vm14, %v5545_v21, %v5544_v55  ;;  %v5501_v4 = vrot.slane %v15185_v11, 3  ;;  %v5503_v25 = vrot.slane %v18360_v60, 2  ;;  %v18366_v45 = vld [vmem:[#allocation83_spill] sm:$0xff] }
 0x37a   : > { %v5505_v54 = vrot.slane %v18361_v28, 1  ;;  %v5548_v22 = vsel %vm3223_vm15, %v5547_v10, %v5546_v62  ;;  %v5496_v37 = vsel %vm3213_vm10, %v5495_v35, %v5494_v30  ;;  %v18364_v13 = vrot.slane %v18363_v40, 7  ;;  %v18368_v62 = vld [vmem:[#allocation88_spill] sm:$0xff] }
 0x37b   : > { %v5523_v29 = vrot.slane %v18365_v32, 6  ;;  %v5556_v36 = vpack.c.b16 %v5548_v22, %v5520_v6  ;;  %v5498_v21 = vsel %vm3215_vm11, %v5497_v9, %v5496_v37  ;;  %v5525_v55 = vrot.slane %v18366_v45, 5  ;;  %v18369_v35 = vld [vmem:[#allocation164_spill] sm:$0xff] }
 0x37c   : > { %v5522_v44 = vsel %vm3211_vm9, %v18364_v13, %v18362_v12  ;;  %v5527_v31 = vrot.slane %v18367_v24, 4  ;;  %v5500_v34 = vsel %vm3217_vm12, %v5499_v53, %v5498_v21  ;;  %v5529_v30 = vrot.slane %v18368_v62, 3  ;;  %v18370_v22 = vld [vmem:[#allocation168_spill] sm:$0xff] }
 0x37d   : > { %v5524_v10 = vsel %vm3213_vm10, %v5523_v29, %v5522_v44  ;;  %v5531_v39 = vrot.slane %v18369_v35, 2  ;;  %10723 = vmatprep.mubr.msk.bf16.mxu1 %vm1024_vm7, %v5556_v36  ;;  %v5502_v12 = vsel %vm3219_vm13, %v5501_v4, %v5500_v34  ;;  %v5533_v9 = vrot.slane %v18370_v22, 1 }
 0x37e   : > { %v5526_v6 = vsel %vm3215_vm11, %v5525_v55, %v5524_v10  ;;  %v6650_v37 = vrot.slane %v15179_v0, 6  ;;  %v5504_v13 = vsel %vm3221_vm14, %v5503_v25, %v5502_v12  ;;  %v6652_v44 = vrot.slane %v15183_v2, 5 }
 0x37f   : > { %v5528_v53 = vsel %vm3217_vm12, %v5527_v31, %v5526_v6  ;;  %v6654_v29 = vrot.slane %v15187_v5, 4  ;;  %v5506_v21 = vsel %vm3223_vm15, %v5505_v54, %v5504_v13  ;;  %v6656_v4 = vrot.slane %v15191_v46, 3  ;;  %v18372_v31 = vld [vmem:[#allocation163_spill] sm:$0xff] }
 0x380   : > { %v5530_v36 = vsel %vm3219_vm13, %v5529_v30, %v5528_v53  ;;  %v6651_v34 = vsel %vm3213_vm10, %v6650_v37, %v18371_v48  ;;  %v6658_v25 = vrot.slane %v15253_v7, 2  ;;  %v6660_v12 = vrot.slane %v18372_v31, 1  ;;  %v18377_v7 = vld [vmem:[#allocation95_spill] sm:$0xff] }
 0x381   : > { %v5532_v55 = vsel %vm3221_vm14, %v5531_v39, %v5530_v36  ;;  %v6653_v10 = vsel %vm3215_vm11, %v6652_v44, %v6651_v34  ;;  %v6678_v54 = vrot.slane %v15323_v20, 6  ;;  %v6680_v30 = vrot.slane %v15327_v49, 5  ;;  %v18373_v44 = vld [vmem:[#allocation162_spill] sm:$0xff]  ;;  %v18384_v49 = vld [vmem:[#allocation15_spill] sm:$0xff] }
 0x382   : > { %v5534_v6 = vsel %vm3223_vm15, %v5533_v9, %v5532_v55  ;;  %v6655_v5 = vsel %vm3217_vm12, %v6654_v29, %v6653_v10  ;;  %v6682_v37 = vrot.slane %v15331_v47, 4  ;;  %v6684_v39 = vrot.slane %v15335_v33, 3  ;;  %v18374_v34 = vld [vmem:[#allocation170_spill] sm:$0xff]  ;;  %v18375_v10 = vld [vmem:[#allocation91_spill] sm:$0xff] }
 0x383   : > { %v5555_v13 = vpack.c.b16 %v5534_v6, %v5506_v21  ;;  %v6657_v48 = vsel %vm3219_vm13, %v6656_v4, %v6655_v5  ;;  %v6679_v36 = vsel %vm3213_vm10, %v6678_v54, %v18373_v44  ;;  %v6686_v9 = vrot.slane %v15347_v63, 2  ;;  %v18376_v4 = vld [vmem:[#allocation93_spill] sm:$0xff]  ;;  %v18379_v54 = vld [vmem:[#allocation99_spill] sm:$0xff] }
 0x384   : > { %v6659_v53 = vsel %vm3221_vm14, %v6658_v25, %v6657_v48  ;;  %v6688_v29 = vrot.slane %v18374_v34, 1  ;;  %v6681_v21 = vsel %vm3215_vm11, %v6680_v30, %v6679_v36  ;;  %v5846_v5 = vrot.slane %v18375_v10, 5  ;;  %v18378_v48 = vld [vmem:[#allocation97_spill] sm:$0xff]  ;;  %v18382_v30 = vld [vmem:[#allocation14_spill] sm:$0xff] }
 0x385   : > { %5786 = vmatmul.mubr.bf16.gmra.mxu1 %v5555_v13  ;;  %v6661_v55 = vsel %vm3223_vm15, %v6660_v12, %v6659_v53  ;;  %v5848_v6 = vrot.slane %v18376_v4, 4  ;;  %v6683_v31 = vsel %vm3217_vm12, %v6682_v37, %v6681_v21  ;;  %v5850_v25 = vrot.slane %v18377_v7, 3  ;;  %v18380_v34 = vld [vmem:[#allocation101_spill] sm:$0xff]  ;;  %v18381_v12 = vld [vmem:[#allocation108_spill] sm:$0xff]  ;;  %v18383_v37 = vld [vmem:[#allocation18_spill] sm:$0xff] }
 0x386   : > { %v5852_v33 = vrot.slane %v18378_v48, 2  ;;  %v5854_v44 = vrot.slane %v18379_v54, 1  ;;  %v6685_v63 = vsel %vm3219_vm13, %v6684_v39, %v6683_v31  ;;  %v5847_v13 = vsel %vm3215_vm11, %v5846_v5, %v18380_v34  ;;  %v18385_v31 = vld [vmem:[#allocation109_spill] sm:$0xff]  ;;  %v18386_v34 = vld [vmem:[#allocation118_spill] sm:$0xff] }
 0x387   : > { %v5874_v53 = vrot.slane %v18381_v12, 5  ;;  %v5876_v36 = vrot.slane %v18382_v30, 4  ;;  %v6687_v10 = vsel %vm3221_vm14, %v6686_v9, %v6685_v63  ;;  %v5849_v47 = vsel %vm3217_vm12, %v5848_v6, %v5847_v13  ;;  %v18387_v9 = vld [vmem:[#allocation77_spill] sm:$0xff] }
 0x388   : > { %v5878_v21 = vrot.slane %v18383_v37, 3  ;;  %v5880_v20 = vrot.slane %v18384_v49, 2  ;;  %v6689_v46 = vsel %vm3223_vm15, %v6688_v29, %v6687_v10  ;;  %v5851_v2 = vsel %vm3219_vm13, %v5850_v25, %v5849_v47  ;;  %v18390_v47 = vld [vmem:[#allocation166_spill] sm:$0xff] }
 0x389   : > { %v5875_v39 = vsel %vm3215_vm11, %v5874_v53, %v18385_v31  ;;  %v5882_v5 = vrot.slane %v18386_v34, 1  ;;  %v6697_v12 = vpack.c.b16 %v6689_v46, %v6661_v55  ;;  %v5853_v0 = vsel %vm3221_vm14, %v5852_v33, %v5851_v2 }
 0x38a   : > { %v5877_v63 = vsel %vm3217_vm12, %v5876_v36, %v5875_v39  ;;  %v18388_v6 = vpack.c.bf16 %v18387_v9, %v18387_v9  ;;  %v5855_v58 = vsel %vm3223_vm15, %v5854_v44, %v5853_v0  ;;  %v18391_v10 = vpack.c.bf16 %v18390_v47, %v18390_v47 }
 0x38b   : > { %v5879_v29 = vsel %vm3219_vm13, %v5878_v21, %v5877_v63  ;;  %v6634_v46 = vrot.slane %v15173_v38, 7  ;;  %10821 = vmatprep.mubr.msk.bf16.mxu0 %vm1024_vm7, %v6697_v12  ;;  %v6636_v33 = vrot.slane %v15177_v50, 6  ;;  %v6638_v55 = vrot.slane %v15181_v52, 5 }
 0x38c   : > { %v15586_v13 = vunpack.c.l.b16 %v18388_v6  ;;  %v15593_v25 = vunpack.c.l.b16 %v18391_v10  ;;  %v5881_v2 = vsel %vm3221_vm14, %v5880_v20, %v5879_v29  ;;  %v6640_v53 = vrot.slane %v15185_v11, 4 }
 0x38d   : > { %v5883_v0 = vsel %vm3223_vm15, %v5882_v5, %v5881_v2  ;;  %v6635_v44 = vsel %vm3211_vm9, %v6634_v46, %v15171_v57  ;;  %v6642_v36 = vrot.slane %v18360_v60, 3  ;;  %v6644_v21 = vrot.slane %v18361_v28, 2 }
 0x38e   : > { %18389 = vst [vmem:[#allocation102_spill] sm:$0xff] %v15586_v13  ;;  %18392 = vst [vmem:[#allocation111_spill] sm:$0xff] %v15593_v25  ;;  %v6053_v31 = vpack.c.b16 %v5883_v0, %v5855_v58  ;;  %v6637_v12 = vsel %vm3213_vm10, %v6636_v33, %v6635_v44  ;;  %v6646_v20 = vrot.slane %v15586_v13, 1  ;;  %v6662_v39 = vrot.slane %v18365_v32, 7  ;;  %v18394_v0 = vld [vmem:[#allocation11_spill] sm:$0xff] }
 0x38f   : > { %v6639_v63 = vsel %vm3215_vm11, %v6638_v55, %v6637_v12  ;;  %v6664_v9 = vrot.slane %v18366_v45, 6  ;;  %v6666_v5 = vrot.slane %v18367_v24, 5  ;;  %v6668_v6 = vrot.slane %v18368_v62, 4  ;;  %v18393_v55 = vld [vmem:[#allocation8_spill] sm:$0xff]  ;;  %v18438_v45 = vld [vmem:[#allocation113_spill] sm:$0xff] }
 0x390   : > { %10754 = vmatprep.mubr.msk.bf16.mxu1 %vm1024_vm7, %v6053_v31  ;;  %v6641_v29 = vsel %vm3217_vm12, %v6640_v53, %v6639_v63  ;;  %v6663_v58 = vsel %vm3211_vm9, %v6662_v39, %v18363_v40  ;;  %v6670_v47 = vrot.slane %v18369_v35, 3  ;;  %v6672_v10 = vrot.slane %v18370_v22, 2  ;;  %v18396_v39 = vld [vmem:[#allocation12_spill] sm:$0xff] }
 0x391   : > { %v6643_v46 = vsel %vm3219_vm13, %v6642_v36, %v6641_v29  ;;  %v6665_v2 = vsel %vm3213_vm10, %v6664_v9, %v6663_v58  ;;  %v6674_v33 = vrot.slane %v15593_v25, 1  ;;  %v18395_v44 = vmax.f32 %v18394_v0, 0.0 }
 0x392   : > { %v6645_v31 = vsel %vm3221_vm14, %v6644_v21, %v6643_v46  ;;  %v6667_v53 = vsel %vm3215_vm11, %v6666_v5, %v6665_v2  ;;  %v18397_v63 = vmax.f32 %v18396_v39, 0.0  ;;  %v7788_v22 = vrot.slane %v18377_v7, 7  ;;  %v18428_v7 = vld [vmem:[#allocation125_spill] sm:$0xff] }
 0x393   : > { %v7622_v12 = vrot.slane %v18395_v44, %v18393_v55  ;;  %v6647_v36 = vsel %vm3223_vm15, %v6646_v20, %v6645_v31  ;;  %v6669_v9 = vsel %vm3217_vm12, %v6668_v6, %v6667_v53  ;;  %v7790_v58 = vrot.slane %v18378_v48, 6  ;;  %v18399_v53 = vld [vmem:[#allocation114_spill] sm:$0xff] }
 0x394   : > { %v7630_v13 = vrot.slane %v18397_v63, %v18393_v55  ;;  %v6671_v0 = vsel %vm3219_vm13, %v6670_v47, %v6669_v9  ;;  %v7789_v21 = vsel %vm3211_vm9, %v7788_v22, %v18376_v4  ;;  %v7792_v5 = vrot.slane %v18379_v54, 5  ;;  %v18398_v63 = vld [vmem:[#allocation106_spill] sm:$0xff]  ;;  %v18400_v22 = vld [vmem:[#allocation116_spill] sm:$0xff] }
 0x395   : > { %v7696_v29 = vpack.c.bf16 %v7622_v12, %v7622_v12  ;;  %v6673_v46 = vsel %vm3221_vm14, %v6672_v10, %v6671_v0  ;;  %v7791_v39 = vsel %vm3213_vm10, %v7790_v58, %v7789_v21  ;;  %v7794_v20 = vrot.slane %v18398_v63, 4 }
 0x396   : > { %v7698_v44 = vpack.c.bf16 %v7630_v13, %v7630_v13  ;;  %v6675_v6 = vsel %vm3223_vm15, %v6674_v33, %v6673_v46  ;;  %v7793_v31 = vsel %vm3215_vm11, %v7792_v5, %v7791_v39  ;;  %v7796_v47 = vrot.slane %v18399_v53, 3  ;;  %v18402_v5 = vld [vmem:[#allocation122_spill] sm:$0xff]  ;;  %v18403_v46 = vld [vmem:[#allocation124_spill] sm:$0xff] }
 0x397   : > { %v7759_v2 = vunpack.c.l.b16 %v7696_v29  ;;  %v6696_v13 = vpack.c.b16 %v6675_v6, %v6647_v36  ;;  %v7795_v9 = vsel %vm3217_vm12, %v7794_v20, %v7793_v31  ;;  %v7798_v25 = vrot.slane %v18400_v22, 2  ;;  %v18404_v31 = vld [vmem:[#allocation92_spill] sm:$0xff]  ;;  %v18410_v22 = vld [vmem:[#allocation13_spill] sm:$0xff] }
 0x398   : > { %v7761_v12 = vunpack.c.l.b16 %v7698_v44  ;;  %v7797_v10 = vsel %vm3219_vm13, %v7796_v47, %v7795_v9  ;;  %v7816_v29 = vrot.slane %v18383_v37, 7  ;;  %v7818_v58 = vrot.slane %v18384_v49, 6  ;;  %v18401_v44 = vld [vmem:[#allocation120_spill] sm:$0xff] }
 0x399   : > { %v7800_v28 = vrot.slane %v7759_v2, 1  ;;  %v7820_v0 = vrot.slane %v18386_v34, 5  ;;  %6927 = vmatmul.mubr.bf16.gmra.mxu0 %v6696_v13  ;;  %v7799_v33 = vsel %vm3221_vm14, %v7798_v25, %v7797_v10  ;;  %v7822_v21 = vrot.slane %v18401_v44, 4  ;;  %v18405_v34 = vld [vmem:[#allocation94_spill] sm:$0xff]  ;;  %v18406_v49 = vld [vmem:[#allocation96_spill] sm:$0xff] }
 0x39a   : > { %v7824_v36 = vrot.slane %v18402_v5, 3  ;;  %v7826_v39 = vrot.slane %v18403_v46, 2  ;;  %v7817_v2 = vsel %vm3211_vm9, %v7816_v29, %v18382_v30  ;;  %v7828_v6 = vrot.slane %v7761_v12, 1  ;;  %v18407_v10 = vld [vmem:[#allocation98_spill] sm:$0xff]  ;;  %v18408_v37 = vld [vmem:[#allocation100_spill] sm:$0xff] }
 0x39b   : > { %v7801_v20 = vsel %vm3223_vm15, %v7800_v28, %v7799_v33  ;;  %v5834_v47 = vrot.slane %v18404_v31, 4  ;;  %v7819_v9 = vsel %vm3213_vm10, %v7818_v58, %v7817_v2  ;;  %v5836_v13 = vrot.slane %v18405_v34, 3  ;;  %v18409_v28 = vld [vmem:[#allocation16_spill] sm:$0xff]  ;;  %v18411_v58 = vld [vmem:[#allocation17_spill] sm:$0xff] }
 0x39c   : > { %v5838_v25 = vrot.slane %v18406_v49, 2  ;;  %v5840_v44 = vrot.slane %v18407_v10, 1  ;;  %v7821_v5 = vsel %vm3215_vm11, %v7820_v0, %v7819_v9  ;;  %v5862_v33 = vrot.slane %v18409_v28, 4  ;;  %v18412_v34 = vld [vmem:[#allocation33_spill] sm:$0xff]  ;;  %v18413_v0 = vld [vmem:[#allocation110_spill] sm:$0xff] }
 0x39d   : > { %v5835_v46 = vsel %vm3217_vm12, %v5834_v47, %v18408_v37  ;;  %v5864_v29 = vrot.slane %v18410_v22, 3  ;;  %v7823_v12 = vsel %vm3217_vm12, %v7822_v21, %v7821_v5  ;;  %v5866_v2 = vrot.slane %v18411_v58, 2  ;;  %v18414_v37 = vld [vmem:[#allocation21_spill] sm:$0xff]  ;;  %v18415_v5 = vld [vmem:[#allocation24_spill] sm:$0xff] }
 0x39e   : > { %v5837_v31 = vsel %vm3219_vm13, %v5836_v13, %v5835_v46  ;;  %v5868_v30 = vrot.slane %v18412_v34, 1  ;;  %v7825_v53 = vsel %vm3219_vm13, %v7824_v36, %v7823_v12  ;;  %v5863_v9 = vsel %vm3217_vm12, %v5862_v33, %v18413_v0  ;;  %v18416_v36 = vld [vmem:[#allocation132_spill] sm:$0xff]  ;;  %v18417_v12 = vld [vmem:[#allocation26_spill] sm:$0xff] }
 0x39f   : > { %v5839_v63 = vsel %vm3221_vm14, %v5838_v25, %v5837_v31  ;;  %v5902_v47 = vrot.slane %v18414_v37, 5  ;;  %v7827_v28 = vsel %vm3221_vm14, %v7826_v39, %v7825_v53  ;;  %v5865_v21 = vsel %vm3219_vm13, %v5864_v29, %v5863_v9  ;;  %v11652_v53 = vld [vmem:[%s17462_s3 + $0x340] ss:$8 sps:$4 sm:$0xff]   ;;  %v18426_v37 = vld [vmem:[#allocation105_spill] sm:$0xff] }
 0x3a0   : > { %v5841_v22 = vsel %vm3223_vm15, %v5840_v44, %v5839_v63  ;;  %v5904_v46 = vrot.slane %v18415_v5, 4  ;;  %v7829_v13 = vsel %vm3223_vm15, %v7828_v6, %v7827_v28  ;;  %v5867_v54 = vsel %vm3221_vm14, %v5866_v2, %v5865_v21  ;;  %v18418_v39 = vld [vmem:[#allocation127_spill] sm:$0xff]  ;;  %v18419_v28 = vld [vmem:[#allocation129_spill] sm:$0xff]  ;;  %v18420_v9 = vld [vmem:[#allocation48_spill] sm:$0xff] }
 0x3a1   : > { %v5903_v25 = vsel %vm3215_vm11, %v5902_v47, %v18416_v36  ;;  %v5906_v31 = vrot.slane %v18417_v12, 3  ;;  %v7999_v33 = vpack.c.b16 %v7829_v13, %v7801_v20  ;;  %v5869_v63 = vsel %vm3223_vm15, %v5868_v30, %v5867_v54  ;;  %v11657_v20 = vld [vmem:[%s17462_s3 + $0x334] ss:$8 sps:$4 sm:$0xff]   ;;  %v18421_v54 = vld [vmem:[#allocation35_spill] sm:$0xff] }
 0x3a2   : > { %v5905_v44 = vsel %vm3217_vm12, %v5904_v46, %v5903_v25  ;;  %v5908_v29 = vrot.slane %v18418_v39, 2  ;;  %v6052_v0 = vpack.c.b16 %v5869_v63, %v5841_v22  ;;  %v5910_v2 = vrot.slane %v18419_v28, 1  ;;  %v18422_v46 = vld [vmem:[#allocation40_spill] sm:$0xff]  ;;  %v18423_v36 = vld [vmem:[#allocation49_spill] sm:$0xff] }
 0x3a3   : > { %v5907_v6 = vsel %vm3219_vm13, %v5906_v31, %v5905_v44  ;;  %v5930_v47 = vrot.slane %v18420_v9, 5  ;;  %10946 = vmatprep.mubr.msk.bf16.mxu0 %vm1024_vm7, %v7999_v33  ;;  %v5932_v30 = vrot.slane %v18421_v54, 4  ;;  %v5934_v13 = vrot.slane %v18422_v46, 3  ;;  %v18424_v31 = vld [vmem:[#allocation135_spill] sm:$0xff]  ;;  %v18425_v44 = vld [vmem:[#allocation141_spill] sm:$0xff] }
 0x3a4   : > { %v5909_v21 = vsel %vm3221_vm14, %v5908_v29, %v5907_v6  ;;  %v5936_v22 = vrot.slane %v18423_v36, 2  ;;  %6259 = vmatmul.mubr.bf16.vlgmr.msra.gmra.mxu1 %v6052_v0  ;;  %v5938_v9 = vrot.slane %v18425_v44, 1  ;;  %v18427_v48 = vrot.slane %v18406_v49, 6  ;;  %v18434_v49 = vld [vmem:[#allocation19_spill] sm:$0xff] }
 0x3a5   : > { %v5911_v25 = vsel %vm3223_vm15, %v5910_v2, %v5909_v21  ;;  %v5931_v63 = vsel %vm3215_vm11, %v5930_v47, %v18424_v31  ;;  %7519 = vmatpush1.bf16.msra.mxu1 %v11652_v53  ;;  %v7778_v6 = vrot.slane %v18407_v10, 5  ;;  %v18429_v0 = vrot.slane %v18411_v58, 6  ;;  %v11655_v47 = vld [vmem:[%s17462_s3 + $0x330] ss:$8 sps:$4 sm:$0xff]  }
 0x3a6   : > { %v7777_v33 = vsel %vm3213_vm10, %v18427_v48, %v18426_v37  ;;  %v5933_v29 = vsel %vm3217_vm12, %v5932_v30, %v5931_v63  ;;  %v7806_v21 = vrot.slane %v18412_v34, 5  ;;  %v18430_v48 = vld [vmem:[#allocation29_spill] sm:$0xff]  ;;  %v18432_v30 = vld [vmem:[#allocation36_spill] sm:$0xff]  ;;  %v7844_v58 = vrot.slane %v18417_v12, 7  ;;  %7520 = vmatprep.subr.bf16.mxu1 %v11657_v20  ;;  %v18436_v12 = vld [vmem:[#allocation119_spill] sm:$0xff] }
 0x3a7   : > { %v7805_v2 = vsel %vm3213_vm10, %v18429_v0, %v18428_v7  ;;  %v5935_v31 = vsel %vm3219_vm13, %v5934_v13, %v5933_v29  ;;  %v18431_v37 = vmax.f32 %v18430_v48, 0.0  ;;  %v18433_v63 = vmax.f32 %v18432_v30, 0.0  ;;  %v11660_v7 = vld [vmem:[%s17462_s3 + $0x324] ss:$8 sps:$4 sm:$0xff]  }
 0x3a8   : > { %v5937_v0 = vsel %vm3221_vm14, %v5936_v22, %v5935_v31  ;;  %v7779_v34 = vsel %vm3215_vm11, %v7778_v6, %v7777_v33  ;;  %v7807_v13 = vsel %vm3215_vm11, %v7806_v21, %v7805_v2  ;;  %v7846_v29 = vrot.slane %v18418_v39, 6  ;;  %v18440_v6 = vld [vmem:[#allocation121_spill] sm:$0xff] }
 0x3a9   : > { %v7638_v53 = vrot.slane %v18431_v37, %v18393_v55  ;;  %v7646_v10 = vrot.slane %v18433_v63, %v18393_v55  ;;  %v5939_v37 = vsel %vm3223_vm15, %v5938_v9, %v5937_v0  ;;  %v18435_v4 = vrot.slane %v18434_v49, 4  ;;  %7521 = vmatpush1.bf16.msra.mxu1 %v11655_v47 }
 0x3aa   : > { %v18437_v20 = vrot.slane %v18436_v12, 4  ;;  %v6055_v24 = vpack.c.b16 %v5939_v37, %v5911_v25  ;;  %v18439_v22 = vrot.slane %v18438_v45, 3  ;;  %v18441_v2 = vrot.slane %v18440_v6, 3  ;;  %7522 = vmatprep.subr.bf16.mxu1 %v11660_v7  ;;  %v18450_v7 = vld [vmem:[#allocation28_spill] sm:$0xff] }
 0x3ab   : > { %v7781_v63 = vsel %vm3217_vm12, %v18435_v4, %v7779_v34  ;;  %v7700_v62 = vpack.c.bf16 %v7638_v53, %v7638_v53  ;;  %v7702_v31 = vpack.c.bf16 %v7646_v10, %v7646_v10  ;;  %v11658_v4 = vld [vmem:[%s17462_s3 + $0x320] ss:$8 sps:$4 sm:$0xff]   ;;  %v18446_v10 = vld [vmem:[#allocation117_spill] sm:$0xff]  ;;  %v5992_v45 = vrot.slane %v14892_v59, 2 }
 0x3ac   : > { %v7809_v35 = vsel %vm3217_vm12, %v18437_v20, %v7807_v13  ;;  %v7783_v33 = vsel %vm3219_vm13, %v18439_v22, %v7781_v63  ;;  %v18442_v34 = vld [vmem:[#allocation115_spill] sm:$0xff]  ;;  %v7845_v63 = vsel %vm3211_vm9, %v7844_v58, %v18415_v5  ;;  %10755 = vmatprep.mubr.msk.bf16.mxu1 %vm1024_vm7, %v6055_v24  ;;  %v18447_v47 = vrot.slane %v18446_v10, 1  ;;  %v18448_v22 = vld [vmem:[#allocation126_spill] sm:$0xff] }
 0x3ad   : > { %v7811_v21 = vsel %vm3219_vm13, %v18441_v2, %v7809_v35  ;;  %v18443_v9 = vrot.slane %v18442_v34, 2  ;;  %v18444_v53 = vld [vmem:[#allocation123_spill] sm:$0xff]  ;;  %v7763_v37 = vunpack.c.l.b16 %v7700_v62  ;;  %v11663_v35 = vld [vmem:[%s17462_s3 + $0x314] ss:$8 sps:$4 sm:$0xff]   ;;  %v7847_v62 = vsel %vm3213_vm10, %v7846_v29, %v7845_v63  ;;  %7523 = vmatpush1.bf16.msra.mxu1 %v11658_v4 }
 0x3ae   : > { %v18445_v25 = vrot.slane %v18444_v53, 2  ;;  %v7848_v58 = vrot.slane %v18419_v28, 5  ;;  %v18451_v53 = vld [vmem:[#allocation138_spill] sm:$0xff]  ;;  %v18452_v34 = vld [vmem:[#allocation139_spill] sm:$0xff]  ;;  %v7872_v10 = vrot.slane %v18422_v46, 7  ;;  %7524 = vmatprep.subr.bf16.mxu1 %v11663_v35 }
 0x3af   : > { %v7785_v0 = vsel %vm3221_vm14, %v18443_v9, %v7783_v33  ;;  %v18449_v33 = vrot.slane %v18448_v22, 1  ;;  %v7852_v6 = vrot.slane %v18451_v53, 3  ;;  %v7854_v24 = vrot.slane %v18452_v34, 2  ;;  %v18453_v63 = vld [vmem:[#allocation143_spill] sm:$0xff] }
 0x3b0   : > { %v7813_v13 = vsel %vm3221_vm14, %v18445_v25, %v7811_v21  ;;  %v7787_v20 = vsel %vm3223_vm15, %v18447_v47, %v7785_v0  ;;  %v7765_v21 = vunpack.c.l.b16 %v7702_v31  ;;  %v7850_v25 = vrot.slane %v18450_v7, 4  ;;  %v11661_v31 = vld [vmem:[%s17462_s3 + $0x310] ss:$8 sps:$4 sm:$0xff]   ;;  %v18459_v46 = vld [vmem:[#allocation23_spill] sm:$0xff] }
 0x3b1   : > { %v7815_v2 = vsel %vm3223_vm15, %v18449_v33, %v7813_v13  ;;  %v7856_v39 = vrot.slane %v7763_v37, 1  ;;  %v7874_v0 = vrot.slane %v18423_v36, 6  ;;  %v7849_v29 = vsel %vm3215_vm11, %v7848_v58, %v7847_v62  ;;  %v11666_v37 = vld [vmem:[%s17462_s3 + $0x304] ss:$8 sps:$4 sm:$0xff]   ;;  %7525 = vmatpush1.bf16.msra.mxu1 %v11661_v31 }
 0x3b2   : > { %v7998_v9 = vpack.c.b16 %v7815_v2, %v7787_v20  ;;  %v7876_v13 = vrot.slane %v18425_v44, 5  ;;  %v7878_v47 = vrot.slane %v18453_v63, 4  ;;  %v18454_v20 = vld [vmem:[#allocation146_spill] sm:$0xff]  ;;  %v7851_v4 = vsel %vm3217_vm12, %v7850_v25, %v7849_v29  ;;  %v18455_v2 = vld [vmem:[#allocation147_spill] sm:$0xff]  ;;  %v18457_v44 = vld [vmem:[#allocation20_spill] sm:$0xff]  ;;  %7526 = vmatprep.subr.bf16.mxu1 %v11666_v37 }
 0x3b3   : > { %v7880_v22 = vrot.slane %v18454_v20, 3  ;;  %v7873_v33 = vsel %vm3211_vm9, %v7872_v10, %v18421_v54  ;;  %v7884_v36 = vrot.slane %v7765_v21, 1  ;;  %v7853_v62 = vsel %vm3219_vm13, %v7852_v6, %v7851_v4  ;;  %v18456_v63 = vld [vmem:[#allocation130_spill] sm:$0xff]  ;;  %v18461_v54 = vld [vmem:[#allocation25_spill] sm:$0xff]  ;;  %v11664_v6 = vld [vmem:[%s17462_s3 + $0x300] ss:$8 sps:$4 sm:$0xff]  }
 0x3b4   : > { %8205 = vmatmul.mubr.bf16.vlgmr.msra.gmra.mxu0 %v7998_v9  ;;  %v7882_v9 = vrot.slane %v18455_v2, 2  ;;  %v7875_v58 = vsel %vm3213_vm10, %v7874_v0, %v7873_v33  ;;  %v18458_v20 = vrot.slane %v18457_v44, 6  ;;  %v5888_v34 = vrot.slane %v18459_v46, 5  ;;  %v18460_v29 = vld [vmem:[#allocation22_spill] sm:$0xff]  ;;  %v18463_v4 = vld [vmem:[#allocation128_spill] sm:$0xff] }
 0x3b5   : > { %v7855_v53 = vsel %vm3221_vm14, %v7854_v24, %v7853_v62  ;;  %v7877_v25 = vsel %vm3215_vm11, %v7876_v13, %v7875_v58  ;;  %v5890_v10 = vrot.slane %v18460_v29, 4  ;;  %v5892_v2 = vrot.slane %v18461_v54, 3  ;;  %v11669_v24 = vld [vmem:[%s17462_s3 + $0x2f4] ss:$8 sps:$4 sm:$0xff]   ;;  %v18465_v58 = vld [vmem:[#allocation31_spill] sm:$0xff]  ;;  %v18467_v37 = vld [vmem:[#allocation32_spill] sm:$0xff]  ;;  %7527 = vmatpush1.bf16.msra.mxu1 %v11664_v6 }
 0x3b6   : > { %v5887_v35 = vsel %vm3213_vm10, %v18458_v20, %v18456_v63  ;;  %v7857_v21 = vsel %vm3223_vm15, %v7856_v39, %v7855_v53  ;;  %v7879_v44 = vsel %vm3217_vm12, %v7878_v47, %v7877_v25  ;;  %v18462_v63 = vld [vmem:[#allocation34_spill] sm:$0xff]  ;;  %v5896_v33 = vrot.slane %v18463_v4, 1  ;;  %v18464_v62 = vld [vmem:[#allocation133_spill] sm:$0xff]  ;;  %7528 = vmatprep.subr.bf16.mxu1 %v11669_v24 }
 0x3b7   : > { %v5889_v0 = vsel %vm3215_vm11, %v5888_v34, %v5887_v35  ;;  %v5894_v20 = vrot.slane %v18462_v63, 2  ;;  %v7881_v13 = vsel %vm3219_vm13, %v7880_v22, %v7879_v44  ;;  %v18466_v39 = vrot.slane %v18465_v58, 6  ;;  %v18468_v25 = vld [vmem:[#allocation37_spill] sm:$0xff] }
 0x3b8   : > { %v5891_v31 = vsel %vm3217_vm12, %v5890_v10, %v5889_v0  ;;  %v7883_v34 = vsel %vm3221_vm14, %v7882_v9, %v7881_v13  ;;  %v5916_v35 = vrot.slane %v18467_v37, 5  ;;  %v5918_v46 = vrot.slane %v18468_v25, 4  ;;  %v18469_v10 = vld [vmem:[#allocation39_spill] sm:$0xff]  ;;  %v18470_v0 = vld [vmem:[#allocation38_spill] sm:$0xff]  ;;  %v18475_v37 = vld [vmem:[#allocation64_spill] sm:$0xff] }
 0x3b9   : > { %v5915_v53 = vsel %vm3213_vm10, %v18466_v39, %v18464_v62  ;;  %v5893_v47 = vsel %vm3219_vm13, %v5892_v2, %v5891_v31  ;;  %v7885_v7 = vsel %vm3223_vm15, %v7884_v36, %v7883_v34  ;;  %v5920_v44 = vrot.slane %v18469_v10, 3  ;;  %v11667_v62 = vld [vmem:[%s17462_s3 + $0x2f0] ss:$8 sps:$4 sm:$0xff]   ;;  %v18471_v31 = vld [vmem:[#allocation140_spill] sm:$0xff] }
 0x3ba   : > { %v5895_v22 = vsel %vm3221_vm14, %v5894_v20, %v5893_v47  ;;  %v5922_v28 = vrot.slane %v18470_v0, 2  ;;  %v8001_v9 = vpack.c.b16 %v7885_v7, %v7857_v21  ;;  %v5917_v13 = vsel %vm3215_vm11, %v5916_v35, %v5915_v53  ;;  %v11672_v36 = vld [vmem:[%s17462_s3 + $0x2e4] ss:$8 sps:$4 sm:$0xff]   ;;  %7529 = vmatpush1.bf16.msra.mxu1 %v11667_v62 }
 0x3bb   : > { %v5897_v2 = vsel %vm3223_vm15, %v5896_v33, %v5895_v22  ;;  %v5924_v58 = vrot.slane %v18471_v31, 1  ;;  %v5919_v20 = vsel %vm3217_vm12, %v5918_v46, %v5917_v13  ;;  %v18472_v39 = vld [vmem:[#allocation112_spill] sm:$0xff]  ;;  %v5960_v34 = vrot.slane %v14702_v43, 4  ;;  %v18473_v33 = vld [vmem:[#allocation46_spill] sm:$0xff]  ;;  %v18474_v53 = vld [vmem:[#allocation55_spill] sm:$0xff]  ;;  %7530 = vmatprep.subr.bf16.mxu1 %v11672_v36 }
 0x3bc   : > { %v5958_v6 = vrot.slane %v18472_v39, 5  ;;  %v5962_v47 = vrot.slane %v14709_v18, 3  ;;  %10947 = vmatprep.mubr.msk.bf16.mxu0 %vm1024_vm7, %v8001_v9  ;;  %v5921_v7 = vsel %vm3219_vm13, %v5920_v44, %v5919_v20  ;;  %v5964_v21 = vrot.slane %v14713_v23, 2  ;;  %v18476_v20 = vld [vmem:[#allocation150_spill] sm:$0xff] }
 0x3bd   : > { %v5966_v24 = vrot.slane %v18473_v33, 1  ;;  %v5986_v35 = vrot.slane %v18474_v53, 5  ;;  %v5923_v22 = vsel %vm3221_vm14, %v5922_v28, %v5921_v7  ;;  %v5988_v13 = vrot.slane %v14878_v51, 4  ;;  %v11670_v28 = vld [vmem:[%s17462_s3 + $0x2e0] ss:$8 sps:$4 sm:$0xff]  }
 0x3be   : > { %v5959_v46 = vsel %vm3215_vm11, %v5958_v6, %v18475_v37  ;;  %v5990_v39 = vrot.slane %v14885_v14, 3  ;;  %v5925_v9 = vsel %vm3223_vm15, %v5924_v58, %v5923_v22  ;;  %v5994_v62 = vrot.slane %v14896_v61, 1  ;;  %v11675_v58 = vld [vmem:[%s17462_s3 + $0x2d4] ss:$8 sps:$4 sm:$0xff]   ;;  %v18477_v22 = vld [vmem:[#allocation136_spill] sm:$0xff]  ;;  %7531 = vmatpush1.bf16.msra.mxu1 %v11670_v28  ;;  %v18483_v28 = vld [vmem:[#allocation27_spill] sm:$0xff] }
 0x3bf   : > { %v5961_v44 = vsel %vm3217_vm12, %v5960_v34, %v5959_v46  ;;  %v5987_v12 = vsel %vm3215_vm11, %v5986_v35, %v18476_v20  ;;  %v6054_v37 = vpack.c.b16 %v5925_v9, %v5897_v2  ;;  %v7045_v46 = vpack.c.bf16 %v18477_v22, %v18477_v22  ;;  %v18478_v20 = vld [vmem:[#allocation145_spill] sm:$0xff]  ;;  %7532 = vmatprep.subr.bf16.mxu1 %v11675_v58 }
 0x3c0   : > { %v5963_v6 = vsel %vm3219_vm13, %v5962_v47, %v5961_v44  ;;  %v5989_v7 = vsel %vm3217_vm12, %v5988_v13, %v5987_v12  ;;  %v7047_v2 = vpack.c.bf16 %v18478_v20, %v18478_v20  ;;  %v18479_v47 = vld [vmem:[#allocation6_spill] sm:$0xff]  ;;  %v18480_v13 = vmax.f32 %v18430_v48, 0.0 }
 0x3c1   : > { %v5965_v34 = vsel %vm3221_vm14, %v5964_v21, %v5963_v6  ;;  %v5991_v35 = vsel %vm3219_vm13, %v5990_v39, %v5989_v7  ;;  %6269 = vmatmul.mubr.bf16.gmra.mxu1 %v6054_v37  ;;  %v18481_v21 = vmax.f32 %v18432_v30, 0.0  ;;  %v15878_v6 = vunpack.c.l.b16 %v7045_v46  ;;  %v11678_v30 = vld [vmem:[%s17462_s3 + $0x3b4] ss:$8 sps:$4 sm:$0xff]  }
 0x3c2   : > { %v5967_v36 = vsel %vm3223_vm15, %v5966_v24, %v5965_v34  ;;  %v5993_v12 = vsel %vm3221_vm14, %v5992_v45, %v5991_v35  ;;  %v7634_v9 = vrot.slane %v18480_v13, %v18479_v47  ;;  %v15880_v7 = vunpack.c.l.b16 %v7047_v2  ;;  %v11673_v45 = vld [vmem:[%s17462_s3 + $0x2d0] ss:$8 sps:$4 sm:$0xff]  }
 0x3c3   : > { %v7642_v44 = vrot.slane %v18481_v21, %v18479_v47  ;;  %v5995_v39 = vsel %vm3223_vm15, %v5994_v62, %v5993_v12  ;;  %18482 = vst [vmem:[#allocation43_spill] sm:$0xff] %v15878_v6  ;;  %v7830_v37 = vrot.slane %v18461_v54, 7  ;;  %v7832_v35 = vrot.slane %v18462_v63, 6  ;;  %v18484_v20 = vld [vmem:[#allocation30_spill] sm:$0xff]  ;;  %7533 = vmatpush1.bf16.msra.mxu1 %v11673_v45 }
 0x3c4   : > { %v6057_v24 = vpack.c.b16 %v5995_v39, %v5967_v36  ;;  %v7699_v48 = vpack.c.bf16 %v7634_v9, %v7634_v9  ;;  %v7834_v22 = vrot.slane %v18463_v4, 5  ;;  %v7836_v46 = vrot.slane %v18483_v28, 4  ;;  %7536 = vmatprep.subr.bf16.mxu1 %v11678_v30 }
 0x3c5   : > { %v7701_v34 = vpack.c.bf16 %v7642_v44, %v7642_v44  ;;  %v7831_v62 = vsel %vm3211_vm9, %v7830_v37, %v18460_v29  ;;  %v7838_v2 = vrot.slane %v18484_v20, 3  ;;  %v7840_v58 = vrot.slane %v15878_v6, 2  ;;  %v11676_v37 = vld [vmem:[%s17462_s3 + $0x3b0] ss:$8 sps:$4 sm:$0xff]  }
 0x3c6   : > { %10756 = vmatprep.mubr.msk.bf16.mxu1 %vm1024_vm7, %v6057_v24  ;;  %v7762_v36 = vunpack.c.l.b16 %v7699_v48  ;;  %v7833_v13 = vsel %vm3213_vm10, %v7832_v35, %v7831_v62  ;;  %v7858_v21 = vrot.slane %v18469_v10, 7  ;;  %v7860_v44 = vrot.slane %v18470_v0, 6  ;;  %v18486_v62 = vld [vmem:[#allocation131_spill] sm:$0xff] }
 0x3c7   : > { %v7764_v12 = vunpack.c.l.b16 %v7701_v34  ;;  %v7835_v9 = vsel %vm3215_vm11, %v7834_v22, %v7833_v13  ;;  %v7862_v39 = vrot.slane %v18471_v31, 5  ;;  %v18485_v34 = vld [vmem:[#allocation142_spill] sm:$0xff]  ;;  %v7866_v53 = vrot.slane %v18486_v62, 3  ;;  %v11681_v22 = vld [vmem:[%s17462_s3 + $0x3a4] ss:$8 sps:$4 sm:$0xff]   ;;  %7537 = vmatpush2.bf16.msra.mxu1 %v11676_v37 }
 0x3c8   : > { %v7837_v24 = vsel %vm3217_vm12, %v7836_v46, %v7835_v9  ;;  %v7842_v48 = vrot.slane %v7762_v36, 1  ;;  %v7864_v35 = vrot.slane %v18485_v34, 4  ;;  %v7859_v45 = vsel %vm3211_vm9, %v7858_v21, %v18468_v25  ;;  %v18487_v9 = vld [vmem:[#allocation50_spill] sm:$0xff]  ;;  %v18489_v34 = vld [vmem:[#allocation59_spill] sm:$0xff]  ;;  %7538 = vmatprep.subr.bf16.mxu1 %v11681_v22 }
 0x3c9   : > { %v7839_v13 = vsel %vm3219_vm13, %v7838_v2, %v7837_v24  ;;  %v7868_v31 = vrot.slane %v15880_v7, 2  ;;  %v7870_v0 = vrot.slane %v7764_v12, 1  ;;  %v7861_v36 = vsel %vm3213_vm10, %v7860_v44, %v7859_v45 }
 0x3ca   : > { %v7841_v46 = vsel %vm3221_vm14, %v7840_v58, %v7839_v13  ;;  %v18488_v62 = vmax.f32 %v18487_v9, 0.0  ;;  %v18490_v10 = vmax.f32 %v18489_v34, 0.0  ;;  %v7863_v24 = vsel %vm3215_vm11, %v7862_v39, %v7861_v36  ;;  %v11679_v58 = vld [vmem:[%s17462_s3 + $0x3a0] ss:$8 sps:$4 sm:$0xff]  }
 0x3cb   : > { %v7843_v2 = vsel %vm3223_vm15, %v7842_v48, %v7841_v46  ;;  %v7900_v21 = vrot.slane %v14709_v18, 7  ;;  %v7902_v12 = vrot.slane %v14713_v23, 6  ;;  %v7865_v44 = vsel %vm3217_vm12, %v7864_v35, %v7863_v24  ;;  %v18491_v48 = vld [vmem:[#allocation56_spill] sm:$0xff]  ;;  %v18492_v23 = vld [vmem:[#allocation57_spill] sm:$0xff]  ;;  %7539 = vmatpush2.bf16.msra.mxu1 %v11679_v58 }
 0x3cc   : > { %v7654_v30 = vrot.slane %v18488_v62, %v18393_v55  ;;  %v7662_v6 = vrot.slane %v18490_v10, %v18393_v55  ;;  %v7904_v45 = vrot.slane %v18473_v33, 5  ;;  %v11684_v10 = vld [vmem:[%s17462_s3 + $0x394] ss:$8 sps:$4 sm:$0xff]   ;;  %v7867_v39 = vsel %vm3219_vm13, %v7866_v53, %v7865_v44 }
 0x3cd   : > { %v7901_v37 = vsel %vm3211_vm9, %v7900_v21, %v14702_v43  ;;  %v7906_v46 = vrot.slane %v18491_v48, 4  ;;  %v7908_v36 = vrot.slane %v18350_v1, 3  ;;  %v7869_v35 = vsel %vm3221_vm14, %v7868_v31, %v7867_v39  ;;  %v11682_v21 = vld [vmem:[%s17462_s3 + $0x390] ss:$8 sps:$4 sm:$0xff]   ;;  %7540 = vmatprep.subr.bf16.mxu1 %v11684_v10 }
 0x3ce   : > { %v7704_v62 = vpack.c.bf16 %v7654_v30, %v7654_v30  ;;  %v7706_v13 = vpack.c.bf16 %v7662_v6, %v7662_v6  ;;  %v7903_v24 = vsel %vm3213_vm10, %v7902_v12, %v7901_v37  ;;  %v7871_v22 = vsel %vm3223_vm15, %v7870_v0, %v7869_v35  ;;  %v11687_v0 = vld [vmem:[%s17462_s3 + $0x384] ss:$8 sps:$4 sm:$0xff]  }
 0x3cf   : > { %v7905_v33 = vsel %vm3215_vm11, %v7904_v45, %v7903_v24  ;;  %v7910_v18 = vrot.slane %v18492_v23, 2  ;;  %v7928_v53 = vrot.slane %v14885_v14, 7  ;;  %v8000_v44 = vpack.c.b16 %v7871_v22, %v7843_v2  ;;  %v18493_v37 = vld [vmem:[#allocation159_spill] sm:$0xff]  ;;  %7541 = vmatpush2.bf16.msra.mxu1 %v11682_v21  ;;  %v18513_v14 = vld [vmem:[#allocation149_spill] sm:$0xff] }
 0x3d0   : > { %v7767_v30 = vunpack.c.l.b16 %v7704_v62  ;;  %v7769_v6 = vunpack.c.l.b16 %v7706_v13  ;;  %v7907_v31 = vsel %vm3217_vm12, %v7906_v46, %v7905_v33  ;;  %v7930_v13 = vrot.slane %v14892_v59, 6  ;;  %v18494_v24 = vld [vmem:[#allocation47_spill] sm:$0xff]  ;;  %7542 = vmatprep.subr.bf16.mxu1 %v11687_v0 }
 0x3d1   : > { %v7909_v12 = vsel %vm3219_vm13, %v7908_v36, %v7907_v31  ;;  %v7929_v58 = vsel %vm3211_vm9, %v7928_v53, %v14878_v51  ;;  %v7932_v45 = vrot.slane %v14896_v61, 5  ;;  %v7934_v39 = vrot.slane %v14903_v41, 4  ;;  %8215 = vmatmul.mubr.bf16.gmra.mxu0 %v8000_v44 }
 0x3d2   : > { %v7912_v62 = vrot.slane %v7767_v30, 1  ;;  %v7911_v33 = vsel %vm3221_vm14, %v7910_v18, %v7909_v12  ;;  %v7931_v2 = vsel %vm3213_vm10, %v7930_v13, %v7929_v58  ;;  %v7936_v10 = vrot.slane %v18352_v19, 3  ;;  %v11685_v18 = vld [vmem:[%s17462_s3 + $0x380] ss:$8 sps:$4 sm:$0xff]   ;;  %v18505_v19 = vld [vmem:[#allocation70_spill] sm:$0xff] }
 0x3d3   : > { %v7938_v46 = vrot.slane %v18493_v37, 2  ;;  %v7933_v36 = vsel %vm3215_vm11, %v7932_v45, %v7931_v2  ;;  %v7940_v30 = vrot.slane %v7769_v6, 1  ;;  %v18495_v22 = vrot.slane %v18332_v15, 6  ;;  %v11690_v15 = vld [vmem:[%s17462_s3 + $0x374] ss:$8 sps:$4 sm:$0xff]   ;;  %v18496_v58 = vld [vmem:[#allocation148_spill] sm:$0xff]  ;;  %7543 = vmatpush2.bf16.msra.mxu1 %v11685_v18 }
 0x3d4   : > { %v7913_v35 = vsel %vm3223_vm15, %v7912_v62, %v7911_v33  ;;  %v7935_v44 = vsel %vm3217_vm12, %v7934_v39, %v7933_v36  ;;  %v5944_v31 = vrot.slane %v18334_v56, 5  ;;  %v5946_v13 = vrot.slane %v18335_v3, 4  ;;  %v18499_v56 = vld [vmem:[#allocation63_spill] sm:$0xff]  ;;  %7544 = vmatprep.subr.bf16.mxu1 %v11690_v15 }
 0x3d5   : > { %v5943_v53 = vsel %vm3213_vm10, %v18495_v22, %v18494_v24  ;;  %v5948_v62 = vrot.slane %v18336_v26, 3  ;;  %v7937_v6 = vsel %vm3219_vm13, %v7936_v10, %v7935_v44  ;;  %v5950_v21 = vrot.slane %v18337_v42, 2  ;;  %v18498_v22 = vld [vmem:[#allocation58_spill] sm:$0xff] }
 0x3d6   : > { %v5952_v12 = vrot.slane %v18338_v16, 1  ;;  %v18497_v45 = vrot.slane %v18341_v17, 6  ;;  %v7939_v33 = vsel %vm3221_vm14, %v7938_v46, %v7937_v6  ;;  %v5945_v2 = vsel %vm3215_vm11, %v5944_v31, %v5943_v53  ;;  %v11688_v17 = vld [vmem:[%s17462_s3 + $0x370] ss:$8 sps:$4 sm:$0xff]   ;;  %v18500_v6 = vld [vmem:[#allocation80_spill] sm:$0xff] }
 0x3d7   : > { %v5972_v0 = vrot.slane %v18343_v27, 5  ;;  %v5974_v36 = vrot.slane %v18344_v8, 4  ;;  %v7941_v24 = vsel %vm3223_vm15, %v7940_v30, %v7939_v33  ;;  %v5947_v10 = vsel %vm3217_vm12, %v5946_v13, %v5945_v2  ;;  %v11693_v30 = vld [vmem:[%s17462_s3 + $0x364] ss:$8 sps:$4 sm:$0xff]   ;;  %7545 = vmatpush2.bf16.msra.mxu1 %v11688_v17  ;;  %v18511_v17 = vld [vmem:[#allocation90_spill] sm:$0xff] }
 0x3d8   : > { %v5971_v39 = vsel %vm3213_vm10, %v18497_v45, %v18496_v58  ;;  %v5976_v44 = vrot.slane %v18498_v22, 3  ;;  %v5978_v37 = vrot.slane %v18499_v56, 2  ;;  %v8003_v46 = vpack.c.b16 %v7941_v24, %v7913_v35  ;;  %v18501_v45 = vld [vmem:[#allocation134_spill] sm:$0xff]  ;;  %v18502_v2 = vld [vmem:[#allocation144_spill] sm:$0xff]  ;;  %7546 = vmatprep.subr.bf16.mxu1 %v11693_v30 }
 0x3d9   : > { %v5949_v53 = vsel %vm3219_vm13, %v5948_v62, %v5947_v10  ;;  %v5973_v31 = vsel %vm3215_vm11, %v5972_v0, %v5971_v39  ;;  %v5980_v58 = vrot.slane %v18500_v6, 1  ;;  %v6014_v33 = vrot.slane %v18501_v45, 5  ;;  %v18503_v39 = vld [vmem:[#allocation66_spill] sm:$0xff]  ;;  %v18504_v0 = vld [vmem:[#allocation68_spill] sm:$0xff] }
 0x3da   : > { %v5951_v13 = vsel %vm3221_vm14, %v5950_v21, %v5949_v53  ;;  %v5975_v18 = vsel %vm3217_vm12, %v5974_v36, %v5973_v31  ;;  %v6016_v27 = vrot.slane %v18502_v2, 4  ;;  %10948 = vmatprep.mubr.msk.bf16.mxu0 %vm1024_vm7, %v8003_v46  ;;  %v6018_v15 = vrot.slane %v18503_v39, 3  ;;  %v18506_v36 = vld [vmem:[#allocation67_spill] sm:$0xff] }
 0x3db   : > { %v5953_v35 = vsel %vm3223_vm15, %v5952_v12, %v5951_v13  ;;  %v5977_v62 = vsel %vm3219_vm13, %v5976_v44, %v5975_v18  ;;  %v6020_v24 = vrot.slane %v18504_v0, 2  ;;  %v6015_v21 = vsel %vm3215_vm11, %v6014_v33, %v18505_v19  ;;  %v18507_v31 = vld [vmem:[#allocation79_spill] sm:$0xff]  ;;  %v18508_v13 = vld [vmem:[#allocation84_spill] sm:$0xff]  ;;  %v18510_v33 = vld [vmem:[#allocation161_spill] sm:$0xff] }
 0x3dc   : > { %v5979_v10 = vsel %vm3221_vm14, %v5978_v37, %v5977_v62  ;;  %v6022_v53 = vrot.slane %v18506_v36, 1  ;;  %v6042_v45 = vrot.slane %v18507_v31, 5  ;;  %v6017_v12 = vsel %vm3217_vm12, %v6016_v27, %v6015_v21  ;;  %v18509_v18 = vld [vmem:[#allocation87_spill] sm:$0xff]  ;;  %v11696_v27 = vld [vmem:[%s17462_s3 + $0x354] ss:$8 sps:$4 sm:$0xff]  }
 0x3dd   : > { %v5981_v46 = vsel %vm3223_vm15, %v5980_v58, %v5979_v10  ;;  %v6044_v44 = vrot.slane %v18508_v13, 4  ;;  %v6046_v41 = vrot.slane %v18509_v18, 3  ;;  %v11691_v37 = vld [vmem:[%s17462_s3 + $0x360] ss:$8 sps:$4 sm:$0xff]   ;;  %v6019_v19 = vsel %vm3219_vm13, %v6018_v15, %v6017_v12  ;;  %v18512_v21 = vld [vmem:[#allocation165_spill] sm:$0xff] }
 0x3de   : > { %v6056_v62 = vpack.c.b16 %v5981_v46, %v5953_v35  ;;  %v6043_v31 = vsel %vm3215_vm11, %v6042_v45, %v18510_v33  ;;  %v6048_v61 = vrot.slane %v18511_v17, 2  ;;  %v6021_v58 = vsel %vm3221_vm14, %v6020_v24, %v6019_v19  ;;  %v18514_v15 = vld [vmem:[#allocation157_spill] sm:$0xff]  ;;  %7547 = vmatpush2.bf16.msra.mxu1 %v11691_v37 }
 0x3df   : > { %v6045_v10 = vsel %vm3217_vm12, %v6044_v44, %v6043_v31  ;;  %v6050_v59 = vrot.slane %v18512_v21, 1  ;;  %v7049_v30 = vpack.c.bf16 %v18513_v14, %v18513_v14  ;;  %v6023_v35 = vsel %vm3223_vm15, %v6022_v53, %v6021_v58  ;;  %7548 = vmatprep.subr.bf16.mxu1 %v11696_v27 }
 0x3e0   : > { %6279 = vmatmul.mubr.bf16.gmra.mxu1 %v6056_v62  ;;  %v6047_v45 = vsel %vm3219_vm13, %v6046_v41, %v6045_v10  ;;  %v7051_v46 = vpack.c.bf16 %v18514_v15, %v18514_v15  ;;  %v18515_v12 = vmax.f32 %v18487_v9, 0.0  ;;  %v18516_v44 = vmax.f32 %v18489_v34, 0.0  ;;  %v11694_v41 = vld [vmem:[%s17462_s3 + $0x350] ss:$8 sps:$4 sm:$0xff]  }
 0x3e1   : > { %v6049_v24 = vsel %vm3221_vm14, %v6048_v61, %v6047_v45  ;;  %v16044_v31 = vunpack.c.l.b16 %v7049_v30  ;;  %v7886_v62 = vrot.slane %v18336_v26, 7  ;;  %v7888_v61 = vrot.slane %v18337_v42, 6  ;;  %v18518_v15 = vld [vmem:[#allocation54_spill] sm:$0xff] }
 0x3e2   : > { %v7650_v33 = vrot.slane %v18515_v12, %v18479_v47  ;;  %v7658_v14 = vrot.slane %v18516_v44, %v18479_v47  ;;  %v6051_v53 = vsel %vm3223_vm15, %v6050_v59, %v6049_v24  ;;  %v16054_v19 = vunpack.c.l.b16 %v7051_v46  ;;  %v18519_v44 = vld [vmem:[#allocation10_spill] sm:$0xff]  ;;  %7549 = vmatpush2.bf16.msra.mxu1 %v11694_v41 }
 0x3e3   : > { %v6059_v58 = vpack.c.b16 %v6051_v53, %v6023_v35  ;;  %v7887_v34 = vsel %vm3211_vm9, %v7886_v62, %v18335_v3  ;;  %v7890_v30 = vrot.slane %v18338_v16, 5  ;;  %v7892_v12 = vrot.slane %v18518_v15, 4 }
 0x3e4   : > { %18517 = vst [vmem:[#allocation42_spill] sm:$0xff] %v16054_v19  ;;  %v7703_v9 = vpack.c.bf16 %v7650_v33, %v7650_v33  ;;  %v7705_v10 = vpack.c.bf16 %v7658_v14, %v7658_v14  ;;  %v7889_v45 = vsel %vm3213_vm10, %v7888_v61, %v7887_v34  ;;  %v7894_v59 = vrot.slane %v18519_v44, 3  ;;  %v18521_v34 = vld [vmem:[#allocation9_spill] sm:$0xff] }
 0x3e5   : > { %10757 = vmatprep.mubr.msk.bf16.mxu1 %vm1024_vm7, %v6059_v58  ;;  %v7891_v33 = vsel %vm3215_vm11, %v7890_v30, %v7889_v45  ;;  %v7896_v27 = vrot.slane %v16044_v31, 2  ;;  %v7914_v35 = vrot.slane %v18498_v22, 7  ;;  %v7916_v62 = vrot.slane %v18499_v56, 6  ;;  %v18520_v58 = vld [vmem:[#allocation154_spill] sm:$0xff] }
 0x3e6   : > { %v7766_v37 = vunpack.c.l.b16 %v7703_v9  ;;  %v7768_v46 = vunpack.c.l.b16 %v7705_v10  ;;  %v7893_v24 = vsel %vm3217_vm12, %v7892_v12, %v7891_v33  ;;  %v7918_v53 = vrot.slane %v18500_v6, 5 }
 0x3e7   : > { %v7895_v9 = vsel %vm3219_vm13, %v7894_v59, %v7893_v24  ;;  %v7915_v61 = vsel %vm3211_vm9, %v7914_v35, %v18344_v8  ;;  %v7920_v10 = vrot.slane %v18520_v58, 4  ;;  %v7922_v30 = vrot.slane %v18521_v34, 3  ;;  %v18522_v59 = vld [vmem:[#allocation81_spill] sm:$0xff] }
 0x3e8   : > { %v7898_v14 = vrot.slane %v7766_v37, 1  ;;  %v7897_v45 = vsel %vm3221_vm14, %v7896_v27, %v7895_v9  ;;  %v7917_v41 = vsel %vm3213_vm10, %v7916_v62, %v7915_v61  ;;  %v7924_v12 = vrot.slane %v16054_v19, 2  ;;  %v18524_v35 = vld [vmem:[#allocation85_spill] sm:$0xff]  ;;  %v18526_v61 = vld [vmem:[#allocation74_spill] sm:$0xff] }
 0x3e9   : > { %v7926_v37 = vrot.slane %v7768_v46, 1  ;;  %v7919_v6 = vsel %vm3215_vm11, %v7918_v53, %v7917_v41  ;;  %v18523_v24 = vmax.f32 %v18522_v59, 0.0  ;;  %v18525_v58 = vmax.f32 %v18524_v35, 0.0 }
 0x3ea   : > { %v7899_v33 = vsel %vm3223_vm15, %v7898_v14, %v7897_v45  ;;  %v7921_v34 = vsel %vm3217_vm12, %v7920_v10, %v7919_v6  ;;  %v7956_v27 = vrot.slane %v18503_v39, 7  ;;  %v7958_v62 = vrot.slane %v18504_v0, 6  ;;  %v18528_v6 = vld [vmem:[#allocation82_spill] sm:$0xff] }
 0x3eb   : > { %v7670_v56 = vrot.slane %v18523_v24, %v18393_v55  ;;  %v7678_v22 = vrot.slane %v18525_v58, %v18393_v55  ;;  %v7960_v46 = vrot.slane %v18506_v36, 5  ;;  %v7923_v14 = vsel %vm3219_vm13, %v7922_v30, %v7921_v34  ;;  %v18527_v58 = vld [vmem:[#allocation163_spill] sm:$0xff] }
 0x3ec   : > { %v7962_v45 = vrot.slane %v18526_v61, 4  ;;  %v7925_v41 = vsel %vm3221_vm14, %v7924_v12, %v7923_v14  ;;  %v7957_v24 = vsel %vm3211_vm9, %v7956_v27, %v18502_v2  ;;  %v7964_v55 = vrot.slane %v18527_v58, 3  ;;  %v18529_v58 = vld [vmem:[#allocation169_spill] sm:$0xff] }
 0x3ed   : > { %v7708_v9 = vpack.c.bf16 %v7670_v56, %v7670_v56  ;;  %v7710_v53 = vpack.c.bf16 %v7678_v22, %v7678_v22  ;;  %v7966_v10 = vrot.slane %v18528_v6, 2  ;;  %v7927_v39 = vsel %vm3223_vm15, %v7926_v37, %v7925_v41 }
 0x3ee   : > { %v7959_v36 = vsel %vm3213_vm10, %v7958_v62, %v7957_v24  ;;  %v8002_v34 = vpack.c.b16 %v7927_v39, %v7899_v33  ;;  %v7984_v22 = vrot.slane %v18509_v18, 7  ;;  %v7986_v30 = vrot.slane %v18511_v17, 6  ;;  %v18530_v39 = vld [vmem:[#allocation170_spill] sm:$0xff] }
 0x3ef   : > { %v7771_v0 = vunpack.c.l.b16 %v7708_v9  ;;  %v7773_v19 = vunpack.c.l.b16 %v7710_v53  ;;  %v7961_v56 = vsel %vm3215_vm11, %v7960_v46, %v7959_v36  ;;  %v7988_v14 = vrot.slane %v18512_v21, 5  ;;  %v18531_v36 = vld [vmem:[#allocation171_spill] sm:$0xff] }
 0x3f0   : > { %v7963_v12 = vsel %vm3217_vm12, %v7962_v45, %v7961_v56  ;;  %v7990_v6 = vrot.slane %v18529_v58, 4  ;;  %8225 = vmatmul.mubr.bf16.gmra.mxu0 %v8002_v34  ;;  %v7985_v62 = vsel %vm3211_vm9, %v7984_v22, %v18508_v13  ;;  %v7992_v33 = vrot.slane %v18530_v39, 3  ;;  %v18541_v39 = vld [vmem:[#allocation93_spill] sm:$0xff]  ;;  %v18553_v58 = vld [vmem:[#allocation15_spill] sm:$0xff] }
 0x3f1   : > { %v7968_v27 = vrot.slane %v7771_v0, 1  ;;  %v7965_v37 = vsel %vm3219_vm13, %v7964_v55, %v7963_v12  ;;  %v7994_v46 = vrot.slane %v18531_v36, 2  ;;  %v7987_v53 = vsel %vm3213_vm10, %v7986_v30, %v7985_v62  ;;  %v18532_v0 = vld [vmem:[#allocation71_spill] sm:$0xff]  ;;  %v18534_v62 = vld [vmem:[#allocation89_spill] sm:$0xff] }
 0x3f2   : > { %v7967_v9 = vsel %vm3221_vm14, %v7966_v10, %v7965_v37  ;;  %v7996_v45 = vrot.slane %v7773_v19, 1  ;;  %v18533_v41 = vrot.slane %v15171_v57, 6  ;;  %v7989_v55 = vsel %vm3215_vm11, %v7988_v14, %v7987_v53 }
 0x3f3   : > { %v7969_v34 = vsel %vm3223_vm15, %v7968_v27, %v7967_v9  ;;  %v6000_v56 = vrot.slane %v15173_v38, 5  ;;  %v6002_v22 = vrot.slane %v15177_v50, 4  ;;  %v7991_v12 = vsel %vm3217_vm12, %v7990_v6, %v7989_v55  ;;  %v18537_v55 = vld [vmem:[#allocation86_spill] sm:$0xff] }
 0x3f4   : > { %v5999_v24 = vsel %vm3213_vm10, %v18533_v41, %v18532_v0  ;;  %v6004_v10 = vrot.slane %v15181_v52, 3  ;;  %v6006_v30 = vrot.slane %v15185_v11, 2  ;;  %v6008_v19 = vrot.slane %v18360_v60, 1  ;;  %v18536_v0 = vld [vmem:[#allocation83_spill] sm:$0xff] }
 0x3f5   : > { %v7993_v57 = vsel %vm3219_vm13, %v7992_v33, %v7991_v12  ;;  %v6001_v37 = vsel %vm3215_vm11, %v6000_v56, %v5999_v24  ;;  %v18535_v27 = vrot.slane %v18363_v40, 6  ;;  %v6028_v9 = vrot.slane %v18365_v32, 5  ;;  %v18538_v56 = vld [vmem:[#allocation88_spill] sm:$0xff]  ;;  %v18540_v32 = vld [vmem:[#allocation91_spill] sm:$0xff] }
 0x3f6   : > { %v7995_v53 = vsel %vm3221_vm14, %v7994_v46, %v7993_v57  ;;  %v6003_v6 = vsel %vm3217_vm12, %v6002_v22, %v6001_v37  ;;  %v6030_v41 = vrot.slane %v18536_v0, 4  ;;  %v6032_v38 = vrot.slane %v18537_v55, 3  ;;  %v18539_v46 = vld [vmem:[#allocation164_spill] sm:$0xff] }
 0x3f7   : > { %v6027_v14 = vsel %vm3213_vm10, %v18535_v27, %v18534_v62  ;;  %v7997_v36 = vsel %vm3223_vm15, %v7996_v45, %v7995_v53  ;;  %v6005_v33 = vsel %vm3219_vm13, %v6004_v10, %v6003_v6  ;;  %v6034_v40 = vrot.slane %v18538_v56, 2  ;;  %v18543_v53 = vld [vmem:[#allocation95_spill] sm:$0xff] }
 0x3f8   : > { %v6029_v24 = vsel %vm3215_vm11, %v6028_v9, %v6027_v14  ;;  %v8005_v12 = vpack.c.b16 %v7997_v36, %v7969_v34  ;;  %v6007_v62 = vsel %vm3221_vm14, %v6006_v30, %v6005_v33  ;;  %v6036_v57 = vrot.slane %v18539_v46, 1  ;;  %v18544_v34 = vld [vmem:[#allocation97_spill] sm:$0xff]  ;;  %v18545_v9 = vld [vmem:[#allocation99_spill] sm:$0xff] }
 0x3f9   : > { %v6031_v27 = vsel %vm3217_vm12, %v6030_v41, %v6029_v24  ;;  %v6009_v22 = vsel %vm3223_vm15, %v6008_v19, %v6007_v62  ;;  %v18542_v45 = vrot.slane %v18541_v39, 7  ;;  %v7136_v14 = vrot.slane %v18543_v53, 6  ;;  %v18546_v41 = vld [vmem:[#allocation106_spill] sm:$0xff]  ;;  %v18548_v62 = vld [vmem:[#allocation116_spill] sm:$0xff] }
 0x3fa   : > { %v6033_v37 = vsel %vm3219_vm13, %v6032_v38, %v6031_v27  ;;  %10949 = vmatprep.mubr.msk.bf16.mxu0 %vm1024_vm7, %v8005_v12  ;;  %v7138_v30 = vrot.slane %v18544_v34, 5  ;;  %v7140_v6 = vrot.slane %v18545_v9, 4  ;;  %v7142_v33 = vrot.slane %v18546_v41, 3  ;;  %v18547_v24 = vld [vmem:[#allocation114_spill] sm:$0xff]  ;;  %v18549_v12 = vld [vmem:[#allocation108_spill] sm:$0xff] }
 0x3fb   : > { %v7135_v10 = vsel %vm3211_vm9, %v18542_v45, %v18540_v32  ;;  %v6035_v36 = vsel %vm3221_vm14, %v6034_v40, %v6033_v37  ;;  %v7144_v39 = vrot.slane %v18547_v24, 2  ;;  %v7146_v32 = vrot.slane %v18548_v62, 1  ;;  %v18550_v53 = vld [vmem:[#allocation14_spill] sm:$0xff]  ;;  %v18557_v62 = vld [vmem:[#allocation124_spill] sm:$0xff] }
 0x3fc   : > { %v6037_v19 = vsel %vm3223_vm15, %v6036_v57, %v6035_v36  ;;  %v7137_v38 = vsel %vm3213_vm10, %v7136_v14, %v7135_v10  ;;  %v18551_v40 = vrot.slane %v18550_v53, 7  ;;  %v18552_v34 = vld [vmem:[#allocation18_spill] sm:$0xff]  ;;  %v7166_v57 = vrot.slane %v18553_v58, 5  ;;  %v18555_v14 = vld [vmem:[#allocation120_spill] sm:$0xff] }
 0x3fd   : > { %v6058_v27 = vpack.c.b16 %v6037_v19, %v6009_v22  ;;  %v7139_v45 = vsel %vm3215_vm11, %v7138_v30, %v7137_v38  ;;  %v7164_v9 = vrot.slane %v18552_v34, 6  ;;  %v18554_v36 = vld [vmem:[#allocation118_spill] sm:$0xff]  ;;  %v7170_v24 = vrot.slane %v18555_v14, 3 }
 0x3fe   : > { %v7163_v37 = vsel %vm3211_vm9, %v18551_v40, %v18549_v12  ;;  %v7141_v41 = vsel %vm3217_vm12, %v7140_v6, %v7139_v45  ;;  %v7168_v10 = vrot.slane %v18554_v36, 4  ;;  %v18556_v19 = vld [vmem:[#allocation122_spill] sm:$0xff]  ;;  %v7174_v53 = vrot.slane %v18557_v62, 1  ;;  %v18558_v6 = vld [vmem:[#allocation160_spill] sm:$0xff]  ;;  %v18559_v45 = vld [vmem:[#allocation167_spill] sm:$0xff] }
 0x3ff   : > { %6289 = vmatmul.mubr.bf16.gmra.mxu1 %v6058_v27  ;;  %v7143_v22 = vsel %vm3219_vm13, %v7142_v33, %v7141_v41  ;;  %v7165_v30 = vsel %vm3213_vm10, %v7164_v9, %v7163_v37  ;;  %v7172_v38 = vrot.slane %v18556_v19, 2  ;;  %v7053_v58 = vpack.c.bf16 %v18558_v6, %v18558_v6 }
 0x400   : > { %v7145_v12 = vsel %vm3221_vm14, %v7144_v39, %v7143_v22  ;;  %v7167_v40 = vsel %vm3215_vm11, %v7166_v57, %v7165_v30  ;;  %v7055_v34 = vpack.c.bf16 %v18559_v45, %v18559_v45  ;;  %v18560_v37 = vmax.f32 %v18522_v59, 0.0 }
 0x401   : > { %v7147_v27 = vsel %vm3223_vm15, %v7146_v32, %v7145_v12  ;;  %v7169_v33 = vsel %vm3217_vm12, %v7168_v10, %v7167_v40  ;;  %v18561_v41 = vmax.f32 %v18524_v35, 0.0  ;;  %v16187_v36 = vunpack.c.l.b16 %v7053_v58 }
 0x402   : > { %v7666_v9 = vrot.slane %v18560_v37, %v18479_v47  ;;  %v7171_v57 = vsel %vm3219_vm13, %v7170_v24, %v7169_v33  ;;  %v16189_v14 = vunpack.c.l.b16 %v7055_v34  ;;  %v7942_v22 = vrot.slane %v15181_v52, 7  ;;  %v18563_v24 = vld [vmem:[#allocation76_spill] sm:$0xff]  ;;  %v18564_v34 = vld [vmem:[#allocation102_spill] sm:$0xff] }
 0x403   : > { %v7674_v39 = vrot.slane %v18561_v41, %v18479_v47  ;;  %v7173_v32 = vsel %vm3221_vm14, %v7172_v38, %v7171_v57  ;;  %v7944_v19 = vrot.slane %v15185_v11, 6  ;;  %v7946_v62 = vrot.slane %v18360_v60, 5 }
 0x404   : > { %18562 = vst [vmem:[#allocation53_spill] sm:$0xff] %v16189_v14  ;;  %v7707_v30 = vpack.c.bf16 %v7666_v9, %v7666_v9  ;;  %v7175_v59 = vsel %vm3223_vm15, %v7174_v53, %v7173_v32  ;;  %v7943_v35 = vsel %vm3211_vm9, %v7942_v22, %v15177_v50  ;;  %v7948_v12 = vrot.slane %v18563_v24, 4  ;;  %v18565_v32 = vld [vmem:[#allocation168_spill] sm:$0xff] }
 0x405   : > { %v7709_v10 = vpack.c.bf16 %v7674_v39, %v7674_v39  ;;  %v7345_v40 = vpack.c.b16 %v7175_v59, %v7147_v27  ;;  %v7945_v45 = vsel %vm3213_vm10, %v7944_v19, %v7943_v35  ;;  %v7950_v33 = vrot.slane %v18564_v34, 3 }
 0x406   : > { %v7770_v6 = vunpack.c.l.b16 %v7707_v30  ;;  %v7947_v38 = vsel %vm3215_vm11, %v7946_v62, %v7945_v45  ;;  %v7952_v37 = vrot.slane %v16187_v36, 2  ;;  %v7970_v53 = vrot.slane %v18537_v55, 7  ;;  %v18567_v45 = vld [vmem:[#allocation104_spill] sm:$0xff] }
 0x407   : > { %v7772_v58 = vunpack.c.l.b16 %v7709_v10  ;;  %10882 = vmatprep.mubr.msk.bf16.mxu1 %vm1024_vm7, %v7345_v40  ;;  %v7949_v9 = vsel %vm3217_vm12, %v7948_v12, %v7947_v38  ;;  %v7972_v39 = vrot.slane %v18538_v56, 6  ;;  %v7974_v27 = vrot.slane %v18539_v46, 5  ;;  %v18566_v10 = vld [vmem:[#allocation111_spill] sm:$0xff]  ;;  %v18568_v38 = vld [vmem:[#allocation94_spill] sm:$0xff] }
 0x408   : > { %v7954_v41 = vrot.slane %v7770_v6, 1  ;;  %v7951_v57 = vsel %vm3219_vm13, %v7950_v33, %v7949_v9  ;;  %v7971_v22 = vsel %vm3211_vm9, %v7970_v53, %v18536_v0  ;;  %v7976_v30 = vrot.slane %v18565_v32, 4  ;;  %v18570_v9 = vld [vmem:[#allocation96_spill] sm:$0xff]  ;;  %v18571_v32 = vld [vmem:[#allocation98_spill] sm:$0xff] }
 0x409   : > { %v7978_v19 = vrot.slane %v18566_v10, 3  ;;  %v7953_v59 = vsel %vm3221_vm14, %v7952_v37, %v7951_v57  ;;  %v7973_v35 = vsel %vm3213_vm10, %v7972_v39, %v7971_v22  ;;  %v7980_v62 = vrot.slane %v16189_v14, 2  ;;  %v18572_v57 = vld [vmem:[#allocation107_spill] sm:$0xff]  ;;  %v18573_v39 = vld [vmem:[#allocation16_spill] sm:$0xff]  ;;  %v18575_v14 = vld [vmem:[#allocation17_spill] sm:$0xff] }
 0x40a   : > { %v7982_v12 = vrot.slane %v7772_v58, 1  ;;  %v7955_v40 = vsel %vm3223_vm15, %v7954_v41, %v7953_v59  ;;  %v7975_v6 = vsel %vm3215_vm11, %v7974_v27, %v7973_v35  ;;  %v18569_v33 = vrot.slane %v18568_v38, 6  ;;  %v18576_v35 = vld [vmem:[#allocation13_spill] sm:$0xff] }
 0x40b   : > { %v7124_v47 = vrot.slane %v18570_v9, 5  ;;  %v7977_v10 = vsel %vm3217_vm12, %v7976_v30, %v7975_v6  ;;  %v7126_v37 = vrot.slane %v18571_v32, 4  ;;  %v18574_v22 = vrot.slane %v18573_v39, 7  ;;  %v18579_v39 = vld [vmem:[#allocation21_spill] sm:$0xff] }
 0x40c   : > { %v7123_v53 = vsel %vm3213_vm10, %v18569_v33, %v18567_v45  ;;  %v7152_v41 = vrot.slane %v18575_v14, 5  ;;  %v7979_v27 = vsel %vm3219_vm13, %v7978_v19, %v7977_v10  ;;  %v18577_v38 = vrot.slane %v18576_v35, 6  ;;  %v18578_v33 = vld [vmem:[#allocation33_spill] sm:$0xff] }
 0x40d   : > { %v7149_v58 = vsel %vm3211_vm9, %v18574_v22, %v18572_v57  ;;  %v7125_v59 = vsel %vm3215_vm11, %v7124_v47, %v7123_v53  ;;  %v7154_v9 = vrot.slane %v18578_v33, 4  ;;  %v7981_v30 = vsel %vm3221_vm14, %v7980_v62, %v7979_v27  ;;  %v18582_v22 = vld [vmem:[#allocation26_spill] sm:$0xff]  ;;  %v18583_v27 = vld [vmem:[#allocation113_spill] sm:$0xff] }
 0x40e   : > { %v7151_v45 = vsel %vm3213_vm10, %v18577_v38, %v7149_v58  ;;  %v7127_v32 = vsel %vm3217_vm12, %v7126_v37, %v7125_v59  ;;  %v18580_v57 = vrot.slane %v18415_v5, 7  ;;  %v7983_v10 = vsel %vm3223_vm15, %v7982_v12, %v7981_v30  ;;  %v18585_v59 = vld [vmem:[#allocation119_spill] sm:$0xff]  ;;  %v18590_v30 = vld [vmem:[#allocation121_spill] sm:$0xff] }
 0x40f   : > { %v7153_v6 = vsel %vm3215_vm11, %v7152_v41, %v7151_v45  ;;  %v18581_v47 = vrot.slane %v18434_v49, 3  ;;  %v7192_v58 = vrot.slane %v18582_v22, 6  ;;  %v8004_v62 = vpack.c.b16 %v7983_v10, %v7955_v40  ;;  %v18587_v38 = vld [vmem:[#allocation127_spill] sm:$0xff] }
 0x410   : > { %v7191_v14 = vsel %vm3211_vm9, %v18580_v57, %v18579_v39  ;;  %v7155_v53 = vsel %vm3217_vm12, %v7154_v9, %v7153_v6  ;;  %v18584_v37 = vrot.slane %v18583_v27, 2  ;;  %v18586_v35 = vrot.slane %v18585_v59, 3  ;;  %v18588_v12 = vld [vmem:[#allocation115_spill] sm:$0xff]  ;;  %v18592_v6 = vld [vmem:[#allocation129_spill] sm:$0xff]  ;;  %v18596_v27 = vld [vmem:[#allocation138_spill] sm:$0xff] }
 0x411   : > { %v7129_v19 = vsel %vm3219_vm13, %v18581_v47, %v7127_v32  ;;  %v7194_v45 = vrot.slane %v18587_v38, 5  ;;  %v18589_v33 = vrot.slane %v18588_v12, 1  ;;  %v18591_v32 = vrot.slane %v18590_v30, 2  ;;  %8235 = vmatmul.mubr.bf16.gmra.mxu0 %v8004_v62  ;;  %v18593_v57 = vld [vmem:[#allocation123_spill] sm:$0xff]  ;;  %v18598_v38 = vld [vmem:[#allocation48_spill] sm:$0xff] }
 0x412   : > { %v7131_v41 = vsel %vm3221_vm14, %v18584_v37, %v7129_v19  ;;  %v7157_v5 = vsel %vm3219_vm13, %v18586_v35, %v7155_v53  ;;  %v7193_v40 = vsel %vm3213_vm10, %v7192_v58, %v7191_v14  ;;  %v7196_v39 = vrot.slane %v18592_v6, 4  ;;  %v18595_v53 = vld [vmem:[#allocation28_spill] sm:$0xff]  ;;  %v18597_v35 = vld [vmem:[#allocation139_spill] sm:$0xff] }
 0x413   : > { %v7133_v49 = vsel %vm3223_vm15, %v18589_v33, %v7131_v41  ;;  %v7159_v9 = vsel %vm3221_vm14, %v18591_v32, %v7157_v5  ;;  %v18594_v10 = vrot.slane %v18593_v57, 1  ;;  %v7195_v19 = vsel %vm3215_vm11, %v7194_v45, %v7193_v40  ;;  %v18599_v14 = vld [vmem:[#allocation35_spill] sm:$0xff]  ;;  %v18601_v33 = vld [vmem:[#allocation40_spill] sm:$0xff]  ;;  %v18602_v32 = vld [vmem:[#allocation49_spill] sm:$0xff] }
 0x414   : > { %v7198_v22 = vrot.slane %v18595_v53, 3  ;;  %v7200_v37 = vrot.slane %v18596_v27, 2  ;;  %v7197_v59 = vsel %vm3217_vm12, %v7196_v39, %v7195_v19  ;;  %v7202_v5 = vrot.slane %v18597_v35, 1  ;;  %v18604_v6 = vld [vmem:[#allocation143_spill] sm:$0xff]  ;;  %v18605_v57 = vld [vmem:[#allocation146_spill] sm:$0xff] }
 0x415   : > { %v7161_v47 = vsel %vm3223_vm15, %v18594_v10, %v7159_v9  ;;  %v18600_v58 = vrot.slane %v18599_v14, 7  ;;  %v7220_v30 = vrot.slane %v18601_v33, 6  ;;  %v7222_v45 = vrot.slane %v18602_v32, 5  ;;  %v18603_v9 = vld [vmem:[#allocation141_spill] sm:$0xff] }
 0x416   : > { %v7344_v41 = vpack.c.b16 %v7161_v47, %v7133_v49  ;;  %v7199_v12 = vsel %vm3219_vm13, %v7198_v22, %v7197_v59  ;;  %v7224_v40 = vrot.slane %v18603_v9, 4  ;;  %v7226_v39 = vrot.slane %v18604_v6, 3  ;;  %v18606_v47 = vld [vmem:[#allocation147_spill] sm:$0xff] }
 0x417   : > { %v7219_v62 = vsel %vm3211_vm9, %v18600_v58, %v18598_v38  ;;  %v7201_v49 = vsel %vm3221_vm14, %v7200_v37, %v7199_v12  ;;  %v7228_v10 = vrot.slane %v18605_v57, 2  ;;  %v7230_v19 = vrot.slane %v18606_v47, 1  ;;  %v18607_v58 = vld [vmem:[#allocation23_spill] sm:$0xff]  ;;  %v18612_v57 = vld [vmem:[#allocation32_spill] sm:$0xff]  ;;  %v18613_v47 = vld [vmem:[#allocation142_spill] sm:$0xff] }
 0x418   : > { %7551 = vmatmul.mubr.bf16.vlgmr.msra.gmra.mxu1 %v7344_v41  ;;  %v7203_v53 = vsel %vm3223_vm15, %v7202_v5, %v7201_v49  ;;  %v7221_v27 = vsel %vm3213_vm10, %v7220_v30, %v7219_v62  ;;  %v7176_v22 = vrot.slane %v18460_v29, 7  ;;  %v7178_v59 = vrot.slane %v18461_v54, 6  ;;  %v18608_v62 = vld [vmem:[#allocation43_spill] sm:$0xff] }
 0x419   : > { %v7223_v35 = vsel %vm3215_vm11, %v7222_v45, %v7221_v27  ;;  %v7180_v41 = vrot.slane %v18462_v63, 5  ;;  %v7182_v37 = vrot.slane %v18463_v4, 4  ;;  %v7184_v38 = vrot.slane %v18483_v28, 3  ;;  %v18609_v63 = vld [vmem:[#allocation39_spill] sm:$0xff]  ;;  %v18610_v45 = vld [vmem:[#allocation38_spill] sm:$0xff] }
 0x41a   : > { %v7225_v14 = vsel %vm3217_vm12, %v7224_v40, %v7223_v35  ;;  %v7177_v12 = vsel %vm3211_vm9, %v7176_v22, %v18607_v58  ;;  %v7186_v5 = vrot.slane %v18484_v20, 2  ;;  %v7188_v33 = vrot.slane %v18608_v62, 1  ;;  %v18611_v40 = vld [vmem:[#allocation140_spill] sm:$0xff]  ;;  %v18617_v62 = vld [vmem:[#allocation41_spill] sm:$0xff] }
 0x41b   : > { %v7227_v29 = vsel %vm3219_vm13, %v7226_v39, %v7225_v14  ;;  %v7179_v54 = vsel %vm3213_vm10, %v7178_v59, %v7177_v12  ;;  %v7204_v30 = vrot.slane %v18468_v25, 7  ;;  %v7206_v32 = vrot.slane %v18609_v63, 6  ;;  %v18614_v59 = vld [vmem:[#allocation131_spill] sm:$0xff]  ;;  %v18615_v58 = vld [vmem:[#allocation112_spill] sm:$0xff]  ;;  %v18619_v63 = vld [vmem:[#allocation46_spill] sm:$0xff] }
 0x41c   : > { %v7229_v4 = vsel %vm3221_vm14, %v7228_v10, %v7227_v29  ;;  %v7181_v28 = vsel %vm3215_vm11, %v7180_v41, %v7179_v54  ;;  %v7208_v9 = vrot.slane %v18610_v45, 5  ;;  %v7210_v49 = vrot.slane %v18611_v40, 4  ;;  %v18618_v54 = vld [vmem:[#allocation44_spill] sm:$0xff]  ;;  %v18620_v45 = vld [vmem:[#allocation55_spill] sm:$0xff] }
 0x41d   : > { %v7231_v20 = vsel %vm3223_vm15, %v7230_v19, %v7229_v4  ;;  %v7183_v6 = vsel %vm3217_vm12, %v7182_v37, %v7181_v28  ;;  %v7205_v39 = vsel %vm3211_vm9, %v7204_v30, %v18612_v57  ;;  %v7212_v27 = vrot.slane %v18613_v47, 3 }
 0x41e   : > { %v7347_v25 = vpack.c.b16 %v7231_v20, %v7203_v53  ;;  %v7185_v22 = vsel %vm3219_vm13, %v7184_v38, %v7183_v6  ;;  %v7207_v10 = vsel %vm3213_vm10, %v7206_v32, %v7205_v39  ;;  %v7214_v35 = vrot.slane %v18614_v59, 2  ;;  %v18622_v6 = vld [vmem:[#allocation62_spill] sm:$0xff] }
 0x41f   : > { %v7187_v41 = vsel %vm3221_vm14, %v7186_v5, %v7185_v22  ;;  %v7209_v14 = vsel %vm3215_vm11, %v7208_v9, %v7207_v10  ;;  %v7216_v19 = vrot.slane %v15880_v7, 1  ;;  %v18616_v37 = vrot.slane %v14702_v43, 7  ;;  %v18625_v22 = vld [vmem:[#allocation155_spill] sm:$0xff]  ;;  %v18626_v59 = vld [vmem:[#allocation158_spill] sm:$0xff] }
 0x420   : > { %10883 = vmatprep.mubr.msk.bf16.mxu1 %vm1024_vm7, %v7347_v25  ;;  %v7189_v53 = vsel %vm3223_vm15, %v7188_v33, %v7187_v41  ;;  %v7211_v38 = vsel %vm3217_vm12, %v7210_v49, %v7209_v14  ;;  %v7248_v29 = vrot.slane %v18617_v62, 6  ;;  %v7250_v30 = vrot.slane %v18618_v54, 5  ;;  %v18627_v41 = vld [vmem:[#allocation159_spill] sm:$0xff] }
 0x421   : > { %v7247_v12 = vsel %vm3211_vm9, %v18616_v37, %v18615_v58  ;;  %v7213_v5 = vsel %vm3219_vm13, %v7212_v27, %v7211_v38  ;;  %v7252_v32 = vrot.slane %v18619_v63, 4  ;;  %v7254_v7 = vrot.slane %v18491_v48, 3  ;;  %v18623_v48 = vld [vmem:[#allocation61_spill] sm:$0xff] }
 0x422   : > { %v7256_v43 = vrot.slane %v18350_v1, 2  ;;  %v7215_v4 = vsel %vm3221_vm14, %v7214_v35, %v7213_v5  ;;  %v7249_v28 = vsel %vm3213_vm10, %v7248_v29, %v7247_v12  ;;  %v7258_v33 = vrot.slane %v18492_v23, 1  ;;  %v18624_v27 = vld [vmem:[#allocation153_spill] sm:$0xff] }
 0x423   : > { %v18621_v9 = vrot.slane %v14878_v51, 7  ;;  %v7217_v49 = vsel %vm3223_vm15, %v7216_v19, %v7215_v4  ;;  %v7251_v20 = vsel %vm3215_vm11, %v7250_v30, %v7249_v28  ;;  %v7276_v57 = vrot.slane %v18622_v6, 6  ;;  %v18628_v30 = vld [vmem:[#allocation103_spill] sm:$0xff]  ;;  %v18629_v4 = vld [vmem:[#allocation58_spill] sm:$0xff] }
 0x424   : > { %v7278_v39 = vrot.slane %v18623_v48, 5  ;;  %v7346_v1 = vpack.c.b16 %v7217_v49, %v7189_v53  ;;  %v7253_v47 = vsel %vm3217_vm12, %v7252_v32, %v7251_v20  ;;  %v7280_v25 = vrot.slane %v18624_v27, 4  ;;  %v18632_v49 = vld [vmem:[#allocation80_spill] sm:$0xff]  ;;  %v18633_v6 = vld [vmem:[#allocation154_spill] sm:$0xff]  ;;  %v18634_v48 = vld [vmem:[#allocation9_spill] sm:$0xff] }
 0x425   : > { %v7275_v40 = vsel %vm3211_vm9, %v18621_v9, %v18620_v45  ;;  %v7282_v23 = vrot.slane %v18625_v22, 3  ;;  %v7255_v10 = vsel %vm3219_vm13, %v7254_v7, %v7253_v47  ;;  %v7284_v35 = vrot.slane %v18626_v59, 2  ;;  %v18635_v27 = vld [vmem:[#allocation42_spill] sm:$0xff] }
 0x426   : > { %v7277_v51 = vsel %vm3213_vm10, %v7276_v57, %v7275_v40  ;;  %v7286_v14 = vrot.slane %v18627_v41, 1  ;;  %7561 = vmatmul.mubr.bf16.gmra.mxu1 %v7346_v1  ;;  %v7257_v19 = vsel %vm3221_vm14, %v7256_v43, %v7255_v10  ;;  %v7232_v37 = vrot.slane %v18335_v3, 7  ;;  %v18636_v22 = vld [vmem:[#allocation134_spill] sm:$0xff] }
 0x427   : > { %v7279_v58 = vsel %vm3215_vm11, %v7278_v39, %v7277_v51  ;;  %v7234_v12 = vrot.slane %v18336_v26, 6  ;;  %v7259_v53 = vsel %vm3223_vm15, %v7258_v33, %v7257_v19  ;;  %v7236_v62 = vrot.slane %v18337_v42, 5  ;;  %v18630_v33 = vld [vmem:[#allocation63_spill] sm:$0xff] }
 0x428   : > { %v7281_v38 = vsel %vm3217_vm12, %v7280_v25, %v7279_v58  ;;  %v7238_v29 = vrot.slane %v18338_v16, 4  ;;  %v7233_v5 = vsel %vm3211_vm9, %v7232_v37, %v18628_v30  ;;  %v7240_v63 = vrot.slane %v18518_v15, 3  ;;  %v18640_v37 = vld [vmem:[#allocation67_spill] sm:$0xff] }
 0x429   : > { %v7283_v54 = vsel %vm3219_vm13, %v7282_v23, %v7281_v38  ;;  %v7242_v32 = vrot.slane %v18519_v44, 2  ;;  %v7235_v26 = vsel %vm3213_vm10, %v7234_v12, %v7233_v5  ;;  %v7244_v7 = vrot.slane %v16044_v31, 1  ;;  %v18631_v44 = vld [vmem:[#allocation52_spill] sm:$0xff]  ;;  %v18641_v38 = vld [vmem:[#allocation163_spill] sm:$0xff] }
 0x42a   : > { %v7285_v3 = vsel %vm3221_vm14, %v7284_v35, %v7283_v54  ;;  %v7260_v43 = vrot.slane %v18344_v8, 7  ;;  %v7237_v16 = vsel %vm3215_vm11, %v7236_v62, %v7235_v26  ;;  %v7262_v28 = vrot.slane %v18629_v4, 6  ;;  %v18638_v35 = vld [vmem:[#allocation66_spill] sm:$0xff]  ;;  %v18643_v5 = vld [vmem:[#allocation79_spill] sm:$0xff] }
 0x42b   : > { %v7287_v42 = vsel %vm3223_vm15, %v7286_v14, %v7285_v3  ;;  %v7264_v45 = vrot.slane %v18630_v33, 5  ;;  %v7239_v15 = vsel %vm3217_vm12, %v7238_v29, %v7237_v16  ;;  %v7266_v20 = vrot.slane %v18632_v49, 4  ;;  %v18639_v14 = vld [vmem:[#allocation68_spill] sm:$0xff]  ;;  %v18642_v54 = vld [vmem:[#allocation82_spill] sm:$0xff]  ;;  %v18647_v49 = vld [vmem:[#allocation171_spill] sm:$0xff] }
 0x42c   : > { %v7349_v9 = vpack.c.b16 %v7287_v42, %v7259_v53  ;;  %v7261_v40 = vsel %vm3211_vm9, %v7260_v43, %v18631_v44  ;;  %v7241_v31 = vsel %vm3219_vm13, %v7240_v63, %v7239_v15  ;;  %v7268_v57 = vrot.slane %v18633_v6, 3  ;;  %v18648_v6 = vld [vmem:[#allocation137_spill] sm:$0xff] }
 0x42d   : > { %v7263_v8 = vsel %vm3213_vm10, %v7262_v28, %v7261_v40  ;;  %v7270_v39 = vrot.slane %v18634_v48, 2  ;;  %v7243_v1 = vsel %vm3221_vm14, %v7242_v32, %v7241_v31  ;;  %v7272_v25 = vrot.slane %v18635_v27, 1 }
 0x42e   : > { %10884 = vmatprep.mubr.msk.bf16.mxu1 %vm1024_vm7, %v7349_v9  ;;  %v7265_v47 = vsel %vm3215_vm11, %v7264_v45, %v7263_v8  ;;  %v18637_v23 = vrot.slane %v18502_v2, 7  ;;  %v7245_v51 = vsel %vm3223_vm15, %v7244_v7, %v7243_v1  ;;  %v7304_v41 = vrot.slane %v18638_v35, 6  ;;  %v18646_v45 = vld [vmem:[#allocation170_spill] sm:$0xff]  ;;  %v18650_v35 = vld [vmem:[#allocation168_spill] sm:$0xff] }
 0x42f   : > { %v7267_v59 = vsel %vm3217_vm12, %v7266_v20, %v7265_v47  ;;  %v7306_v19 = vrot.slane %v18639_v14, 5  ;;  %v7308_v12 = vrot.slane %v18640_v37, 4  ;;  %v7310_v53 = vrot.slane %v18526_v61, 3  ;;  %v18652_v37 = vld [vmem:[#allocation53_spill] sm:$0xff] }
 0x430   : > { %v7303_v10 = vsel %vm3211_vm9, %v18637_v23, %v18636_v22  ;;  %v7269_v58 = vsel %vm3219_vm13, %v7268_v57, %v7267_v59  ;;  %v7312_v62 = vrot.slane %v18641_v38, 2  ;;  %v7314_v30 = vrot.slane %v18642_v54, 1 }
 0x431   : > { %v7271_v2 = vsel %vm3221_vm14, %v7270_v39, %v7269_v58  ;;  %v7305_v29 = vsel %vm3213_vm10, %v7304_v41, %v7303_v10  ;;  %v18644_v63 = vrot.slane %v18508_v13, 7  ;;  %v7332_v7 = vrot.slane %v18509_v18, 6  ;;  %v18645_v13 = vld [vmem:[#allocation169_spill] sm:$0xff] }
 0x432   : > { %v7273_v3 = vsel %vm3223_vm15, %v7272_v25, %v7271_v2  ;;  %v7307_v26 = vsel %vm3215_vm11, %v7306_v19, %v7305_v29  ;;  %v7334_v61 = vrot.slane %v18511_v17, 5  ;;  %v7336_v16 = vrot.slane %v18512_v21, 4  ;;  %v18651_v19 = vld [vmem:[#allocation111_spill] sm:$0xff]  ;;  %v5757_v2 = vpop.f32.mrf.mxu1 }
 0x433   : > { %v7331_v32 = vsel %vm3211_vm9, %v18644_v63, %v18643_v5  ;;  %v7348_v43 = vpack.c.b16 %v7273_v3, %v7245_v51  ;;  %v7309_v42 = vsel %vm3217_vm12, %v7308_v12, %v7307_v26  ;;  %v7338_v33 = vrot.slane %v18645_v13, 3 }
 0x434   : > { %v7311_v4 = vsel %vm3219_vm13, %v7310_v53, %v7309_v42  ;;  %v7333_v28 = vsel %vm3213_vm10, %v7332_v7, %v7331_v32  ;;  %v7340_v9 = vrot.slane %v18646_v45, 2  ;;  %v7288_v17 = vrot.slane %v15177_v50, 7  ;;  %v5759_v29 = vpop.f32.mrf.mxu1 }
 0x435   : > { %7571 = vmatmul.mubr.bf16.gmra.mxu1 %v7348_v43  ;;  %v7313_v15 = vsel %vm3221_vm14, %v7312_v62, %v7311_v4  ;;  %v7335_v18 = vsel %vm3215_vm11, %v7334_v61, %v7333_v28  ;;  %v7290_v44 = vrot.slane %v15181_v52, 6  ;;  %v7342_v20 = vrot.slane %v18647_v49, 1  ;;  %v6898_v28 = vpop.f32.mrf.mxu0 }
 0x436   : > { %v7315_v40 = vsel %vm3223_vm15, %v7314_v30, %v7313_v15  ;;  %v7337_v21 = vsel %vm3217_vm12, %v7336_v16, %v7335_v18  ;;  %v7294_v31 = vrot.slane %v18360_v60, 4  ;;  %v7289_v57 = vsel %vm3211_vm9, %v7288_v17, %v18648_v6  ;;  %v5761_v54 = vpop.f32.mrf.mxu1 }
 0x437   : > { %v7339_v8 = vsel %vm3219_vm13, %v7338_v33, %v7337_v21  ;;  %v7292_v48 = vrot.slane %v15185_v11, 5  ;;  %v7296_v39 = vrot.slane %v18563_v24, 3  ;;  %v7291_v52 = vsel %vm3213_vm10, %v7290_v44, %v7289_v57  ;;  %v18649_v24 = vld [vmem:[#allocation78_spill] sm:$0xff]  ;;  %v6900_v33 = vpop.f32.mrf.mxu0 }
 0x438   : > { %v7341_v50 = vsel %vm3221_vm14, %v7340_v9, %v7339_v8  ;;  %v7298_v1 = vrot.slane %v18564_v34, 2  ;;  %v7316_v47 = vrot.slane %v18536_v0, 7  ;;  %v7318_v25 = vrot.slane %v18537_v55, 6  ;;  %v5763_v30 = vpop.f32.mrf.mxu1 }
 0x439   : > { %v7343_v27 = vsel %vm3223_vm15, %v7342_v20, %v7341_v50  ;;  %v7293_v60 = vsel %vm3215_vm11, %v7292_v48, %v7291_v52  ;;  %v7320_v22 = vrot.slane %v18538_v56, 5  ;;  %v7322_v51 = vrot.slane %v18539_v46, 4  ;;  %v6902_v9 = vpop.f32.mrf.mxu0 }
 0x43a   : > { %v7351_v23 = vpack.c.b16 %v7343_v27, %v7315_v40  ;;  %v7295_v11 = vsel %vm3217_vm12, %v7294_v31, %v7293_v60  ;;  %v7317_v10 = vsel %vm3211_vm9, %v7316_v47, %v18649_v24  ;;  %v7300_v59 = vrot.slane %v16187_v36, 1  ;;  %v16448_v5 = vpop.f32.mrf.mxu1 }
 0x43b   : > { %v7297_v34 = vsel %vm3219_vm13, %v7296_v39, %v7295_v11  ;;  %v7319_v0 = vsel %vm3213_vm10, %v7318_v25, %v7317_v10  ;;  %v7324_v56 = vrot.slane %v18650_v35, 3  ;;  %v7326_v58 = vrot.slane %v18651_v19, 2  ;;  %v6904_v18 = vpop.f32.mrf.mxu0  ;;  %v8261_v19 = vld [vmem:[%s17463_s4] sm:$0x3] }
 0x43c   : > { %10885 = vmatprep.mubr.msk.bf16.mxu1 %vm1024_vm7, %v7351_v23  ;;  %v7321_v55 = vsel %vm3215_vm11, %v7320_v22, %v7319_v0  ;;  %v7299_v41 = vsel %vm3221_vm14, %v7298_v1, %v7297_v34  ;;  %v7328_v12 = vrot.slane %v18652_v37, 1  ;;  %v16450_v63 = vpop.f32.mrf.mxu1 }
 0x43d   : > { %v7323_v14 = vsel %vm3217_vm12, %v7322_v51, %v7321_v55  ;;  %v7301_v38 = vsel %vm3223_vm15, %v7300_v59, %v7299_v41  ;;  %v6908_v44 = vpop.f32.mrf.mxu0 }
 0x43e   : > { %v7325_v46 = vsel %vm3219_vm13, %v7324_v56, %v7323_v14  ;;  %v16452_v32 = vpop.f32.mrf.mxu1 }
 0x43f   : > { %v7327_v53 = vsel %vm3221_vm14, %v7326_v58, %v7325_v46  ;;  %v6910_v21 = vpop.f32.mrf.mxu0 }
 0x440   : > { %v7329_v36 = vsel %vm3223_vm15, %v7328_v12, %v7327_v53  ;;  %v16454_v3 = vpop.f32.mrf.mxu1  ;;  %v18654_v53 = vld [vmem:[#allocation6_spill] sm:$0xff] }
 0x441   : > { %v7350_v62 = vpack.c.b16 %v7329_v36, %v7301_v38  ;;  %v6912_v20 = vpop.f32.mrf.mxu0  ;;  %v16490_v38 = vrot.slane %v8261_v19, %v18654_v53 }
 0x442   : > { %v16456_v26 = vpop.f32.mrf.mxu1 }
 0x443   : > { %7581 = vmatmul.mubr.bf16.gmra.mxu1 %v7350_v62  ;;  %v6914_v8 = vpop.f32.mrf.mxu0 }
 0x444   : > { %v16458_v7 = vpop.f32.mrf.mxu1 }
 0x445   : > { %v6918_v6 = vpop.f32.mrf.mxu0 }
 0x446   : > { %v16460_v61 = vpop.f32.mrf.mxu1 }
 0x447   : > { %v16472_v48 = vpop.f32.mrf.mxu0 }
 0x448   : > { %v16462_v43 = vpop.f32.mrf.mxu1 }
 0x449   : > { %v16474_v50 = vpop.f32.mrf.mxu0 }
 0x44a   : > { %v16464_v42 = vpop.f32.mrf.mxu1 }
 0x44b   : > { %v16476_v1 = vpop.f32.mrf.mxu0 }
 0x44c   : > { %v16466_v16 = vpop.f32.mrf.mxu1 }
 0x44e   : > { %v16468_v4 = vpop.f32.mrf.mxu1 }
 0x450   : > { %v16470_v13 = vpop.f32.mrf.mxu1 }
 0x459   : > { %v16478_v27 = vpop.f32.mrf.mxu0 }
 0x45b   : > { %v16480_v25 = vpop.f32.mrf.mxu0 }
 0x45d   : > { %v16482_v23 = vpop.f32.mrf.mxu0 }
 0x45f   : > { %v16484_v24 = vpop.f32.mrf.mxu0 }
 0x460   : > { %18653 = vst [vmem:[#allocation51_spill] sm:$0xff] %v16484_v24 }
 0x464   : > { %v6260_v45 = vpop.f32.mrf.mxu1 }
 0x465   : > { %v6261_v0 = vadd.f32 %v6260_v45, %v5757_v2 }
 0x466   : > { %v6262_v15 = vpop.f32.mrf.mxu1 }
 0x467   : > { %v6263_v55 = vadd.f32 %v6262_v15, %v5759_v29  ;;  %v6937_v14 = vadd.f32 %v6898_v28, %v6261_v0  ;;  %v18655_v29 = vld [vmem:[#allocation5_spill] sm:$0xff] }
 0x468   : > { %v6264_v17 = vpop.f32.mrf.mxu1  ;;  %v18656_v15 = vsub.s32 1, %v18655_v29 }
 0x469   : > { %v6265_v56 = vadd.f32 %v6264_v17, %v5761_v54  ;;  %v6938_v12 = vadd.f32 %v6900_v33, %v6263_v55 }
 0x46a   : > { %v6266_v40 = vpop.f32.mrf.mxu1  ;;  %v16494_v54 = vrot.slane %v8261_v19, %v18656_v15 }
 0x46b   : > { %v6267_v46 = vadd.f32 %v6266_v40, %v5763_v30  ;;  %v6939_v28 = vadd.f32 %v6902_v9, %v6265_v56 }
 0x46d   : > { %v6940_v55 = vadd.f32 %v6904_v18, %v6267_v46 }
 0x474   : > { %v8206_v51 = vpop.f32.mrf.mxu0 }
 0x476   : > { %v8208_v59 = vpop.f32.mrf.mxu0 }
 0x478   : > { %v8210_v41 = vpop.f32.mrf.mxu0 }
 0x47a   : > { %v8212_v62 = vpop.f32.mrf.mxu0 }
 0x481   : > { %v6270_v49 = vpop.f32.mrf.mxu1 }
 0x482   : > { %v6271_v17 = vadd.f32 %v6270_v49, %v16448_v5 }
 0x483   : > { %v6272_v31 = vpop.f32.mrf.mxu1 }
 0x484   : > { %v6273_v0 = vadd.f32 %v6272_v31, %v16450_v63  ;;  %v6941_v49 = vadd.f32 %v6908_v44, %v6271_v17 }
 0x485   : > { %v6274_v57 = vpop.f32.mrf.mxu1 }
 0x486   : > { %v6275_v30 = vadd.f32 %v6274_v57, %v16452_v32  ;;  %v6942_v31 = vadd.f32 %v6910_v21, %v6273_v0 }
 0x487   : > { %v6276_v39 = vpop.f32.mrf.mxu1 }
 0x488   : > { %v6943_v18 = vadd.f32 %v6912_v20, %v6275_v30 }
 0x4a0   : > { %v6280_v52 = vpop.f32.mrf.mxu1 }
 0x4a2   : > { %v6282_v47 = vpop.f32.mrf.mxu1 }
 0x4a3   : > { %v6283_v5 = vadd.f32 %v6282_v47, %v16458_v7 }
 0x4a4   : > { %v6284_v60 = vpop.f32.mrf.mxu1 }
 0x4a6   : > { %v6286_v22 = vpop.f32.mrf.mxu1 }
 0x4bf   : > { %v6290_v11 = vpop.f32.mrf.mxu1 }
 0x4c0   : > { %v6291_v46 = vadd.f32 %v6290_v11, %v16464_v42 }
 0x4c1   : > { %v6292_v10 = vpop.f32.mrf.mxu1 }
 0x4c2   : > { %v6293_v21 = vadd.f32 %v6292_v10, %v16466_v16 }
 0x4c3   : > { %v6294_v34 = vpop.f32.mrf.mxu1 }
 0x4c4   : > { %v6295_v20 = vadd.f32 %v6294_v34, %v16468_v4 }
 0x4c5   : > { %v6296_v35 = vpop.f32.mrf.mxu1 }
 0x4c6   : > { %v16538_v15 = vadd.f32 %v16482_v23, %v6295_v20 }
 0x4d8   : > { %v7552_v58 = vpop.f32.mrf.mxu1 }
 0x4d9   : > { %v7591_v37 = vadd.f32 %v7552_v58, %v6937_v14  ;;  %v6277_v14 = vadd.f32 %v6276_v39, %v16454_v3  ;;  %v6285_v3 = vadd.f32 %v6284_v60, %v16460_v61 }
 0x4da   : > { %v7554_v36 = vpop.f32.mrf.mxu1 }
 0x4db   : > { %v8245_v2 = vadd.f32 %v8206_v51, %v7591_v37  ;;  %v7592_v45 = vadd.f32 %v7554_v36, %v6938_v12  ;;  %v6281_v51 = vadd.f32 %v6280_v52, %v16456_v26  ;;  %v8216_v37 = vpop.f32.mrf.mxu0  ;;  %v6287_v26 = vadd.f32 %v6286_v22, %v16462_v43  ;;  %v18657_v12 = vld [vmem:[#allocation7_spill] sm:$0xff] }
 0x4dc   : > { %v7556_v24 = vpop.f32.mrf.mxu1  ;;  %v6944_v39 = vadd.f32 %v6914_v8, %v6277_v14  ;;  %v16516_v43 = vadd.f32 %v16472_v48, %v6283_v5  ;;  %v6297_v8 = vadd.f32 %v6296_v35, %v16470_v13  ;;  %v16520_v11 = vadd.f32 %v16474_v50, %v6285_v3 }
 0x4dd   : > { %v8246_v33 = vadd.f32 %v8208_v59, %v7592_v45  ;;  %v7593_v40 = vadd.f32 %v7556_v24, %v6939_v28  ;;  %v8273_v19 = vadd.f32 %v16490_v38, %v8245_v2  ;;  %v16506_v52 = vadd.f32 %v6918_v6, %v6281_v51  ;;  %v8218_v59 = vpop.f32.mrf.mxu0  ;;  %v18658_v28 = vld [vmem:[#allocation51_spill] sm:$0xff] }
 0x4de   : > { %v7558_v58 = vpop.f32.mrf.mxu1  ;;  %v16526_v48 = vadd.f32 %v16478_v27, %v6291_v46  ;;  %v16531_v45 = vadd.f32 %v16480_v25, %v6293_v21  ;;  %v16541_v17 = vadd.f32 %v18658_v28, %v6297_v8 }
 0x4df   : > { %v8274_v9 = vadd.f32 %v16494_v54, %v8246_v33  ;;  %v7594_v56 = vadd.f32 %v7558_v58, %v6940_v55  ;;  %v8247_v63 = vadd.f32 %v8210_v41, %v7593_v40  ;;  %v16523_v41 = vadd.f32 %v16476_v1, %v6287_v26  ;;  %v8220_v16 = vpop.f32.mrf.mxu0 }
 0x4e1   : > { %v8305_v32 = vcombine.low %v8273_v19, %v8274_v9  ;;  %v8306_v57 = vcombine.high %v8273_v19, %v8274_v9  ;;  %v8248_v24 = vadd.f32 %v8212_v62, %v7594_v56  ;;  %v8275_v61 = vadd.f32 %v16490_v38, %v8247_v63  ;;  %v8222_v40 = vpop.f32.mrf.mxu0  ;;  %v18659_v19 = vld [vmem:[#allocation8_spill] sm:$0xff] }
 0x4e3   : > { %v8313_v36 = vrot.slane %v8305_v32, %v18657_v12  ;;  %v8320_v7 = vrot.slane %v8306_v57, %v18657_v12  ;;  %v8276_v44 = vadd.f32 %v16494_v54, %v8248_v24  ;;  %v8226_v46 = vpop.f32.mrf.mxu0 }
 0x4e5   : > { %v8321_v6 = vcombine.high %v8313_v36, %v8313_v36  ;;  %v8322_v47 = vcombine.high %v8320_v7, %v8320_v7  ;;  %v10950_v42 = vrot.slane %v8313_v36, 9  ;;  %v8323_v60 = vcombine.low %v8275_v61, %v8276_v44 }
 0x4e6   : > { %v8324_v22 = vcombine.high %v8275_v61, %v8276_v44  ;;  %v10952_v10 = vrot.slane %v8320_v7, 9  ;;  %v7562_v62 = vpop.f32.mrf.mxu1 }
 0x4e7   : > { %v10951_v4 = vrot.slane %v8321_v6, 9  ;;  %v10953_v34 = vrot.slane %v8322_v47, 9  ;;  %v8331_v13 = vrot.slane %v8323_v60, %v18657_v12  ;;  %v7595_v2 = vadd.f32 %v7562_v62, %v6941_v49 }
 0x4e8   : > { %v8338_v35 = vrot.slane %v8324_v22, %v18657_v12  ;;  %v16533_v50 = vmax.f32 %v8313_v36, %v10950_v42  ;;  %v7564_v29 = vpop.f32.mrf.mxu1  ;;  %v16543_v55 = vmax.f32 %v8320_v7, %v10952_v10 }
 0x4e9   : > { %v16535_v1 = vmax.f32 %v8321_v6, %v10951_v4  ;;  %v8339_v27 = vcombine.high %v8331_v13, %v8331_v13  ;;  %v10954_v0 = vrot.slane %v8331_v13, 9  ;;  %v8249_v33 = vadd.f32 %v8216_v37, %v7595_v2  ;;  %v8228_v4 = vpop.f32.mrf.mxu0 }
 0x4ea   : > { %v10956_v30 = vrot.slane %v8338_v35, 9  ;;  %v16545_v25 = vmax.f32 %v8322_v47, %v10953_v34  ;;  %v7596_v14 = vadd.f32 %v7564_v29, %v6942_v31  ;;  %v7566_v51 = vpop.f32.mrf.mxu1  ;;  %v8340_v58 = vcombine.high %v8338_v35, %v8338_v35 }
 0x4eb   : > { %v8656_v9 = vrot.slane %v16535_v1, %v18659_v19  ;;  %v10955_v23 = vrot.slane %v8339_v27, 9  ;;  %v16549_v56 = vmax.f32 %v8331_v13, %v10954_v0  ;;  %v7597_v5 = vadd.f32 %v7566_v51, %v6943_v18 }
 0x4ec   : > { %v8648_v63 = vrot.slane %v16533_v50, %v18659_v19  ;;  %v8277_v37 = vadd.f32 %v16490_v38, %v8249_v33  ;;  %v8250_v49 = vadd.f32 %v8218_v59, %v7596_v14  ;;  %v7568_v32 = vpop.f32.mrf.mxu1  ;;  %v10957_v57 = vrot.slane %v8340_v58, 9 }
 0x4ed   : > { %v16554_v24 = vmax.f32 %v8339_v27, %v10955_v23  ;;  %v8251_v31 = vadd.f32 %v8220_v16, %v7597_v5  ;;  %v7598_v3 = vadd.f32 %v7568_v32, %v6944_v39  ;;  %v16556_v26 = vmax.f32 %v8338_v35, %v10956_v30  ;;  %v8230_v23 = vpop.f32.mrf.mxu0 }
 0x4ee   : > { %v8278_v36 = vadd.f32 %v16494_v54, %v8250_v49  ;;  %v8664_v18 = vrot.slane %v16543_v55, %v18659_v19  ;;  %v8672_v7 = vrot.slane %v16545_v25, %v18659_v19  ;;  %v8680_v59 = vrot.slane %v16549_v56, %v18659_v19 }
 0x4ef   : > { %v8252_v44 = vadd.f32 %v8222_v40, %v7598_v3  ;;  %v16565_v21 = vmax.f32 %v8340_v58, %v10957_v57  ;;  %v8688_v39 = vrot.slane %v16554_v24, %v18659_v19  ;;  %v8904_v20 = vsel %vm3211_vm9, %v8656_v9, %v8648_v63 }
 0x4f0   : > { %v8644_v61 = vrot.slane %v16533_v50, %v18654_v53  ;;  %v8341_v8 = vcombine.low %v8277_v37, %v8278_v36  ;;  %v8342_v6 = vcombine.high %v8277_v37, %v8278_v36  ;;  %v8905_v47 = vsel %vm3213_vm10, %v8664_v18, %v8904_v20 }
 0x4f1   : > { %v8652_v42 = vrot.slane %v16535_v1, %v18654_v53  ;;  %v8279_v60 = vadd.f32 %v16490_v38, %v8251_v31  ;;  %v8280_v22 = vadd.f32 %v16494_v54, %v8252_v44  ;;  %v8906_v16 = vsel %vm3215_vm11, %v8672_v7, %v8905_v47 }
 0x4f2   : > { %v8349_v10 = vrot.slane %v8341_v8, %v18657_v12  ;;  %v8356_v34 = vrot.slane %v8342_v6, %v18657_v12  ;;  %v8696_v62 = vrot.slane %v16556_v26, %v18659_v19  ;;  %v8907_v13 = vsel %vm3217_vm12, %v8680_v59, %v8906_v16  ;;  %v8232_v6 = vpop.f32.mrf.mxu0 }
 0x4f3   : > { %v8359_v35 = vcombine.low %v8279_v60, %v8280_v22  ;;  %v8360_v2 = vcombine.high %v8279_v60, %v8280_v22  ;;  %v8704_v29 = vrot.slane %v16565_v21, %v18659_v19  ;;  %v8908_v28 = vsel %vm3219_vm13, %v8688_v39, %v8907_v13 }
 0x4f4   : > { %v8357_v27 = vcombine.high %v8349_v10, %v8349_v10  ;;  %v8358_v0 = vcombine.high %v8356_v34, %v8356_v34  ;;  %v10958_v30 = vrot.slane %v8349_v10, 9  ;;  %v10960_v33 = vrot.slane %v8356_v34, 9 }
 0x4f5   : > { %v7572_v40 = vpop.f32.mrf.mxu1  ;;  %v8367_v14 = vrot.slane %v8359_v35, %v18657_v12  ;;  %v8374_v51 = vrot.slane %v8360_v2, %v18657_v12  ;;  %v8660_v9 = vrot.slane %v16543_v55, %v18654_v53  ;;  %v8668_v32 = vrot.slane %v16545_v25, %v18654_v53 }
 0x4f6   : > { %v7599_v58 = vadd.f32 %v7572_v40, %v16506_v52  ;;  %v10959_v5 = vrot.slane %v8357_v27, 9  ;;  %v10961_v63 = vrot.slane %v8358_v0, 9  ;;  %v16591_v37 = vmax.f32 %v8349_v10, %v10958_v30  ;;  %v8236_v30 = vpop.f32.mrf.mxu0 }
 0x4f7   : > { %v7574_v49 = vpop.f32.mrf.mxu1  ;;  %v8375_v57 = vcombine.high %v8367_v14, %v8367_v14  ;;  %v10962_v31 = vrot.slane %v8367_v14, 9  ;;  %v8909_v36 = vsel %vm3221_vm14, %v8696_v62, %v8908_v28  ;;  %v16598_v52 = vmax.f32 %v8356_v34, %v10960_v33 }
 0x4f8   : > { %v8253_v3 = vadd.f32 %v8226_v46, %v7599_v58  ;;  %v16596_v18 = vmax.f32 %v8357_v27, %v10959_v5  ;;  %v8676_v59 = vrot.slane %v16549_v56, %v18654_v53  ;;  %v8684_v44 = vrot.slane %v16554_v24, %v18654_v53 }
 0x4f9   : > { %v7576_v7 = vpop.f32.mrf.mxu1  ;;  %v16604_v39 = vmax.f32 %v8358_v0, %v10961_v63  ;;  %v8708_v20 = vrot.slane %v16591_v37, %v18654_v53  ;;  %v10964_v8 = vrot.slane %v8374_v51, 9  ;;  %v7600_v46 = vadd.f32 %v7574_v49, %v16516_v43 }
 0x4fa   : > { %v8712_v47 = vrot.slane %v16591_v37, %v18659_v19  ;;  %v10963_v60 = vrot.slane %v8375_v57, 9  ;;  %v7601_v22 = vadd.f32 %v7576_v7, %v16520_v11  ;;  %v8910_v10 = vsel %vm3223_vm15, %v8704_v29, %v8909_v36  ;;  %v8238_v36 = vpop.f32.mrf.mxu0 }
 0x4fb   : > { %v7578_v16 = vpop.f32.mrf.mxu1  ;;  %v16613_v34 = vmax.f32 %v8367_v14, %v10962_v31  ;;  %v8281_v62 = vadd.f32 %v16490_v38, %v8253_v3  ;;  %v8254_v13 = vadd.f32 %v8228_v4, %v7600_v46  ;;  %8955 = vrot.lane.b32.xlu1 %v8910_v10, %s11814_s28  ;;  %v8716_v43 = vrot.slane %v16596_v18, %v18654_v53 }
 0x4fc   : > { %v7602_v35 = vadd.f32 %v7578_v16, %v16523_v41  ;;  %v8255_v2 = vadd.f32 %v8230_v23, %v7601_v22  ;;  %v8897_v28 = vsel %vm3211_vm9, %v8652_v42, %v8644_v61  ;;  %v8376_v11 = vcombine.high %v8374_v51, %v8374_v51 }
 0x4fd   : > { %v8720_v29 = vrot.slane %v16596_v18, %v18659_v19  ;;  %v8282_v27 = vadd.f32 %v16494_v54, %v8254_v13  ;;  %v8898_v4 = vsel %vm3213_vm10, %v8660_v9, %v8897_v28  ;;  %v16625_v41 = vmax.f32 %v8375_v57, %v10963_v60 }
 0x4fe   : > { %v8256_v0 = vadd.f32 %v8232_v6, %v7602_v35  ;;  %v8283_v33 = vadd.f32 %v16490_v38, %v8255_v2  ;;  %v8899_v40 = vsel %vm3215_vm11, %v8668_v32, %v8898_v4  ;;  %v10965_v14 = vrot.slane %v8376_v11, 9 }
 0x4ff   : > { %v8377_v58 = vcombine.low %v8281_v62, %v8282_v27  ;;  %v8378_v23 = vcombine.high %v8281_v62, %v8282_v27  ;;  %v8900_v42 = vsel %vm3217_vm12, %v8676_v59, %v8899_v40  ;;  %v8692_v5 = vrot.slane %v16556_v26, %v18654_v53 }
 0x500   : > { %v8284_v61 = vadd.f32 %v16494_v54, %v8256_v0  ;;  %v8700_v9 = vrot.slane %v16565_v21, %v18654_v53  ;;  %v8901_v63 = vsel %vm3219_vm13, %v8684_v44, %v8900_v42  ;;  %v16636_v49 = vmax.f32 %v8374_v51, %v10964_v8  ;;  %v8240_v0 = vpop.f32.mrf.mxu0 }
 0x501   : > { %v8385_v57 = vrot.slane %v8377_v58, %v18657_v12  ;;  %v8392_v32 = vrot.slane %v8378_v23, %v18657_v12  ;;  %v8902_v59 = vsel %vm3221_vm14, %v8692_v5, %v8901_v63  ;;  %v16641_v46 = vmax.f32 %v8376_v11, %v10965_v14 }
 0x502   : > { %v8395_v31 = vcombine.low %v8283_v33, %v8284_v61  ;;  %v8396_v3 = vcombine.high %v8283_v33, %v8284_v61  ;;  %v8724_v6 = vrot.slane %v16598_v52, %v18654_v53  ;;  %v8732_v44 = vrot.slane %v16604_v39, %v18654_v53 }
 0x503   : > { %v7582_v7 = vpop.f32.mrf.mxu1  ;;  %v8393_v51 = vcombine.high %v8385_v57, %v8385_v57  ;;  %v8394_v8 = vcombine.high %v8392_v32, %v8392_v32  ;;  %v10966_v60 = vrot.slane %v8385_v57, 9  ;;  %v10968_v22 = vrot.slane %v8392_v32, 9 }
 0x504   : > { %v8403_v16 = vrot.slane %v8395_v31, %v18657_v12  ;;  %v16649_v10 = vrot.slane %v8396_v3, %v18657_v12  ;;  %v7603_v62 = vadd.f32 %v7582_v7, %v16526_v48  ;;  %v8903_v35 = vsel %vm3223_vm15, %v8700_v9, %v8902_v59  ;;  %v8242_v59 = vpop.f32.mrf.mxu0 }
 0x505   : > { %v7584_v13 = vpop.f32.mrf.mxu1  ;;  %v10967_v2 = vrot.slane %v8393_v51, 9  ;;  %v10969_v28 = vrot.slane %v8394_v8, 9  ;;  %v16653_v11 = vmax.f32 %v8385_v57, %v10966_v60  ;;  %8953 = vrot.lane.b32.xlu0 %v8903_v35, %s11814_s28  ;;  %v8740_v27 = vrot.slane %v16613_v34, %v18654_v53 }
 0x506   : > { %v16658_v4 = vcombine.high %v8403_v16, %v8403_v16  ;;  %v10970_v33 = vrot.slane %v8403_v16, 9  ;;  %v8257_v40 = vadd.f32 %v8236_v30, %v7603_v62  ;;  %v8748_v48 = vrot.slane %v16625_v41, %v18654_v53 }
 0x507   : > { %v7586_v14 = vpop.f32.mrf.mxu1  ;;  %v16662_v58 = vmax.f32 %v8393_v51, %v10967_v2  ;;  %v16664_v23 = vmax.f32 %v8392_v32, %v10968_v22  ;;  %v8756_v61 = vrot.slane %v16636_v49, %v18654_v53  ;;  %v8764_v42 = vrot.slane %v16641_v46, %v18654_v53 }
 0x508   : > { %v16670_v5 = vmax.f32 %v8394_v8, %v10969_v28  ;;  %v8772_v9 = vrot.slane %v16653_v11, %v18654_v53  ;;  %v10972_v30 = vrot.slane %v16649_v10, 9  ;;  %v7604_v63 = vadd.f32 %v7584_v13, %v16531_v45 }
 0x509   : > { %v7588_v57 = vpop.f32.mrf.mxu1  ;;  %v8776_v32 = vrot.slane %v16653_v11, %v18659_v19  ;;  %v10971_v31 = vrot.slane %v16658_v4, 9  ;;  %v7605_v3 = vadd.f32 %v7586_v14, %v16538_v15  ;;  %8978 = vrot.lane.b32.xlu0 %v8903_v35, %s11815_s29  ;;  %v16682_v51 = vmax.f32 %v8403_v16, %v10970_v33 }
 0x50a   : > { %v7606_v7 = vadd.f32 %v7588_v57, %v16541_v17  ;;  %v8285_v8 = vadd.f32 %v16490_v38, %v8257_v40  ;;  %v8258_v60 = vadd.f32 %v8238_v36, %v7604_v63  ;;  %v8911_v45 = vsel %vm3211_vm9, %v8716_v43, %v8708_v20 }
 0x50b   : > { %v8780_v15 = vrot.slane %v16662_v58, %v18654_v53  ;;  %v8259_v17 = vadd.f32 %v8240_v0, %v7605_v3  ;;  %v8912_v62 = vsel %vm3213_vm10, %v8724_v6, %v8911_v45  ;;  %v8728_v36 = vrot.slane %v16598_v52, %v18659_v19 }
 0x50c   : > { %v8260_v22 = vadd.f32 %v8242_v59, %v7606_v7  ;;  %v8286_v16 = vadd.f32 %v16494_v54, %v8258_v60  ;;  %v8913_v13 = vsel %vm3215_vm11, %v8732_v44, %v8912_v62  ;;  %v8736_v35 = vrot.slane %v16604_v39, %v18659_v19 }
 0x50d   : > { %v8287_v2 = vadd.f32 %v16490_v38, %v8259_v17  ;;  %v8914_v43 = vsel %vm3217_vm12, %v8740_v27, %v8913_v13  ;;  %v8744_v28 = vrot.slane %v16613_v34, %v18659_v19  ;;  %v8752_v44 = vrot.slane %v16625_v41, %v18659_v19 }
 0x50e   : > { %v8288_v20 = vadd.f32 %v16494_v54, %v8260_v22  ;;  %v8413_v6 = vcombine.low %v8285_v8, %v8286_v16  ;;  %v8414_v0 = vcombine.high %v8285_v8, %v8286_v16  ;;  %v8915_v33 = vsel %vm3219_vm13, %v8748_v48, %v8914_v43 }
 0x50f   : > { %v8916_v63 = vsel %vm3221_vm14, %v8756_v61, %v8915_v33  ;;  %v8918_v38 = vsel %vm3211_vm9, %v8720_v29, %v8712_v47  ;;  %v8412_v59 = vcombine.high %v16649_v10, %v16649_v10  ;;  %v16731_v62 = vmax.f32 %v16658_v4, %v10971_v31 }
 0x510   : > { %v8431_v40 = vcombine.low %v8287_v2, %v8288_v20  ;;  %v8432_v14 = vcombine.high %v8287_v2, %v8288_v20  ;;  %v8421_v54 = vrot.slane %v8413_v6, %v18657_v12  ;;  %v8428_v27 = vrot.slane %v8414_v0, %v18657_v12 }
 0x511   : > { %v8917_v48 = vsel %vm3223_vm15, %v8764_v42, %v8916_v63  ;;  %v8919_v57 = vsel %vm3213_vm10, %v8728_v36, %v8918_v38  ;;  %v8784_v42 = vrot.slane %v16662_v58, %v18659_v19  ;;  %v8760_v2 = vrot.slane %v16636_v49, %v18659_v19 }
 0x512   : > { %v8439_v3 = vrot.slane %v8431_v40, %v18657_v12  ;;  %v8446_v61 = vrot.slane %v8432_v14, %v18657_v12  ;;  %8957 = vrot.lane.b32.xlu1 %v8917_v48, %s11814_s28  ;;  %v8920_v7 = vsel %vm3215_vm11, %v8736_v35, %v8919_v57  ;;  %v8429_v47 = vcombine.high %v8421_v54, %v8421_v54 }
 0x513   : > { %v8430_v29 = vcombine.high %v8428_v27, %v8428_v27  ;;  %v10974_v8 = vrot.slane %v8421_v54, 9  ;;  %v10976_v60 = vrot.slane %v8428_v27, 9  ;;  %v8921_v22 = vsel %vm3217_vm12, %v8744_v28, %v8920_v7 }
 0x514   : > { %v8447_v45 = vcombine.high %v8439_v3, %v8439_v3  ;;  %v10978_v17 = vrot.slane %v8439_v3, 9  ;;  %v10975_v16 = vrot.slane %v8429_v47, 9  ;;  %v8922_v20 = vsel %vm3219_vm13, %v8752_v44, %v8921_v22 }
 0x515   : > { %v10977_v13 = vrot.slane %v8430_v29, 9  ;;  %v16733_v36 = vmax.f32 %v8421_v54, %v10974_v8  ;;  %v10973_v43 = vrot.slane %v8412_v59, 9  ;;  %v16741_v0 = vmax.f32 %v8428_v27, %v10976_v60 }
 0x516   : > { %v10979_v35 = vrot.slane %v8447_v45, 9  ;;  %8980 = vrot.lane.b32.xlu1 %v8917_v48, %s11815_s29  ;;  %v16739_v6 = vmax.f32 %v8429_v47, %v10975_v16  ;;  %v10980_v28 = vrot.slane %v8446_v61, 9  ;;  %v8768_v4 = vrot.slane %v16641_v46, %v18659_v19 }
 0x517   : > { %v16745_v31 = vmax.f32 %v8430_v29, %v10977_v13  ;;  %v16747_v33 = vmax.f32 %v8439_v3, %v10978_v17  ;;  %v8923_v40 = vsel %vm3221_vm14, %v8760_v2, %v8922_v20  ;;  %v16753_v44 = vmax.f32 %v16649_v10, %v10972_v30 }
 0x518   : > { %v8836_v14 = vrot.slane %v16733_v36, %v18654_v53  ;;  %v16757_v63 = vmax.f32 %v8447_v45, %v10979_v35  ;;  %v8924_v38 = vsel %vm3223_vm15, %v8768_v4, %v8923_v40  ;;  %v16760_v54 = vmax.f32 %v8412_v59, %v10973_v43 }
 0x519   : > { %v8844_v27 = vrot.slane %v16739_v6, %v18654_v53  ;;  %v8848_v48 = vrot.slane %v16739_v6, %v18659_v19  ;;  %8959 = vrot.lane.b32.xlu0 %v8924_v38, %s11814_s28  ;;  %v8792_v10 = vrot.slane %v16664_v23, %v18659_v19  ;;  %v8808_v30 = vrot.slane %v16682_v51, %v18659_v19 }
 0x51a   : > { %v8800_v57 = vrot.slane %v16670_v5, %v18659_v19  ;;  %v8816_v3 = vrot.slane %v16731_v62, %v18659_v19  ;;  %v8824_v7 = vrot.slane %v16753_v44, %v18659_v19  ;;  %v8932_v59 = vsel %vm3211_vm9, %v8784_v42, %v8776_v32 }
 0x51b   : > { %v8933_v47 = vsel %vm3213_vm10, %v8792_v10, %v8932_v59  ;;  %v8788_v29 = vrot.slane %v16664_v23, %v18654_v53  ;;  %v8796_v8 = vrot.slane %v16670_v5, %v18654_v53  ;;  %v8804_v60 = vrot.slane %v16682_v51, %v18654_v53 }
 0x51c   : > { %v8934_v45 = vsel %vm3215_vm11, %v8800_v57, %v8933_v47  ;;  %v8812_v17 = vrot.slane %v16731_v62, %v18654_v53  ;;  %v8925_v32 = vsel %vm3211_vm9, %v8780_v15, %v8772_v9  ;;  %v8448_v42 = vcombine.high %v8446_v61, %v8446_v61 }
 0x51d   : > { %v8832_v22 = vrot.slane %v16760_v54, %v18659_v19  ;;  %v8935_v16 = vsel %vm3217_vm12, %v8808_v30, %v8934_v45  ;;  %v8820_v13 = vrot.slane %v16753_v44, %v18654_v53  ;;  %v8926_v35 = vsel %vm3213_vm10, %v8788_v29, %v8925_v32  ;;  %v11697_v45 = vld [vmem:[%s17464_s5 + $0x38] sm:$0xff]  }
 0x51e   : > { %v8936_v2 = vsel %vm3219_vm13, %v8816_v3, %v8935_v16  ;;  %v8927_v20 = vsel %vm3215_vm11, %v8796_v8, %v8926_v35  ;;  %v10981_v43 = vrot.slane %v8448_v42, 9  ;;  %v16806_v4 = vmax.f32 %v8446_v61, %v10980_v28 }
 0x51f   : > { %v8937_v9 = vsel %vm3221_vm14, %v8824_v7, %v8936_v2  ;;  %v8828_v15 = vrot.slane %v16760_v54, %v18654_v53  ;;  %v8928_v40 = vsel %vm3217_vm12, %v8804_v60, %v8927_v20  ;;  %v8852_v38 = vrot.slane %v16741_v0, %v18654_v53 }
 0x520   : > { %v8938_v10 = vsel %vm3223_vm15, %v8832_v22, %v8937_v9  ;;  %v8929_v30 = vsel %vm3219_vm13, %v8812_v17, %v8928_v40  ;;  %v8860_v57 = vrot.slane %v16745_v31, %v18654_v53  ;;  %v8868_v61 = vrot.slane %v16747_v33, %v18654_v53 }
 0x521   : > { %8963 = vrot.lane.b32.xlu1 %v8938_v10, %s11814_s28  ;;  %v8930_v28 = vsel %vm3221_vm14, %v8820_v13, %v8929_v30  ;;  %v16822_v3 = vmax.f32 %v8448_v42, %v10981_v43  ;;  %v8876_v7 = vrot.slane %v16757_v63, %v18654_v53  ;;  %v8939_v59 = vsel %vm3211_vm9, %v8844_v27, %v8836_v14 }
 0x522   : > { %v8840_v47 = vrot.slane %v16733_v36, %v18659_v19  ;;  %v8931_v29 = vsel %vm3223_vm15, %v8828_v15, %v8930_v28  ;;  %v8884_v8 = vrot.slane %v16806_v4, %v18654_v53  ;;  %v8940_v60 = vsel %vm3213_vm10, %v8852_v38, %v8939_v59  ;;  %v11699_v28 = vld [vmem:[%s17464_s5 + $0x30] sm:$0xff]   ;;  %v11701_v59 = vld [vmem:[%s17464_s5 + $0x28] sm:$0xff]  }
 0x523   : > { %8961 = vrot.lane.b32.xlu0 %v8931_v29, %s11814_s28  ;;  %v8941_v17 = vsel %vm3215_vm11, %v8860_v57, %v8940_v60  ;;  %v8856_v14 = vrot.slane %v16741_v0, %v18659_v19  ;;  %v8864_v27 = vrot.slane %v16745_v31, %v18659_v19  ;;  %v8872_v32 = vrot.slane %v16747_v33, %v18659_v19  ;;  %v11705_v60 = vld [vmem:[%s17464_s5 + $0x18] sm:$0xff]  }
 0x524   : > { %v8942_v42 = vsel %vm3217_vm12, %v8868_v61, %v8941_v17  ;;  %v8880_v22 = vrot.slane %v16757_v63, %v18659_v19  ;;  %v8946_v16 = vsel %vm3211_vm9, %v8848_v48, %v8840_v47  ;;  %v8892_v13 = vrot.slane %v16822_v3, %v18654_v53  ;;  %v11698_v61 = vld [vmem:[%s17464_s5 + $0x88] sm:$0xff]   ;;  %v11702_v47 = vld [vmem:[%s17464_s5 + $0x78] sm:$0xff]   ;;  %v11707_v17 = vld [vmem:[%s17464_s5 + $0x10] sm:$0xff]  }
 0x525   : > { %v8943_v35 = vsel %vm3219_vm13, %v8876_v7, %v8942_v42  ;;  %v8947_v2 = vsel %vm3213_vm10, %v8856_v14, %v8946_v16  ;;  %v17852_v20 = vmov 0   ;;  %v8888_v15 = vrot.slane %v16806_v4, %v18659_v19  ;;  %v11700_v7 = vld [vmem:[%s17464_s5 + $0x80] sm:$0xff]   ;;  %v11713_v16 = vld [vmem:[%s17464_s5 + $0x48] sm:$0xff]  }
 0x526   : > { %9724 = vmatprep.subr.bf16.mxu0 %v17852_v20  ;;  %9558 = vmatprep.subr.bf16.mxu1 %v17852_v20  ;;  %v8944_v43 = vsel %vm3221_vm14, %v8884_v8, %v8943_v35  ;;  %v8948_v9 = vsel %vm3215_vm11, %v8864_v27, %v8947_v2  ;;  %v8896_v38 = vrot.slane %v16822_v3, %v18659_v19  ;;  %v11704_v8 = vld [vmem:[%s17464_s5 + $0x70] sm:$0xff]   ;;  %v11708_v14 = vld [vmem:[%s17464_s5 + $0x60] sm:$0xff]   ;;  %v11709_v27 = vld [vmem:[%s17464_s5 + $0x8] sm:$0xff]  }
 0x527   : > { %9725 = vmatpush1.bf16.msra.mxu0 %v11697_v45  ;;  %8982 = vrot.lane.b32.xlu0 %v8931_v29, %s11815_s29  ;;  %v8945_v48 = vsel %vm3223_vm15, %v8892_v13, %v8944_v43  ;;  %v8949_v40 = vsel %vm3217_vm12, %v8872_v32, %v8948_v9  ;;  %v11703_v29 = vld [vmem:[%s17464_s5 + $0x20] sm:$0xff]   ;;  %v11706_v45 = vld [vmem:[%s17464_s5 + $0x68] sm:$0xff]   ;;  %v11710_v32 = vld [vmem:[%s17464_s5 + $0x58] sm:$0xff]  }
 0x528   : > { %9726 = vmatprep.subr.bf16.mxu0 %v17852_v20  ;;  %8965 = vrot.lane.b32.xlu1 %v8945_v48, %s11814_s28  ;;  %v8950_v10 = vsel %vm3219_vm13, %v8880_v22, %v8949_v40  ;;  %v11711_v42 = vld [vmem:[%s17464_s5] sm:$0xff]   ;;  %v11712_v22 = vld [vmem:[%s17464_s5 + $0x50] sm:$0xff]   ;;  %v11714_v13 = vld [vmem:[%s17464_s5 + $0x98] sm:$0xff]  }
 0x529   : > { %v8951_v30 = vsel %vm3221_vm14, %v8888_v15, %v8950_v10  ;;  %9559 = vmatpush1.bf16.msra.mxu1 %v11698_v61  ;;  %v11715_v35 = vld [vmem:[%s17464_s5 + $0x40] sm:$0xff]   ;;  %v11716_v2 = vld [vmem:[%s17464_s5 + $0x90] sm:$0xff]  }
 0x52a   : > { %v8952_v57 = vsel %vm3223_vm15, %v8896_v38, %v8951_v30  ;;  %9560 = vmatprep.subr.bf16.mxu1 %v17852_v20 }
 0x52b   : > { %8967 = vrot.lane.b32.xlu0 %v8952_v57, %s11814_s28  ;;  %9727 = vmatpush1.bf16.msra.mxu0 %v11699_v28  ;;  %s11094_s28 = sshll.u32 %s11891_s13, 7  ;;  %s11751_s13 = scalar_lea.vmem %s11750_s14, 256 }
 0x52c   : > { %8984 = vrot.lane.b32.xlu1 %v8945_v48, %s11815_s29  ;;  %9728 = vmatprep.subr.bf16.mxu0 %v17852_v20  ;;  %s328_s29 = scalar_lea.vmem [#allocation2], %s10529_s27  ;;  %s10464_s21 = scalar_lea.hbm %s17468_s9, %s11094_s28 }
 0x52d   : > { %9561 = vmatpush1.bf16.msra.mxu1 %v11700_v7  ;;  %s10466_s17 = sshll.u32 %s328_s29, 4  ;;  %s10467_s17 = int_to_ptr.vmem [resolvable:$true] %s10466_s17 }
 0x52e   : > { %9562 = vmatprep.subr.bf16.mxu1 %v17852_v20  ;;  %s11745_s26 = scalar_lea.vmem %s10467_s17, 128  ;;  %p11752_p0 = scmp.lt.s32.totalorder %s10467_s17, %s11750_s14 }
 0x52f   : > { %9729 = vmatpush1.bf16.msra.mxu0 %v11701_v59  ;;  %p11746_p11 = scmp.ne.s32.totalorder %s10467_s17, %s11745_s26  ;;  %p11753_p1 = scmp.lt.s32.totalorder %s11751_s13, %s11745_s26 }
 0x530   : > { %9730 = vmatprep.subr.bf16.mxu0 %v17852_v20 }
 0x531   : > { %9563 = vmatpush1.bf16.msra.mxu1 %v11702_v47  ;;  %p11747_p12 = pnand %p11746_p11, %p11908_p5  ;;  %p11754_p2 = por %p11753_p1, %p11752_p0 }
 0x532   : > { %9564 = vmatprep.subr.bf16.mxu1 %v17852_v20 }
 0x533   : > { %9731 = vmatpush1.bf16.msra.mxu0 %v11703_v29  ;;  %p11748_p13 = pneg %p11747_p12 }
 0x534   : > { %9732 = vmatprep.subr.bf16.mxu0 %v17852_v20 }
 0x535   : > { %9565 = vmatpush1.bf16.msra.mxu1 %v11704_v8  ;;  %p11755_p3 = pnand %p11754_p2, %p11748_p13 }
 0x536   : > { %9566 = vmatprep.subr.bf16.mxu1 %v17852_v20 }
 0x537   : > { %9733 = vmatpush1.bf16.msra.mxu0 %v11705_v60 }
 0x538   : > { %9734 = vmatprep.subr.bf16.mxu0 %v17852_v20 }
 0x539   : > { %9567 = vmatpush1.bf16.msra.mxu1 %v11706_v45 }
 0x53a   : > { %9568 = vmatprep.subr.bf16.mxu1 %v17852_v20 }
 0x53b   : > { %9735 = vmatpush1.bf16.msra.mxu0 %v11707_v17 }
 0x53c   : > { %9736 = vmatprep.subr.bf16.mxu0 %v17852_v20 }
 0x53d   : > { %9569 = vmatpush1.bf16.msra.mxu1 %v11708_v14 }
 0x53e   : > { %9570 = vmatprep.subr.bf16.mxu1 %v17852_v20 }
 0x53f   : > { %9737 = vmatpush1.bf16.msra.mxu0 %v11709_v27 }
 0x540   : > { %9738 = vmatprep.subr.bf16.mxu0 %v17852_v20 }
 0x541   : > { %9571 = vmatpush1.bf16.msra.mxu1 %v11710_v32 }
 0x542   : > { %9572 = vmatprep.subr.bf16.mxu1 %v17852_v20 }
 0x543   : > { %9739 = vmatpush1.bf16.msra.mxu0 %v11711_v42 }
 0x544   : > { %9752 = vmatprep.subr.bf16.mxu0 %v17852_v20 }
 0x545   : > { %9573 = vmatpush1.bf16.msra.mxu1 %v11712_v22 }
 0x546   : > { %9586 = vmatprep.subr.bf16.mxu1 %v17852_v20 }
 0x547   : > { %9753 = vmatpush2.bf16.msra.mxu0 %v11713_v16 }
 0x548   : > { %9754 = vmatprep.subr.bf16.mxu0 %v17852_v20 }
 0x549   : > { %9587 = vmatpush2.bf16.msra.mxu1 %v11714_v13 }
 0x54a   : > { %9588 = vmatprep.subr.bf16.mxu1 %v17852_v20 }
 0x54b   : > { %9755 = vmatpush2.bf16.msra.mxu0 %v11715_v35 }
 0x54c   : > { %10307 = vmatprep.subr.bf16.mxu0 %v17852_v20 }
 0x54d   : > { %9589 = vmatpush2.bf16.msra.mxu1 %v11716_v2 }
 0x54e   : > { %10015 = vmatprep.subr.bf16.mxu1 %v17852_v20 }
 0x56d   : > { %v8956_v48 = vpop.permute.xlu1 %8955 }
 0x577   : > { %v8954_v43 = vpop.permute.xlu0 %8953 }
 0x578   : > { %v8970_v40 = vsel %vm8969_vm2, %v8954_v43, %v8956_v48 }
 0x57b   : > { %v8979_v9 = vpop.permute.xlu0 %8978 }
 0x57c   : > { %v8990_v15 = vsel %vm1191_vm8, %v8956_v48, %v8979_v9 }
 0x57d   : > { %v8999_v38 = vcombine.high %v8970_v40, %v8990_v15  ;;  %v8998_v10 = vcombine.low %v8970_v40, %v8990_v15 }
 0x57f   : > { %v9013_v30 = vrot.slane %v8999_v38, %v18657_v12  ;;  %v9006_v57 = vrot.slane %v8998_v10, %v18657_v12 }
 0x581   : > { %v9072_v61 = vrot.slane %v9013_v30, 1  ;;  %v9122_v28 = vmax.f32 %v16549_v56, %v9013_v30  ;;  %v9070_v7 = vrot.slane %v9006_v57, 1  ;;  %v9015_v47 = vcombine.high %v9013_v30, %v9013_v30 }
 0x582   : > { %v9118_v29 = vmax.f32 %v16533_v50, %v9006_v57  ;;  %v9014_v17 = vcombine.high %v9006_v57, %v9006_v57 }
 0x583   : > { %v9123_v8 = vmax.f32 %v16554_v24, %v9072_v61  ;;  %v9154_v60 = vmax.f32 %v9122_v28, 0.0  ;;  %v9119_v45 = vmax.f32 %v16535_v1, %v9070_v7  ;;  %v9073_v14 = vrot.slane %v9015_v47, 1 }
 0x584   : > { %v8958_v59 = vpop.permute.xlu1 %8957  ;;  %v9150_v27 = vmax.f32 %v9118_v29, 0.0  ;;  %v9071_v56 = vrot.slane %v9014_v17, 1  ;;  %v9120_v35 = vmax.f32 %v16543_v55, %v9014_v17  ;;  %v9124_v50 = vmax.f32 %v16556_v26, %v9015_v47 }
 0x585   : > { %v9155_v32 = vmax.f32 %v9123_v8, 0.0  ;;  %v9201_v42 = vrot.slane %v9154_v60, %v18654_v53  ;;  %v9151_v16 = vmax.f32 %v9119_v45, 0.0  ;;  %v9205_v2 = vrot.slane %v9154_v60, %v18659_v19 }
 0x586   : > { %v16959_v24 = vmax.f32 %v16565_v21, %v9073_v14  ;;  %v9193_v1 = vrot.slane %v9150_v27, %v18654_v53  ;;  %v9197_v55 = vrot.slane %v9150_v27, %v18659_v19  ;;  %v16969_v21 = vmax.f32 %v16545_v25, %v9071_v56 }
 0x587   : > { %v9272_v9 = vpack.c.bf16 %v9201_v42, %v9201_v42  ;;  %v9325_v48 = vrot.slane %v9155_v32, %v18654_v53  ;;  %v9329_v15 = vrot.slane %v9155_v32, %v18659_v19  ;;  %v9317_v38 = vrot.slane %v9151_v16, %v18654_v53 }
 0x588   : > { %v8981_v22 = vpop.permute.xlu1 %8980  ;;  %v16971_v30 = vmax.f32 %v9120_v35, 0.0  ;;  %v9273_v57 = vpack.c.bf16 %v9205_v2, %v9205_v2  ;;  %v16973_v61 = vmax.f32 %v9124_v50, 0.0  ;;  %v9321_v28 = vrot.slane %v9151_v16, %v18659_v19 }
 0x589   : > { %v17851_v47 = vmax.f32 %v16959_v24, 0.0  ;;  %v9396_v29 = vpack.c.bf16 %v9325_v48, %v9325_v48  ;;  %v9397_v8 = vpack.c.bf16 %v9329_v15, %v9329_v15  ;;  %v9616_v60 = vunpack.c.l.b16 %v9272_v9 }
 0x58a   : > { %v9270_v45 = vpack.c.bf16 %v9193_v1, %v9193_v1  ;;  %v9271_v17 = vpack.c.bf16 %v9197_v55, %v9197_v55  ;;  %v9394_v25 = vpack.c.bf16 %v9317_v38, %v9317_v38  ;;  %v9617_v27 = vunpack.c.l.b16 %v9273_v57 }
 0x58b   : > { %v8960_v13 = vpop.permute.xlu0 %8959  ;;  %v9779_v32 = vrot.slane %v16971_v30, %v18659_v19  ;;  %v17848_v16 = vmax.f32 %v16969_v21, 0.0  ;;  %v9787_v56 = vrot.slane %v16973_v61, %v18659_v19  ;;  %v9449_v2 = vunpack.c.l.b16 %v9396_v29 }
 0x58c   : > { %v8991_v43 = vsel %vm1191_vm8, %v8960_v13, %v8981_v22  ;;  %v8971_v40 = vsel %vm8969_vm2, %v8958_v59, %v8960_v13  ;;  %v9395_v13 = vpack.c.bf16 %v9321_v28, %v9321_v28  ;;  %v9450_v50 = vunpack.c.l.b16 %v9397_v8 }
 0x58d   : > { %v9016_v10 = vcombine.low %v8971_v40, %v8991_v43  ;;  %v9017_v26 = vcombine.high %v8971_v40, %v8991_v43  ;;  %v9630_v1 = vrot.slane %v9616_v60, 7  ;;  %v9447_v9 = vunpack.c.l.b16 %v9394_v25 }
 0x58e   : > { %v9614_v48 = vunpack.c.l.b16 %v9270_v45  ;;  %v9615_v15 = vunpack.c.l.b16 %v9271_v17  ;;  %v9644_v55 = vrot.slane %v9617_v27, 7  ;;  %v9853_v38 = vpack.c.bf16 %v9779_v32, %v9779_v32 }
 0x58f   : > { %v9024_v7 = vrot.slane %v9016_v10, %v18657_v12  ;;  %v9031_v59 = vrot.slane %v9017_v26, %v18657_v12  ;;  %v9448_v26 = vunpack.c.l.b16 %v9395_v13  ;;  %v9855_v57 = vpack.c.bf16 %v9787_v56, %v9787_v56 }
 0x590   : > { %v9463_v29 = vrot.slane %v9449_v2, 7  ;;  %v9477_v8 = vrot.slane %v9450_v50, 7  ;;  %v10071_v45 = vrot.slane %v17848_v16, %v18659_v19 }
 0x591   : > { %v9074_v14 = vrot.slane %v9024_v7, 1  ;;  %v9076_v42 = vrot.slane %v9031_v59, 1  ;;  %v9126_v22 = vmax.f32 %v16591_v37, %v9024_v7  ;;  %v9130_v35 = vmax.f32 %v16613_v34, %v9031_v59 }
 0x592   : > { %v10079_v37 = vrot.slane %v17851_v47, %v18659_v19  ;;  %v9032_v34 = vcombine.high %v9024_v7, %v9024_v7  ;;  %v9033_v17 = vcombine.high %v9031_v59, %v9031_v59  ;;  %v9906_v7 = vunpack.c.l.b16 %v9853_v38 }
 0x593   : > { %v9127_v43 = vmax.f32 %v16596_v18, %v9074_v14  ;;  %v9158_v40 = vmax.f32 %v9126_v22, 0.0  ;;  %v9131_v10 = vmax.f32 %v16625_v41, %v9076_v42  ;;  %v9162_v28 = vmax.f32 %v9130_v35, 0.0 }
 0x594   : > { %v16992_v18 = vsel %vm3211_vm9, %v9630_v1, %v9614_v48  ;;  %v17000_v41 = vsel %vm3211_vm9, %v9644_v55, %v9615_v15  ;;  %v10147_v27 = vpack.c.bf16 %v10079_v37, %v10079_v37  ;;  %v9908_v42 = vunpack.c.l.b16 %v9855_v57 }
 0x595   : > { %v9159_v60 = vmax.f32 %v9127_v43, 0.0  ;;  %v9209_v25 = vrot.slane %v9158_v40, %v18654_v53  ;;  %v9213_v14 = vrot.slane %v9158_v40, %v18659_v19  ;;  %v9163_v32 = vmax.f32 %v9131_v10, 0.0  ;;  %v8962_v35 = vpop.permute.xlu0 %8961 }
 0x596   : > { %v9075_v22 = vrot.slane %v9032_v34, 1  ;;  %v9217_v13 = vrot.slane %v9162_v28, %v18654_v53  ;;  %v9221_v56 = vrot.slane %v9162_v28, %v18659_v19  ;;  %v17005_v2 = vsel %vm3211_vm9, %v9463_v29, %v9447_v9 }
 0x597   : > { %v9128_v59 = vmax.f32 %v16598_v52, %v9032_v34  ;;  %v9333_v50 = vrot.slane %v9159_v60, %v18654_v53  ;;  %v9337_v1 = vrot.slane %v9159_v60, %v18659_v19  ;;  %v10145_v43 = vpack.c.bf16 %v10071_v45, %v10071_v45 }
 0x598   : > { %v9132_v48 = vmax.f32 %v16636_v49, %v9033_v17  ;;  %v9274_v15 = vpack.c.bf16 %v9209_v25, %v9209_v25  ;;  %v9275_v40 = vpack.c.bf16 %v9213_v14, %v9213_v14  ;;  %v10200_v55 = vunpack.c.l.b16 %v10147_v27 }
 0x599   : > { %v9077_v38 = vrot.slane %v9033_v17, 1  ;;  %v9341_v37 = vrot.slane %v9163_v32, %v18654_v53  ;;  %v9345_v10 = vrot.slane %v9163_v32, %v18659_v19  ;;  %v9935_v57 = vrot.slane %v9908_v42, 7  ;;  %v8983_v27 = vpop.permute.xlu0 %8982 }
 0x59a   : > { %v17014_v9 = vmax.f32 %v16604_v39, %v9075_v22  ;;  %v9276_v52 = vpack.c.bf16 %v9217_v13, %v9217_v13  ;;  %v9277_v34 = vpack.c.bf16 %v9221_v56, %v9221_v56  ;;  %v17017_v28 = vsel %vm3211_vm9, %v9477_v8, %v9448_v26  ;;  %v8964_v13 = vpop.permute.xlu1 %8963 }
 0x59b   : > { %v17019_v29 = vmax.f32 %v9128_v59, 0.0  ;;  %v9398_v49 = vpack.c.bf16 %v9333_v50, %v9333_v50  ;;  %v9399_v60 = vpack.c.bf16 %v9337_v1, %v9337_v1  ;;  %v10198_v45 = vunpack.c.l.b16 %v10145_v43 }
 0x59c   : > { %v17021_v25 = vmax.f32 %v9132_v48, 0.0  ;;  %v9618_v17 = vunpack.c.l.b16 %v9274_v15  ;;  %v9619_v14 = vunpack.c.l.b16 %v9275_v40  ;;  %v10227_v32 = vrot.slane %v10200_v55, 7 }
 0x59d   : > { %v17024_v42 = vmax.f32 %v16641_v46, %v9077_v38  ;;  %v9400_v39 = vpack.c.bf16 %v9341_v37, %v9341_v37  ;;  %v9401_v22 = vpack.c.bf16 %v9345_v10, %v9345_v10  ;;  %v17027_v26 = vsel %vm3211_vm9, %v9935_v57, %v9906_v7 }
 0x59e   : > { %v17850_v8 = vmax.f32 %v17014_v9, 0.0  ;;  %v9620_v56 = vunpack.c.l.b16 %v9276_v52  ;;  %v17030_v59 = vunpack.c.l.b16 %v9277_v34  ;;  %v9451_v50 = vunpack.c.l.b16 %v9398_v49 }
 0x59f   : > { %v17032_v1 = vunpack.c.l.b16 %v9399_v60  ;;  %v9795_v43 = vrot.slane %v17019_v29, %v18659_v19  ;;  %v8992_v46 = vsel %vm1191_vm8, %v8964_v13, %v8983_v27  ;;  %v9632_v48 = vrot.slane %v9618_v17, 6 }
 0x5a0   : > { %v9646_v15 = vrot.slane %v9619_v14, 6  ;;  %v9803_v40 = vrot.slane %v17021_v25, %v18659_v19  ;;  %v8972_v7 = vsel %vm8969_vm2, %v8962_v35, %v8964_v13  ;;  %v17849_v55 = vmax.f32 %v17024_v42, 0.0 }
 0x5a1   : > { %v9453_v38 = vunpack.c.l.b16 %v9400_v39  ;;  %v17041_v37 = vunpack.c.l.b16 %v9401_v22  ;;  %v17044_v10 = vsel %vm3211_vm9, %v10227_v32, %v10198_v45  ;;  %v9634_v57 = vrot.slane %v9620_v56, 5 }
 0x5a2   : > { %v9648_v52 = vrot.slane %v17030_v59, 5  ;;  %v10087_v34 = vrot.slane %v17850_v8, %v18659_v19  ;;  %v9034_v49 = vcombine.low %v8972_v7, %v8992_v46  ;;  %v9465_v60 = vrot.slane %v9451_v50, 6 }
 0x5a3   : > { %v9479_v17 = vrot.slane %v17032_v1, 6  ;;  %v9857_v35 = vpack.c.bf16 %v9795_v43, %v9795_v43  ;;  %v9035_v14 = vcombine.high %v8972_v7, %v8992_v46  ;;  %v9633_v27 = vsel %vm3213_vm10, %v9632_v48, %v16992_v18  ;;  %v8966_v48 = vpop.permute.xlu1 %8965 }
 0x5a4   : > { %v17055_v45 = vsel %vm3213_vm10, %v9646_v15, %v17000_v41  ;;  %v9859_v32 = vpack.c.bf16 %v9803_v40, %v9803_v40  ;;  %v9042_v39 = vrot.slane %v9034_v49, %v18657_v12  ;;  %v9467_v22 = vrot.slane %v9453_v38, 5 }
 0x5a5   : > { %v10095_v56 = vrot.slane %v17849_v55, %v18659_v19  ;;  %v9049_v50 = vrot.slane %v9035_v14, %v18657_v12  ;;  %v10149_v43 = vpack.c.bf16 %v10087_v34, %v10087_v34  ;;  %v17064_v41 = vunpack.c.l.b16 %v9857_v35 }
 0x5a6   : > { %v9050_v46 = vcombine.high %v9042_v39, %v9042_v39  ;;  %v9078_v7 = vrot.slane %v9042_v39, 1  ;;  %v9134_v18 = vmax.f32 %v16653_v11, %v9042_v39  ;;  %v9466_v49 = vsel %vm3213_vm10, %v9465_v60, %v17005_v2 }
 0x5a7   : > { %v9051_v15 = vcombine.high %v9049_v50, %v9049_v50  ;;  %v9080_v40 = vrot.slane %v9049_v50, 1  ;;  %v9138_v38 = vmax.f32 %v16682_v51, %v9049_v50  ;;  %v17069_v16 = vunpack.c.l.b16 %v9859_v32 }
 0x5a8   : > { %v9135_v55 = vmax.f32 %v16662_v58, %v9078_v7  ;;  %v9166_v14 = vmax.f32 %v9134_v18, 0.0  ;;  %v17073_v34 = vsel %vm3215_vm11, %v9634_v57, %v9633_v27  ;;  %v9079_v8 = vrot.slane %v9050_v46, 1 }
 0x5a9   : > { %v9139_v11 = vmax.f32 %v16731_v62, %v9080_v40  ;;  %v9170_v35 = vmax.f32 %v9138_v38, 0.0  ;;  %v10151_v39 = vpack.c.bf16 %v10095_v56, %v10095_v56  ;;  %v9081_v47 = vrot.slane %v9051_v15, 1  ;;  %v8968_v56 = vpop.permute.xlu0 %8967 }
 0x5aa   : > { %v9167_v20 = vmax.f32 %v9135_v55, 0.0  ;;  %v9225_v51 = vrot.slane %v9166_v14, %v18654_v53  ;;  %v17078_v50 = vsel %vm3215_vm11, %v9467_v22, %v9466_v49  ;;  %v9937_v2 = vrot.slane %v17064_v41, 6  ;;  %v8985_v55 = vpop.permute.xlu1 %8984 }
 0x5ab   : > { %v17081_v60 = vunpack.c.l.b16 %v10149_v43  ;;  %v9171_v58 = vmax.f32 %v9139_v11, 0.0  ;;  %v9136_v27 = vmax.f32 %v16664_v23, %v9050_v46  ;;  %v9229_v62 = vrot.slane %v9166_v14, %v18659_v19 }
 0x5ac   : > { %v9233_v32 = vrot.slane %v9170_v35, %v18654_v53  ;;  %v17088_v7 = vmax.f32 %v16670_v5, %v9079_v8  ;;  %v9140_v22 = vmax.f32 %v16753_v44, %v9051_v15  ;;  %v9237_v18 = vrot.slane %v9170_v35, %v18659_v19 }
 0x5ad   : > { %v9349_v43 = vrot.slane %v9167_v20, %v18654_v53  ;;  %v17093_v41 = vunpack.c.l.b16 %v10151_v39  ;;  %v17096_v40 = vmax.f32 %v16760_v54, %v9081_v47  ;;  %v9278_v23 = vpack.c.bf16 %v9225_v51, %v9225_v51 }
 0x5ae   : > { %v9353_v46 = vrot.slane %v9167_v20, %v18659_v19  ;;  %v9357_v49 = vrot.slane %v9171_v58, %v18654_v53  ;;  %v8973_v5 = vsel %vm8969_vm2, %v8966_v48, %v8968_v56  ;;  %v8993_v44 = vsel %vm1191_vm8, %v8968_v56, %v8985_v55 }
 0x5af   : > { %v17103_v8 = vmax.f32 %v9136_v27, 0.0  ;;  %v9279_v15 = vpack.c.bf16 %v9229_v62, %v9229_v62  ;;  %v9280_v14 = vpack.c.bf16 %v9233_v32, %v9233_v32  ;;  %v9361_v11 = vrot.slane %v9171_v58, %v18659_v19 }
 0x5b0   : > { %v17855_v54 = vmax.f32 %v17088_v7, 0.0  ;;  %v17107_v47 = vmax.f32 %v9140_v22, 0.0  ;;  %v9281_v35 = vpack.c.bf16 %v9237_v18, %v9237_v18  ;;  %v9402_v20 = vpack.c.bf16 %v9349_v43, %v9349_v43 }
 0x5b1   : > { %v17854_v51 = vmax.f32 %v17096_v40, 0.0  ;;  %v9403_v38 = vpack.c.bf16 %v9353_v46, %v9353_v46  ;;  %v9622_v48 = vunpack.c.l.b16 %v9278_v23  ;;  %v9404_v57 = vpack.c.bf16 %v9357_v49, %v9357_v49 }
 0x5b2   : > { %v9052_v56 = vcombine.low %v8973_v5, %v8993_v44  ;;  %v9053_v27 = vcombine.high %v8973_v5, %v8993_v44  ;;  %v17115_v58 = vsel %vm3215_vm11, %v9648_v52, %v17055_v45  ;;  %v9405_v62 = vpack.c.bf16 %v9361_v11, %v9361_v11 }
 0x5b3   : > { %v17117_v32 = vunpack.c.l.b16 %v9279_v15  ;;  %v17119_v55 = vunpack.c.l.b16 %v9280_v14  ;;  %v9811_v22 = vrot.slane %v17103_v8, %v18659_v19  ;;  %v17123_v18 = vunpack.c.l.b16 %v9402_v20 }
 0x5b4   : > { %v17125_v43 = vunpack.c.l.b16 %v9281_v35  ;;  %v9819_v23 = vrot.slane %v17107_v47, %v18659_v19  ;;  %v10103_v59 = vrot.slane %v17855_v54, %v18659_v19  ;;  %v17132_v52 = vunpack.c.l.b16 %v9403_v38 }
 0x5b5   : > { %v9636_v45 = vrot.slane %v9622_v48, 4  ;;  %v9861_v46 = vpack.c.bf16 %v9811_v22, %v9811_v22  ;;  %v10111_v49 = vrot.slane %v17854_v51, %v18659_v19  ;;  %v17137_v5 = vunpack.c.l.b16 %v9404_v57 }
 0x5b6   : > { %v9863_v44 = vpack.c.bf16 %v9819_v23, %v9819_v23  ;;  %v10153_v15 = vpack.c.bf16 %v10103_v59, %v10103_v59  ;;  %v9060_v14 = vrot.slane %v9052_v56, %v18657_v12  ;;  %v9650_v11 = vrot.slane %v17117_v32, 4 }
 0x5b7   : > { %v9067_v35 = vrot.slane %v9053_v27, %v18657_v12  ;;  %v17146_v38 = vsel %vm3213_vm10, %v9479_v17, %v17017_v28  ;;  %v17150_v20 = vsel %vm3213_vm10, %v9937_v2, %v17027_v26  ;;  %v17152_v57 = vunpack.c.l.b16 %v9405_v62 }
 0x5b8   : > { %v9638_v48 = vrot.slane %v17119_v55, 3  ;;  %v9652_v56 = vrot.slane %v17125_v43, 3  ;;  %v17156_v22 = vunpack.c.l.b16 %v9861_v46  ;;  %v17162_v28 = vsel %vm3217_vm12, %v9636_v45, %v17073_v34 }
 0x5b9   : > { %v10155_v1 = vpack.c.bf16 %v10111_v49, %v10111_v49  ;;  %v17165_v17 = vunpack.c.l.b16 %v9863_v44  ;;  %v17167_v2 = vunpack.c.l.b16 %v10153_v15  ;;  %v9068_v62 = vcombine.high %v9060_v14, %v9060_v14 }
 0x5ba   : > { %v9069_v32 = vcombine.high %v9067_v35, %v9067_v35  ;;  %v9082_v23 = vrot.slane %v9060_v14, 1  ;;  %v9084_v59 = vrot.slane %v9067_v35, 1  ;;  %v9142_v46 = vmax.f32 %v16733_v36, %v9060_v14 }
 0x5bb   : > { %v9083_v39 = vrot.slane %v9068_v62, 1  ;;  %v9146_v34 = vmax.f32 %v16747_v33, %v9067_v35  ;;  %v17173_v45 = vunpack.c.l.b16 %v10155_v1  ;;  %v9144_v44 = vmax.f32 %v16741_v0, %v9068_v62 }
 0x5bc   : > { %v9143_v49 = vmax.f32 %v16739_v6, %v9082_v23  ;;  %v9147_v15 = vmax.f32 %v16757_v63, %v9084_v59  ;;  %v9174_v36 = vmax.f32 %v9142_v46, 0.0  ;;  %v9085_v51 = vrot.slane %v9069_v32, 1 }
 0x5bd   : > { %v9178_v14 = vmax.f32 %v9146_v34, 0.0  ;;  %v9148_v54 = vmax.f32 %v16806_v4, %v9069_v32  ;;  %v17182_v33 = vmax.f32 %v16745_v31, %v9083_v39  ;;  %v17187_v35 = vmax.f32 %v9144_v44, 0.0 }
 0x5be   : > { %v9175_v27 = vmax.f32 %v9143_v49, 0.0  ;;  %v9179_v13 = vmax.f32 %v9147_v15, 0.0  ;;  %v9241_v6 = vrot.slane %v9174_v36, %v18654_v53  ;;  %v9245_v0 = vrot.slane %v9174_v36, %v18659_v19 }
 0x5bf   : > { %v9249_v63 = vrot.slane %v9178_v14, %v18654_v53  ;;  %v9253_v1 = vrot.slane %v9178_v14, %v18659_v19  ;;  %v17194_v39 = vmax.f32 %v16822_v3, %v9085_v51  ;;  %v17196_v14 = vmax.f32 %v9148_v54, 0.0 }
 0x5c0   : > { %v9365_v62 = vrot.slane %v9175_v27, %v18654_v53  ;;  %v9369_v23 = vrot.slane %v9175_v27, %v18659_v19  ;;  %v9282_v4 = vpack.c.bf16 %v9241_v6, %v9241_v6  ;;  %v9283_v32 = vpack.c.bf16 %v9245_v0, %v9245_v0 }
 0x5c1   : > { %v9284_v59 = vpack.c.bf16 %v9249_v63, %v9249_v63  ;;  %v9373_v31 = vrot.slane %v9179_v13, %v18654_v53  ;;  %v9285_v46 = vpack.c.bf16 %v9253_v1, %v9253_v1  ;;  %v9827_v27 = vrot.slane %v17187_v35, %v18659_v19 }
 0x5c2   : > { %v9406_v34 = vpack.c.bf16 %v9365_v62, %v9365_v62  ;;  %v9407_v49 = vpack.c.bf16 %v9369_v23, %v9369_v23  ;;  %v9626_v44 = vunpack.c.l.b16 %v9282_v4  ;;  %v9627_v36 = vunpack.c.l.b16 %v9283_v32 }
 0x5c3   : > { %v9408_v15 = vpack.c.bf16 %v9373_v31, %v9373_v31  ;;  %v9628_v12 = vunpack.c.l.b16 %v9284_v59  ;;  %v9651_v6 = vsel %vm3217_vm12, %v9650_v11, %v17115_v58  ;;  %v9177_v1 = vmax.f32 %v17182_v33, 0.0  ;;  %v11726_v33 = vld [vmem:[%s17464_s5 + $0xb8] sm:$0xff]  }
 0x5c4   : > { %v9459_v26 = vunpack.c.l.b16 %v9406_v34  ;;  %v9460_v0 = vunpack.c.l.b16 %v9407_v49  ;;  %v9640_v51 = vrot.slane %v9626_v44, 2  ;;  %v9654_v63 = vrot.slane %v9627_v36, 2 }
 0x5c5   : > { %v9461_v3 = vunpack.c.l.b16 %v9408_v15  ;;  %v9181_v62 = vmax.f32 %v17194_v39, 0.0  ;;  %v9642_v23 = vrot.slane %v9628_v12, 1  ;;  %v9865_v4 = vpack.c.bf16 %v9827_v27, %v9827_v27  ;;  %v11728_v39 = vld [vmem:[%s17464_s5 + $0xb0] sm:$0xff]  }
 0x5c6   : > { %v9473_v32 = vrot.slane %v9459_v26, 2  ;;  %v9629_v59 = vunpack.c.l.b16 %v9285_v46  ;;  %v9653_v31 = vsel %vm3219_vm13, %v9652_v56, %v9651_v6  ;;  %v9639_v11 = vsel %vm3219_vm13, %v9638_v48, %v17162_v28 }
 0x5c7   : > { %v9475_v54 = vrot.slane %v9461_v3, 1  ;;  %v9918_v34 = vunpack.c.l.b16 %v9865_v4  ;;  %v9655_v58 = vsel %vm3221_vm14, %v9654_v63, %v9653_v31  ;;  %v9377_v49 = vrot.slane %v9179_v13, %v18659_v19 }
 0x5c8   : > { %v9656_v15 = vrot.slane %v9629_v59, 1  ;;  %v9641_v12 = vsel %vm3221_vm14, %v9640_v51, %v9639_v11  ;;  %v18660_v26 = vrot.slane %v17041_v37, 5  ;;  %v9487_v46 = vrot.slane %v9460_v0, 2 }
 0x5c9   : > { %v9643_v56 = vsel %vm3223_vm15, %v9642_v23, %v9641_v12  ;;  %v9409_v44 = vpack.c.bf16 %v9377_v49, %v9377_v49  ;;  %v18661_v36 = vrot.slane %v17132_v52, 4  ;;  %v18662_v48 = vrot.slane %v17123_v18, 4  ;;  %v11717_v52 = vld [vmem:[%s17464_s5 + $0x128] sm:$0xff]  }
 0x5ca   : > { %v9482_v43 = vsel %vm3215_vm11, %v18660_v26, %v17146_v38  ;;  %v10119_v28 = vrot.slane %v9177_v1, %v18659_v19  ;;  %v9657_v37 = vsel %vm3223_vm15, %v9656_v15, %v9655_v58  ;;  %v9658_v38 = vpack.c.b16 %v9643_v56, %v9643_v56 }
 0x5cb   : > { %v9484_v55 = vsel %vm3217_vm12, %v18661_v36, %v9482_v43  ;;  %v9470_v13 = vsel %vm3217_vm12, %v18662_v48, %v17078_v50  ;;  %v18663_v27 = vrot.slane %v17137_v5, 3  ;;  %v9659_v0 = vpack.c.b16 %v9657_v37, %v9657_v37 }
 0x5cc   : > { %v9462_v3 = vunpack.c.l.b16 %v9409_v44  ;;  %v18664_v18 = vrot.slane %v17152_v57, 3  ;;  %v9835_v5 = vrot.slane %v17196_v14, %v18659_v19  ;;  %v18665_v4 = vrot.slane %v17069_v16, 5 }
 0x5cd   : > { %v9472_v6 = vsel %vm3219_vm13, %v18663_v27, %v9470_v13  ;;  %11023 = vmatprep.mubr.msk.bf16.mxu0 %vm9554_vm3, %v9659_v0  ;;  %v18666_v57 = vrot.slane %v17156_v22, 4  ;;  %v10157_v15 = vpack.c.bf16 %v10119_v28, %v10119_v28  ;;  %v18667_v16 = vrot.slane %v17081_v60, 6 }
 0x5ce   : > { %v9486_v50 = vsel %vm3219_vm13, %v18664_v18, %v9484_v55  ;;  %v9474_v51 = vsel %vm3221_vm14, %v9473_v32, %v9472_v6  ;;  %v9940_v59 = vsel %vm3215_vm11, %v18665_v4, %v17150_v20  ;;  %v9489_v31 = vrot.slane %v9462_v3, 1  ;;  %9757 = vmatmul.mubr.bf16.vlgmr.msra.gmra.mxu0 %v9658_v38 }
 0x5cf   : > { %v9488_v63 = vsel %vm3221_vm14, %v9487_v46, %v9486_v50  ;;  %v9476_v23 = vsel %vm3223_vm15, %v9475_v54, %v9474_v51  ;;  %v9942_v58 = vsel %vm3217_vm12, %v18666_v57, %v9940_v59  ;;  %v9945_v32 = vrot.slane %v9918_v34, 2  ;;  %10308 = vmatpush1.bf16.msra.mxu0 %v11717_v52  ;;  %v11719_v46 = vld [vmem:[%s17464_s5 + $0x120] sm:$0xff]  }
 0x5d0   : > { %v10127_v54 = vrot.slane %v9181_v62, %v18659_v19  ;;  %v9491_v11 = vpack.c.b16 %v9476_v23, %v9476_v23  ;;  %v9867_v49 = vpack.c.bf16 %v9835_v5, %v9835_v5  ;;  %v10230_v20 = vsel %vm3213_vm10, %v18667_v16, %v17044_v10  ;;  %v11718_v10 = vld [vmem:[%s17464_s5 + $0xd8] sm:$0xff]   ;;  %v11723_v5 = vld [vmem:[%s17464_s5 + $0x110] sm:$0xff]  }
 0x5d1   : > { %v9490_v12 = vsel %vm3223_vm15, %v9489_v31, %v9488_v63  ;;  %v18668_v22 = vrot.slane %v17165_v17, 3  ;;  %v18669_v43 = vrot.slane %v17093_v41, 5  ;;  %v18670_v44 = vmov 0  }
 0x5d2   : > { %v10159_v26 = vpack.c.bf16 %v10127_v54, %v10127_v54  ;;  %v9492_v56 = vpack.c.b16 %v9490_v12, %v9490_v12  ;;  %v9920_v60 = vunpack.c.l.b16 %v9867_v49  ;;  %10309 = vmatprep.subr.bf16.mxu0 %v18670_v44  ;;  %v10210_v17 = vunpack.c.l.b16 %v10157_v15  ;;  %v11725_v49 = vld [vmem:[%s17464_s5 + $0x108] sm:$0xff]  }
 0x5d3   : > { %v9944_v34 = vsel %vm3219_vm13, %v18668_v22, %v9942_v58  ;;  %v10232_v19 = vsel %vm3215_vm11, %v18669_v43, %v10230_v20  ;;  %v18671_v36 = vrot.slane %v17167_v2, 4  ;;  %v10235_v13 = vrot.slane %v17173_v45, 3  ;;  %10310 = vmatpush1.bf16.msra.mxu0 %v11719_v46  ;;  %v11721_v2 = vld [vmem:[%s17464_s5 + $0x118] sm:$0xff]   ;;  %v11720_v45 = vld [vmem:[%s17464_s5 + $0xd0] sm:$0xff]  }
 0x5d4   : > { %v9946_v41 = vsel %vm3221_vm14, %v9945_v32, %v9944_v34  ;;  %v10212_v48 = vunpack.c.l.b16 %v10159_v26  ;;  %11012 = vmatprep.mubr.msk.bf16.mxu1 %vm9554_vm3, %v9492_v56  ;;  %v9947_v28 = vrot.slane %v9920_v60, 1  ;;  %v10237_v37 = vrot.slane %v10210_v17, 2  ;;  %10311 = vmatprep.subr.bf16.mxu0 %v18670_v44 }
 0x5d5   : > { %v10234_v55 = vsel %vm3217_vm12, %v18671_v36, %v10232_v19  ;;  %9591 = vmatmul.mubr.bf16.vlgmr.msra.gmra.mxu1 %v9491_v11  ;;  %v18672_v52 = vmax.f32 %v16959_v24, 0.0  ;;  %v18673_v51 = vmax.f32 %v17014_v9, 0.0  ;;  %v9783_v24 = vrot.slane %v16973_v61, %v18654_v53  ;;  %v11722_v9 = vld [vmem:[%s17464_s5 + $0xc8] sm:$0xff]   ;;  %v11727_v19 = vld [vmem:[%s17464_s5 + $0x100] sm:$0xff]  }
 0x5d6   : > { %v10236_v38 = vsel %vm3219_vm13, %v10235_v13, %v10234_v55  ;;  %v10239_v27 = vrot.slane %v10212_v48, 1  ;;  %10016 = vmatpush1.bf16.msra.mxu1 %v11718_v10  ;;  %v9948_v6 = vsel %vm3223_vm15, %v9947_v28, %v9946_v41  ;;  %v18674_v4 = vmax.f32 %v17024_v42, 0.0 }
 0x5d7   : > { %v10238_v0 = vsel %vm3221_vm14, %v10237_v37, %v10236_v38  ;;  %v10075_v3 = vrot.slane %v18672_v52, %v18654_v53  ;;  %v9950_v18 = vpack.c.b16 %v9948_v6, %v9948_v6  ;;  %10017 = vmatprep.subr.bf16.mxu1 %v18670_v44  ;;  %v10083_v63 = vrot.slane %v18673_v51, %v18654_v53 }
 0x5d8   : > { %v10240_v50 = vsel %vm3223_vm15, %v10239_v27, %v10238_v0  ;;  %10312 = vmatpush1.bf16.msra.mxu0 %v11721_v2  ;;  %v10091_v59 = vrot.slane %v18674_v4, %v18654_v53  ;;  %v18675_v61 = vmax.f32 %v17088_v7, 0.0  ;;  %v9775_v42 = vrot.slane %v16971_v30, %v18654_v53  ;;  %v11724_v30 = vld [vmem:[%s17464_s5 + $0xc0] sm:$0xff]   ;;  %v11730_v4 = vld [vmem:[%s17464_s5 + $0xa8] sm:$0xff]  }
 0x5d9   : > { %v10242_v23 = vpack.c.b16 %v10240_v50, %v10240_v50  ;;  %11054 = vmatprep.mubr.msk.bf16.mxu1 %vm9554_vm3, %v9950_v18  ;;  %v10146_v31 = vpack.c.bf16 %v10075_v3, %v10075_v3  ;;  %10313 = vmatprep.subr.bf16.mxu0 %v18670_v44  ;;  %v10148_v57 = vpack.c.bf16 %v10083_v63, %v10083_v63  ;;  %v18676_v32 = vmax.f32 %v16969_v21, 0.0 }
 0x5da   : > { %10018 = vmatpush1.bf16.msra.mxu1 %v11720_v45  ;;  %v10099_v58 = vrot.slane %v18675_v61, %v18654_v53  ;;  %v9791_v11 = vrot.slane %v17019_v29, %v18654_v53  ;;  %v9854_v15 = vpack.c.bf16 %v9783_v24, %v9783_v24  ;;  %v9799_v7 = vrot.slane %v17021_v25, %v18654_v53 }
 0x5db   : > { %11085 = vmatprep.mubr.msk.bf16.mxu0 %vm9554_vm3, %v10242_v23  ;;  %10019 = vmatprep.subr.bf16.mxu1 %v18670_v44  ;;  %v10067_v54 = vrot.slane %v18676_v32, %v18654_v53  ;;  %v10150_v16 = vpack.c.bf16 %v10091_v59, %v10091_v59  ;;  %v10199_v21 = vunpack.c.l.b16 %v10146_v31  ;;  %v18677_v29 = vmax.f32 %v17096_v40, 0.0 }
 0x5dc   : > { %10314 = vmatpush1.bf16.msra.mxu0 %v11723_v5  ;;  %v10201_v12 = vunpack.c.l.b16 %v10148_v57  ;;  %v10152_v22 = vpack.c.bf16 %v10099_v58, %v10099_v58  ;;  %v10115_v25 = vrot.slane %v9177_v1, %v18654_v53  ;;  %v9856_v26 = vpack.c.bf16 %v9791_v11, %v9791_v11  ;;  %v11731_v5 = vld [vmem:[%s17464_s5 + $0xf0] sm:$0xff]  }
 0x5dd   : > { %10315 = vmatprep.subr.bf16.mxu0 %v18670_v44  ;;  %v10107_v20 = vrot.slane %v18677_v29, %v18654_v53  ;;  %v10144_v34 = vpack.c.bf16 %v10067_v54, %v10067_v54  ;;  %v9807_v43 = vrot.slane %v17103_v8, %v18654_v53  ;;  %v9852_v40 = vpack.c.bf16 %v9775_v42, %v9775_v42  ;;  %v11733_v54 = vld [vmem:[%s17464_s5 + $0x138] sm:$0xff]  }
 0x5de   : > { %10020 = vmatpush1.bf16.msra.mxu1 %v11722_v9  ;;  %v9907_v46 = vunpack.c.l.b16 %v9854_v15  ;;  %v9858_v56 = vpack.c.bf16 %v9799_v7, %v9799_v7  ;;  %v10203_v10 = vunpack.c.l.b16 %v10150_v16  ;;  %v10213_v1 = vrot.slane %v10199_v21, 7 }
 0x5df   : > { %10021 = vmatprep.subr.bf16.mxu1 %v18670_v44  ;;  %v9815_v8 = vrot.slane %v17107_v47, %v18654_v53  ;;  %v10154_v60 = vpack.c.bf16 %v10107_v20, %v10107_v20  ;;  %v10123_v17 = vrot.slane %v9181_v62, %v18654_v53  ;;  %v10215_v36 = vrot.slane %v10201_v12, 6  ;;  %v11729_v47 = vld [vmem:[%s17464_s5 + $0xf8] sm:$0xff]   ;;  %v11735_v20 = vld [vmem:[%s17464_s5 + $0x130] sm:$0xff]  }
 0x5e0   : > { %10316 = vmatpush1.bf16.msra.mxu0 %v11725_v49  ;;  %v10205_v55 = vunpack.c.l.b16 %v10152_v22  ;;  %v10156_v41 = vpack.c.bf16 %v10115_v25, %v10115_v25  ;;  %v10197_v48 = vunpack.c.l.b16 %v10144_v34  ;;  %v9909_v13 = vunpack.c.l.b16 %v9856_v26  ;;  %v11732_v49 = vld [vmem:[%s17464_s5 + $0xa0] sm:$0xff]   ;;  %v11734_v25 = vld [vmem:[%s17464_s5 + $0xe8] sm:$0xff]  }
 0x5e1   : > { %10317 = vmatprep.subr.bf16.mxu0 %v18670_v44  ;;  %v9860_v28 = vpack.c.bf16 %v9807_v43, %v9807_v43  ;;  %v9823_v37 = vrot.slane %v17187_v35, %v18654_v53  ;;  %v9905_v38 = vunpack.c.l.b16 %v9852_v40  ;;  %v9921_v27 = vrot.slane %v9907_v46, 7  ;;  %v11736_v40 = vld [vmem:[%s17464_s5 + $0xe0] sm:$0xff]  }
 0x5e2   : > { %10022 = vmatpush1.bf16.msra.mxu1 %v11724_v30  ;;  %v9911_v2 = vunpack.c.l.b16 %v9858_v56  ;;  %v10217_v6 = vrot.slane %v10203_v10, 5  ;;  %v9862_v62 = vpack.c.bf16 %v9815_v8, %v9815_v8  ;;  %v10207_v0 = vunpack.c.l.b16 %v10154_v60  ;;  %v11739_v60 = vld [vmem:[%s17466_s7 + $0x8] sm:$0xff]  }
 0x5e3   : > { %10023 = vmatprep.subr.bf16.mxu1 %v18670_v44  ;;  %v10158_v35 = vpack.c.bf16 %v10123_v17, %v10123_v17  ;;  %v10214_v45 = vsel %vm3211_vm9, %v10213_v1, %v10197_v48  ;;  %v10219_v52 = vrot.slane %v10205_v55, 4  ;;  %v10209_v3 = vunpack.c.l.b16 %v10156_v41  ;;  %v11740_v17 = vld [vmem:[%s17466_s7] sm:$0xff]  }
 0x5e4   : > { %10318 = vmatpush1.bf16.msra.mxu0 %v11727_v19  ;;  %v10216_v18 = vsel %vm3213_vm10, %v10215_v36, %v10214_v45  ;;  %v9831_v50 = vrot.slane %v17196_v14, %v18654_v53  ;;  %v9923_v51 = vrot.slane %v9909_v13, 6  ;;  %v9913_v63 = vunpack.c.l.b16 %v9860_v28 }
 0x5e5   : > { %10319 = vmatprep.subr.bf16.mxu0 %v18670_v44  ;;  %v9864_v23 = vpack.c.bf16 %v9823_v37, %v9823_v37  ;;  %v9922_v24 = vsel %vm3211_vm9, %v9921_v27, %v9905_v38  ;;  %v9925_v59 = vrot.slane %v9911_v2, 5  ;;  %v10211_v53 = vunpack.c.l.b16 %v10158_v35  ;;  %v11086_v35 = vld [vmem:[%s17465_s6] ss:$0 sm:$0xff] }
 0x5e6   : > { %10024 = vmatpush1.bf16.msra.mxu1 %v11726_v33  ;;  %v10218_v14 = vsel %vm3215_vm11, %v10217_v6, %v10216_v18  ;;  %v10221_v9 = vrot.slane %v10207_v0, 3  ;;  %v9915_v31 = vunpack.c.l.b16 %v9862_v62  ;;  %v10223_v61 = vrot.slane %v10209_v3, 2  ;;  %v11737_v33 = vld [vmem:[%s17466_s7 + $0x18] ss:$0 sps:$4 sm:$0x11]  }
 0x5e7   : > { %10025 = vmatprep.subr.bf16.mxu1 %v18670_v44  ;;  %v10220_v57 = vsel %vm3217_vm12, %v10219_v52, %v10218_v14  ;;  %v9866_v58 = vpack.c.bf16 %v9831_v50, %v9831_v50  ;;  %v9927_v42 = vrot.slane %v9913_v63, 4  ;;  %v9917_v32 = vunpack.c.l.b16 %v9864_v23  ;;  %v11087_v23 = vld [vmem:[%s17467_s8] ss:$0 sm:$0xff] }
 0x5e8   : > { %10320 = vmatpush1.bf16.msra.mxu0 %v11729_v47  ;;  %v9924_v11 = vsel %vm3213_vm10, %v9923_v51, %v9922_v24  ;;  %v10222_v15 = vsel %vm3219_vm13, %v10221_v9, %v10220_v57  ;;  %v10225_v7 = vrot.slane %v10211_v53, 1  ;;  %v9929_v16 = vrot.slane %v9915_v31, 3 }
 0x5e9   : > { %10321 = vmatprep.subr.bf16.mxu0 %v18670_v44  ;;  %v10224_v30 = vsel %vm3221_vm14, %v10223_v61, %v10222_v15  ;;  %v9919_v21 = vunpack.c.l.b16 %v9866_v58  ;;  %v9926_v29 = vsel %vm3215_vm11, %v9925_v59, %v9924_v11  ;;  %v9931_v22 = vrot.slane %v9917_v32, 2 }
 0x5ea   : > { %10026 = vmatpush1.bf16.msra.mxu1 %v11728_v39  ;;  %v9928_v12 = vsel %vm3217_vm12, %v9927_v42, %v9926_v29  ;;  %v10226_v34 = vsel %vm3223_vm15, %v10225_v7, %v10224_v30  ;;  %v11817_v1 = vmov 0.0   ;;  %v10399_v8 = vsel %vm10397_vm4, %v11737_v33, 0 }
 0x5eb   : > { %10027 = vmatprep.subr.bf16.mxu1 %v18670_v44  ;;  %v9930_v26 = vsel %vm3219_vm13, %v9929_v16, %v9928_v12  ;;  %v9933_v43 = vrot.slane %v9919_v21, 1  ;;  %v10241_v46 = vpack.c.b16 %v10226_v34, %v10226_v34 }
 0x5ec   : > { %10322 = vmatpush1.bf16.msra.mxu0 %v11731_v5  ;;  %v9932_v19 = vsel %vm3221_vm14, %v9931_v22, %v9930_v26 }
 0x5ed   : > { %10335 = vmatprep.subr.bf16.mxu0 %v18670_v44  ;;  %v9934_v56 = vsel %vm3223_vm15, %v9933_v43, %v9932_v19 }
 0x5ee   : > { %10028 = vmatpush1.bf16.msra.mxu1 %v11730_v4  ;;  %v9949_v10 = vpack.c.b16 %v9934_v56, %v9934_v56 }
 0x5ef   : > { %10029 = vmatprep.subr.bf16.mxu1 %v18670_v44 }
 0x5f0   : > { %10336 = vmatpush2.bf16.msra.mxu0 %v11733_v54 }
 0x5f1   : > { %10337 = vmatprep.subr.bf16.mxu0 %v18670_v44 }
 0x5f2   : > { %10030 = vmatpush1.bf16.msra.mxu1 %v11732_v49 }
 0x5f3   : > { %10043 = vmatprep.subr.bf16.mxu1 %v18670_v44 }
 0x5f4   : > { %10338 = vmatpush2.bf16.msra.mxu0 %v11735_v20 }
 0x5f6   : > { %10044 = vmatpush2.bf16.msra.mxu1 %v11734_v25 }
 0x5f7   : > { %10045 = vmatprep.subr.bf16.mxu1 %v18670_v44  ;;  %10340 = vmatmul.mubr.bf16.vlgmr.msra.gmra.mxu0 %v10241_v46  ;;  %v11738_v44 = vld [vmem:[%s17466_s7 + $0x10] sm:$0xff]  }
 0x5fa   : > { %10046 = vmatpush2.bf16.msra.mxu1 %v11736_v40 }
 0x5fb   : > { %11142 = vmatprep.subr.bf16.mxu1 %v11817_v1 }
 0x5fd   : > { %10048 = vmatmul.mubr.bf16.vlgmr.msra.gmra.mxu1 %v9949_v10 }
 0x5fe   : > { %11143 = vmatpush3.bf16.msra.mxu1 %v10399_v8  ;;  %11150 = vmatprep.mubr.msk.bf16.mxu1 %vm11818_vm5, %v11817_v1 }
 0x5ff   : > { %11144 = vmatprep.subr.bf16.mxu1 %v11817_v1 }
 0x602   : > { %11145 = vmatpush3.bf16.msra.mxu1 %v11738_v44 }
 0x603   : > { %11146 = vmatprep.subr.bf16.mxu1 %v11817_v1 }
 0x606   : > { %11147 = vmatpush3.bf16.msra.mxu1 %v11739_v60 }
 0x607   : > { %11148 = vmatprep.subr.bf16.mxu1 %v11817_v1 }
 0x60a   : > { %11149 = vmatpush3.bf16.msra.mxu1 %v11740_v17 }
 0x68e   : > { %v9758_v36 = vpop.f32.mrf.mxu0 }
 0x690   : > { %v9760_v55 = vpop.f32.mrf.mxu0 }
 0x692   : > { %v9761_v41 = vpop.f32.mrf.mxu0 }
 0x694   : > { %v9762_v13 = vpop.f32.mrf.mxu0 }
 0x695   : > { %v9592_v48 = vpop.f32.mrf.mxu1 }
 0x696   : > { %v9759_v2 = vadd.f32 %v9758_v36, %v9592_v48 }
 0x697   : > { %v9594_v28 = vpop.f32.mrf.mxu1 }
 0x699   : > { %v9595_v37 = vpop.f32.mrf.mxu1 }
 0x69b   : > { %v9596_v47 = vpop.f32.mrf.mxu1 }
 0x6b7   : > { %v10341_v38 = vpop.f32.mrf.mxu0 }
 0x6b9   : > { %v10343_v27 = vpop.f32.mrf.mxu0 }
 0x6bb   : > { %v10344_v6 = vpop.f32.mrf.mxu0 }
 0x6bd   : > { %v10049_v39 = vpop.f32.mrf.mxu1  ;;  %v10345_v0 = vpop.f32.mrf.mxu0 }
 0x6be   : > { %v10055_v62 = vadd.f32 %v10049_v39, %v9759_v2 }
 0x6bf   : > { %v10051_v45 = vpop.f32.mrf.mxu1 }
 0x6c0   : > { %v10347_v52 = vadd.f32 %v10341_v38, %v10055_v62 }
 0x6c1   : > { %v10052_v3 = vpop.f32.mrf.mxu1 }
 0x6c2   : > { %v10355_v18 = vadd.f32 %v11086_v35, %v10347_v52 }
 0x6c3   : > { %v10053_v50 = vpop.f32.mrf.mxu1 }
 0x6c4   : > { %v10356_v51 = vmax.f32 %v10355_v18, 0.0 }
 0x6c6   : > { %v10357_v63 = vpack.c.bf16 %v10356_v51, %v10356_v51 }
 0x6c8   : > { %11151 = vmatmul.mubr.msk.bf16.vlgmr.msra.gmra.mxu1 %vm10393_vm6, %v10357_v63 }
 0x788   : > { %v10435_v5 = vpop.f32.mrf.mxu1 }
 0x789   : > { %v10436_v24 = vadd.f32 %v11087_v23, %v10435_v5 }
 0x78a   : > { %v11152_v4 = vpop.f32.mrf.mxu1 }
 0x78b   : > { %10441 = vmax.xlane.f32.xlu0 %v10436_v24 }
 0x78c   : > { %v10438_v59 = vpop.f32.mrf.mxu1 }
 0x78e   : > { %v11153_v53 = vpop.f32.mrf.mxu1 }
 0x814   : > { %v10442_v14 = vpop.xlane.xlu0 %10441 }
 0x815   : > { %v10443_v9 = vsub.f32 %v10436_v24, %v10442_v14 }
 0x817   : > { %v10444_v31 = vmul.f32 1.442695, %v10443_v9 }
 0x819   : > { %11741 = vpow2.f32 %v10444_v31 }
 0x826   : > { %v11742_v57 = vpop.eup %11741 }
 0x827   : > { %10446 = vadd.xlane.f32.xlu1 %v11742_v57 }
 0x8b0   : > { %v10447_v61 = vpop.xlane.xlu1 %10446 }
 0x8b1   : > { %11743 = vlog2.f32 %v10447_v61 }
 0x8be   : > { %v11744_v58 = vpop.eup %11743 }
 0x8bf   : > { %v10449_v42 = vmul.f32 0.6931472, %v11744_v58 }
 0x8c1   : > { %v10450_v32 = vsub.f32 %v10443_v9, %v10449_v42 }
 0x8c3   : > { %10451 = vst [vmem:[%s328_s29] sm:$0xff] %v10450_v32 }
 0x8c4   : > { %11758 = shalt.err (!%p11755_p3)
}
 0x8c5   : > { %s11759_s27 = scalar_lea.hbm %s10464_s21, 128  ;;  %s11763_s29 = scalar_lea.hbm %s17468_s9, 256 }
 0x8c6   : > { %p11760_p4 = scmp.ne.s32.totalorder %s10464_s21, %s11759_s27  ;;  %p11764_p9 = scmp.lt.s32.totalorder %s10464_s21, %s17468_s9 }
 0x8c7   : > { %p11765_p10 = scmp.lt.s32.totalorder %s11763_s29, %s11759_s27 }
 0x8c8   : > { %p11761_p7 = pnand %p11760_p4, %p11908_p5 }
 0x8c9   : > { %p11766_p11 = por %p11765_p10, %p11764_p9 }
 0x8ca   : > { %p11762_p8 = pneg %p11761_p7 }
 0x8cc   : > { %p11767_p12 = pnand %p11766_p11, %p11762_p8 }
 0x8ce   : > { %11770 = shalt.err (!%p11767_p12)
}
 0x8cf   : > { %11154 = dma.vmem_to_hbm [thread:$0]  (%p11908_p5), %s10467_s17, 128, %s10464_s21, %s10453_s25  }
 0x8d0 PF: > { %p11160_p13 = scmp.ge.s32.totalorder %s11805_s12, 2  ;;  %s10478_s26 = sand.u32 1, %s11793_s30  }
 0x8d1   : > { %s10479_s24 = scalar_lea.sflag [#allocation3], %s10478_s26 }
 0x8d2   : > { %p11157_p0 = pnand %p11160_p13, %p11912_p6 }
 0x8d4   : > { %p11158_p1 = pneg %p11157_p0 }
 0x8d6   : > { %11788 = dma.done.wait (%p11158_p1), %s10479_s24, 128  }
 0x8d7   : > { %11790 = vsyncadd (%p11158_p1), %s10479_s24, 4294967168  ;;  %p19_p2 = scmp.ge.s32.totalorder %s11895_s15, 4   ;;  %s18678_s30 = smov %s11797_s10 }
 0x8d8   : > { %s18679_s10 = smov %s11801_s11  ;;  %s18680_s11 = smov %s11906_s18 }
 0x8d9   : > { %s18681_s12 = smov %s11895_s15  ;;  %21 = sbr.rel (!%p19_p2) target bundleno = 3 (0x3), region = 98 }
 0x8de   :  { %10484 = vsyncpa [#allocation3], 1 }
 0x8df   :  { %10486 = vsyncpa [#allocation3 + $0x1], 1 }

</bundles_post_ra>
